<compile_context>
chip_gen: v7x
topology: tpu7x:2x2x1
jax: 0.10.0
libtpu: 0.0.40
codegen_flags: <defaults>
</compile_context>

<pallas_src>
import jax
import jax.numpy as jnp
from jax.experimental import pallas as pl
from jax.experimental.pallas import tpu as pltpu


# ----------------------------------------------------------------------------
# Fixed mini-model geometry (input 32x32x3):
#   stem 3x3/s2 : 32x32x3  -> 16x16x16
#   block 1     : 16x16x16 -> 16x16x16 (dw3x3/s1 + SE + project + residual)
#   block 2     : 16x16x16 -> 8x8x24   (expand x6 + dw3x3/s2 + SE + project)
#   head 1x1    : 8x8x24   -> 8x8x64
# ----------------------------------------------------------------------------
H0 = 16                 # stem output spatial extent
WP1 = H0 + 2            # 18: block-1 SAME-padded width (pad 1 each side)
R1_OUT = WP1 * WP1      # 324: rows computed by kernel 1 (padded-flat grid)
R1_IN = 368             # 324 + tap slack (max offset 2*18+2=38), rounded to x8
H1 = 8                  # block-2 output spatial extent
WP2 = 9                 # per-phase width for the stride-2 depthwise conv
R2_OUT = WP2 * WP2      # 81
R2_IN = 96              # 81 + tap slack (max offset 10), rounded to x8
CPAD = 128              # expanded/head channels padded to 128 (lane-dense)


# ----------------------------------------------------------------------------
# Pallas kernels (grid = (N,), one image per grid step, both marked "parallel")
# ----------------------------------------------------------------------------

def _stem_block1_kernel(
        taps_ref,                       # (1, R1_IN, 27)  bf16: stem im2col taps, padded-flat coords
        padmask_ref,                    # (R1_IN, 1)  f32: 1 at interior rows of the 18x18 grid
        vmask_ref,                      # (R1_OUT, 1) f32: 1 at the 256 valid output rows
        wstem_ref, stem_s_ref, stem_b_ref,
        dw1_ref, dw1_s_ref, dw1_b_ref,
        se1_w1_ref, se1_b1_ref, se1_w2_ref, se1_b2_ref,
        pr1_w_ref, pr1_s_ref, pr1_b_ref,
        ex_w_ref, ex_s_ref, ex_b_ref,
        e_ref):                         # (1, R1_OUT, CPAD) bf16: block-2 expanded activation
    f32 = jnp.float32

    # --- stem conv: 9 taps folded into the contraction dim -> one MXU dot, BN, swish
    t = taps_ref[0].astype(f32)                                   # (R1_IN, 27)
    s = jnp.dot(t, wstem_ref[...], preferred_element_type=f32)    # (R1_IN, 16)
    s = s * stem_s_ref[...] + stem_b_ref[...]
    s = s * jax.nn.sigmoid(s)
    # zero the SAME-padding border rows (and slack rows) of the padded-flat grid
    sp = s * padmask_ref[...]                                     # (R1_IN, 16)

    # --- block-1 depthwise 3x3 / s1: in-register tap slices (no im2col), BN, swish
    wd = dw1_ref[...]                                             # (9, 16)
    acc = jnp.zeros((R1_OUT, sp.shape[1]), f32)
    for ki in range(3):
        for kj in range(3):
            d = ki * WP1 + kj
            w_row = wd[ki * 3 + kj: ki * 3 + kj + 1, :]           # (1, 16)
            acc = acc + sp[d: d + R1_OUT, :] * w_row
    y = acc * dw1_s_ref[...] + dw1_b_ref[...]
    y = y * jax.nn.sigmoid(y)                                     # (R1_OUT, 16)

    # --- squeeze-excite, fused (mean over the 256 valid output positions only)
    m = jnp.sum(y * vmask_ref[...], axis=0, keepdims=True) * (1.0 / (H0 * H0))
    h = jnp.dot(m, se1_w1_ref[...], preferred_element_type=f32) + se1_b1_ref[...]
    h = h * jax.nn.sigmoid(h)
    g = jax.nn.sigmoid(jnp.dot(h, se1_w2_ref[...], preferred_element_type=f32)
                       + se1_b2_ref[...])
    y = y * g

    # --- project 1x1 + BN (no act) + residual add, all resident in VMEM
    pj = jnp.dot(y, pr1_w_ref[...], preferred_element_type=f32)
    pj = pj * pr1_s_ref[...] + pr1_b_ref[...]
    out1 = pj + sp[WP1 + 1: WP1 + 1 + R1_OUT, :]                  # identity skip

    # --- block-2 expand 1x1 + BN + swish (Cout 96 padded to 128 for lane density)
    e = jnp.dot(out1, ex_w_ref[...], preferred_element_type=f32)
    e = e * ex_s_ref[...] + ex_b_ref[...]
    e = e * jax.nn.sigmoid(e)
    e_ref[0] = e.astype(e_ref.dtype)


def _block2_head_kernel(
        ph_ref,                         # (1, 4*R2_IN, CPAD) bf16: 4 stride-phases, flattened
        vmask_ref,                      # (R2_OUT, 1) f32: 1 at the 64 valid output rows
        dw2_ref, dw2_s_ref, dw2_b_ref,
        se2_w1_ref, se2_b1_ref, se2_w2_ref, se2_b2_ref,
        pr2_w_ref, pr2_s_ref, pr2_b_ref,
        hd_w_ref, hd_s_ref, hd_b_ref,
        o_ref):                         # (1, R2_OUT, CPAD) f32
    f32 = jnp.float32
    ph = ph_ref[0].astype(f32)                                    # (4*R2_IN, CPAD)
    wd = dw2_ref[...]                                             # (9, CPAD)

    # --- block-2 depthwise 3x3 / s2 via even/odd phase decomposition, BN, swish
    acc = jnp.zeros((R2_OUT, ph.shape[1]), f32)
    for ki in range(3):
        for kj in range(3):
            base = ((ki % 2) * 2 + (kj % 2)) * R2_IN + (ki // 2) * WP2 + (kj // 2)
            w_row = wd[ki * 3 + kj: ki * 3 + kj + 1, :]           # (1, CPAD)
            acc = acc + ph[base: base + R2_OUT, :] * w_row
    y = acc * dw2_s_ref[...] + dw2_b_ref[...]
    y = y * jax.nn.sigmoid(y)                                     # (R2_OUT, CPAD)

    # --- squeeze-excite (mean over the 64 valid output positions only)
    m = jnp.sum(y * vmask_ref[...], axis=0, keepdims=True) * (1.0 / (H1 * H1))
    h = jnp.dot(m, se2_w1_ref[...], preferred_element_type=f32) + se2_b1_ref[...]
    h = h * jax.nn.sigmoid(h)
    g = jax.nn.sigmoid(jnp.dot(h, se2_w2_ref[...], preferred_element_type=f32)
                       + se2_b2_ref[...])
    y = y * g

    # --- project 1x1 + BN (no act)
    pj = jnp.dot(y, pr2_w_ref[...], preferred_element_type=f32)
    pj = pj * pr2_s_ref[...] + pr2_b_ref[...]

    # --- conv head 1x1 + BN + swish (Cout 64 padded to 128; sliced in the wrapper)
    o = jnp.dot(pj, hd_w_ref[...], preferred_element_type=f32)
    o = o * hd_s_ref[...] + hd_b_ref[...]
    o = o * jax.nn.sigmoid(o)
    o_ref[0] = o.astype(o_ref.dtype)


# ----------------------------------------------------------------------------
# pallas_call wrappers
# ----------------------------------------------------------------------------

def _wspec(arr):
    shape = arr.shape
    return pl.BlockSpec(shape, lambda n: (0,) * len(shape))   # resident, no re-DMA


_PARALLEL = pltpu.CompilerParams(dimension_semantics=("parallel",))


def _run_stem_block1(taps, pad_mask, vmask, weights):
    n = taps.shape[0]
    return pl.pallas_call(
        _stem_block1_kernel,
        out_shape=jax.ShapeDtypeStruct((n, R1_OUT, CPAD), jnp.bfloat16),
        grid=(n,),
        in_specs=[pl.BlockSpec((1, R1_IN, 27), lambda i: (i, 0, 0)),
                  _wspec(pad_mask), _wspec(vmask)]
                 + [_wspec(w) for w in weights],
        out_specs=pl.BlockSpec((1, R1_OUT, CPAD), lambda i: (i, 0, 0)),
        compiler_params=_PARALLEL,
    )(taps, pad_mask, vmask, *weights)


def _run_block2_head(phases, vmask, weights):
    n = phases.shape[0]
    return pl.pallas_call(
        _block2_head_kernel,
        out_shape=jax.ShapeDtypeStruct((n, R2_OUT, CPAD), jnp.float32),
        grid=(n,),
        in_specs=[pl.BlockSpec((1, 4 * R2_IN, CPAD), lambda i: (i, 0, 0)),
                  _wspec(vmask)]
                 + [_wspec(w) for w in weights],
        out_specs=pl.BlockSpec((1, R2_OUT, CPAD), lambda i: (i, 0, 0)),
        compiler_params=_PARALLEL,
    )(phases, vmask, *weights)


# ----------------------------------------------------------------------------
# JAX glue: TF-"SAME" tap extraction (stem only) + layout plumbing
# ----------------------------------------------------------------------------

def _extract_taps(x, K, stride):
    # x: (N, H, W, C) NHWC -> (N, K*K, Ho*Wo, C)
    N, H, W, C = x.shape
    Ho = -(-H // stride)
    Wo = -(-W // stride)
    ph = max((Ho - 1) * stride + K - H, 0)
    pw = max((Wo - 1) * stride + K - W, 0)
    xp = jnp.pad(x, ((0, 0), (ph // 2, ph - ph // 2), (pw // 2, pw - pw // 2), (0, 0)))
    taps = [xp[:, ki:ki + stride * (Ho - 1) + 1:stride,
               kj:kj + stride * (Wo - 1) + 1:stride, :]
            for ki in range(K) for kj in range(K)]
    taps = jnp.stack(taps, axis=1)                          # (N, K*K, Ho, Wo, C)
    return taps.reshape(N, K * K, Ho * Wo, C), Ho, Wo


def _prep_params(p):
    """Reshape conv weights to matmul form; pad expanded/head channels to CPAD."""
    def padc(w):
        return jnp.pad(w, ((0, 0), (0, CPAD - w.shape[1])))
    def padr(w):
        return jnp.pad(w, ((0, CPAD - w.shape[0]), (0, 0)))

    w1 = (
        p["stem_w"].reshape(27, 16), p["stem_s"], p["stem_b"],
        p["b1_dw_w"].reshape(9, 16), p["b1_dw_s"], p["b1_dw_b"],
        p["b1_se_w1"], p["b1_se_b1"], p["b1_se_w2"], p["b1_se_b2"],
        p["b1_pr_w"].reshape(16, 16), p["b1_pr_s"], p["b1_pr_b"],
        padc(p["b2_ex_w"].reshape(16, 96)), padc(p["b2_ex_s"]), padc(p["b2_ex_b"]),
    )
    w2 = (
        padc(p["b2_dw_w"].reshape(9, 96)), padc(p["b2_dw_s"]), padc(p["b2_dw_b"]),
        padr(p["b2_se_w1"]), p["b2_se_b1"], padc(p["b2_se_w2"]), padc(p["b2_se_b2"]),
        padr(p["b2_pr_w"].reshape(96, 24)), p["b2_pr_s"], p["b2_pr_b"],
        padc(p["head_w"].reshape(24, 64)), padc(p["head_s"]), padc(p["head_b"]),
    )
    return w1, w2


def _masks():
    q = jnp.arange(R1_IN)
    a, b = q // WP1, q % WP1
    pad_mask = ((a >= 1) & (a <= H0) & (b >= 1) & (b <= H0)).astype(jnp.float32)[:, None]
    qo = jnp.arange(R1_OUT)
    vmask1 = (((qo % WP1) < H0) & (qo < H0 * WP1)).astype(jnp.float32)[:, None]
    q2 = jnp.arange(R2_OUT)
    vmask2 = (((q2 % WP2) < H1) & (q2 < H1 * WP2)).astype(jnp.float32)[:, None]
    return pad_mask, vmask1, vmask2


# ----------------------------------------------------------------------------
# Deterministic synthetic parameters (eval-mode BN folded into scale/bias)
# ----------------------------------------------------------------------------

def init_params(seed=0):
    key = jax.random.PRNGKey(seed)
    cnt = [0]

    def nk():
        cnt[0] += 1
        return jax.random.fold_in(key, cnt[0])

    def conv_w(K, cin, cout):
        fan_in = float(K * K * cin)
        return jax.random.normal(nk(), (K, K, cin, cout), jnp.float32) / jnp.sqrt(fan_in)

    def dw_w(K, c):
        return jax.random.normal(nk(), (K, K, c), jnp.float32) / float(K * K)

    def fc(cin, cout):
        w = jax.random.normal(nk(), (cin, cout), jnp.float32) / jnp.sqrt(float(cin))
        b = 0.1 * jax.random.normal(nk(), (1, cout), jnp.float32)
        return w, b

    def bn(c):
        gamma = 1.0 + 0.1 * jax.random.normal(nk(), (c,), jnp.float32)
        beta = 0.1 * jax.random.normal(nk(), (c,), jnp.float32)
        mean = 0.1 * jax.random.normal(nk(), (c,), jnp.float32)
        var = 1.0 + 0.1 * jnp.abs(jax.random.normal(nk(), (c,), jnp.float32))
        s = gamma / jnp.sqrt(var + 1e-3)
        b = beta - mean * s
        return s.reshape(1, c), b.reshape(1, c)

    p = {}
    p["stem_w"] = conv_w(3, 3, 16); p["stem_s"], p["stem_b"] = bn(16)
    p["b1_dw_w"] = dw_w(3, 16); p["b1_dw_s"], p["b1_dw_b"] = bn(16)
    p["b1_se_w1"], p["b1_se_b1"] = fc(16, 4)
    p["b1_se_w2"], p["b1_se_b2"] = fc(4, 16)
    p["b1_pr_w"] = conv_w(1, 16, 16); p["b1_pr_s"], p["b1_pr_b"] = bn(16)
    p["b2_ex_w"] = conv_w(1, 16, 96); p["b2_ex_s"], p["b2_ex_b"] = bn(96)
    p["b2_dw_w"] = dw_w(3, 96); p["b2_dw_s"], p["b2_dw_b"] = bn(96)
    p["b2_se_w1"], p["b2_se_b1"] = fc(96, 4)
    p["b2_se_w2"], p["b2_se_b2"] = fc(4, 96)
    p["b2_pr_w"] = conv_w(1, 96, 24); p["b2_pr_s"], p["b2_pr_b"] = bn(24)
    p["head_w"] = conv_w(1, 24, 64); p["head_s"], p["head_b"] = bn(64)
    return p


# ----------------------------------------------------------------------------
# Forward pass == EfficientNet.extract_features
# ----------------------------------------------------------------------------

@jax.jit
def efficientnet_extract_features(x_nchw, p):
    w1, w2 = _prep_params(p)
    pad_mask, vmask1, vmask2 = _masks()

    x = jnp.transpose(x_nchw, (0, 2, 3, 1))                  # NCHW -> NHWC (N,32,32,3)
    n = x.shape[0]

    # stem im2col: taps folded into the contraction dim and laid out in the
    # padded-flat (18x18) coordinates consumed by block-1's depthwise conv.
    taps, ho, wo = _extract_taps(x, 3, 2)                    # (N, 9, 256, 3)
    taps = jnp.transpose(taps, (0, 2, 1, 3)).reshape(n, ho, wo, 27)
    taps = jnp.pad(taps, ((0, 0), (1, 1), (1, 1), (0, 0)))   # SAME pad of the stem-output grid
    taps = taps.reshape(n, WP1 * WP1, 27)
    taps = jnp.pad(taps, ((0, 0), (0, R1_IN - WP1 * WP1), (0, 0)))
    taps = taps.astype(jnp.bfloat16)                         # halve DMA bytes

    # kernel 1: stem + MBConv-1 (dw + SE + project + residual) + MBConv-2 expand
    e = _run_stem_block1(taps, pad_mask, vmask1, w1)         # (N, 324, 128) bf16
    e = e.reshape(n, WP1, WP1, CPAD)[:, :H0, :H0, :]         # valid 16x16 positions
    # SAME pad for the stride-2 depthwise conv, then even/odd phase decomposition
    e = jnp.pad(e, ((0, 0), (0, 2), (0, 2), (0, 0)))         # (N, 18, 18, 128)
    phases = jnp.stack([e[:, a::2, b::2, :] for a in range(2) for b in range(2)], axis=1)
    phases = phases.reshape(n, 4, WP2 * WP2, CPAD)
    phases = jnp.pad(phases, ((0, 0), (0, 0), (0, R2_IN - WP2 * WP2), (0, 0)))
    phases = phases.reshape(n, 4 * R2_IN, CPAD)

    # kernel 2: MBConv-2 (dw/s2 + SE + project) + conv head
    o = _run_block2_head(phases, vmask2, w2)                 # (N, 81, 128) f32
    o = o.reshape(n, WP2, WP2, CPAD)[:, :H1, :H1, :64]
    return jnp.transpose(o, (0, 3, 1, 2))                    # NHWC -> NCHW (N, 64, 8, 8)


# ----------------------------------------------------------------------------
# Pure-JAX reference (op-by-op), used only to validate the fused kernels
# ----------------------------------------------------------------------------

def _reference_extract_features(x_nchw, p):
    def conv(x, w, s, b, stride, act):
        n = x.shape[0]
        K, _, cin, cout = w.shape
        taps, ho, wo = _extract_taps(x, K, stride)
        y = jnp.einsum("ntpc,tcd->npd", taps, w.reshape(K * K, cin, cout))
        y = y * s + b
        if act:
            y = y * jax.nn.sigmoid(y)
        return y.reshape(n, ho, wo, cout)

    def dwconv(x, w, s, b, stride):
        n = x.shape[0]
        K = w.shape[0]
        c = x.shape[-1]
        taps, ho, wo = _extract_taps(x, K, stride)
        y = jnp.einsum("ntpc,tc->npc", taps, w.reshape(K * K, c))
        y = y * s + b
        y = y * jax.nn.sigmoid(y)
        return y.reshape(n, ho, wo, c)

    def se(x, w1, b1, w2, b2):
        m = jnp.mean(x, axis=(1, 2))
        h = m @ w1 + b1
        h = h * jax.nn.sigmoid(h)
        g = jax.nn.sigmoid(h @ w2 + b2)
        return x * g[:, None, None, :]

    x = jnp.transpose(x_nchw, (0, 2, 3, 1))
    x = conv(x, p["stem_w"], p["stem_s"], p["stem_b"], 2, True)
    h = dwconv(x, p["b1_dw_w"], p["b1_dw_s"], p["b1_dw_b"], 1)
    h = se(h, p["b1_se_w1"], p["b1_se_b1"], p["b1_se_w2"], p["b1_se_b2"])
    h = conv(h, p["b1_pr_w"], p["b1_pr_s"], p["b1_pr_b"], 1, False)
    x = x + h
    h = conv(x, p["b2_ex_w"], p["b2_ex_s"], p["b2_ex_b"], 1, True)
    h = dwconv(h, p["b2_dw_w"], p["b2_dw_s"], p["b2_dw_b"], 2)
    h = se(h, p["b2_se_w1"], p["b2_se_b1"], p["b2_se_w2"], p["b2_se_b2"])
    x = conv(h, p["b2_pr_w"], p["b2_pr_s"], p["b2_pr_b"], 1, False)
    x = conv(x, p["head_w"], p["head_s"], p["head_b"], 1, True)
    return jnp.transpose(x, (0, 3, 1, 2))


if __name__ == "__main__":
    key = jax.random.PRNGKey(0)
    x = jax.random.normal(key, (2, 3, 32, 32), jnp.float32)  # NCHW, like torch
    params = init_params(seed=0)

    feats = efficientnet_extract_features(x, params)
    feats = jax.block_until_ready(feats)

    assert feats.shape == (2, 64, 8, 8), feats.shape
    assert bool(jnp.all(jnp.isfinite(feats)))

    ref = _reference_extract_features(x, params)
    err = float(jnp.max(jnp.abs(feats - ref)))
    # loose tolerance: the two large inter-kernel activation tensors are bf16
    assert err < 1e-1, f"max abs error vs reference: {err}"

    print("KERNEL_OK")
</pallas_src>

<mosaic_0001>
module attributes {stable_mosaic.version = 11 : i64} {
  func.func @_stem_block1_kernel(%arg0: i32, %arg1: memref<1x368x27xbf16, #tpu.memory_space<vmem>>, %arg2: memref<368x1xf32, #tpu.memory_space<vmem>>, %arg3: memref<324x1xf32, #tpu.memory_space<vmem>>, %arg4: memref<27x16xf32, #tpu.memory_space<vmem>>, %arg5: memref<1x16xf32, #tpu.memory_space<vmem>>, %arg6: memref<1x16xf32, #tpu.memory_space<vmem>>, %arg7: memref<9x16xf32, #tpu.memory_space<vmem>>, %arg8: memref<1x16xf32, #tpu.memory_space<vmem>>, %arg9: memref<1x16xf32, #tpu.memory_space<vmem>>, %arg10: memref<16x4xf32, #tpu.memory_space<vmem>>, %arg11: memref<1x4xf32, #tpu.memory_space<vmem>>, %arg12: memref<4x16xf32, #tpu.memory_space<vmem>>, %arg13: memref<1x16xf32, #tpu.memory_space<vmem>>, %arg14: memref<16x16xf32, #tpu.memory_space<vmem>>, %arg15: memref<1x16xf32, #tpu.memory_space<vmem>>, %arg16: memref<1x16xf32, #tpu.memory_space<vmem>>, %arg17: memref<16x128xf32, #tpu.memory_space<vmem>>, %arg18: memref<1x128xf32, #tpu.memory_space<vmem>>, %arg19: memref<1x128xf32, #tpu.memory_space<vmem>>, %arg20: memref<1x324x128xbf16, #tpu.memory_space<vmem>>) attributes {dimension_semantics = [#tpu.dimension_semantics<parallel>], iteration_bounds = array<i64: 2>, scalar_prefetch = 0 : i64, scratch_operands = 0 : i64, tpu.core_type = #tpu.core_type<tc>, window_params = [{transform_indices = @transform_0, window_bounds = array<i64: 1, 368, 27>}, {pipeline_mode = #tpu.pipeline_mode<synchronous>, transform_indices = @transform_1, window_bounds = array<i64: 368, 1>}, {pipeline_mode = #tpu.pipeline_mode<synchronous>, transform_indices = @transform_2, window_bounds = array<i64: 324, 1>}, {pipeline_mode = #tpu.pipeline_mode<synchronous>, transform_indices = @transform_3, window_bounds = array<i64: 27, 16>}, {pipeline_mode = #tpu.pipeline_mode<synchronous>, transform_indices = @transform_4, window_bounds = array<i64: 1, 16>}, {pipeline_mode = #tpu.pipeline_mode<synchronous>, transform_indices = @transform_5, window_bounds = array<i64: 1, 16>}, {pipeline_mode = #tpu.pipeline_mode<synchronous>, transform_indices = @transform_6, window_bounds = array<i64: 9, 16>}, {pipeline_mode = #tpu.pipeline_mode<synchronous>, transform_indices = @transform_7, window_bounds = array<i64: 1, 16>}, {pipeline_mode = #tpu.pipeline_mode<synchronous>, transform_indices = @transform_8, window_bounds = array<i64: 1, 16>}, {pipeline_mode = #tpu.pipeline_mode<synchronous>, transform_indices = @transform_9, window_bounds = array<i64: 16, 4>}, {pipeline_mode = #tpu.pipeline_mode<synchronous>, transform_indices = @transform_10, window_bounds = array<i64: 1, 4>}, {pipeline_mode = #tpu.pipeline_mode<synchronous>, transform_indices = @transform_11, window_bounds = array<i64: 4, 16>}, {pipeline_mode = #tpu.pipeline_mode<synchronous>, transform_indices = @transform_12, window_bounds = array<i64: 1, 16>}, {pipeline_mode = #tpu.pipeline_mode<synchronous>, transform_indices = @transform_13, window_bounds = array<i64: 16, 16>}, {pipeline_mode = #tpu.pipeline_mode<synchronous>, transform_indices = @transform_14, window_bounds = array<i64: 1, 16>}, {pipeline_mode = #tpu.pipeline_mode<synchronous>, transform_indices = @transform_15, window_bounds = array<i64: 1, 16>}, {pipeline_mode = #tpu.pipeline_mode<synchronous>, transform_indices = @transform_16, window_bounds = array<i64: 16, 128>}, {pipeline_mode = #tpu.pipeline_mode<synchronous>, transform_indices = @transform_17, window_bounds = array<i64: 1, 128>}, {pipeline_mode = #tpu.pipeline_mode<synchronous>, transform_indices = @transform_18, window_bounds = array<i64: 1, 128>}, {transform_indices = @transform_19, window_bounds = array<i64: 1, 324, 128>}]} {
    %c0 = arith.constant 0 : index
    %c0_0 = arith.constant 0 : index
    %c0_1 = arith.constant 0 : index
    %0 = vector.load %arg1[%c0, %c0_0, %c0_1] : memref<1x368x27xbf16, #tpu.memory_space<vmem>>, vector<1x368x27xbf16>
    %1 = vector.shape_cast %0 : vector<1x368x27xbf16> to vector<368x27xbf16>
    %2 = arith.extf %1 : vector<368x27xbf16> to vector<368x27xf32>
    %c0_2 = arith.constant 0 : index
    %c0_3 = arith.constant 0 : index
    %3 = vector.load %arg4[%c0_2, %c0_3] : memref<27x16xf32, #tpu.memory_space<vmem>>, vector<27x16xf32>
    %cst = arith.constant dense<0.000000e+00> : vector<368x16xf32>
    %4 = tpu.matmul %2, %3, %cst {dimension_numbers = #tpu.dot_dimension_numbers<[1], [0], [0], [1], [0, 0, 1, 1], [], []>} : vector<368x27xf32>, vector<27x16xf32>, vector<368x16xf32> -> vector<368x16xf32>
    %c0_4 = arith.constant 0 : index
    %c0_5 = arith.constant 0 : index
    %5 = vector.load %arg5[%c0_4, %c0_5] : memref<1x16xf32, #tpu.memory_space<vmem>>, vector<1x16xf32>
    %6 = vector.broadcast %5 : vector<1x16xf32> to vector<368x16xf32>
    %7 = arith.mulf %4, %6 : vector<368x16xf32>
    %c0_6 = arith.constant 0 : index
    %c0_7 = arith.constant 0 : index
    %8 = vector.load %arg6[%c0_6, %c0_7] : memref<1x16xf32, #tpu.memory_space<vmem>>, vector<1x16xf32>
    %9 = vector.broadcast %8 : vector<1x16xf32> to vector<368x16xf32>
    %10 = arith.addf %7, %9 : vector<368x16xf32>
    %11 = arith.negf %10 : vector<368x16xf32>
    %12 = math.exp %11 : vector<368x16xf32>
    %cst_8 = arith.constant 1.000000e+00 : f32
    %13 = vector.broadcast %cst_8 : f32 to vector<368x16xf32>
    %14 = arith.addf %13, %12 : vector<368x16xf32>
    %15 = arith.divf %13, %14 : vector<368x16xf32>
    %16 = arith.mulf %10, %15 : vector<368x16xf32>
    %c0_9 = arith.constant 0 : index
    %c0_10 = arith.constant 0 : index
    %17 = vector.load %arg2[%c0_9, %c0_10] : memref<368x1xf32, #tpu.memory_space<vmem>>, vector<368x1xf32>
    %18 = vector.broadcast %17 : vector<368x1xf32> to vector<368x16xf32>
    %19 = arith.mulf %16, %18 : vector<368x16xf32>
    %c0_11 = arith.constant 0 : index
    %c0_12 = arith.constant 0 : index
    %20 = vector.load %arg7[%c0_11, %c0_12] : memref<9x16xf32, #tpu.memory_space<vmem>>, vector<9x16xf32>
    %cst_13 = arith.constant 0.000000e+00 : f32
    %21 = vector.broadcast %cst_13 : f32 to vector<324x16xf32>
    %22 = vector.extract_strided_slice %20 {offsets = [0, 0], sizes = [1, 16], strides = [1, 1]} : vector<9x16xf32> to vector<1x16xf32>
    %23 = vector.extract_strided_slice %19 {offsets = [0, 0], sizes = [324, 16], strides = [1, 1]} : vector<368x16xf32> to vector<324x16xf32>
    %24 = vector.broadcast %22 : vector<1x16xf32> to vector<324x16xf32>
    %25 = arith.mulf %23, %24 : vector<324x16xf32>
    %26 = arith.addf %21, %25 : vector<324x16xf32>
    %27 = vector.extract_strided_slice %20 {offsets = [1, 0], sizes = [1, 16], strides = [1, 1]} : vector<9x16xf32> to vector<1x16xf32>
    %28 = vector.extract_strided_slice %19 {offsets = [1, 0], sizes = [324, 16], strides = [1, 1]} : vector<368x16xf32> to vector<324x16xf32>
    %29 = vector.broadcast %27 : vector<1x16xf32> to vector<324x16xf32>
    %30 = arith.mulf %28, %29 : vector<324x16xf32>
    %31 = arith.addf %26, %30 : vector<324x16xf32>
    %32 = vector.extract_strided_slice %20 {offsets = [2, 0], sizes = [1, 16], strides = [1, 1]} : vector<9x16xf32> to vector<1x16xf32>
    %33 = vector.extract_strided_slice %19 {offsets = [2, 0], sizes = [324, 16], strides = [1, 1]} : vector<368x16xf32> to vector<324x16xf32>
    %34 = vector.broadcast %32 : vector<1x16xf32> to vector<324x16xf32>
    %35 = arith.mulf %33, %34 : vector<324x16xf32>
    %36 = arith.addf %31, %35 : vector<324x16xf32>
    %37 = vector.extract_strided_slice %20 {offsets = [3, 0], sizes = [1, 16], strides = [1, 1]} : vector<9x16xf32> to vector<1x16xf32>
    %38 = vector.extract_strided_slice %19 {offsets = [18, 0], sizes = [324, 16], strides = [1, 1]} : vector<368x16xf32> to vector<324x16xf32>
    %39 = vector.broadcast %37 : vector<1x16xf32> to vector<324x16xf32>
    %40 = arith.mulf %38, %39 : vector<324x16xf32>
    %41 = arith.addf %36, %40 : vector<324x16xf32>
    %42 = vector.extract_strided_slice %20 {offsets = [4, 0], sizes = [1, 16], strides = [1, 1]} : vector<9x16xf32> to vector<1x16xf32>
    %43 = vector.extract_strided_slice %19 {offsets = [19, 0], sizes = [324, 16], strides = [1, 1]} : vector<368x16xf32> to vector<324x16xf32>
    %44 = vector.broadcast %42 : vector<1x16xf32> to vector<324x16xf32>
    %45 = arith.mulf %43, %44 : vector<324x16xf32>
    %46 = arith.addf %41, %45 : vector<324x16xf32>
    %47 = vector.extract_strided_slice %20 {offsets = [5, 0], sizes = [1, 16], strides = [1, 1]} : vector<9x16xf32> to vector<1x16xf32>
    %48 = vector.extract_strided_slice %19 {offsets = [20, 0], sizes = [324, 16], strides = [1, 1]} : vector<368x16xf32> to vector<324x16xf32>
    %49 = vector.broadcast %47 : vector<1x16xf32> to vector<324x16xf32>
    %50 = arith.mulf %48, %49 : vector<324x16xf32>
    %51 = arith.addf %46, %50 : vector<324x16xf32>
    %52 = vector.extract_strided_slice %20 {offsets = [6, 0], sizes = [1, 16], strides = [1, 1]} : vector<9x16xf32> to vector<1x16xf32>
    %53 = vector.extract_strided_slice %19 {offsets = [36, 0], sizes = [324, 16], strides = [1, 1]} : vector<368x16xf32> to vector<324x16xf32>
    %54 = vector.broadcast %52 : vector<1x16xf32> to vector<324x16xf32>
    %55 = arith.mulf %53, %54 : vector<324x16xf32>
    %56 = arith.addf %51, %55 : vector<324x16xf32>
    %57 = vector.extract_strided_slice %20 {offsets = [7, 0], sizes = [1, 16], strides = [1, 1]} : vector<9x16xf32> to vector<1x16xf32>
    %58 = vector.extract_strided_slice %19 {offsets = [37, 0], sizes = [324, 16], strides = [1, 1]} : vector<368x16xf32> to vector<324x16xf32>
    %59 = vector.broadcast %57 : vector<1x16xf32> to vector<324x16xf32>
    %60 = arith.mulf %58, %59 : vector<324x16xf32>
    %61 = arith.addf %56, %60 : vector<324x16xf32>
    %62 = vector.extract_strided_slice %20 {offsets = [8, 0], sizes = [1, 16], strides = [1, 1]} : vector<9x16xf32> to vector<1x16xf32>
    %63 = vector.extract_strided_slice %19 {offsets = [38, 0], sizes = [324, 16], strides = [1, 1]} : vector<368x16xf32> to vector<324x16xf32>
    %64 = vector.broadcast %62 : vector<1x16xf32> to vector<324x16xf32>
    %65 = arith.mulf %63, %64 : vector<324x16xf32>
    %66 = arith.addf %61, %65 : vector<324x16xf32>
    %c0_14 = arith.constant 0 : index
    %c0_15 = arith.constant 0 : index
    %67 = vector.load %arg8[%c0_14, %c0_15] : memref<1x16xf32, #tpu.memory_space<vmem>>, vector<1x16xf32>
    %68 = vector.broadcast %67 : vector<1x16xf32> to vector<324x16xf32>
    %69 = arith.mulf %66, %68 : vector<324x16xf32>
    %c0_16 = arith.constant 0 : index
    %c0_17 = arith.constant 0 : index
    %70 = vector.load %arg9[%c0_16, %c0_17] : memref<1x16xf32, #tpu.memory_space<vmem>>, vector<1x16xf32>
    %71 = vector.broadcast %70 : vector<1x16xf32> to vector<324x16xf32>
    %72 = arith.addf %69, %71 : vector<324x16xf32>
    %73 = arith.negf %72 : vector<324x16xf32>
    %74 = math.exp %73 : vector<324x16xf32>
    %cst_18 = arith.constant 1.000000e+00 : f32
    %75 = vector.broadcast %cst_18 : f32 to vector<324x16xf32>
    %76 = arith.addf %75, %74 : vector<324x16xf32>
    %77 = arith.divf %75, %76 : vector<324x16xf32>
    %78 = arith.mulf %72, %77 : vector<324x16xf32>
    %c0_19 = arith.constant 0 : index
    %c0_20 = arith.constant 0 : index
    %79 = vector.load %arg3[%c0_19, %c0_20] : memref<324x1xf32, #tpu.memory_space<vmem>>, vector<324x1xf32>
    %80 = vector.broadcast %79 : vector<324x1xf32> to vector<324x16xf32>
    %81 = arith.mulf %78, %80 : vector<324x16xf32>
    %cst_21 = arith.constant dense<0.000000e+00> : vector<16xf32>
    %82 = vector.multi_reduction <add>, %81, %cst_21 [0] : vector<324x16xf32> to vector<16xf32>
    %83 = vector.shape_cast %82 : vector<16xf32> to vector<1x16xf32>
    %cst_22 = arith.constant 3.906250e-03 : f32
    %84 = vector.broadcast %cst_22 : f32 to vector<1x16xf32>
    %85 = arith.mulf %83, %84 : vector<1x16xf32>
    %c0_23 = arith.constant 0 : index
    %c0_24 = arith.constant 0 : index
    %86 = vector.load %arg10[%c0_23, %c0_24] : memref<16x4xf32, #tpu.memory_space<vmem>>, vector<16x4xf32>
    %cst_25 = arith.constant dense<0.000000e+00> : vector<1x4xf32>
    %87 = tpu.matmul %85, %86, %cst_25 {dimension_numbers = #tpu.dot_dimension_numbers<[1], [0], [0], [1], [0, 0, 1, 1], [], []>} : vector<1x16xf32>, vector<16x4xf32>, vector<1x4xf32> -> vector<1x4xf32>
    %c0_26 = arith.constant 0 : index
    %c0_27 = arith.constant 0 : index
    %88 = vector.load %arg11[%c0_26, %c0_27] : memref<1x4xf32, #tpu.memory_space<vmem>>, vector<1x4xf32>
    %89 = arith.addf %87, %88 : vector<1x4xf32>
    %90 = arith.negf %89 : vector<1x4xf32>
    %91 = math.exp %90 : vector<1x4xf32>
    %cst_28 = arith.constant 1.000000e+00 : f32
    %92 = vector.broadcast %cst_28 : f32 to vector<1x4xf32>
    %93 = arith.addf %92, %91 : vector<1x4xf32>
    %94 = arith.divf %92, %93 : vector<1x4xf32>
    %95 = arith.mulf %89, %94 : vector<1x4xf32>
    %c0_29 = arith.constant 0 : index
    %c0_30 = arith.constant 0 : index
    %96 = vector.load %arg12[%c0_29, %c0_30] : memref<4x16xf32, #tpu.memory_space<vmem>>, vector<4x16xf32>
    %cst_31 = arith.constant dense<0.000000e+00> : vector<1x16xf32>
    %97 = tpu.matmul %95, %96, %cst_31 {dimension_numbers = #tpu.dot_dimension_numbers<[1], [0], [0], [1], [0, 0, 1, 1], [], []>} : vector<1x4xf32>, vector<4x16xf32>, vector<1x16xf32> -> vector<1x16xf32>
    %c0_32 = arith.constant 0 : index
    %c0_33 = arith.constant 0 : index
    %98 = vector.load %arg13[%c0_32, %c0_33] : memref<1x16xf32, #tpu.memory_space<vmem>>, vector<1x16xf32>
    %99 = arith.addf %97, %98 : vector<1x16xf32>
    %100 = arith.negf %99 : vector<1x16xf32>
    %101 = math.exp %100 : vector<1x16xf32>
    %cst_34 = arith.constant 1.000000e+00 : f32
    %102 = vector.broadcast %cst_34 : f32 to vector<1x16xf32>
    %103 = arith.addf %102, %101 : vector<1x16xf32>
    %104 = arith.divf %102, %103 : vector<1x16xf32>
    %105 = vector.broadcast %104 : vector<1x16xf32> to vector<324x16xf32>
    %106 = arith.mulf %78, %105 : vector<324x16xf32>
    %c0_35 = arith.constant 0 : index
    %c0_36 = arith.constant 0 : index
    %107 = vector.load %arg14[%c0_35, %c0_36] : memref<16x16xf32, #tpu.memory_space<vmem>>, vector<16x16xf32>
    %cst_37 = arith.constant dense<0.000000e+00> : vector<324x16xf32>
    %108 = tpu.matmul %106, %107, %cst_37 {dimension_numbers = #tpu.dot_dimension_numbers<[1], [0], [0], [1], [0, 0, 1, 1], [], []>} : vector<324x16xf32>, vector<16x16xf32>, vector<324x16xf32> -> vector<324x16xf32>
    %c0_38 = arith.constant 0 : index
    %c0_39 = arith.constant 0 : index
    %109 = vector.load %arg15[%c0_38, %c0_39] : memref<1x16xf32, #tpu.memory_space<vmem>>, vector<1x16xf32>
    %110 = vector.broadcast %109 : vector<1x16xf32> to vector<324x16xf32>
    %111 = arith.mulf %108, %110 : vector<324x16xf32>
    %c0_40 = arith.constant 0 : index
    %c0_41 = arith.constant 0 : index
    %112 = vector.load %arg16[%c0_40, %c0_41] : memref<1x16xf32, #tpu.memory_space<vmem>>, vector<1x16xf32>
    %113 = vector.broadcast %112 : vector<1x16xf32> to vector<324x16xf32>
    %114 = arith.addf %111, %113 : vector<324x16xf32>
    %115 = vector.extract_strided_slice %19 {offsets = [19, 0], sizes = [324, 16], strides = [1, 1]} : vector<368x16xf32> to vector<324x16xf32>
    %116 = arith.addf %114, %115 : vector<324x16xf32>
    %c0_42 = arith.constant 0 : index
    %c0_43 = arith.constant 0 : index
    %117 = vector.load %arg17[%c0_42, %c0_43] : memref<16x128xf32, #tpu.memory_space<vmem>>, vector<16x128xf32>
    %cst_44 = arith.constant dense<0.000000e+00> : vector<324x128xf32>
    %118 = tpu.matmul %116, %117, %cst_44 {dimension_numbers = #tpu.dot_dimension_numbers<[1], [0], [0], [1], [0, 0, 1, 1], [], []>} : vector<324x16xf32>, vector<16x128xf32>, vector<324x128xf32> -> vector<324x128xf32>
    %c0_45 = arith.constant 0 : index
    %c0_46 = arith.constant 0 : index
    %119 = vector.load %arg18[%c0_45, %c0_46] : memref<1x128xf32, #tpu.memory_space<vmem>>, vector<1x128xf32>
    %120 = vector.broadcast %119 : vector<1x128xf32> to vector<324x128xf32>
    %121 = arith.mulf %118, %120 : vector<324x128xf32>
    %c0_47 = arith.constant 0 : index
    %c0_48 = arith.constant 0 : index
    %122 = vector.load %arg19[%c0_47, %c0_48] : memref<1x128xf32, #tpu.memory_space<vmem>>, vector<1x128xf32>
    %123 = vector.broadcast %122 : vector<1x128xf32> to vector<324x128xf32>
    %124 = arith.addf %121, %123 : vector<324x128xf32>
    %125 = arith.negf %124 : vector<324x128xf32>
    %126 = math.exp %125 : vector<324x128xf32>
    %cst_49 = arith.constant 1.000000e+00 : f32
    %127 = vector.broadcast %cst_49 : f32 to vector<324x128xf32>
    %128 = arith.addf %127, %126 : vector<324x128xf32>
    %129 = arith.divf %127, %128 : vector<324x128xf32>
    %130 = arith.mulf %124, %129 : vector<324x128xf32>
    %131 = arith.truncf %130 : vector<324x128xf32> to vector<324x128xbf16>
    %c0_50 = arith.constant 0 : index
    %c0_51 = arith.constant 0 : index
    %c0_52 = arith.constant 0 : index
    %132 = vector.load %arg20[%c0_50, %c0_51, %c0_52] : memref<1x324x128xbf16, #tpu.memory_space<vmem>>, vector<1x324x128xbf16>
    %133 = vector.shape_cast %132 : vector<1x324x128xbf16> to vector<324x128xbf16>
    %134 = vector.shape_cast %131 : vector<324x128xbf16> to vector<1x324x128xbf16>
    tpu.vector_store %arg20[%c0_50, %c0_51, %c0_52], %134 {strides = array<i32>} : memref<1x324x128xbf16, #tpu.memory_space<vmem>>, vector<1x324x128xbf16>,
    return
  }
  func.func @transform_0(%arg0: i32) -> (i32, i32, i32) {
    %c0_i32 = arith.constant 0 : i32
    %c0_i32_0 = arith.constant 0 : i32
    %c0_i32_1 = arith.constant 0 : i32
    return %arg0, %c0_i32, %c0_i32_0 : i32, i32, i32
  }
  func.func @transform_1(%arg0: i32) -> (i32, i32) {
    %c0_i32 = arith.constant 0 : i32
    %c0_i32_0 = arith.constant 0 : i32
    %c0_i32_1 = arith.constant 0 : i32
    return %c0_i32, %c0_i32_0 : i32, i32
  }
  func.func @transform_2(%arg0: i32) -> (i32, i32) {
    %c0_i32 = arith.constant 0 : i32
    %c0_i32_0 = arith.constant 0 : i32
    %c0_i32_1 = arith.constant 0 : i32
    return %c0_i32, %c0_i32_0 : i32, i32
  }
  func.func @transform_3(%arg0: i32) -> (i32, i32) {
    %c0_i32 = arith.constant 0 : i32
    %c0_i32_0 = arith.constant 0 : i32
    %c0_i32_1 = arith.constant 0 : i32
    return %c0_i32, %c0_i32_0 : i32, i32
  }
  func.func @transform_4(%arg0: i32) -> (i32, i32) {
    %c0_i32 = arith.constant 0 : i32
    %c0_i32_0 = arith.constant 0 : i32
    %c0_i32_1 = arith.constant 0 : i32
    return %c0_i32, %c0_i32_0 : i32, i32
  }
  func.func @transform_5(%arg0: i32) -> (i32, i32) {
    %c0_i32 = arith.constant 0 : i32
    %c0_i32_0 = arith.constant 0 : i32
    %c0_i32_1 = arith.constant 0 : i32
    return %c0_i32, %c0_i32_0 : i32, i32
  }
  func.func @transform_6(%arg0: i32) -> (i32, i32) {
    %c0_i32 = arith.constant 0 : i32
    %c0_i32_0 = arith.constant 0 : i32
    %c0_i32_1 = arith.constant 0 : i32
    return %c0_i32, %c0_i32_0 : i32, i32
  }
  func.func @transform_7(%arg0: i32) -> (i32, i32) {
    %c0_i32 = arith.constant 0 : i32
    %c0_i32_0 = arith.constant 0 : i32
    %c0_i32_1 = arith.constant 0 : i32
    return %c0_i32, %c0_i32_0 : i32, i32
  }
  func.func @transform_8(%arg0: i32) -> (i32, i32) {
    %c0_i32 = arith.constant 0 : i32
    %c0_i32_0 = arith.constant 0 : i32
    %c0_i32_1 = arith.constant 0 : i32
    return %c0_i32, %c0_i32_0 : i32, i32
  }
  func.func @transform_9(%arg0: i32) -> (i32, i32) {
    %c0_i32 = arith.constant 0 : i32
    %c0_i32_0 = arith.constant 0 : i32
    %c0_i32_1 = arith.constant 0 : i32
    return %c0_i32, %c0_i32_0 : i32, i32
  }
  func.func @transform_10(%arg0: i32) -> (i32, i32) {
    %c0_i32 = arith.constant 0 : i32
    %c0_i32_0 = arith.constant 0 : i32
    %c0_i32_1 = arith.constant 0 : i32
    return %c0_i32, %c0_i32_0 : i32, i32
  }
  func.func @transform_11(%arg0: i32) -> (i32, i32) {
    %c0_i32 = arith.constant 0 : i32
    %c0_i32_0 = arith.constant 0 : i32
    %c0_i32_1 = arith.constant 0 : i32
    return %c0_i32, %c0_i32_0 : i32, i32
  }
  func.func @transform_12(%arg0: i32) -> (i32, i32) {
    %c0_i32 = arith.constant 0 : i32
    %c0_i32_0 = arith.constant 0 : i32
    %c0_i32_1 = arith.constant 0 : i32
    return %c0_i32, %c0_i32_0 : i32, i32
  }
  func.func @transform_13(%arg0: i32) -> (i32, i32) {
    %c0_i32 = arith.constant 0 : i32
    %c0_i32_0 = arith.constant 0 : i32
    %c0_i32_1 = arith.constant 0 : i32
    return %c0_i32, %c0_i32_0 : i32, i32
  }
  func.func @transform_14(%arg0: i32) -> (i32, i32) {
    %c0_i32 = arith.constant 0 : i32
    %c0_i32_0 = arith.constant 0 : i32
    %c0_i32_1 = arith.constant 0 : i32
    return %c0_i32, %c0_i32_0 : i32, i32
  }
  func.func @transform_15(%arg0: i32) -> (i32, i32) {
    %c0_i32 = arith.constant 0 : i32
    %c0_i32_0 = arith.constant 0 : i32
    %c0_i32_1 = arith.constant 0 : i32
    return %c0_i32, %c0_i32_0 : i32, i32
  }
  func.func @transform_16(%arg0: i32) -> (i32, i32) {
    %c0_i32 = arith.constant 0 : i32
    %c0_i32_0 = arith.constant 0 : i32
    %c0_i32_1 = arith.constant 0 : i32
    return %c0_i32, %c0_i32_0 : i32, i32
  }
  func.func @transform_17(%arg0: i32) -> (i32, i32) {
    %c0_i32 = arith.constant 0 : i32
    %c0_i32_0 = arith.constant 0 : i32
    %c0_i32_1 = arith.constant 0 : i32
    return %c0_i32, %c0_i32_0 : i32, i32
  }
  func.func @transform_18(%arg0: i32) -> (i32, i32) {
    %c0_i32 = arith.constant 0 : i32
    %c0_i32_0 = arith.constant 0 : i32
    %c0_i32_1 = arith.constant 0 : i32
    return %c0_i32, %c0_i32_0 : i32, i32
  }
  func.func @transform_19(%arg0: i32) -> (i32, i32, i32) {
    %c0_i32 = arith.constant 0 : i32
    %c0_i32_0 = arith.constant 0 : i32
    %c0_i32_1 = arith.constant 0 : i32
    return %arg0, %c0_i32, %c0_i32_0 : i32, i32, i32
  }
}

module attributes {stable_mosaic.version = 11 : i64} {
  func.func @_block2_head_kernel(%arg0: i32, %arg1: memref<1x384x128xbf16, #tpu.memory_space<vmem>>, %arg2: memref<81x1xf32, #tpu.memory_space<vmem>>, %arg3: memref<9x128xf32, #tpu.memory_space<vmem>>, %arg4: memref<1x128xf32, #tpu.memory_space<vmem>>, %arg5: memref<1x128xf32, #tpu.memory_space<vmem>>, %arg6: memref<128x4xf32, #tpu.memory_space<vmem>>, %arg7: memref<1x4xf32, #tpu.memory_space<vmem>>, %arg8: memref<4x128xf32, #tpu.memory_space<vmem>>, %arg9: memref<1x128xf32, #tpu.memory_space<vmem>>, %arg10: memref<128x24xf32, #tpu.memory_space<vmem>>, %arg11: memref<1x24xf32, #tpu.memory_space<vmem>>, %arg12: memref<1x24xf32, #tpu.memory_space<vmem>>, %arg13: memref<24x128xf32, #tpu.memory_space<vmem>>, %arg14: memref<1x128xf32, #tpu.memory_space<vmem>>, %arg15: memref<1x128xf32, #tpu.memory_space<vmem>>, %arg16: memref<1x81x128xf32, #tpu.memory_space<vmem>>) attributes {dimension_semantics = [#tpu.dimension_semantics<parallel>], iteration_bounds = array<i64: 2>, scalar_prefetch = 0 : i64, scratch_operands = 0 : i64, tpu.core_type = #tpu.core_type<tc>, window_params = [{transform_indices = @transform_0, window_bounds = array<i64: 1, 384, 128>}, {pipeline_mode = #tpu.pipeline_mode<synchronous>, transform_indices = @transform_1, window_bounds = array<i64: 81, 1>}, {pipeline_mode = #tpu.pipeline_mode<synchronous>, transform_indices = @transform_2, window_bounds = array<i64: 9, 128>}, {pipeline_mode = #tpu.pipeline_mode<synchronous>, transform_indices = @transform_3, window_bounds = array<i64: 1, 128>}, {pipeline_mode = #tpu.pipeline_mode<synchronous>, transform_indices = @transform_4, window_bounds = array<i64: 1, 128>}, {pipeline_mode = #tpu.pipeline_mode<synchronous>, transform_indices = @transform_5, window_bounds = array<i64: 128, 4>}, {pipeline_mode = #tpu.pipeline_mode<synchronous>, transform_indices = @transform_6, window_bounds = array<i64: 1, 4>}, {pipeline_mode = #tpu.pipeline_mode<synchronous>, transform_indices = @transform_7, window_bounds = array<i64: 4, 128>}, {pipeline_mode = #tpu.pipeline_mode<synchronous>, transform_indices = @transform_8, window_bounds = array<i64: 1, 128>}, {pipeline_mode = #tpu.pipeline_mode<synchronous>, transform_indices = @transform_9, window_bounds = array<i64: 128, 24>}, {pipeline_mode = #tpu.pipeline_mode<synchronous>, transform_indices = @transform_10, window_bounds = array<i64: 1, 24>}, {pipeline_mode = #tpu.pipeline_mode<synchronous>, transform_indices = @transform_11, window_bounds = array<i64: 1, 24>}, {pipeline_mode = #tpu.pipeline_mode<synchronous>, transform_indices = @transform_12, window_bounds = array<i64: 24, 128>}, {pipeline_mode = #tpu.pipeline_mode<synchronous>, transform_indices = @transform_13, window_bounds = array<i64: 1, 128>}, {pipeline_mode = #tpu.pipeline_mode<synchronous>, transform_indices = @transform_14, window_bounds = array<i64: 1, 128>}, {transform_indices = @transform_15, window_bounds = array<i64: 1, 81, 128>}]} {
    %c0 = arith.constant 0 : index
    %c0_0 = arith.constant 0 : index
    %c0_1 = arith.constant 0 : index
    %0 = vector.load %arg1[%c0, %c0_0, %c0_1] : memref<1x384x128xbf16, #tpu.memory_space<vmem>>, vector<1x384x128xbf16>
    %1 = vector.shape_cast %0 : vector<1x384x128xbf16> to vector<384x128xbf16>
    %2 = arith.extf %1 : vector<384x128xbf16> to vector<384x128xf32>
    %c0_2 = arith.constant 0 : index
    %c0_3 = arith.constant 0 : index
    %3 = vector.load %arg3[%c0_2, %c0_3] : memref<9x128xf32, #tpu.memory_space<vmem>>, vector<9x128xf32>
    %cst = arith.constant 0.000000e+00 : f32
    %4 = vector.broadcast %cst : f32 to vector<81x128xf32>
    %5 = vector.extract_strided_slice %3 {offsets = [0, 0], sizes = [1, 128], strides = [1, 1]} : vector<9x128xf32> to vector<1x128xf32>
    %6 = vector.extract_strided_slice %2 {offsets = [0, 0], sizes = [81, 128], strides = [1, 1]} : vector<384x128xf32> to vector<81x128xf32>
    %7 = vector.broadcast %5 : vector<1x128xf32> to vector<81x128xf32>
    %8 = arith.mulf %6, %7 : vector<81x128xf32>
    %9 = arith.addf %4, %8 : vector<81x128xf32>
    %10 = vector.extract_strided_slice %3 {offsets = [1, 0], sizes = [1, 128], strides = [1, 1]} : vector<9x128xf32> to vector<1x128xf32>
    %11 = vector.extract_strided_slice %2 {offsets = [96, 0], sizes = [81, 128], strides = [1, 1]} : vector<384x128xf32> to vector<81x128xf32>
    %12 = vector.broadcast %10 : vector<1x128xf32> to vector<81x128xf32>
    %13 = arith.mulf %11, %12 : vector<81x128xf32>
    %14 = arith.addf %9, %13 : vector<81x128xf32>
    %15 = vector.extract_strided_slice %3 {offsets = [2, 0], sizes = [1, 128], strides = [1, 1]} : vector<9x128xf32> to vector<1x128xf32>
    %16 = vector.extract_strided_slice %2 {offsets = [1, 0], sizes = [81, 128], strides = [1, 1]} : vector<384x128xf32> to vector<81x128xf32>
    %17 = vector.broadcast %15 : vector<1x128xf32> to vector<81x128xf32>
    %18 = arith.mulf %16, %17 : vector<81x128xf32>
    %19 = arith.addf %14, %18 : vector<81x128xf32>
    %20 = vector.extract_strided_slice %3 {offsets = [3, 0], sizes = [1, 128], strides = [1, 1]} : vector<9x128xf32> to vector<1x128xf32>
    %21 = vector.extract_strided_slice %2 {offsets = [192, 0], sizes = [81, 128], strides = [1, 1]} : vector<384x128xf32> to vector<81x128xf32>
    %22 = vector.broadcast %20 : vector<1x128xf32> to vector<81x128xf32>
    %23 = arith.mulf %21, %22 : vector<81x128xf32>
    %24 = arith.addf %19, %23 : vector<81x128xf32>
    %25 = vector.extract_strided_slice %3 {offsets = [4, 0], sizes = [1, 128], strides = [1, 1]} : vector<9x128xf32> to vector<1x128xf32>
    %26 = vector.extract_strided_slice %2 {offsets = [288, 0], sizes = [81, 128], strides = [1, 1]} : vector<384x128xf32> to vector<81x128xf32>
    %27 = vector.broadcast %25 : vector<1x128xf32> to vector<81x128xf32>
    %28 = arith.mulf %26, %27 : vector<81x128xf32>
    %29 = arith.addf %24, %28 : vector<81x128xf32>
    %30 = vector.extract_strided_slice %3 {offsets = [5, 0], sizes = [1, 128], strides = [1, 1]} : vector<9x128xf32> to vector<1x128xf32>
    %31 = vector.extract_strided_slice %2 {offsets = [193, 0], sizes = [81, 128], strides = [1, 1]} : vector<384x128xf32> to vector<81x128xf32>
    %32 = vector.broadcast %30 : vector<1x128xf32> to vector<81x128xf32>
    %33 = arith.mulf %31, %32 : vector<81x128xf32>
    %34 = arith.addf %29, %33 : vector<81x128xf32>
    %35 = vector.extract_strided_slice %3 {offsets = [6, 0], sizes = [1, 128], strides = [1, 1]} : vector<9x128xf32> to vector<1x128xf32>
    %36 = vector.extract_strided_slice %2 {offsets = [9, 0], sizes = [81, 128], strides = [1, 1]} : vector<384x128xf32> to vector<81x128xf32>
    %37 = vector.broadcast %35 : vector<1x128xf32> to vector<81x128xf32>
    %38 = arith.mulf %36, %37 : vector<81x128xf32>
    %39 = arith.addf %34, %38 : vector<81x128xf32>
    %40 = vector.extract_strided_slice %3 {offsets = [7, 0], sizes = [1, 128], strides = [1, 1]} : vector<9x128xf32> to vector<1x128xf32>
    %41 = vector.extract_strided_slice %2 {offsets = [105, 0], sizes = [81, 128], strides = [1, 1]} : vector<384x128xf32> to vector<81x128xf32>
    %42 = vector.broadcast %40 : vector<1x128xf32> to vector<81x128xf32>
    %43 = arith.mulf %41, %42 : vector<81x128xf32>
    %44 = arith.addf %39, %43 : vector<81x128xf32>
    %45 = vector.extract_strided_slice %3 {offsets = [8, 0], sizes = [1, 128], strides = [1, 1]} : vector<9x128xf32> to vector<1x128xf32>
    %46 = vector.extract_strided_slice %2 {offsets = [10, 0], sizes = [81, 128], strides = [1, 1]} : vector<384x128xf32> to vector<81x128xf32>
    %47 = vector.broadcast %45 : vector<1x128xf32> to vector<81x128xf32>
    %48 = arith.mulf %46, %47 : vector<81x128xf32>
    %49 = arith.addf %44, %48 : vector<81x128xf32>
    %c0_4 = arith.constant 0 : index
    %c0_5 = arith.constant 0 : index
    %50 = vector.load %arg4[%c0_4, %c0_5] : memref<1x128xf32, #tpu.memory_space<vmem>>, vector<1x128xf32>
    %51 = vector.broadcast %50 : vector<1x128xf32> to vector<81x128xf32>
    %52 = arith.mulf %49, %51 : vector<81x128xf32>
    %c0_6 = arith.constant 0 : index
    %c0_7 = arith.constant 0 : index
    %53 = vector.load %arg5[%c0_6, %c0_7] : memref<1x128xf32, #tpu.memory_space<vmem>>, vector<1x128xf32>
    %54 = vector.broadcast %53 : vector<1x128xf32> to vector<81x128xf32>
    %55 = arith.addf %52, %54 : vector<81x128xf32>
    %56 = arith.negf %55 : vector<81x128xf32>
    %57 = math.exp %56 : vector<81x128xf32>
    %cst_8 = arith.constant 1.000000e+00 : f32
    %58 = vector.broadcast %cst_8 : f32 to vector<81x128xf32>
    %59 = arith.addf %58, %57 : vector<81x128xf32>
    %60 = arith.divf %58, %59 : vector<81x128xf32>
    %61 = arith.mulf %55, %60 : vector<81x128xf32>
    %c0_9 = arith.constant 0 : index
    %c0_10 = arith.constant 0 : index
    %62 = vector.load %arg2[%c0_9, %c0_10] : memref<81x1xf32, #tpu.memory_space<vmem>>, vector<81x1xf32>
    %63 = vector.broadcast %62 : vector<81x1xf32> to vector<81x128xf32>
    %64 = arith.mulf %61, %63 : vector<81x128xf32>
    %cst_11 = arith.constant dense<0.000000e+00> : vector<128xf32>
    %65 = vector.multi_reduction <add>, %64, %cst_11 [0] : vector<81x128xf32> to vector<128xf32>
    %66 = vector.shape_cast %65 : vector<128xf32> to vector<1x128xf32>
    %cst_12 = arith.constant 1.562500e-02 : f32
    %67 = vector.broadcast %cst_12 : f32 to vector<1x128xf32>
    %68 = arith.mulf %66, %67 : vector<1x128xf32>
    %c0_13 = arith.constant 0 : index
    %c0_14 = arith.constant 0 : index
    %69 = vector.load %arg6[%c0_13, %c0_14] : memref<128x4xf32, #tpu.memory_space<vmem>>, vector<128x4xf32>
    %cst_15 = arith.constant dense<0.000000e+00> : vector<1x4xf32>
    %70 = tpu.matmul %68, %69, %cst_15 {dimension_numbers = #tpu.dot_dimension_numbers<[1], [0], [0], [1], [0, 0, 1, 1], [], []>} : vector<1x128xf32>, vector<128x4xf32>, vector<1x4xf32> -> vector<1x4xf32>
    %c0_16 = arith.constant 0 : index
    %c0_17 = arith.constant 0 : index
    %71 = vector.load %arg7[%c0_16, %c0_17] : memref<1x4xf32, #tpu.memory_space<vmem>>, vector<1x4xf32>
    %72 = arith.addf %70, %71 : vector<1x4xf32>
    %73 = arith.negf %72 : vector<1x4xf32>
    %74 = math.exp %73 : vector<1x4xf32>
    %cst_18 = arith.constant 1.000000e+00 : f32
    %75 = vector.broadcast %cst_18 : f32 to vector<1x4xf32>
    %76 = arith.addf %75, %74 : vector<1x4xf32>
    %77 = arith.divf %75, %76 : vector<1x4xf32>
    %78 = arith.mulf %72, %77 : vector<1x4xf32>
    %c0_19 = arith.constant 0 : index
    %c0_20 = arith.constant 0 : index
    %79 = vector.load %arg8[%c0_19, %c0_20] : memref<4x128xf32, #tpu.memory_space<vmem>>, vector<4x128xf32>
    %cst_21 = arith.constant dense<0.000000e+00> : vector<1x128xf32>
    %80 = tpu.matmul %78, %79, %cst_21 {dimension_numbers = #tpu.dot_dimension_numbers<[1], [0], [0], [1], [0, 0, 1, 1], [], []>} : vector<1x4xf32>, vector<4x128xf32>, vector<1x128xf32> -> vector<1x128xf32>
    %c0_22 = arith.constant 0 : index
    %c0_23 = arith.constant 0 : index
    %81 = vector.load %arg9[%c0_22, %c0_23] : memref<1x128xf32, #tpu.memory_space<vmem>>, vector<1x128xf32>
    %82 = arith.addf %80, %81 : vector<1x128xf32>
    %83 = arith.negf %82 : vector<1x128xf32>
    %84 = math.exp %83 : vector<1x128xf32>
    %cst_24 = arith.constant 1.000000e+00 : f32
    %85 = vector.broadcast %cst_24 : f32 to vector<1x128xf32>
    %86 = arith.addf %85, %84 : vector<1x128xf32>
    %87 = arith.divf %85, %86 : vector<1x128xf32>
    %88 = vector.broadcast %87 : vector<1x128xf32> to vector<81x128xf32>
    %89 = arith.mulf %61, %88 : vector<81x128xf32>
    %c0_25 = arith.constant 0 : index
    %c0_26 = arith.constant 0 : index
    %90 = vector.load %arg10[%c0_25, %c0_26] : memref<128x24xf32, #tpu.memory_space<vmem>>, vector<128x24xf32>
    %cst_27 = arith.constant dense<0.000000e+00> : vector<81x24xf32>
    %91 = tpu.matmul %89, %90, %cst_27 {dimension_numbers = #tpu.dot_dimension_numbers<[1], [0], [0], [1], [0, 0, 1, 1], [], []>} : vector<81x128xf32>, vector<128x24xf32>, vector<81x24xf32> -> vector<81x24xf32>
    %c0_28 = arith.constant 0 : index
    %c0_29 = arith.constant 0 : index
    %92 = vector.load %arg11[%c0_28, %c0_29] : memref<1x24xf32, #tpu.memory_space<vmem>>, vector<1x24xf32>
    %93 = vector.broadcast %92 : vector<1x24xf32> to vector<81x24xf32>
    %94 = arith.mulf %91, %93 : vector<81x24xf32>
    %c0_30 = arith.constant 0 : index
    %c0_31 = arith.constant 0 : index
    %95 = vector.load %arg12[%c0_30, %c0_31] : memref<1x24xf32, #tpu.memory_space<vmem>>, vector<1x24xf32>
    %96 = vector.broadcast %95 : vector<1x24xf32> to vector<81x24xf32>
    %97 = arith.addf %94, %96 : vector<81x24xf32>
    %c0_32 = arith.constant 0 : index
    %c0_33 = arith.constant 0 : index
    %98 = vector.load %arg13[%c0_32, %c0_33] : memref<24x128xf32, #tpu.memory_space<vmem>>, vector<24x128xf32>
    %cst_34 = arith.constant dense<0.000000e+00> : vector<81x128xf32>
    %99 = tpu.matmul %97, %98, %cst_34 {dimension_numbers = #tpu.dot_dimension_numbers<[1], [0], [0], [1], [0, 0, 1, 1], [], []>} : vector<81x24xf32>, vector<24x128xf32>, vector<81x128xf32> -> vector<81x128xf32>
    %c0_35 = arith.constant 0 : index
    %c0_36 = arith.constant 0 : index
    %100 = vector.load %arg14[%c0_35, %c0_36] : memref<1x128xf32, #tpu.memory_space<vmem>>, vector<1x128xf32>
    %101 = vector.broadcast %100 : vector<1x128xf32> to vector<81x128xf32>
    %102 = arith.mulf %99, %101 : vector<81x128xf32>
    %c0_37 = arith.constant 0 : index
    %c0_38 = arith.constant 0 : index
    %103 = vector.load %arg15[%c0_37, %c0_38] : memref<1x128xf32, #tpu.memory_space<vmem>>, vector<1x128xf32>
    %104 = vector.broadcast %103 : vector<1x128xf32> to vector<81x128xf32>
    %105 = arith.addf %102, %104 : vector<81x128xf32>
    %106 = arith.negf %105 : vector<81x128xf32>
    %107 = math.exp %106 : vector<81x128xf32>
    %cst_39 = arith.constant 1.000000e+00 : f32
    %108 = vector.broadcast %cst_39 : f32 to vector<81x128xf32>
    %109 = arith.addf %108, %107 : vector<81x128xf32>
    %110 = arith.divf %108, %109 : vector<81x128xf32>
    %111 = arith.mulf %105, %110 : vector<81x128xf32>
    %c0_40 = arith.constant 0 : index
    %c0_41 = arith.constant 0 : index
    %c0_42 = arith.constant 0 : index
    %112 = vector.load %arg16[%c0_40, %c0_41, %c0_42] : memref<1x81x128xf32, #tpu.memory_space<vmem>>, vector<1x81x128xf32>
    %113 = vector.shape_cast %112 : vector<1x81x128xf32> to vector<81x128xf32>
    %114 = vector.shape_cast %111 : vector<81x128xf32> to vector<1x81x128xf32>
    tpu.vector_store %arg16[%c0_40, %c0_41, %c0_42], %114 {strides = array<i32>} : memref<1x81x128xf32, #tpu.memory_space<vmem>>, vector<1x81x128xf32>,
    return
  }
  func.func @transform_0(%arg0: i32) -> (i32, i32, i32) {
    %c0_i32 = arith.constant 0 : i32
    %c0_i32_0 = arith.constant 0 : i32
    %c0_i32_1 = arith.constant 0 : i32
    return %arg0, %c0_i32, %c0_i32_0 : i32, i32, i32
  }
  func.func @transform_1(%arg0: i32) -> (i32, i32) {
    %c0_i32 = arith.constant 0 : i32
    %c0_i32_0 = arith.constant 0 : i32
    %c0_i32_1 = arith.constant 0 : i32
    return %c0_i32, %c0_i32_0 : i32, i32
  }
  func.func @transform_2(%arg0: i32) -> (i32, i32) {
    %c0_i32 = arith.constant 0 : i32
    %c0_i32_0 = arith.constant 0 : i32
    %c0_i32_1 = arith.constant 0 : i32
    return %c0_i32, %c0_i32_0 : i32, i32
  }
  func.func @transform_3(%arg0: i32) -> (i32, i32) {
    %c0_i32 = arith.constant 0 : i32
    %c0_i32_0 = arith.constant 0 : i32
    %c0_i32_1 = arith.constant 0 : i32
    return %c0_i32, %c0_i32_0 : i32, i32
  }
  func.func @transform_4(%arg0: i32) -> (i32, i32) {
    %c0_i32 = arith.constant 0 : i32
    %c0_i32_0 = arith.constant 0 : i32
    %c0_i32_1 = arith.constant 0 : i32
    return %c0_i32, %c0_i32_0 : i32, i32
  }
  func.func @transform_5(%arg0: i32) -> (i32, i32) {
    %c0_i32 = arith.constant 0 : i32
    %c0_i32_0 = arith.constant 0 : i32
    %c0_i32_1 = arith.constant 0 : i32
    return %c0_i32, %c0_i32_0 : i32, i32
  }
  func.func @transform_6(%arg0: i32) -> (i32, i32) {
    %c0_i32 = arith.constant 0 : i32
    %c0_i32_0 = arith.constant 0 : i32
    %c0_i32_1 = arith.constant 0 : i32
    return %c0_i32, %c0_i32_0 : i32, i32
  }
  func.func @transform_7(%arg0: i32) -> (i32, i32) {
    %c0_i32 = arith.constant 0 : i32
    %c0_i32_0 = arith.constant 0 : i32
    %c0_i32_1 = arith.constant 0 : i32
    return %c0_i32, %c0_i32_0 : i32, i32
  }
  func.func @transform_8(%arg0: i32) -> (i32, i32) {
    %c0_i32 = arith.constant 0 : i32
    %c0_i32_0 = arith.constant 0 : i32
    %c0_i32_1 = arith.constant 0 : i32
    return %c0_i32, %c0_i32_0 : i32, i32
  }
  func.func @transform_9(%arg0: i32) -> (i32, i32) {
    %c0_i32 = arith.constant 0 : i32
    %c0_i32_0 = arith.constant 0 : i32
    %c0_i32_1 = arith.constant 0 : i32
    return %c0_i32, %c0_i32_0 : i32, i32
  }
  func.func @transform_10(%arg0: i32) -> (i32, i32) {
    %c0_i32 = arith.constant 0 : i32
    %c0_i32_0 = arith.constant 0 : i32
    %c0_i32_1 = arith.constant 0 : i32
    return %c0_i32, %c0_i32_0 : i32, i32
  }
  func.func @transform_11(%arg0: i32) -> (i32, i32) {
    %c0_i32 = arith.constant 0 : i32
    %c0_i32_0 = arith.constant 0 : i32
    %c0_i32_1 = arith.constant 0 : i32
    return %c0_i32, %c0_i32_0 : i32, i32
  }
  func.func @transform_12(%arg0: i32) -> (i32, i32) {
    %c0_i32 = arith.constant 0 : i32
    %c0_i32_0 = arith.constant 0 : i32
    %c0_i32_1 = arith.constant 0 : i32
    return %c0_i32, %c0_i32_0 : i32, i32
  }
  func.func @transform_13(%arg0: i32) -> (i32, i32) {
    %c0_i32 = arith.constant 0 : i32
    %c0_i32_0 = arith.constant 0 : i32
    %c0_i32_1 = arith.constant 0 : i32
    return %c0_i32, %c0_i32_0 : i32, i32
  }
  func.func @transform_14(%arg0: i32) -> (i32, i32) {
    %c0_i32 = arith.constant 0 : i32
    %c0_i32_0 = arith.constant 0 : i32
    %c0_i32_1 = arith.constant 0 : i32
    return %c0_i32, %c0_i32_0 : i32, i32
  }
  func.func @transform_15(%arg0: i32) -> (i32, i32, i32) {
    %c0_i32 = arith.constant 0 : i32
    %c0_i32_0 = arith.constant 0 : i32
    %c0_i32_1 = arith.constant 0 : i32
    return %arg0, %c0_i32, %c0_i32_0 : i32, i32, i32
  }
}

</mosaic_0001>

<bundles_post_ra>
// kernel: efficientnet_extract_features.3
= control target key start
LH: loop header
LB: loop body
LE: loop exit
PB: predicated region body
PF: predicated region fallthrough
CT: control target
= control target key end

     0   :  { %s2573_s18 = smov 0   ;;  %s3687_s0 = inlined_call_operand.vmem [shape: bf16[2,384,128], index: 0, kind: input, shape index: {}]   ;;  %s3688_s1 = inlined_call_operand.vmem [shape: f32[81,1], index: 1, kind: input, shape index: {}]   ;;  %s3689_s2 = inlined_call_operand.vmem [shape: f32[9,128], index: 2, kind: input, shape index: {}]   ;;  %s3690_s3 = inlined_call_operand.vmem [shape: f32[1,128], index: 3, kind: input, shape index: {}]   ;;  %s3691_s4 = inlined_call_operand.vmem [shape: f32[1,128], index: 4, kind: input, shape index: {}]   ;;  %s3692_s5 = inlined_call_operand.vmem [shape: f32[128,4], index: 5, kind: input, shape index: {}]   ;;  %s3693_s6 = inlined_call_operand.vmem [shape: f32[1,4], index: 6, kind: input, shape index: {}]   ;;  %s3694_s7 = inlined_call_operand.vmem [shape: f32[4,128], index: 7, kind: input, shape index: {}]   ;;  %s3695_s8 = inlined_call_operand.vmem [shape: f32[1,128], index: 8, kind: input, shape index: {}]   ;;  %s3696_s9 = inlined_call_operand.vmem [shape: f32[128,24], index: 9, kind: input, shape index: {}]   ;;  %s3697_s10 = inlined_call_operand.vmem [shape: f32[1,24], index: 10, kind: input, shape index: {}]   ;;  %s3698_s11 = inlined_call_operand.vmem [shape: f32[1,24], index: 11, kind: input, shape index: {}]   ;;  %s3699_s12 = inlined_call_operand.vmem [shape: f32[24,128], index: 12, kind: input, shape index: {}]   ;;  %s3700_s13 = inlined_call_operand.vmem [shape: f32[1,128], index: 13, kind: input, shape index: {}]   ;;  %s3701_s14 = inlined_call_operand.vmem [shape: f32[1,128], index: 14, kind: input, shape index: {}]   ;;  %s3702_s15 = inlined_call_operand.vmem [shape: f32[2,81,128], index: 15, kind: output, shape index: {}]  }
   0x1 LB: > { %s1952_s19 = sadd.s32 4294967295, %s2487_s18   ;;  %p1956_p0 = scmp.ge.s32.totalorder %s2487_s18, 1  ;;  %s2487_s18 = sphi %s2573_s18, %s25_s18  }
   0x2   : > { %p437_p1 = scmp.lt.s32.totalorder %s2487_s18, 3 }
   0x4   : > { %p438_p2 = pnand %p1956_p0, %p437_p1 }
   0x5   : > { %v1155_v0 = vld [vmem:[%s3688_s1 + $0x10] sm:$0xff] (!%p438_p2)  ;;  %v1153_v1 = vld [vmem:[%s3688_s1] sm:$0xff] (!%p438_p2)  ;;  %p485_p3 = scmp.lt.s32.totalorder (!%p438_p2), %s1952_s19, 1  ;;  %v589_v2 = vlaneseq (!%p438_p2)  ;;  %v2489_v3 = vmov (!%p438_p2), 0   ;;  %v1156_v5 = vld [vmem:[%s3688_s1 + $0x18] sm:$0xff] (!%p438_p2)  ;;  %vm667_vm0 = vcmask (!%p438_p2), 1046528  }
   0x6   : > { %441 = sbr.rel (%p438_p2) target bundleno = 1163 (0x48b), region = 80  ;;  %2384 = vset.pattern.permute.xlu1 (!%p438_p2), %v2489_v3  ;;  %2383 = vset.pattern.permute.xlu0 (!%p438_p2), %v2489_v3  ;;  %v1154_v6 = vld [vmem:[%s3688_s1 + $0x8] sm:$0xff] (!%p438_p2)  ;;  %v2601_v7 = vld [vmem:[%s3689_s2] sm:$0xff] (!%p438_p2)  ;;  %v1160_v27 = vld [vmem:[%s3688_s1 + $0x38] sm:$0xff] (!%p438_p2)  ;;  %vm996_vm1 = vcmask (!%p438_p2), 1045504   ;;  %vm2491_vm2 = vmmov (!%p438_p2), 0  }
   0x7   : > { %1176 = vperm.xlu1 (!%p438_p2), %2384, %v1155_v0   ;;  %1166 = vperm.xlu0 (!%p438_p2), %2383, %v1153_v1   ;;  %v2589_v4 = vshrl.u32 (!%p438_p2), %v589_v2, 7  ;;  %v1158_v11 = vld [vmem:[%s3688_s1 + $0x28] sm:$0xff] (!%p438_p2)  ;;  %v1157_v12 = vld [vmem:[%s3688_s1 + $0x20] sm:$0xff] (!%p438_p2)  ;;  %v1159_v28 = vld [vmem:[%s3688_s1 + $0x30] sm:$0xff] (!%p438_p2)  ;;  %vm1239_vm3 = vcmask (!%p438_p2), 1040384   ;;  %vm1349_vm4 = vcmask (!%p438_p2), 1043456  }
   0x8   : > { %v1162_v41 = vld [vmem:[%s3688_s1 + $0x48] sm:$0xff] (!%p438_p2)  ;;  %v1161_v42 = vld [vmem:[%s3688_s1 + $0x40] sm:$0xff] (!%p438_p2)  ;;  %v1163_v59 = vld [vmem:[%s3688_s1 + $0x50] sm:$0x1] (!%p438_p2)  ;;  %vm1345_vm5 = vcmask (!%p438_p2), 31744   ;;  %vm1619_vm6 = vcmask (!%p438_p2), 195584  }
   0x9   : > { %v3703_v8 = vsub.s32 (!%p438_p2), 0, %v2589_v4  ;;  %v617_v9 = vsub.s32 (!%p438_p2), 1, %v2589_v4  ;;  %v643_v10 = vsub.s32 (!%p438_p2), 2, %v2589_v4  ;;  %v713_v22 = vsub.s32 (!%p438_p2), 3, %v2589_v4 }
   0xa   : > { %v765_v26 = vsub.s32 (!%p438_p2), 5, %v2589_v4  ;;  %v739_v36 = vsub.s32 (!%p438_p2), 4, %v2589_v4  ;;  %v834_v37 = vsub.s32 (!%p438_p2), 6, %v2589_v4  ;;  %v903_v50 = vsub.s32 (!%p438_p2), 7, %v2589_v4 }
   0xb   : > { %1181 = vperm.xlu1 (!%p438_p2), %2384, %v1156_v5   ;;  %1171 = vperm.xlu0 (!%p438_p2), %2383, %v1154_v6   ;;  %v2624_v15 = vrot.slane (!%p438_p2), %v2601_v7, %v3703_v8  ;;  %v2627_v16 = vrot.slane (!%p438_p2), %v2601_v7, %v617_v9  ;;  %v2635_v20 = vrot.slane (!%p438_p2), %v2601_v7, %v643_v10 }
   0xc   : > { %v2671_v38 = vrot.slane (!%p438_p2), %v2601_v7, %v713_v22  ;;  %v2674_v39 = vrot.slane (!%p438_p2), %v2601_v7, %v765_v26  ;;  %v2704_v52 = vrot.slane (!%p438_p2), %v2601_v7, %v739_v36  ;;  %v2712_v54 = vrot.slane (!%p438_p2), %v2601_v7, %v834_v37 }
   0xd   : > { %s3741_s19 = smov (!%p485_p3, %s1952_s19), 1  ;;  %v2736_v3 = vrot.slane %v2601_v7, %v903_v50 }
   0xe   : > { %s2369_s28 = smul.u32 192, %s3741_s19 }
   0xf   : > { %1191 = vperm.xlu1 %2384, %v1158_v11   ;;  %1186 = vperm.xlu0 %2383, %v1157_v12   ;;  %s2370_s23 = smul.u32 88, %s3741_s19 }
  0x10   : > { %s2612_s22 = scalar_lea.vmem %s3687_s0, %s2369_s28 }
  0x11   : > { %v2093_v13 = vld [vmem:[%s2612_s22 + $0x8] sm:$0xff]   ;;  %v2619_v14 = vld [vmem:[%s2612_s22 + $0x38] sm:$0xff]   ;;  %v2006_v40 = vld [vmem:[%s2612_s22] sm:$0xff]   ;;  %s3659_s25 = scalar_lea.vmem %s3702_s15, %s2370_s23 }
  0x12   : > { %v2629_v17 = vunpack.c.l.bf16 %v2093_v13  ;;  %v2631_v18 = vunpack.c.h.bf16 %v2093_v13  ;;  %v2035_v19 = vunpack.c.l.bf16 %v2619_v14  ;;  %v2638_v21 = vld [vmem:[%s2612_s22 + $0x68] sm:$0xff]   ;;  %v2663_v31 = vld [vmem:[%s2612_s22 + $0x98] sm:$0xff]   ;;  %v2684_v43 = vld [vmem:[%s2612_s22 + $0x10] sm:$0xff]   ;;  %v2007_v55 = vunpack.c.l.bf16 %v2006_v40 }
  0x13   : > { %v2059_v30 = vunpack.c.l.bf16 %v2638_v21  ;;  %v2060_v34 = vunpack.c.h.bf16 %v2638_v21  ;;  %1201 = vperm.xlu1 %2384, %v1160_v27   ;;  %1196 = vperm.xlu0 %2383, %v1159_v28   ;;  %v2079_v44 = vunpack.c.l.bf16 %v2663_v31  ;;  %v2693_v46 = vld [vmem:[%s2612_s22 + $0x40] sm:$0xff]   ;;  %v2701_v51 = vld [vmem:[%s2612_s22 + $0x30] sm:$0xff]   ;;  %v2715_v56 = vunpack.c.l.bf16 %v2684_v43 }
  0x14   : > { %v595_v23 = vmul.f32 %v2629_v17, %v2624_v15  ;;  %v621_v24 = vmul.f32 %v2035_v19, %v2627_v16  ;;  %v2648_v25 = vmul.f32 %v2629_v17, %v2635_v20  ;;  %v2659_v29 = vmul.f32 %v2631_v18, %v2635_v20  ;;  %v2743_v11 = vld [vmem:[%s2612_s22 + $0x60] sm:$0xff]   ;;  %v2760_v27 = vld [vmem:[%s2612_s22 + $0x90] sm:$0xff]  }
  0x15   : > { %v717_v48 = vmul.f32 %v2059_v30, %v2671_v38  ;;  %v2697_v49 = vmul.f32 %v2059_v30, %v2674_v39  ;;  %v2709_v53 = vmul.f32 %v2060_v34, %v2674_v39  ;;  %v2036_v57 = vunpack.c.h.bf16 %v2619_v14  ;;  %v2766_v30 = vld [vmem:[%s3689_s2 + $0x8] ss:$0 sm:$0xff] }
  0x16   : > { %v632_v32 = vadd.f32 %v621_v24, %v595_v23  ;;  %v671_v33 = vrot.slane %v2648_v25, 1  ;;  %v673_v35 = vrot.slane %v2659_v29, 1  ;;  %v2718_v58 = vunpack.c.h.bf16 %v2006_v40 }
  0x17   : > { %1211 = vperm.xlu1 %2384, %v1162_v41   ;;  %1206 = vperm.xlu0 %2383, %v1161_v42   ;;  %v3706_v60 = vunpack.c.l.bf16 %v2693_v46  ;;  %v743_v61 = vmul.f32 %v2079_v44, %v2704_v52  ;;  %v2727_v62 = vmul.f32 %v2631_v18, %v2712_v54  ;;  %v2031_v63 = vunpack.c.l.bf16 %v2701_v51 }
  0x18   : > { %v674_v45 = vsel %vm667_vm0, %v671_v33, %v673_v35  ;;  %v3708_v1 = vrot.slane %v2697_v49, 1  ;;  %v2733_v2 = vmul.f32 %v2715_v56, %v2712_v54  ;;  %v794_v5 = vrot.slane %v2709_v53, 1 }
  0x19   : > { %v702_v47 = vadd.f32 %v674_v45, %v632_v32  ;;  %v593_v6 = vmul.f32 %v2007_v55, %v2624_v15  ;;  %v619_v9 = vmul.f32 %v2031_v63, %v2627_v16  ;;  %v645_v10 = vmul.f32 %v2007_v55, %v2635_v20 }
  0x1a   : > { %v2747_v12 = vmul.f32 %v2718_v58, %v2635_v20  ;;  %v2750_v13 = vmul.f32 %v2036_v57, %v2736_v3  ;;  %v2755_v7 = vmul.f32 %v3706_v60, %v2736_v3  ;;  %v3705_v24 = vrot.slane %v2727_v62, 1 }
  0x1b   : > { %v728_v0 = vadd.f32 %v717_v48, %v702_v47  ;;  %1216 = vperm.xlu0 %2383, %v1163_v59   ;;  %v668_v22 = vrot.slane %v645_v10, 1  ;;  %v863_v26 = vrot.slane %v2733_v2, 1  ;;  %v795_v32 = vsel %vm667_vm0, %v3708_v1, %v794_v5 }
  0x1c   : > { %v669_v28 = vrot.slane %v2747_v12, 1  ;;  %v2055_v36 = vunpack.c.l.bf16 %v2743_v11  ;;  %v2056_v37 = vunpack.c.h.bf16 %v2743_v11  ;;  %v630_v40 = vadd.f32 %v619_v9, %v593_v6 }
  0x1d   : > { %v754_v23 = vadd.f32 %v743_v61, %v728_v0  ;;  %v2777_v41 = vmul.f32 %v2631_v18, %v2766_v30  ;;  %v2781_v42 = vmul.f32 %v2715_v56, %v2766_v30  ;;  %v3704_v45 = vrot.slane %v2750_v13, 1  ;;  %v2794_v61 = vld [vmem:[%s2612_s22 + $0x70] sm:$0xff]  }
  0x1e   : > { %v670_v44 = vsel %vm667_vm0, %v668_v22, %v669_v28  ;;  %v3707_v47 = vrot.slane %v2755_v7, 1  ;;  %v2075_v48 = vunpack.c.l.bf16 %v2760_v27  ;;  %v622_v50 = vmul.f32 %v2036_v57, %v2627_v16 }
  0x1f   : > { %v823_v55 = vadd.f32 %v795_v32, %v754_v23  ;;  %v864_v59 = vsel %vm667_vm0, %v3705_v24, %v863_v26  ;;  %v700_v63 = vadd.f32 %v670_v44, %v630_v40  ;;  %v715_v0 = vmul.f32 %v2055_v36, %v2671_v38 }
  0x20   : > { %v767_v6 = vmul.f32 %v2055_v36, %v2674_v39  ;;  %v2801_v9 = vmul.f32 %v2056_v37, %v2674_v39  ;;  %v3710_v57 = vrot.slane %v2777_v41, 2  ;;  %v1002_v10 = vrot.slane %v2781_v42, 2 }
  0x21   : > { %v2032_v12 = vunpack.c.h.bf16 %v2701_v51  ;;  %v933_v22 = vsel %vm667_vm0, %v3704_v45, %v3707_v47  ;;  %v741_v23 = vmul.f32 %v2075_v48, %v2704_v52  ;;  %v3709_v32 = vunpack.c.l.bf16 %v2794_v61 }
  0x22   : > { %v596_v36 = vmul.f32 %v2631_v18, %v2624_v15  ;;  %v892_v40 = vadd.f32 %v864_v59, %v823_v55  ;;  %v836_v44 = vmul.f32 %v2718_v58, %v2712_v54  ;;  %v2819_v51 = vmul.f32 %v2629_v17, %v2712_v54 }
  0x23   : > { %v2823_v8 = vmul.f32 %v2715_v56, %v2635_v20  ;;  %v726_v45 = vadd.f32 %v715_v0, %v700_v63  ;;  %v789_v24 = vrot.slane %v767_v6, 1  ;;  %v790_v48 = vrot.slane %v2801_v9, 1 }
  0x24   : > { %v633_v60 = vadd.f32 %v622_v50, %v596_v36  ;;  %v1003_v18 = vsel %vm996_vm1, %v3710_v57, %v1002_v10  ;;  %v905_v55 = vmul.f32 %v2032_v12, %v2736_v3  ;;  %v2080_v59 = vunpack.c.h.bf16 %v2663_v31 }
  0x25   : > { %v675_v47 = vrot.slane %v2823_v8, 1  ;;  %v620_v1 = vmul.f32 %v2032_v12, %v2627_v16  ;;  %v2838_v63 = vmul.f32 %v2035_v19, %v2736_v3  ;;  %v718_v50 = vmul.f32 %v2060_v34, %v2671_v38  ;;  %v1249_v8 = vld [vmem:[%s3692_s5] sm:$0xff] }
  0x26   : > { %v2846_v0 = vmul.f32 %v3709_v32, %v2674_v39  ;;  %v961_v6 = vadd.f32 %v933_v22, %v892_v40  ;;  %v858_v31 = vrot.slane %v836_v44, 1  ;;  %v859_v36 = vrot.slane %v2819_v51, 1 }
  0x27   : > { %v676_v14 = vsel %vm667_vm0, %v673_v35, %v675_v47  ;;  %v752_v19 = vadd.f32 %v741_v23, %v726_v45  ;;  %v791_v21 = vsel %vm667_vm0, %v789_v24, %v790_v48  ;;  %v2016_v34 = vunpack.c.h.bf16 %v2684_v43  ;;  %v2095_v43 = vld [vmem:[%s2612_s22 + $0x18] sm:$0xff]  }
  0x28   : > { %v703_v12 = vadd.f32 %v676_v14, %v633_v60  ;;  %v927_v32 = vrot.slane %v905_v55, 1  ;;  %v2040_v22 = vunpack.c.h.bf16 %v2693_v46  ;;  %v744_v40 = vmul.f32 %v2080_v59, %v2704_v52 }
  0x29   : > { %v594_v44 = vmul.f32 %v2718_v58, %v2624_v15  ;;  %v3712_v29 = vrot.slane %v2846_v0, 1  ;;  %v2864_v35 = vmul.f32 %v2016_v34, %v2712_v54  ;;  %v672_v24 = vsel %vm667_vm0, %v669_v28, %v671_v33 }
  0x2a   : > { %v729_v57 = vadd.f32 %v718_v50, %v703_v12  ;;  %v1031_v60 = vadd.f32 %v1003_v18, %v961_v6  ;;  %v928_v45 = vrot.slane %v2838_v63, 1  ;;  %v974_v23 = vmul.f32 %v2718_v58, %v2766_v30 }
  0x2b   : > { %v631_v55 = vadd.f32 %v620_v1, %v594_v44  ;;  %v821_v59 = vadd.f32 %v791_v21, %v752_v19  ;;  %v860_v50 = vsel %vm667_vm0, %v858_v31, %v859_v36  ;;  %v2076_v14 = vunpack.c.h.bf16 %v2760_v27  ;;  %v2889_v1 = vld [vmem:[%s3690_s3] ss:$0 sm:$0xff] }
  0x2c   : > { %v716_v25 = vmul.f32 %v2056_v37, %v2671_v38  ;;  %v2882_v33 = vmul.f32 %v2629_v17, %v2766_v30  ;;  %v755_v28 = vadd.f32 %v744_v40, %v729_v57  ;;  %v2884_v58 = vunpack.c.l.bf16 %v2095_v43  ;;  %v2911_v40 = vld [vmem:[%s2612_s22 + $0x78] sm:$0xff]  }
  0x2d   : > { %v701_v18 = vadd.f32 %v672_v24, %v631_v55  ;;  %v624_v27 = vmul.f32 %v2040_v22, %v2627_v16  ;;  %v797_v11 = vsel %vm667_vm0, %v794_v5, %v3712_v29  ;;  %v3711_v17 = vrot.slane %v2864_v35, 1 }
  0x2e   : > { %v2899_v37 = vmul.f32 %v2040_v22, %v2736_v3  ;;  %v1049_v57 = vmul.f32 %v2889_v1, %v1031_v60  ;;  %v929_v6 = vsel %vm667_vm0, %v927_v32, %v928_v45  ;;  %v997_v31 = vrot.slane %v974_v23, 2  ;;  %v2922_v60 = vld [vmem:[%s3691_s4] ss:$0 sm:$0xff] }
  0x2f   : > { %v598_v19 = vmul.f32 %v2016_v34, %v2624_v15  ;;  %v890_v21 = vadd.f32 %v860_v50, %v821_v59  ;;  %v2907_v53 = vmul.f32 %v2016_v34, %v2766_v30  ;;  %v727_v5 = vadd.f32 %v716_v25, %v701_v18  ;;  %v2111_v25 = vld [vmem:[%s2612_s22 + $0xa0] sm:$0xff]  }
  0x30   : > { %v742_v12 = vmul.f32 %v2076_v14, %v2704_v52  ;;  %v998_v22 = vrot.slane %v2882_v33, 2  ;;  %v824_v44 = vadd.f32 %v797_v11, %v755_v28  ;;  %v650_v24 = vmul.f32 %v2016_v34, %v2635_v20 }
  0x31   : > { %v2917_v32 = vmul.f32 %v2884_v58, %v2635_v20  ;;  %v866_v23 = vsel %vm667_vm0, %v863_v26, %v3711_v17  ;;  %v934_v55 = vrot.slane %v2899_v37, 1  ;;  %v2064_v34 = vunpack.c.h.bf16 %v2794_v61 }
  0x32   : > { %v635_v59 = vadd.f32 %v624_v27, %v598_v19  ;;  %v2932_v50 = vadd.f32 %v2922_v60, %v1049_v57  ;;  %v2067_v14 = vunpack.c.l.bf16 %v2911_v40  ;;  %v677_v33 = vrot.slane %v650_v24, 1 }
  0x33   : > { %v679_v28 = vrot.slane %v2917_v32, 1  ;;  %v959_v18 = vadd.f32 %v929_v6, %v890_v21  ;;  %v1004_v2 = vrot.slane %v2907_v53, 2  ;;  %v753_v11 = vadd.f32 %v742_v12, %v727_v5  ;;  %v2953_v21 = vld [vmem:[%s2612_s22 + $0x48] sm:$0xff]  }
  0x34   : > { %v999_v26 = vsel %vm996_vm1, %v997_v31, %v998_v22  ;;  %v893_v17 = vadd.f32 %v866_v23, %v824_v44  ;;  %v3722_v29 = vrot.slane %v2697_v49, 1  ;;  %v3723_v6 = vrot.slane %v2755_v7, 1 }
  0x35   : > { %v680_v57 = vsel %vm667_vm0, %v677_v33, %v679_v28  ;;  %v2084_v31 = vunpack.c.h.bf16 %v2111_v25  ;;  %v720_v49 = vmul.f32 %v2064_v34, %v2671_v38  ;;  %v3724_v9 = vunpack.c.l.bf16 %v2693_v46 }
  0x36   : > { %v793_v27 = vsel %vm667_vm0, %v790_v48, %v3722_v29  ;;  %v935_v19 = vsel %vm667_vm0, %v3723_v6, %v934_v55  ;;  %v705_v5 = vadd.f32 %v680_v57, %v635_v59  ;;  %v2960_v29 = vmul.f32 -1.442695, %v2932_v50 }
  0x37   : > { %v623_v48 = vmul.f32 %v3724_v9, %v2627_v16  ;;  %v772_v12 = vmul.f32 %v2064_v34, %v2674_v39  ;;  %v2966_v7 = vmul.f32 %v2067_v14, %v2674_v39  ;;  %v1029_v44 = vadd.f32 %v999_v26, %v959_v18 }
  0x38   : > { %v1005_v24 = vsel %vm996_vm1, %v1002_v10, %v1004_v2  ;;  %v822_v23 = vadd.f32 %v793_v27, %v753_v11  ;;  %v2020_v46 = vunpack.c.h.bf16 %v2095_v43  ;;  %v962_v59 = vadd.f32 %v935_v19, %v893_v17 }
  0x39   : > { %v3725_v57 = vrot.slane %v2727_v62, 1  ;;  %v2043_v6 = vunpack.c.l.bf16 %v2953_v21  ;;  %v2044_v9 = vunpack.c.h.bf16 %v2953_v21  ;;  %v731_v18 = vadd.f32 %v720_v49, %v705_v5 }
  0x3a   : > { %v746_v26 = vmul.f32 %v2084_v31, %v2704_v52  ;;  %v841_v42 = vmul.f32 %v2884_v58, %v2712_v54  ;;  %v2984_v10 = vmul.f32 %v2020_v46, %v2712_v54  ;;  %v798_v43 = vrot.slane %v772_v12, 1 }
  0x3b   : > { %v862_v34 = vsel %vm667_vm0, %v859_v36, %v3725_v57  ;;  %v800_v62 = vrot.slane %v2966_v7, 1  ;;  %v2083_v17 = vunpack.c.l.bf16 %v2111_v25  ;;  %v597_v51 = vmul.f32 %v2715_v56, %v2624_v15 }
  0x3c   : > { %v1047_v36 = vmul.f32 %v2889_v1, %v1029_v44  ;;  %v891_v11 = vadd.f32 %v862_v34, %v822_v23  ;;  %v3726_v27 = vrot.slane %v2750_v13, 1  ;;  %v910_v31 = vmul.f32 %v2043_v6, %v2736_v3 }
  0x3d   : > { %v3727_v5 = vrot.slane %v2777_v41, 2  ;;  %v3002_v56 = vmul.f32 %v2044_v9, %v2736_v3  ;;  %v634_v49 = vadd.f32 %v623_v48, %v597_v51  ;;  %v678_v13 = vsel %vm667_vm0, %v675_v47, %v677_v33  ;;  %v1250_v47 = vld [vmem:[%s3692_s5 + $0x8] sm:$0xff] }
  0x3e   : > { %v931_v19 = vsel %vm667_vm0, %v928_v45, %v3726_v27  ;;  %v1032_v63 = vadd.f32 %v1005_v24, %v962_v59  ;;  %v757_v12 = vadd.f32 %v746_v26, %v731_v18  ;;  %v867_v45 = vrot.slane %v841_v42, 1 }
  0x3f   : > { %v1001_v25 = vsel %vm996_vm1, %v998_v22, %v3727_v5  ;;  %v3728_v44 = vunpack.c.l.bf16 %v2794_v61  ;;  %v801_v41 = vsel %vm667_vm0, %v798_v43, %v800_v62  ;;  %v869_v22 = vrot.slane %v2984_v10, 1  ;;  %v2096_v61 = vld [vmem:[%s2612_s22 + $0x20] sm:$0xff]  }
  0x40   : > { %v704_v57 = vadd.f32 %v678_v13, %v634_v49  ;;  %v745_v48 = vmul.f32 %v2083_v17, %v2704_v52  ;;  %v3023_v33 = vadd.f32 %v2922_v60, %v1047_v36  ;;  %v960_v24 = vadd.f32 %v931_v19, %v891_v11  ;;  %v3032_v17 = vld [vmem:[%s2612_s22 + $0x80] sm:$0xff]  }
  0x41   : > { %v719_v23 = vmul.f32 %v3728_v44, %v2671_v38  ;;  %v936_v59 = vrot.slane %v910_v31, 1  ;;  %v979_v34 = vmul.f32 %v2884_v58, %v2766_v30  ;;  %v938_v18 = vrot.slane %v3002_v56, 1 }
  0x42   : > { %v3029_v26 = vmul.f32 %v2020_v46, %v2766_v30  ;;  %v826_v51 = vadd.f32 %v801_v41, %v757_v12  ;;  %v3729_v27 = vrot.slane %v2846_v0, 1  ;;  %v3714_v5 = vmov 0.0|0.0  }
  0x43   : > { %v730_v42 = vadd.f32 %v719_v23, %v704_v57  ;;  %2318 = vmatprep.subr.bf16.mxu0 %v3714_v5  ;;  %v2319_v11 = vpack.c.bf16 %v1250_v47, %v1249_v8  ;;  %v3038_v19 = vunpack.c.l.bf16 %v2096_v61  ;;  %v1050_v31 = vmul.f32 %v2889_v1, %v1032_v63  ;;  %v3048_v23 = vld [vmem:[%s2612_s22 + $0xa8] sm:$0xff]  }
  0x44   : > { %v799_v36 = vsel %vm667_vm0, %v3729_v27, %v798_v43  ;;  %v626_v49 = vmul.f32 %v2044_v9, %v2627_v16  ;;  %v870_v13 = vsel %vm667_vm0, %v867_v45, %v869_v22  ;;  %v1030_v12 = vadd.f32 %v1001_v25, %v960_v24 }
  0x45   : > { %v756_v44 = vadd.f32 %v745_v48, %v730_v42  ;;  %2320 = vmatpush3.bf16.msra.mxu0 %v2319_v11  ;;  %v2068_v0 = vunpack.c.h.bf16 %v2911_v40  ;;  %v3713_v43 = vunpack.c.l.bf16 %v3032_v17  ;;  %v600_v41 = vmul.f32 %v2020_v46, %v2624_v15 }
  0x46   : > { %v1006_v57 = vrot.slane %v979_v34, 2  ;;  %v3730_v9 = vrot.slane %v2864_v35, 1  ;;  %v652_v47 = vmul.f32 %v2020_v46, %v2635_v20  ;;  %2321 = vmatprep.subr.bf16.mxu0 %v3714_v5  ;;  %v895_v25 = vadd.f32 %v870_v13, %v826_v51 }
  0x47   : > { %v825_v63 = vadd.f32 %v799_v36, %v756_v44  ;;  %v939_v48 = vsel %vm667_vm0, %v936_v59, %v938_v18  ;;  %v1008_v24 = vrot.slane %v3029_v26, 2  ;;  %v3062_v42 = vmul.f32 %v3038_v19, %v2635_v20  ;;  %v3068_v36 = vld [vmem:[%s2612_s22 + $0x50] sm:$0xff]  }
  0x48   : > { %v868_v8 = vsel %vm667_vm0, %v3730_v9, %v867_v45  ;;  %v3064_v34 = vunpack.c.h.bf16 %v2096_v61  ;;  %v2088_v35 = vunpack.c.h.bf16 %v3048_v23  ;;  %v637_v45 = vadd.f32 %v626_v49, %v600_v41 }
  0x49   : > { %v681_v27 = vrot.slane %v652_v47, 1  ;;  %v894_v46 = vadd.f32 %v868_v8, %v825_v63  ;;  %v3716_v51 = vrot.slane %v3062_v42, 1  ;;  %v3072_v11 = vmul.f32 %v2068_v0, %v2674_v39 }
  0x4a   : > { %v3077_v13 = vmul.f32 %v3713_v43, %v2674_v39  ;;  %v937_v61 = vsel %vm667_vm0, %v934_v55, %v936_v59  ;;  %v722_v49 = vmul.f32 %v2068_v0, %v2671_v38  ;;  %v843_v44 = vmul.f32 %v3038_v19, %v2712_v54 }
  0x4b   : > { %v3087_v41 = vmul.f32 %v3064_v34, %v2712_v54  ;;  %v1048_v63 = vmul.f32 %v2889_v1, %v1030_v12  ;;  %v964_v9 = vadd.f32 %v939_v48, %v895_v25  ;;  %v684_v8 = vsel %vm667_vm0, %v681_v27, %v3716_v51 }
  0x4c   : > { %v802_v37 = vrot.slane %v3072_v11, 1  ;;  %v2047_v55 = vunpack.c.l.bf16 %v3068_v36  ;;  %v707_v59 = vadd.f32 %v684_v8, %v637_v45  ;;  %v748_v0 = vmul.f32 %v2088_v35, %v2704_v52 }
  0x4d   : > { %v3717_v47 = vrot.slane %v3077_v13, 1  ;;  %v1009_v43 = vsel %vm996_vm1, %v1006_v57, %v1008_v24  ;;  %v963_v5 = vadd.f32 %v937_v61, %v894_v46  ;;  %v1007_v12 = vsel %vm996_vm1, %v1004_v2, %v1006_v57 }
  0x4e   : > { %v2048_v25 = vunpack.c.h.bf16 %v3068_v36  ;;  %v733_v48 = vadd.f32 %v722_v49, %v707_v59  ;;  %v871_v11 = vrot.slane %v843_v44, 1  ;;  %v3718_v51 = vrot.slane %v3087_v41, 1 }
  0x4f   : > { %v912_v35 = vmul.f32 %v2047_v55, %v2736_v3  ;;  %v1962_v45 = vmul.f32 -1.442695, %v3023_v33  ;;  %v625_v46 = vmul.f32 %v2043_v6, %v2627_v16  ;;  %v805_v53 = vsel %vm667_vm0, %v802_v37, %v3717_v47 }
  0x50   : > { %v3116_v2 = vmul.f32 %v2048_v25, %v2736_v3  ;;  %v3119_v57 = vadd.f32 %v2922_v60, %v1050_v31  ;;  %v3122_v61 = vadd.f32 %v2922_v60, %v1048_v63  ;;  %v1034_v49 = vadd.f32 %v1009_v43, %v964_v9 }
  0x51   : > { %v759_v44 = vadd.f32 %v748_v0, %v733_v48  ;;  %v1033_v8 = vadd.f32 %v1007_v12, %v963_v5  ;;  %v3126_v21 = vmul.f32 %v3038_v19, %v2766_v30  ;;  %v2087_v6 = vunpack.c.l.bf16 %v3048_v23  ;;  %v1251_v5 = vld [vmem:[%s3692_s5 + $0x10] sm:$0xff]  ;;  %v1252_v23 = vld [vmem:[%s3692_s5 + $0x18] sm:$0xff] }
  0x52   : > { %v599_v59 = vmul.f32 %v2884_v58, %v2624_v15  ;;  %v874_v31 = vsel %vm667_vm0, %v871_v11, %v3718_v51  ;;  %v940_v63 = vrot.slane %v912_v35, 1  ;;  %v682_v43 = vsel %vm667_vm0, %v679_v28, %v681_v27  ;;  %v3152_v28 = vld [vmem:[%s2612_s22 + $0x28] sm:$0xff]  }
  0x53   : > { %v828_v47 = vadd.f32 %v805_v53, %v759_v44  ;;  %v942_v58 = vrot.slane %v3116_v2, 1  ;;  %v3146_v9 = vmul.f32 %v3064_v34, %v2766_v30  ;;  %v721_v32 = vmul.f32 %v2067_v14, %v2671_v38  ;;  %v3166_v14 = vld [vmem:[%s2612_s22 + $0x88] ss:$48 sps:$4 sm:$0xff]  }
  0x54   : > { %v636_v0 = vadd.f32 %v625_v46, %v599_v59  ;;  %2385 = vpow2.f32 %v1962_v45  ;;  %v3155_v27 = vmul.f32 -1.442695, %v3119_v57  ;;  %v3158_v12 = vmul.f32 -1.442695, %v3122_v61 }
  0x55   : > { %v3161_v48 = vmul.f32 %v2889_v1, %v1034_v49  ;;  %v628_v35 = vmul.f32 %v2048_v25, %v2627_v16  ;;  %v747_v53 = vmul.f32 %v2087_v6, %v2704_v52  ;;  %v2322_v40 = vpack.c.bf16 %v1252_v23, %v1251_v5  ;;  %v3181_v5 = vld [vmem:[%s2612_s22 + $0x58] sm:$0xff]  }
  0x56   : > { %v706_v46 = vadd.f32 %v682_v43, %v636_v0  ;;  %v1051_v45 = vmul.f32 %v2889_v1, %v1033_v8  ;;  %v897_v44 = vadd.f32 %v874_v31, %v828_v47  ;;  %v1010_v59 = vrot.slane %v3126_v21, 2  ;;  %v3191_v31 = vld [vmem:[%s2612_s22 + $0xb0] sm:$0xff]  }
  0x57   : > { %v3171_v51 = vunpack.c.l.bf16 %v3152_v28  ;;  %v943_v49 = vsel %vm667_vm0, %v940_v63, %v942_v58  ;;  %v1012_v25 = vrot.slane %v3146_v9, 2  ;;  %v803_v6 = vsel %vm667_vm0, %v800_v62, %v802_v37  ;;  %2323 = vmatpush3.bf16.msra.mxu0 %v2322_v40  ;;  %v1262_v9 = vld [vmem:[%s3692_s5 + $0x68] sm:$0xff] }
  0x58   : > { %v732_v43 = vadd.f32 %v721_v32, %v706_v46  ;;  %v872_v47 = vsel %vm667_vm0, %v869_v22, %v871_v11  ;;  %v941_v8 = vsel %vm667_vm0, %v938_v18, %v940_v63  ;;  %v2072_v21 = vunpack.c.h.bf16 %v3032_v17 }
  0x59   : > { %v575_v23 = vunpack.c.l.bf16 %v3166_v14  ;;  %v3731_v7 = vmov 0.0|0.0   ;;  %v2028_v37 = vunpack.c.h.bf16 %v3152_v28  ;;  %v602_v10 = vmul.f32 %v3064_v34, %v2624_v15 }
  0x5a   : > { %2324 = vmatprep.subr.bf16.mxu0 %v3731_v7  ;;  %v758_v62 = vadd.f32 %v747_v53, %v732_v43  ;;  %v654_v22 = vmul.f32 %v3064_v34, %v2635_v20  ;;  %v966_v56 = vadd.f32 %v943_v49, %v897_v44  ;;  %v1011_v18 = vsel %vm996_vm1, %v1008_v24, %v1010_v59 }
  0x5b   : > { %v2051_v11 = vunpack.c.l.bf16 %v3181_v5  ;;  %v3206_v63 = vmul.f32 %v3171_v51, %v2635_v20  ;;  %v2092_v32 = vunpack.c.h.bf16 %v3191_v31  ;;  %v639_v28 = vadd.f32 %v628_v35, %v602_v10 }
  0x5c   : > { %v827_v0 = vadd.f32 %v803_v6, %v758_v62  ;;  %v685_v46 = vrot.slane %v654_v22, 1  ;;  %v2052_v53 = vunpack.c.h.bf16 %v3181_v5  ;;  %v3212_v40 = vmul.f32 %v2072_v21, %v2674_v39 }
  0x5d   : > { %v687_v34 = vrot.slane %v3206_v63, 1  ;;  %v3217_v26 = vmul.f32 %v2674_v39, %v575_v23  ;;  %v724_v20 = vmul.f32 %v2072_v21, %v2671_v38  ;;  %v3222_v44 = vmul.f32 %v3171_v51, %v2712_v54  ;;  %v1260_v63 = vld [vmem:[%s3692_s5 + $0x58] sm:$0xff] }
  0x5e   : > { %v896_v24 = vadd.f32 %v872_v47, %v827_v0  ;;  %v3225_v35 = vmul.f32 %v2028_v37, %v2712_v54  ;;  %v3227_v49 = vpop.eup %2385  ;;  %v806_v6 = vrot.slane %v3212_v40, 1  ;;  %v3235_v5 = vmul.f32 %v2051_v11, %v2736_v3 }
  0x5f   : > { %v688_v43 = vsel %vm667_vm0, %v685_v46, %v687_v34  ;;  %v808_v39 = vrot.slane %v3217_v26, 1  ;;  %v750_v62 = vmul.f32 %v2092_v32, %v2704_v52  ;;  %v875_v54 = vrot.slane %v3222_v44, 1 }
  0x60   : > { %v965_v47 = vadd.f32 %v941_v8, %v896_v24  ;;  %v709_v21 = vadd.f32 %v688_v43, %v639_v28  ;;  %v627_v10 = vmul.f32 %v2047_v55, %v2627_v16  ;;  %v1013_v22 = vsel %vm996_vm1, %v1010_v59, %v1012_v25 }
  0x61   : > { %v3719_v0 = vrot.slane %v3225_v35, 1  ;;  %v3247_v40 = vmul.f32 %v2052_v53, %v2736_v3  ;;  %v3250_v8 = vadd.f32 %v2922_v60, %v1051_v45  ;;  %v809_v24 = vsel %vm667_vm0, %v806_v6, %v808_v39 }
  0x62   : > { %v1035_v28 = vadd.f32 %v1011_v18, %v965_v47  ;;  %v735_v32 = vadd.f32 %v724_v20, %v709_v21  ;;  %v944_v36 = vrot.slane %v3235_v5, 1  ;;  %v3259_v59 = vmul.f32 %v3171_v51, %v2766_v30 }
  0x63   : > { %v3720_v55 = vrot.slane %v3247_v40, 1  ;;  %v3262_v3 = vmul.f32 %v2028_v37, %v2766_v30  ;;  %v1036_v53 = vadd.f32 %v1013_v22, %v966_v56  ;;  %v878_v20 = vsel %vm667_vm0, %v875_v54, %v3719_v0  ;;  %v1255_v0 = vld [vmem:[%s3692_s5 + $0x30] sm:$0xff] }
  0x64   : > { %v1053_v45 = vmul.f32 %v2889_v1, %v1035_v28  ;;  %v761_v18 = vadd.f32 %v750_v62, %v735_v32  ;;  %v1014_v43 = vrot.slane %v3259_v59, 2  ;;  %v2091_v21 = vunpack.c.l.bf16 %v3191_v31  ;;  %v1253_v28 = vld [vmem:[%s3692_s5 + $0x20] sm:$0xff]  ;;  %v1254_v31 = vld [vmem:[%s3692_s5 + $0x28] sm:$0xff] }
  0x65   : > { %v3721_v47 = vrot.slane %v3262_v3, 2  ;;  %v601_v30 = vmul.f32 %v3038_v19, %v2624_v15  ;;  %2387 = vpow2.f32 %v3158_v12  ;;  %v3278_v37 = vadd.f32 %v2922_v60, %v3161_v48  ;;  %v1261_v59 = vld [vmem:[%s3692_s5 + $0x60] sm:$0xff] }
  0x66   : > { %v830_v56 = vadd.f32 %v809_v24, %v761_v18  ;;  %v3732_v62 = vrot.slane %v3062_v42, 1  ;;  %v1966_v19 = vmul.f32 -1.442695, %v3250_v8  ;;  %v947_v12 = vsel %vm667_vm0, %v944_v36, %v3720_v55 }
  0x67   : > { %v638_v48 = vadd.f32 %v627_v10, %v601_v30  ;;  %v3733_v42 = vunpack.c.l.bf16 %v3032_v17  ;;  %v1054_v32 = vmul.f32 %v2889_v1, %v1036_v53  ;;  %v3300_v24 = vadd.f32 %v2922_v60, %v1053_v45  ;;  %v1256_v10 = vld [vmem:[%s3692_s5 + $0x38] sm:$0xff] }
  0x68   : > { %v686_v22 = vsel %vm667_vm0, %v3732_v62, %v685_v46  ;;  %v629_v18 = vmul.f32 %v2051_v11, %v2627_v16  ;;  %v899_v62 = vadd.f32 %v878_v20, %v830_v56  ;;  %v1017_v17 = vsel %vm996_vm1, %v1014_v43, %v3721_v47 }
  0x69   : > { %v723_v46 = vmul.f32 %v3733_v42, %v2671_v38  ;;  %v708_v53 = vadd.f32 %v686_v22, %v638_v48  ;;  %v749_v45 = vmul.f32 %v2091_v21, %v2704_v52  ;;  %v2325_v30 = vpack.c.bf16 %v1254_v31, %v1253_v28 }
  0x6a   : > { %2389 = vpow2.f32 %v2960_v29  ;;  %v968_v16 = vadd.f32 %v947_v12, %v899_v62  ;;  %v586_v11 = vunpack.c.h.bf16 %v3166_v14  ;;  %v603_v20 = vmul.f32 %v3171_v51, %v2624_v15  ;;  %v1257_v15 = vld [vmem:[%s3692_s5 + $0x40] sm:$0xff]  ;;  %v1258_v51 = vld [vmem:[%s3692_s5 + $0x48] sm:$0xff] }
  0x6b   : > { %2391 = vpow2.f32 %v3155_v27  ;;  %v1967_v56 = vmul.f32 -1.442695, %v3278_v37  ;;  %v734_v42 = vadd.f32 %v723_v46, %v708_v53  ;;  %2326 = vmatpush3.bf16.msra.mxu0 %v2325_v30  ;;  %v2328_v55 = vpack.c.bf16 %v1256_v10, %v1255_v0 }
  0x6c   : > { %v1038_v47 = vadd.f32 %v1017_v17, %v968_v16  ;;  %v3734_v22 = vrot.slane %v3077_v13, 1  ;;  %v640_v28 = vadd.f32 %v629_v18, %v603_v20  ;;  %v725_v29 = vmul.f32 %v2671_v38, %v575_v23  ;;  %2327 = vmatprep.subr.bf16.mxu0 %v3731_v7 }
  0x6d   : > { %2393 = vpow2.f32 %v1966_v19  ;;  %v3335_v13 = vadd.f32 %v2922_v60, %v1054_v32  ;;  %v1968_v27 = vmul.f32 -1.442695, %v3300_v24  ;;  %v3735_v38 = vrot.slane %v3087_v41, 1 }
  0x6e   : > { %v807_v21 = vsel %vm667_vm0, %v3734_v22, %v806_v6  ;;  %v760_v6 = vadd.f32 %v749_v45, %v734_v42  ;;  %v1056_v14 = vmul.f32 %v2889_v1, %v1038_v47  ;;  %v710_v0 = vadd.f32 %v687_v34, %v640_v28 }
  0x6f   : > { %v876_v23 = vsel %vm667_vm0, %v3735_v38, %v875_v54  ;;  %v751_v31 = vmul.f32 %v2704_v52, %v586_v11  ;;  %2329 = vmatpush3.bf16.msra.mxu0 %v2328_v55  ;;  %v2331_v12 = vpack.c.bf16 %v1258_v51, %v1257_v15  ;;  %v2388_v48 = vpop.eup %2387  ;;  %2395 = vpow2.f32 %v1967_v56  ;;  %v1259_v52 = vld [vmem:[%s3692_s5 + $0x50] sm:$0xff] }
  0x70   : > { %v829_v19 = vadd.f32 %v807_v21, %v760_v6  ;;  %v3348_v46 = vadd.f32 %v2922_v60, %v1056_v14  ;;  %v945_v41 = vsel %vm667_vm0, %v942_v58, %v944_v36  ;;  %v736_v44 = vadd.f32 %v725_v29, %v710_v0  ;;  %2330 = vmatprep.subr.bf16.mxu0 %v3731_v7 }
  0x71   : > { %v2492_v34 = vmov 0.0   ;;  %v1969_v2 = vmul.f32 -1.442695, %v3335_v13  ;;  %v1015_v58 = vsel %vm996_vm1, %v1012_v25, %v1014_v43  ;;  %2397 = vpow2.f32 %v1968_v27 }
  0x72   : > { %2206 = vmatprep.mubr.msk.f32.mxu0 %vm2491_vm2, %v2492_v34  ;;  %v898_v5 = vadd.f32 %v876_v23, %v829_v19  ;;  %2209 = vmatprep.subr.mxu1 %v2492_v34  ;;  %v762_v54 = vadd.f32 %v751_v31, %v736_v44  ;;  %v2334_v55 = vpack.c.bf16 %v1260_v63, %v1259_v52  ;;  %v1971_v32 = vmul.f32 -1.442695, %v3348_v46 }
  0x73   : > { %2211 = vmatprep.mubr.msk.f32.mxu1 %vm2491_vm2, %v2492_v34  ;;  %2332 = vmatpush3.bf16.msra.mxu0 %v2331_v12  ;;  %v1109_v43 = vadd.f32 1.0, %v3227_v49  ;;  %2399 = vpow2.f32 %v1969_v2  ;;  %v1110_v10 = vadd.f32 1.0, %v2388_v48  ;;  %v3736_v17 = vrot.slane %v3225_v35, 1  ;;  %v1263_v49 = vld [vmem:[%s3692_s5 + $0x70] sm:$0xff]  ;;  %v1264_v35 = vld [vmem:[%s3692_s5 + $0x78] sm:$0xff] }
  0x74   : > { %v967_v36 = vadd.f32 %v945_v41, %v898_v5  ;;  %v2390_v47 = vpop.eup %2389  ;;  %v831_v18 = vadd.f32 %v808_v39, %v762_v54  ;;  %2333 = vmatprep.subr.bf16.mxu0 %v3731_v7  ;;  %v2337_v45 = vpack.c.bf16 %v1262_v9, %v1261_v59  ;;  %2401 = vpow2.f32 %v1971_v32 }
  0x75   : > { %v2392_v25 = vpop.eup %2391  ;;  %v1111_v30 = vadd.f32 1.0, %v2390_v47  ;;  %v3737_v16 = vrot.slane %v3247_v40, 1  ;;  %2403 = vrcp.f32 %v1109_v43  ;;  %v3738_v40 = vrot.slane %v3262_v3, 2 }
  0x76   : > { %v1037_v62 = vadd.f32 %v1015_v58, %v967_v36  ;;  %v900_v26 = vadd.f32 %v3736_v17, %v831_v18  ;;  %v1112_v42 = vadd.f32 1.0, %v2392_v25  ;;  %2405 = vrcp.f32 %v1110_v10 }
  0x77   : > { %v2394_v39 = vpop.eup %2393  ;;  %2335 = vmatpush3.bf16.msra.mxu0 %v2334_v55  ;;  %v2340_v28 = vpack.c.bf16 %v1264_v35, %v1263_v49  ;;  %2407 = vrcp.f32 %v1111_v30 }
  0x78   : > { %v1055_v53 = vmul.f32 %v2889_v1, %v1037_v62  ;;  %v969_v11 = vadd.f32 %v3737_v16, %v900_v26  ;;  %2336 = vmatprep.subr.bf16.mxu0 %v3731_v7  ;;  %v1113_v29 = vadd.f32 1.0, %v2394_v39 }
  0x79   : > { %v2396_v56 = vpop.eup %2395 }
  0x7a   : > { %v3397_v20 = vadd.f32 %v2922_v60, %v1055_v53  ;;  %v1039_v22 = vadd.f32 %v3738_v40, %v969_v11  ;;  %v1114_v27 = vadd.f32 1.0, %v2396_v56 }
  0x7b   : > { %2338 = vmatpush3.bf16.msra.mxu0 %v2337_v45  ;;  %v2398_v51 = vpop.eup %2397 }
  0x7c   : > { %v1970_v21 = vmul.f32 -1.442695, %v3397_v20  ;;  %v1057_v15 = vmul.f32 %v2889_v1, %v1039_v22  ;;  %2339 = vmatprep.subr.bf16.mxu0 %v3731_v7  ;;  %v1115_v3 = vadd.f32 1.0, %v2398_v51 }
  0x7d   : > { %v2400_v14 = vpop.eup %2399 }
  0x7e   : > { %2409 = vpow2.f32 %v1970_v21  ;;  %v3405_v6 = vadd.f32 %v2922_v60, %v1057_v15  ;;  %v2402_v23 = vpop.eup %2401  ;;  %v1116_v1 = vadd.f32 1.0, %v2400_v14 }
  0x7f   : > { %2411 = vrcp.f32 %v1112_v42  ;;  %2341 = vmatpush3.bf16.msra.mxu0 %v2340_v28  ;;  %v2404_v0 = vpop.eup %2403  ;;  %v1118_v19 = vadd.f32 1.0, %v2402_v23 }
  0x80   : > { %2413 = vrcp.f32 %v1113_v29  ;;  %v1972_v38 = vmul.f32 -1.442695, %v3405_v6  ;;  %2366 = vmatprep.subr.bf16.mxu0 %v3731_v7  ;;  %v2406_v31 = vpop.eup %2405  ;;  %v3410_v44 = vmul.f32 %v2404_v0, %v3023_v33 }
  0x81   : > { %2415 = vrcp.f32 %v1114_v27  ;;  %v2408_v12 = vpop.eup %2407  ;;  %v3413_v52 = vmul.f32 %v2406_v31, %v3122_v61 }
  0x82   : > { %2417 = vpow2.f32 %v1972_v38  ;;  %v3416_v5 = vmul.f32 %v2408_v12, %v2932_v50 }
  0x83   : > { %2419 = vrcp.f32 %v1115_v3 }
  0x84   : > { %2421 = vrcp.f32 %v1116_v1 }
  0x85   : > { %2423 = vrcp.f32 %v1118_v19 }
  0x86   : > { %v1177_v48 = vpop.permute.xlu1 %1176  ;;  %v1167_v60 = vpop.permute.xlu0 %1166 }
  0x87   : > { %v1219_v47 = vmul.f32 %v1167_v60, %v3410_v44  ;;  %v1221_v18 = vmul.f32 %v1177_v48, %v3416_v5 }
  0x88   : > { %v2410_v41 = vpop.eup %2409 }
  0x89   : > { %v2412_v63 = vpop.eup %2411  ;;  %v1117_v2 = vadd.f32 1.0, %v2410_v41 }
  0x8a   : > { %v2414_v58 = vpop.eup %2413  ;;  %v1182_v54 = vpop.permute.xlu1 %1181  ;;  %v3420_v32 = vmul.f32 %v2412_v63, %v3119_v57  ;;  %v1265_v63 = vld [vmem:[%s3693_s6] sm:$0x1] }
  0x8b   : > { %v1172_v36 = vpop.permute.xlu0 %1171  ;;  %2425 = vrcp.f32 %v1117_v2  ;;  %v2416_v55 = vpop.eup %2415  ;;  %v3425_v50 = vmul.f32 %v2414_v58, %v3250_v8 }
  0x8c   : > { %v1220_v33 = vmul.f32 %v1172_v36, %v3413_v52  ;;  %v2418_v61 = vpop.eup %2417  ;;  %v1222_v10 = vmul.f32 %v1182_v54, %v3420_v32  ;;  %v3429_v26 = vmul.f32 %v2416_v55, %v3278_v37 }
  0x8d   : > { %v1119_v9 = vadd.f32 1.0, %v2418_v61  ;;  %v2420_v25 = vpop.eup %2419 }
  0x8e   : > { %v1230_v59 = vadd.f32 %v1220_v33, %v1219_v47  ;;  %v1192_v43 = vpop.permute.xlu1 %1191  ;;  %v2422_v57 = vpop.eup %2421  ;;  %v3433_v45 = vmul.f32 %v2420_v25, %v3300_v24  ;;  %v1446_v25 = vld [vmem:[%s3696_s9 + $0x10] sm:$0xff] }
  0x8f   : > { %v1187_v62 = vpop.permute.xlu0 %1186  ;;  %2427 = vrcp.f32 %v1119_v9  ;;  %v2424_v16 = vpop.eup %2423  ;;  %v1224_v11 = vmul.f32 %v1192_v43, %v3429_v26  ;;  %v3437_v35 = vmul.f32 %v2422_v57, %v3335_v13  ;;  %v1447_v43 = vld [vmem:[%s3696_s9 + $0x18] sm:$0xff] }
  0x90   : > { %v1231_v17 = vadd.f32 %v1230_v59, %v1221_v18  ;;  %v1223_v39 = vmul.f32 %v1187_v62, %v3425_v50  ;;  %v3445_v28 = vmul.f32 %v2424_v16, %v3348_v46  ;;  %v1444_v18 = vld [vmem:[%s3696_s9] sm:$0xff]  ;;  %v1445_v59 = vld [vmem:[%s3696_s9 + $0x8] sm:$0xff]  ;;  %v2346_v62 = vpack.c.bf16 %v1447_v43, %v1446_v25 }
  0x91   : > { %v2343_v9 = vpack.c.bf16 %v1445_v59, %v1444_v18  ;;  %v1453_v16 = vld [vmem:[%s3696_s9 + $0x48] sm:$0xff] }
  0x92   : > { %v1232_v53 = vadd.f32 %v1231_v17, %v1222_v10  ;;  %v1202_v8 = vpop.permute.xlu1 %1201  ;;  %v1448_v10 = vld [vmem:[%s3696_s9 + $0x20] sm:$0xff]  ;;  %v1449_v17 = vld [vmem:[%s3696_s9 + $0x28] sm:$0xff] }
  0x93   : > { %v1197_v30 = vpop.permute.xlu0 %1196  ;;  %v1226_v24 = vmul.f32 %v1202_v8, %v3437_v35  ;;  %v2349_v57 = vpack.c.bf16 %v1449_v17, %v1448_v10 }
  0x94   : > { %v1233_v49 = vadd.f32 %v1232_v53, %v1223_v39  ;;  %v1225_v37 = vmul.f32 %v1197_v30, %v3433_v45  ;;  %v1450_v39 = vld [vmem:[%s3696_s9 + $0x30] sm:$0xff]  ;;  %v1451_v53 = vld [vmem:[%s3696_s9 + $0x38] sm:$0xff]  ;;  %v1452_v30 = vld [vmem:[%s3696_s9 + $0x40] sm:$0xff] }
  0x95   : > { %v2426_v56 = vpop.eup %2425  ;;  %v2352_v8 = vpack.c.bf16 %v1451_v53, %v1450_v39 }
  0x96   : > { %v1234_v42 = vadd.f32 %v1233_v49, %v1224_v11  ;;  %v3441_v40 = vmul.f32 %v2426_v56, %v3397_v20  ;;  %v1212_v29 = vpop.permute.xlu1 %1211  ;;  %v2355_v11 = vpack.c.bf16 %v1453_v16, %v1452_v30  ;;  %v1454_v49 = vld [vmem:[%s3696_s9 + $0x50] sm:$0xff]  ;;  %v1455_v56 = vld [vmem:[%s3696_s9 + $0x58] sm:$0xff] }
  0x97   : > { %v1207_v22 = vpop.permute.xlu0 %1206  ;;  %v1228_v3 = vmul.f32 %v1212_v29, %v3445_v28  ;;  %v1459_v29 = vld [vmem:[%s3696_s9 + $0x78] sm:$0xff] }
  0x98   : > { %v1235_v21 = vadd.f32 %v1234_v42, %v1225_v37  ;;  %v1227_v51 = vmul.f32 %v1207_v22, %v3441_v40  ;;  %v2358_v37 = vpack.c.bf16 %v1455_v56, %v1454_v49  ;;  %v1456_v42 = vld [vmem:[%s3696_s9 + $0x60] sm:$0xff]  ;;  %v1457_v22 = vld [vmem:[%s3696_s9 + $0x68] sm:$0xff] }
  0x99   : > { %v2428_v15 = vpop.eup %2427 }
  0x9a   : > { %v1236_v13 = vadd.f32 %v1235_v21, %v1226_v24  ;;  %v3449_v14 = vmul.f32 %v2428_v15, %v3405_v6  ;;  %v1343_v6 = vld [vmem:[%s3694_s7] sm:$0xf]  ;;  %v2361_v24 = vpack.c.bf16 %v1457_v22, %v1456_v42  ;;  %v1458_v21 = vld [vmem:[%s3696_s9 + $0x70] sm:$0xff] }
  0x9b   : > { %v1217_v27 = vpop.permute.xlu0 %1216  ;;  %2210 = vmatpush3.msk.msra.mxu1 %vm1349_vm4, %v1343_v6  ;;  %v2364_v15 = vpack.c.bf16 %v1459_v29, %v1458_v21 }
  0x9c   : > { %v1237_v20 = vadd.f32 %v1236_v13, %v1227_v51  ;;  %v1229_v38 = vmul.f32 %v1217_v27, %v3449_v14  ;;  %2342 = vmatprep.subr.bf16.mxu1 %v3731_v7  ;;  %v1616_v51 = vld [vmem:[%s3699_s12] sm:$0xff]  ;;  %v1617_v13 = vld [vmem:[%s3699_s12 + $0x8] sm:$0xff] }
  0x9d   : > { %v2367_v27 = vpack.c.bf16 %v1617_v13, %v1616_v51 }
  0x9e   : > { %v1238_v23 = vadd.f32 %v1237_v20, %v1228_v3  ;;  %v1240_v1 = vsel %vm1239_vm3, %v1229_v38, 0.0 }
  0xa0   : > { %v1241_v0 = vadd.f32 %v1240_v1, %v1238_v23 }
  0xa2   : > { %v1242_v46 = vrot.slane %v1241_v0, 4 }
  0xa4   : > { %v1243_v31 = vadd.f32 %v1242_v46, %v1241_v0 }
  0xa6   : > { %v1244_v19 = vrot.slane %v1243_v31, 2 }
  0xa8   : > { %v1245_v12 = vadd.f32 %v1244_v19, %v1243_v31  ;;  %v3739_v31 = vsub.s32 0, %v2589_v4 }
  0xaa   : > { %v1246_v48 = vrot.slane %v1245_v12, 1 }
  0xac   : > { %v1247_v60 = vadd.f32 %v1246_v48, %v1245_v12 }
  0xae   : > { %v1248_v41 = vmul.f32 0.015625, %v1247_v60 }
  0xb0   : > { %2207 = vmatmul.mubr.f32.vlgmr.msra.gmra.mrb[0].mxu0 %v1248_v41 }
  0xb1   : > { %2285 = vmatprep.mubr.msk.f32.mxu0 %vm2491_vm2, %v2492_v34  ;;  %2368 = vmatpush3.bf16.msra.mxu0 %v2367_v27 }
  0xb2   : > { %2283 = vmatprep.subr.mxu0 %v2492_v34 }
 0x183   : > { %v1332_v2 = vpop.f32.mrb[0].mxu0 }
 0x184   : > { %v1333_v58 = vadd.f32 %v1332_v2, %v1265_v63  ;;  %v2208_v54 = vpop.f32.mrb[1].mxu0 }
 0x186   : > { %v1973_v36 = vmul.f32 -1.442695, %v1333_v58 }
 0x188   : > { %2429 = vpow2.f32 %v1973_v36 }
 0x192   : > { %v2430_v55 = vpop.eup %2429 }
 0x193   : > { %v1339_v47 = vadd.f32 1.0, %v2430_v55 }
 0x195   : > { %2431 = vrcp.f32 %v1339_v47 }
 0x19f   : > { %v2432_v33 = vpop.eup %2431 }
 0x1a0   : > { %v1342_v61 = vmul.f32 %v2432_v33, %v1333_v58 }
 0x1a2   : > { %2212 = vmatmul.mubr.msk.f32.vlgmr.msra.gmra.mrb[0].mxu1 %vm1345_vm5, %v1342_v61 }
 0x1a3   : > { %2246 = vmatprep.mubr.msk.f32.mxu1 %vm2491_vm2, %v2492_v34  ;;  %2344 = vmatpush3.bf16.msra.mxu1 %v2343_v9 }
 0x1a4   : > { %2345 = vmatprep.subr.bf16.mxu1 %v3731_v7 }
 0x1a7   : > { %2347 = vmatpush3.bf16.msra.mxu1 %v2346_v62 }
 0x1a8   : > { %2348 = vmatprep.subr.bf16.mxu1 %v3731_v7 }
 0x1ab   : > { %2350 = vmatpush3.bf16.msra.mxu1 %v2349_v57 }
 0x1ac   : > { %2351 = vmatprep.subr.bf16.mxu1 %v3731_v7 }
 0x1af   : > { %2353 = vmatpush3.bf16.msra.mxu1 %v2352_v8 }
 0x1b0   : > { %2354 = vmatprep.subr.bf16.mxu1 %v3731_v7 }
 0x1b3   : > { %2356 = vmatpush3.bf16.msra.mxu1 %v2355_v11 }
 0x1b4   : > { %2357 = vmatprep.subr.bf16.mxu1 %v3731_v7 }
 0x1b7   : > { %2359 = vmatpush3.bf16.msra.mxu1 %v2358_v37 }
 0x1b8   : > { %2360 = vmatprep.subr.bf16.mxu1 %v3731_v7 }
 0x1bb   : > { %2362 = vmatpush3.bf16.msra.mxu1 %v2361_v24 }
 0x1bc   : > { %2363 = vmatprep.subr.bf16.mxu1 %v3731_v7  ;;  %v1344_v7 = vld [vmem:[%s3695_s8] sm:$0x1] }
 0x1bf   : > { %2365 = vmatpush3.bf16.msra.mxu1 %v2364_v15 }
 0x275   : > { %v1419_v3 = vpop.f32.mrb[0].mxu1 }
 0x276   : > { %v1420_v20 = vadd.f32 %v1419_v3, %v1344_v7  ;;  %v2213_v38 = vpop.f32.mrb[1].mxu1 }
 0x278   : > { %v1976_v23 = vmul.f32 -1.442695, %v1420_v20 }
 0x27a   : > { %2433 = vpow2.f32 %v1976_v23 }
 0x284   : > { %v2434_v1 = vpop.eup %2433 }
 0x285   : > { %v1426_v0 = vadd.f32 1.0, %v2434_v1  ;;  %v3618_v1 = vld [vmem:[%s3700_s13] ss:$0 sm:$0xff] }
 0x287   : > { %2435 = vrcp.f32 %v1426_v0 }
 0x291   : > { %v2436_v46 = vpop.eup %2435 }
 0x292   : > { %v1432_v19 = vrot.slane %v2436_v46, %v3739_v31  ;;  %v3623_v46 = vld [vmem:[%s3701_s14] ss:$0 sm:$0xff] }
 0x294   : > { %v1433_v12 = vmul.f32 %v1432_v19, %v3410_v44  ;;  %v1434_v48 = vmul.f32 %v1432_v19, %v3413_v52  ;;  %v1435_v60 = vmul.f32 %v1432_v19, %v3416_v5  ;;  %v1436_v4 = vmul.f32 %v1432_v19, %v3420_v32 }
 0x295   : > { %v1437_v44 = vmul.f32 %v1432_v19, %v3425_v50  ;;  %v1438_v52 = vmul.f32 %v1432_v19, %v3429_v26  ;;  %v1439_v5 = vmul.f32 %v1432_v19, %v3433_v45  ;;  %v1440_v32 = vmul.f32 %v1432_v19, %v3437_v35  ;;  %v1618_v35 = vld [vmem:[%s3699_s12 + $0x10] sm:$0xff] }
 0x296   : > { %2247 = vmatmul.mubr.f32.vlgmr.msra.gmra.mrb[2].mxu1 %v1433_v12  ;;  %v1441_v50 = vmul.f32 %v1432_v19, %v3441_v40  ;;  %v1442_v26 = vmul.f32 %v1432_v19, %v3445_v28  ;;  %v1443_v45 = vmul.f32 %v1432_v19, %v3449_v14  ;;  %2284 = vmatpush3.msra.mxu0 %v1618_v35  ;;  %v1977_v40 = vld [vmem:[%s3697_s10] ss:$0 sm:$0xff] }
 0x297   : > { %2249 = vmatprep.mubr.msk.f32.mxu1 %vm2491_vm2, %v2492_v34  ;;  %v3571_v28 = vld [vmem:[%s3698_s11] ss:$0 sm:$0xff] }
 0x29a   : > { %2250 = vmatmul.mubr.f32.gmra.mrb[4].mxu1 %v1434_v48 }
 0x29b   : > { %2252 = vmatprep.mubr.msk.f32.mxu1 %vm2491_vm2, %v2492_v34 }
 0x29e   : > { %2253 = vmatmul.mubr.f32.gmra.mrb[6].mxu1 %v1435_v60 }
 0x29f   : > { %2255 = vmatprep.mubr.msk.f32.mxu1 %vm2491_vm2, %v2492_v34 }
 0x2a2   : > { %2256 = vmatmul.mubr.f32.gmra.mrb[8].mxu1 %v1436_v4 }
 0x2a3   : > { %2258 = vmatprep.mubr.msk.f32.mxu1 %vm2491_vm2, %v2492_v34 }
 0x2a6   : > { %2259 = vmatmul.mubr.f32.gmra.mrb[10].mxu1 %v1437_v44 }
 0x2a7   : > { %2261 = vmatprep.mubr.msk.f32.mxu1 %vm2491_vm2, %v2492_v34 }
 0x2aa   : > { %2262 = vmatmul.mubr.f32.gmra.mrb[12].mxu1 %v1438_v52 }
 0x2ab   : > { %2264 = vmatprep.mubr.msk.f32.mxu1 %vm2491_vm2, %v2492_v34 }
 0x2ae   : > { %2265 = vmatmul.mubr.f32.gmra.mrb[14].mxu1 %v1439_v5 }
 0x2af   : > { %2267 = vmatprep.mubr.msk.f32.mxu1 %vm2491_vm2, %v2492_v34 }
 0x2b2   : > { %2268 = vmatmul.mubr.f32.gmra.mrb[16].mxu1 %v1440_v32 }
 0x2b3   : > { %2270 = vmatprep.mubr.msk.f32.mxu1 %vm2491_vm2, %v2492_v34 }
 0x2b6   : > { %2271 = vmatmul.mubr.f32.gmra.mrb[18].mxu1 %v1441_v50 }
 0x2b7   : > { %2273 = vmatprep.mubr.msk.f32.mxu1 %vm2491_vm2, %v2492_v34 }
 0x2ba   : > { %2274 = vmatmul.mubr.f32.gmra.mrb[20].mxu1 %v1442_v26 }
 0x2bb   : > { %2276 = vmatprep.mubr.msk.f32.mxu1 %vm2491_vm2, %v2492_v34 }
 0x2be   : > { %2277 = vmatmul.mubr.f32.gmra.mrb[22].mxu1 %v1443_v45 }
 0x369   : > { %v1526_v41 = vpop.f32.mrb[2].mxu1 }
 0x36a   : > { %v1587_v6 = vmul.f32 %v1977_v40, %v1526_v41  ;;  %v2248_v63 = vpop.f32.mrb[3].mxu1 }
 0x36c   : > { %v1605_v14 = vadd.f32 %v3571_v28, %v1587_v6 }
 0x36d   : > { %v1531_v2 = vpop.f32.mrb[4].mxu1 }
 0x36e   : > { %v1588_v58 = vmul.f32 %v1977_v40, %v1531_v2  ;;  %v2251_v54 = vpop.f32.mrb[5].mxu1  ;;  %2286 = vmatmul.mubr.msk.f32.vlgmr.msra.gmra.mrb[2].mxu0 %vm1619_vm6, %v1605_v14 }
 0x36f   : > { %2288 = vmatprep.mubr.msk.f32.mxu0 %vm2491_vm2, %v2492_v34 }
 0x370   : > { %v1606_v36 = vadd.f32 %v3571_v28, %v1588_v58 }
 0x371   : > { %v1536_v55 = vpop.f32.mrb[6].mxu1 }
 0x372   : > { %v1589_v47 = vmul.f32 %v1977_v40, %v1536_v55  ;;  %v2254_v33 = vpop.f32.mrb[7].mxu1  ;;  %2289 = vmatmul.mubr.msk.f32.gmra.mrb[4].mxu0 %vm1619_vm6, %v1606_v36 }
 0x373   : > { %2291 = vmatprep.mubr.msk.f32.mxu0 %vm2491_vm2, %v2492_v34 }
 0x374   : > { %v1607_v61 = vadd.f32 %v3571_v28, %v1589_v47 }
 0x375   : > { %v1541_v18 = vpop.f32.mrb[8].mxu1 }
 0x376   : > { %v1590_v59 = vmul.f32 %v1977_v40, %v1541_v18  ;;  %v2257_v9 = vpop.f32.mrb[9].mxu1  ;;  %2292 = vmatmul.mubr.msk.f32.gmra.mrb[6].mxu0 %vm1619_vm6, %v1607_v61 }
 0x377   : > { %2294 = vmatprep.mubr.msk.f32.mxu0 %vm2491_vm2, %v2492_v34 }
 0x378   : > { %v1608_v25 = vadd.f32 %v3571_v28, %v1590_v59 }
 0x379   : > { %v1546_v43 = vpop.f32.mrb[10].mxu1 }
 0x37a   : > { %v1591_v62 = vmul.f32 %v1977_v40, %v1546_v43  ;;  %v2260_v10 = vpop.f32.mrb[11].mxu1  ;;  %2295 = vmatmul.mubr.msk.f32.gmra.mrb[8].mxu0 %vm1619_vm6, %v1608_v25 }
 0x37b   : > { %2297 = vmatprep.mubr.msk.f32.mxu0 %vm2491_vm2, %v2492_v34 }
 0x37c   : > { %v1609_v17 = vadd.f32 %v3571_v28, %v1591_v62 }
 0x37d   : > { %v1551_v57 = vpop.f32.mrb[12].mxu1 }
 0x37e   : > { %v1592_v39 = vmul.f32 %v1977_v40, %v1551_v57  ;;  %v2263_v53 = vpop.f32.mrb[13].mxu1  ;;  %2298 = vmatmul.mubr.msk.f32.gmra.mrb[10].mxu0 %vm1619_vm6, %v1609_v17 }
 0x37f   : > { %2300 = vmatprep.mubr.msk.f32.mxu0 %vm2491_vm2, %v2492_v34 }
 0x380   : > { %v1610_v8 = vadd.f32 %v3571_v28, %v1592_v39 }
 0x381   : > { %v1556_v30 = vpop.f32.mrb[14].mxu1 }
 0x382   : > { %v1593_v16 = vmul.f32 %v1977_v40, %v1556_v30  ;;  %v2266_v11 = vpop.f32.mrb[15].mxu1  ;;  %2301 = vmatmul.mubr.msk.f32.gmra.mrb[12].mxu0 %vm1619_vm6, %v1610_v8 }
 0x383   : > { %2303 = vmatprep.mubr.msk.f32.mxu0 %vm2491_vm2, %v2492_v34 }
 0x384   : > { %v1611_v49 = vadd.f32 %v3571_v28, %v1593_v16 }
 0x385   : > { %v1561_v56 = vpop.f32.mrb[16].mxu1 }
 0x386   : > { %v1594_v37 = vmul.f32 %v1977_v40, %v1561_v56  ;;  %v2269_v42 = vpop.f32.mrb[17].mxu1  ;;  %2304 = vmatmul.mubr.msk.f32.gmra.mrb[14].mxu0 %vm1619_vm6, %v1611_v49 }
 0x387   : > { %2306 = vmatprep.mubr.msk.f32.mxu0 %vm2491_vm2, %v2492_v34 }
 0x388   : > { %v1612_v22 = vadd.f32 %v3571_v28, %v1594_v37 }
 0x389   : > { %v1566_v24 = vpop.f32.mrb[18].mxu1 }
 0x38a   : > { %v1595_v21 = vmul.f32 %v1977_v40, %v1566_v24  ;;  %v2272_v29 = vpop.f32.mrb[19].mxu1  ;;  %2307 = vmatmul.mubr.msk.f32.gmra.mrb[16].mxu0 %vm1619_vm6, %v1612_v22 }
 0x38b   : > { %2309 = vmatprep.mubr.msk.f32.mxu0 %vm2491_vm2, %v2492_v34 }
 0x38c   : > { %v1613_v15 = vadd.f32 %v3571_v28, %v1595_v21 }
 0x38d   : > { %v1571_v51 = vpop.f32.mrb[20].mxu1 }
 0x38e   : > { %v1596_v13 = vmul.f32 %v1977_v40, %v1571_v51  ;;  %v2275_v27 = vpop.f32.mrb[21].mxu1  ;;  %2310 = vmatmul.mubr.msk.f32.gmra.mrb[18].mxu0 %vm1619_vm6, %v1613_v15 }
 0x38f   : > { %2312 = vmatprep.mubr.msk.f32.mxu0 %vm2491_vm2, %v2492_v34 }
 0x390   : > { %v1614_v7 = vadd.f32 %v3571_v28, %v1596_v13 }
 0x391   : > { %v1576_v3 = vpop.f32.mrb[22].mxu1 }
 0x392   : > { %v1597_v20 = vmul.f32 %v1977_v40, %v1576_v3  ;;  %v2278_v38 = vpop.f32.mrb[23].mxu1  ;;  %2313 = vmatmul.mubr.msk.f32.gmra.mrb[20].mxu0 %vm1619_vm6, %v1614_v7 }
 0x393   : > { %2315 = vmatprep.mubr.msk.f32.mxu0 %vm2491_vm2, %v2492_v34 }
 0x394   : > { %v1615_v23 = vadd.f32 %v3571_v28, %v1597_v20 }
 0x396   : > { %2316 = vmatmul.mubr.msk.f32.gmra.mrb[22].mxu0 %vm1619_vm6, %v1615_v23 }
 0x441   : > { %v1719_v0 = vpop.f32.mrb[2].mxu0 }
 0x442   : > { %v1780_v31 = vmul.f32 %v3618_v1, %v1719_v0  ;;  %v2287_v19 = vpop.f32.mrb[3].mxu0 }
 0x444   : > { %v1798_v34 = vadd.f32 %v3623_v46, %v1780_v31 }
 0x445   : > { %v1724_v12 = vpop.f32.mrb[4].mxu0 }
 0x446   : > { %v1992_v48 = vmul.f32 -1.442695, %v1798_v34  ;;  %v1781_v60 = vmul.f32 %v3618_v1, %v1724_v12  ;;  %v2290_v4 = vpop.f32.mrb[5].mxu0 }
 0x448   : > { %2437 = vpow2.f32 %v1992_v48  ;;  %v1799_v44 = vadd.f32 %v3623_v46, %v1781_v60 }
 0x449   : > { %v1729_v52 = vpop.f32.mrb[6].mxu0 }
 0x44a   : > { %v1993_v5 = vmul.f32 -1.442695, %v1799_v44  ;;  %v1782_v32 = vmul.f32 %v3618_v1, %v1729_v52  ;;  %v2293_v50 = vpop.f32.mrb[7].mxu0 }
 0x44c   : > { %2439 = vpow2.f32 %v1993_v5  ;;  %v3631_v26 = vadd.f32 %v3623_v46, %v1782_v32 }
 0x44d   : > { %v1734_v45 = vpop.f32.mrb[8].mxu0 }
 0x44e   : > { %v1994_v35 = vmul.f32 -1.442695, %v3631_v26  ;;  %v1783_v40 = vmul.f32 %v3618_v1, %v1734_v45  ;;  %v2296_v41 = vpop.f32.mrb[9].mxu0 }
 0x450   : > { %2441 = vpow2.f32 %v1994_v35  ;;  %v3636_v28 = vadd.f32 %v3623_v46, %v1783_v40 }
 0x451   : > { %v1739_v6 = vpop.f32.mrb[10].mxu0 }
 0x452   : > { %v2438_v63 = vpop.eup %2437  ;;  %v1995_v14 = vmul.f32 -1.442695, %v3636_v28  ;;  %v1784_v2 = vmul.f32 %v3618_v1, %v1739_v6  ;;  %v2299_v58 = vpop.f32.mrb[11].mxu0 }
 0x453   : > { %v1842_v54 = vadd.f32 1.0, %v2438_v63 }
 0x454   : > { %2443 = vpow2.f32 %v1995_v14  ;;  %v3641_v36 = vadd.f32 %v3623_v46, %v1784_v2 }
 0x455   : > { %2445 = vrcp.f32 %v1842_v54  ;;  %v1744_v55 = vpop.f32.mrb[12].mxu0 }
 0x456   : > { %v2440_v47 = vpop.eup %2439  ;;  %v1996_v33 = vmul.f32 -1.442695, %v3641_v36  ;;  %v1785_v61 = vmul.f32 %v3618_v1, %v1744_v55  ;;  %v2302_v18 = vpop.f32.mrb[13].mxu0 }
 0x457   : > { %v1843_v59 = vadd.f32 1.0, %v2440_v47 }
 0x458   : > { %2447 = vpow2.f32 %v1996_v33  ;;  %v3646_v9 = vadd.f32 %v3623_v46, %v1785_v61 }
 0x459   : > { %2449 = vrcp.f32 %v1843_v59  ;;  %v1749_v25 = vpop.f32.mrb[14].mxu0 }
 0x45a   : > { %v2442_v43 = vpop.eup %2441  ;;  %v1997_v62 = vmul.f32 -1.442695, %v3646_v9  ;;  %v1786_v10 = vmul.f32 %v3618_v1, %v1749_v25  ;;  %v2305_v17 = vpop.f32.mrb[15].mxu0 }
 0x45b   : > { %v1844_v57 = vadd.f32 1.0, %v2442_v43 }
 0x45c   : > { %2451 = vpow2.f32 %v1997_v62  ;;  %v3652_v39 = vadd.f32 %v3623_v46, %v1786_v10 }
 0x45d   : > { %2453 = vrcp.f32 %v1844_v57  ;;  %v1754_v53 = vpop.f32.mrb[16].mxu0 }
 0x45e   : > { %v2444_v8 = vpop.eup %2443  ;;  %v1998_v30 = vmul.f32 -1.442695, %v3652_v39  ;;  %v1787_v16 = vmul.f32 %v3618_v1, %v1754_v53  ;;  %v2308_v11 = vpop.f32.mrb[17].mxu0 }
 0x45f   : > { %v2446_v49 = vpop.eup %2445  ;;  %v1845_v56 = vadd.f32 1.0, %v2444_v8 }
 0x460   : > { %v1875_v37 = vmul.f32 %v2446_v49, %v1798_v34  ;;  %2455 = vpow2.f32 %v1998_v30  ;;  %v1805_v42 = vadd.f32 %v3623_v46, %v1787_v16 }
 0x461   : > { %2457 = vrcp.f32 %v1845_v56  ;;  %v1759_v22 = vpop.f32.mrb[18].mxu0 }
 0x462   : > { %v2448_v24 = vpop.eup %2447  ;;  %1886 = vst [vmem:[%s3659_s25] sm:$0xff] %v1875_v37  ;;  %v1999_v21 = vmul.f32 -1.442695, %v1805_v42  ;;  %v1788_v29 = vmul.f32 %v3618_v1, %v1759_v22  ;;  %v2311_v15 = vpop.f32.mrb[19].mxu0 }
 0x463   : > { %v2450_v51 = vpop.eup %2449  ;;  %v1846_v13 = vadd.f32 1.0, %v2448_v24 }
 0x464   : > { %v1876_v27 = vmul.f32 %v2450_v51, %v1799_v44  ;;  %2459 = vpow2.f32 %v1999_v21  ;;  %v1806_v7 = vadd.f32 %v3623_v46, %v1788_v29 }
 0x465   : > { %2461 = vrcp.f32 %v1846_v13  ;;  %v1764_v3 = vpop.f32.mrb[20].mxu0 }
 0x466   : > { %v2452_v20 = vpop.eup %2451  ;;  %1887 = vst [vmem:[%s3659_s25 + $0x8] sm:$0xff] %v1876_v27  ;;  %v2000_v38 = vmul.f32 -1.442695, %v1806_v7  ;;  %v1789_v23 = vmul.f32 %v3618_v1, %v1764_v3  ;;  %v2314_v0 = vpop.f32.mrb[21].mxu0 }
 0x467   : > { %v2454_v31 = vpop.eup %2453  ;;  %v1847_v19 = vadd.f32 1.0, %v2452_v20 }
 0x468   : > { %v1877_v34 = vmul.f32 %v2454_v31, %v3631_v26  ;;  %2463 = vpow2.f32 %v2000_v38  ;;  %v1807_v12 = vadd.f32 %v3623_v46, %v1789_v23 }
 0x469   : > { %2465 = vrcp.f32 %v1847_v19  ;;  %v1769_v48 = vpop.f32.mrb[22].mxu0 }
 0x46a   : > { %v2456_v60 = vpop.eup %2455  ;;  %1888 = vst [vmem:[%s3659_s25 + $0x10] sm:$0xff] %v1877_v34  ;;  %v2001_v4 = vmul.f32 -1.442695, %v1807_v12  ;;  %v1790_v44 = vmul.f32 %v3618_v1, %v1769_v48  ;;  %v2317_v52 = vpop.f32.mrb[23].mxu0 }
 0x46b   : > { %v2458_v5 = vpop.eup %2457  ;;  %v1848_v32 = vadd.f32 1.0, %v2456_v60 }
 0x46c   : > { %v1878_v50 = vmul.f32 %v2458_v5, %v3636_v28  ;;  %2467 = vpow2.f32 %v2001_v4  ;;  %v1808_v26 = vadd.f32 %v3623_v46, %v1790_v44 }
 0x46d   : > { %2469 = vrcp.f32 %v1848_v32 }
 0x46e   : > { %v2460_v45 = vpop.eup %2459  ;;  %1889 = vst [vmem:[%s3659_s25 + $0x18] sm:$0xff] %v1878_v50  ;;  %v2002_v35 = vmul.f32 -1.442695, %v1808_v26 }
 0x46f   : > { %v2462_v40 = vpop.eup %2461  ;;  %v1849_v41 = vadd.f32 1.0, %v2460_v45 }
 0x470   : > { %v1879_v6 = vmul.f32 %v2462_v40, %v3641_v36  ;;  %2471 = vpow2.f32 %v2002_v35 }
 0x471   : > { %2473 = vrcp.f32 %v1849_v41 }
 0x472   : > { %v2464_v1 = vpop.eup %2463  ;;  %1890 = vst [vmem:[%s3659_s25 + $0x20] sm:$0xff] %v1879_v6 }
 0x473   : > { %v2466_v63 = vpop.eup %2465  ;;  %v1850_v28 = vadd.f32 1.0, %v2464_v1 }
 0x474   : > { %v1880_v14 = vmul.f32 %v2466_v63, %v3646_v9 }
 0x475   : > { %2475 = vrcp.f32 %v1850_v28 }
 0x476   : > { %v2468_v46 = vpop.eup %2467  ;;  %1891 = vst [vmem:[%s3659_s25 + $0x28] sm:$0xff] %v1880_v14 }
 0x477   : > { %v2470_v2 = vpop.eup %2469  ;;  %v1851_v58 = vadd.f32 1.0, %v2468_v46 }
 0x478   : > { %v1881_v54 = vmul.f32 %v2470_v2, %v3652_v39 }
 0x479   : > { %2477 = vrcp.f32 %v1851_v58 }
 0x47a   : > { %v2472_v36 = vpop.eup %2471  ;;  %1892 = vst [vmem:[%s3659_s25 + $0x30] sm:$0xff] %v1881_v54 }
 0x47b   : > { %v2474_v55 = vpop.eup %2473  ;;  %v1852_v47 = vadd.f32 1.0, %v2472_v36 }
 0x47c   : > { %v1882_v33 = vmul.f32 %v2474_v55, %v1805_v42 }
 0x47d   : > { %2479 = vrcp.f32 %v1852_v47 }
 0x47e   : > { %1893 = vst [vmem:[%s3659_s25 + $0x38] sm:$0xff] %v1882_v33 }
 0x47f   : > { %v2476_v61 = vpop.eup %2475 }
 0x480   : > { %v1883_v18 = vmul.f32 %v2476_v61, %v1806_v7 }
 0x482   : > { %1894 = vst [vmem:[%s3659_s25 + $0x40] sm:$0xff] %v1883_v18 }
 0x483   : > { %v2478_v59 = vpop.eup %2477 }
 0x484   : > { %v1884_v9 = vmul.f32 %v2478_v59, %v1807_v12 }
 0x486   : > { %1895 = vst [vmem:[%s3659_s25 + $0x48] sm:$0xff] %v1884_v9 }
 0x487   : > { %v2480_v25 = vpop.eup %2479 }
 0x488   : > { %v1885_v43 = vmul.f32 %v2480_v25, %v1808_v26 }
 0x48a   : > { %1896 = vst [vmem:[%s3659_s25 + $0x50] sm:$0x1] %v1885_v43 }
 0x48b PF: > { %s25_s18 = sadd.s32 1, %s2487_s18  }
 0x48c   : > { %p22_p4 = scmp.ge.s32.totalorder %s25_s18, 4  }
 0x48e   :  { %24 = sbr.rel (!%p22_p4) target bundleno = 1 (0x1), region = 110 }

// kernel: efficientnet_extract_features.2
= control target key start
LH: loop header
LB: loop body
LE: loop exit
PB: predicated region body
PF: predicated region fallthrough
CT: control target
= control target key end

     0   :  { %s13303_s0 = inlined_call_operand.vmem [shape: bf16[2,368,27], index: 0, kind: input, shape index: {}]   ;;  %s13304_s1 = inlined_call_operand.vmem [shape: f32[368,1], index: 1, kind: input, shape index: {}]   ;;  %s13305_s2 = inlined_call_operand.vmem [shape: f32[324,1], index: 2, kind: input, shape index: {}]   ;;  %s13306_s3 = inlined_call_operand.vmem [shape: f32[27,16], index: 3, kind: input, shape index: {}]   ;;  %s13307_s4 = inlined_call_operand.vmem [shape: f32[1,16], index: 4, kind: input, shape index: {}]   ;;  %s13308_s5 = inlined_call_operand.vmem [shape: f32[1,16], index: 5, kind: input, shape index: {}]   ;;  %s13309_s6 = inlined_call_operand.vmem [shape: f32[9,16], index: 6, kind: input, shape index: {}]   ;;  %s13310_s7 = inlined_call_operand.vmem [shape: f32[1,16], index: 7, kind: input, shape index: {}]   ;;  %s13311_s8 = inlined_call_operand.vmem [shape: f32[1,16], index: 8, kind: input, shape index: {}]   ;;  %s13312_s9 = inlined_call_operand.vmem [shape: f32[16,4], index: 9, kind: input, shape index: {}]   ;;  %s13313_s10 = inlined_call_operand.vmem [shape: f32[1,4], index: 10, kind: input, shape index: {}]   ;;  %s13314_s11 = inlined_call_operand.vmem [shape: f32[4,16], index: 11, kind: input, shape index: {}]   ;;  %s13315_s12 = inlined_call_operand.vmem [shape: f32[1,16], index: 12, kind: input, shape index: {}]   ;;  %s13316_s13 = inlined_call_operand.vmem [shape: f32[16,16], index: 13, kind: input, shape index: {}]   ;;  %s13317_s14 = inlined_call_operand.vmem [shape: f32[1,16], index: 14, kind: input, shape index: {}]   ;;  %s13318_s15 = inlined_call_operand.vmem [shape: f32[1,16], index: 15, kind: input, shape index: {}]   ;;  %s13319_s16 = inlined_call_operand.vmem [shape: f32[16,128], index: 16, kind: input, shape index: {}]   ;;  %s13320_s17 = inlined_call_operand.vmem [shape: f32[1,128], index: 17, kind: input, shape index: {}]   ;;  %s13321_s18 = inlined_call_operand.vmem [shape: f32[1,128], index: 18, kind: input, shape index: {}]   ;;  %s13322_s19 = inlined_call_operand.vmem [shape: bf16[2,324,128], index: 19, kind: output, shape index: {}]  }
   0x1   :  { %13500 = sst [smem:[#allocation116_spill]] %s13303_s0  ;;  %s8449_s0 = smov 0  }
   0x2   :  { %13501 = sst [smem:[#allocation117_spill]] %s13304_s1 }
   0x3   :  { %13502 = sst [smem:[#allocation118_spill]] %s13305_s2 }
   0x4   :  { %13503 = sst [smem:[#allocation119_spill]] %s13306_s3 }
   0x5 LB: > { %s6687_s30 = sadd.s32 4294967295, %s8342_s0   ;;  %p6691_p0 = scmp.ge.s32.totalorder %s8342_s0, 1  ;;  %s8342_s0 = sphi %s8449_s0, %s29_s0  }
   0x6   : > { %p537_p1 = scmp.lt.s32.totalorder %s8342_s0, 3 }
   0x8   : > { %p538_p2 = pnand %p6691_p0, %p537_p1 }
   0xa   : > { %541 = sbr.rel (%p538_p2) target bundleno = 1985 (0x7c1), region = 96 }
  0x11   : > { %s13504_s1 = sld [smem:[#allocation117_spill]]  ;;  %s13505_s25 = sld [smem:[#allocation119_spill]]  ;;  %v8344_v3 = vmov 0   ;;  %vm838_vm0 = vcmask 1042432   ;;  %vm8345_vm1 = vmmov 1   ;;  %vm699_vm3 = vcmask 220160  }
  0x12   : > { %7803 = vset.pattern.permute.xlu1 %v8344_v3  ;;  %7802 = vset.pattern.permute.xlu0 %v8344_v3  ;;  %p593_p3 = scmp.lt.s32.totalorder %s6687_s30, 1  ;;  %vm7771_vm2 = vmpackc.low %vm838_vm0, %vm8345_vm1  ;;  %s13506_s21 = sld [smem:[#allocation116_spill]]  ;;  %vm2061_vm4 = vcmask 1046528   ;;  %vm2311_vm5 = vcmask 1045504   ;;  %vm2810_vm6 = vcmask 1044480   ;;  %vm3060_vm7 = vcmask 1043456  }
  0x13   : > { %s13507_s2 = sld [smem:[#allocation118_spill]]  ;;  %vm3814_vm8 = vcmask 1041408   ;;  %vm4650_vm9 = vcmask 130048   ;;  %vm8347_vm10 = vmmov 0   ;;  %vm4730_vm11 = vcmask 125952  }
  0x14   : > { %s14208_s30 = smov (!%p593_p3, %s6687_s30), 1  ;;  %vm4825_vm12 = vcmask 31744  }
  0x15   : > { %s7787_s24 = smul.u32 184, %s14208_s30 }
  0x16   : > { %s7788_s20 = smul.u32 164, %s14208_s30 }
  0x17   : > { %v1567_v0 = vld [vmem:[%s13504_s1 + $0x10] sm:$0xff]  ;;  %v1565_v1 = vld [vmem:[%s13504_s1] sm:$0xff]  ;;  %v696_v4 = vld [vmem:[%s13505_s25 + $0x8] sm:$0xff] }
  0x18   : > { %v695_v2 = vld [vmem:[%s13505_s25] sm:$0xff]  ;;  %1623 = vperm.xlu1 %7803, %v1567_v0   ;;  %1613 = vperm.xlu0 %7802, %v1565_v1   ;;  %v697_v6 = vld [vmem:[%s13505_s25 + $0x10] sm:$0xff]  ;;  %v698_v7 = vld [vmem:[%s13505_s25 + $0x18] sm:$0x7]  ;;  %s8494_s22 = scalar_lea.vmem %s13506_s21, %s7787_s24  ;;  %s13089_s30 = scalar_lea.vmem %s13322_s19, %s7788_s20 }
  0x19   : > { %v7766_v5 = vpack.c.bf16 %v696_v4, %v695_v2  ;;  %v1568_v8 = vld [vmem:[%s13504_s1 + $0x18] sm:$0xff]  ;;  %v1566_v9 = vld [vmem:[%s13504_s1 + $0x8] sm:$0xff]  ;;  %v7770_v10 = vpack.c.bf16 %v698_v7, %v697_v6  ;;  %v1569_v12 = vld [vmem:[%s13504_s1 + $0x20] sm:$0xff] }
  0x1a   : > { %v1570_v11 = vld [vmem:[%s13504_s1 + $0x28] sm:$0xff]  ;;  %v7050_v13 = vld [vmem:[%s8494_s22] sm:$0xff]   ;;  %v7242_v18 = vld [vmem:[%s8494_s22 + $0x10] sm:$0xff]  }
  0x1b   : > { %7767 = vmatprep.subr.bf16.mxu0 %v7766_v5  ;;  %v7241_v14 = vld [vmem:[%s8494_s22 + $0x8] sm:$0xff]   ;;  %v7051_v15 = vunpack.c.l.bf16 %v7050_v13  ;;  %v7052_v16 = vunpack.c.h.bf16 %v7050_v13  ;;  %v1572_v19 = vld [vmem:[%s13504_s1 + $0x38] sm:$0xff]  ;;  %v1571_v20 = vld [vmem:[%s13504_s1 + $0x30] sm:$0xff]  ;;  %v7059_v22 = vunpack.c.l.bf16 %v7242_v18  ;;  %v7060_v26 = vunpack.c.h.bf16 %v7242_v18 }
  0x1c   : > { %7769 = vmatpush3.bf16.msra.mxu0 %v7766_v5  ;;  %1628 = vperm.xlu1 %7803, %v1568_v8   ;;  %v7055_v17 = vunpack.c.l.bf16 %v7241_v14  ;;  %v7056_v21 = vunpack.c.h.bf16 %v7241_v14  ;;  %v7243_v23 = vld [vmem:[%s8494_s22 + $0x18] sm:$0xff]   ;;  %v1574_v24 = vld [vmem:[%s13504_s1 + $0x48] sm:$0xff]  ;;  %v1573_v25 = vld [vmem:[%s13504_s1 + $0x40] sm:$0xff] }
  0x1d   : > { %1618 = vperm.xlu0 %7802, %v1566_v9   ;;  %7772 = vmatprep.subr.msk.bf16.mxu0 %vm7771_vm2, %v7770_v10  ;;  %v7063_v27 = vunpack.c.l.bf16 %v7243_v23  ;;  %v7244_v28 = vld [vmem:[%s8494_s22 + $0x20] sm:$0xff]   ;;  %v1576_v29 = vld [vmem:[%s13504_s1 + $0x58] sm:$0xff]  ;;  %v1575_v30 = vld [vmem:[%s13504_s1 + $0x50] sm:$0xff]  ;;  %v7064_v31 = vunpack.c.h.bf16 %v7243_v23 }
  0x1e   : > { %7431 = vmatprep.mubr.msk.f32.mxu0 %vm699_vm3, %v7051_v15  ;;  %v7067_v32 = vunpack.c.l.bf16 %v7244_v28  ;;  %v7245_v33 = vld [vmem:[%s8494_s22 + $0x28] sm:$0xff]   ;;  %v1577_v35 = vld [vmem:[%s13504_s1 + $0x60] sm:$0xff]  ;;  %v7068_v36 = vunpack.c.h.bf16 %v7244_v28  ;;  %v7246_v38 = vld [vmem:[%s8494_s22 + $0x30] sm:$0xff]  }
  0x1f   : > { %v1578_v34 = vld [vmem:[%s13504_s1 + $0x68] sm:$0xff]  ;;  %v7071_v37 = vunpack.c.l.bf16 %v7245_v33  ;;  %v1580_v39 = vld [vmem:[%s13504_s1 + $0x78] sm:$0xff]  ;;  %v1579_v40 = vld [vmem:[%s13504_s1 + $0x70] sm:$0xff]  ;;  %v7072_v41 = vunpack.c.h.bf16 %v7245_v33  ;;  %v7075_v42 = vunpack.c.l.bf16 %v7246_v38  ;;  %v7076_v46 = vunpack.c.h.bf16 %v7246_v38 }
  0x20   : > { %7775 = vmatpush3.bf16.msk.msra.mxu0 %vm7771_vm2, %v7770_v10  ;;  %1638 = vperm.xlu1 %7803, %v1570_v11   ;;  %v7247_v43 = vld [vmem:[%s8494_s22 + $0x38] sm:$0xff]   ;;  %v1582_v44 = vld [vmem:[%s13504_s1 + $0x88] sm:$0xff]  ;;  %v1581_v45 = vld [vmem:[%s13504_s1 + $0x80] sm:$0xff] }
  0x21   : > { %1633 = vperm.xlu0 %7802, %v1569_v12   ;;  %v7079_v47 = vunpack.c.l.bf16 %v7247_v43  ;;  %v7248_v48 = vld [vmem:[%s8494_s22 + $0x40] sm:$0xff]   ;;  %v1584_v49 = vld [vmem:[%s13504_s1 + $0x98] sm:$0xff]  ;;  %v1583_v50 = vld [vmem:[%s13504_s1 + $0x90] sm:$0xff]  ;;  %v7080_v51 = vunpack.c.h.bf16 %v7247_v43 }
  0x22   : > { %v7083_v52 = vunpack.c.l.bf16 %v7248_v48  ;;  %v7249_v53 = vld [vmem:[%s8494_s22 + $0x48] sm:$0xff]   ;;  %v1585_v55 = vld [vmem:[%s13504_s1 + $0xa0] sm:$0xff]  ;;  %v7084_v56 = vunpack.c.h.bf16 %v7248_v48  ;;  %v7250_v58 = vld [vmem:[%s8494_s22 + $0x50] sm:$0xff]  }
  0x23   : > { %7432 = vmatmul.mubr.msk.f32.vlgmr.msra.gmra.mrb[0].mxu0 %vm699_vm3, %v7052_v16  ;;  %v1586_v54 = vld [vmem:[%s13504_s1 + $0xa8] sm:$0xff]  ;;  %v7087_v57 = vunpack.c.l.bf16 %v7249_v53  ;;  %v1588_v59 = vld [vmem:[%s13504_s1 + $0xb8] sm:$0xff]  ;;  %v1587_v60 = vld [vmem:[%s13504_s1 + $0xb0] sm:$0xff]  ;;  %v7088_v61 = vunpack.c.h.bf16 %v7249_v53  ;;  %v7091_v62 = vunpack.c.l.bf16 %v7250_v58  ;;  %v7092_v2 = vunpack.c.h.bf16 %v7250_v58 }
  0x24   : > { %7434 = vmatprep.mubr.msk.f32.mxu0 %vm699_vm3, %v7055_v17  ;;  %1648 = vperm.xlu1 %7803, %v1572_v19   ;;  %v7251_v63 = vld [vmem:[%s8494_s22 + $0x58] sm:$0xff]   ;;  %v1590_v0 = vld [vmem:[%s13504_s1 + $0xc8] sm:$0xff]  ;;  %v1589_v1 = vld [vmem:[%s13504_s1 + $0xc0] sm:$0xff] }
  0x25   : > { %1643 = vperm.xlu0 %7802, %v1571_v20   ;;  %v7095_v3 = vunpack.c.l.bf16 %v7251_v63  ;;  %v7252_v4 = vld [vmem:[%s8494_s22 + $0x60] sm:$0xff]   ;;  %v1592_v5 = vld [vmem:[%s13504_s1 + $0xd8] sm:$0xff]  ;;  %v1591_v6 = vld [vmem:[%s13504_s1 + $0xd0] sm:$0xff]  ;;  %v7096_v7 = vunpack.c.h.bf16 %v7251_v63 }
  0x26   : > { %v7099_v8 = vunpack.c.l.bf16 %v7252_v4  ;;  %v7253_v9 = vld [vmem:[%s8494_s22 + $0x68] sm:$0xff]   ;;  %v1593_v11 = vld [vmem:[%s13504_s1 + $0xe0] sm:$0xff]  ;;  %v7100_v12 = vunpack.c.h.bf16 %v7252_v4  ;;  %v7254_v14 = vld [vmem:[%s8494_s22 + $0x70] sm:$0xff]  }
  0x27   : > { %7435 = vmatmul.mubr.msk.f32.gmra.mrb[2].mxu0 %vm699_vm3, %v7056_v21  ;;  %v1594_v10 = vld [vmem:[%s13504_s1 + $0xe8] sm:$0xff]  ;;  %v7103_v13 = vunpack.c.l.bf16 %v7253_v9  ;;  %v4363_v16 = vld [vmem:[%s13507_s2] sm:$0xff]  ;;  %v7104_v17 = vunpack.c.h.bf16 %v7253_v9  ;;  %v7107_v18 = vunpack.c.l.bf16 %v7254_v14  ;;  %v7255_v19 = vld [vmem:[%s8494_s22 + $0x78] sm:$0xff]  }
  0x28   : > { %7437 = vmatprep.mubr.msk.f32.mxu0 %vm699_vm3, %v7059_v22  ;;  %1658 = vperm.xlu1 %7803, %v1574_v24   ;;  %v4364_v15 = vld [vmem:[%s13507_s2 + $0x8] sm:$0xff]  ;;  %v4365_v20 = vld [vmem:[%s13507_s2 + $0x10] sm:$0xff]  ;;  %v7108_v22 = vunpack.c.h.bf16 %v7254_v14  ;;  %v7111_v23 = vunpack.c.l.bf16 %v7255_v19  ;;  %v7256_v24 = vld [vmem:[%s8494_s22 + $0x80] sm:$0xff]  }
  0x29   : > { %1653 = vperm.xlu0 %7802, %v1573_v25   ;;  %v1595_v21 = vld [vmem:[%s13504_s1 + $0xf0] sm:$0xff]  ;;  %v4366_v25 = vld [vmem:[%s13507_s2 + $0x18] sm:$0xff]  ;;  %v7115_v28 = vunpack.c.l.bf16 %v7256_v24  ;;  %v4379_v9 = vld [vmem:[%s13507_s2 + $0x80] sm:$0xff] }
  0x2a   : > { %v1604_v63 = vld [vmem:[%s13504_s1 + $0x138] sm:$0xff]  ;;  %v4377_v4 = vld [vmem:[%s13507_s2 + $0x70] sm:$0xff]  ;;  %v4384_v14 = vld [vmem:[%s13507_s2 + $0xa8] sm:$0xff] }
  0x2b   : > { %7438 = vmatmul.mubr.msk.f32.gmra.mrb[4].mxu0 %vm699_vm3, %v7060_v26  ;;  %v1596_v26 = vld [vmem:[%s13504_s1 + $0xf8] sm:$0xff] }
  0x2c   : > { %7440 = vmatprep.mubr.msk.f32.mxu0 %vm699_vm3, %v7063_v27  ;;  %1668 = vperm.xlu1 %7803, %v1576_v29   ;;  %v7112_v27 = vunpack.c.h.bf16 %v7255_v19  ;;  %v7257_v29 = vld [vmem:[%s8494_s22 + $0x88] sm:$0xff]   ;;  %v4387_v19 = vld [vmem:[%s13507_s2 + $0xc0] sm:$0xff] }
  0x2d   : > { %1663 = vperm.xlu0 %7802, %v1575_v30   ;;  %v4367_v30 = vld [vmem:[%s13507_s2 + $0x20] sm:$0xff]  ;;  %v7119_v33 = vunpack.c.l.bf16 %v7257_v29 }
  0x2f   : > { %7441 = vmatmul.mubr.msk.f32.gmra.mrb[6].mxu0 %vm699_vm3, %v7064_v31  ;;  %v1597_v31 = vld [vmem:[%s13504_s1 + $0x100] sm:$0xff] }
  0x30   : > { %7443 = vmatprep.mubr.msk.f32.mxu0 %vm699_vm3, %v7067_v32  ;;  %1678 = vperm.xlu1 %7803, %v1578_v34   ;;  %v7116_v32 = vunpack.c.h.bf16 %v7256_v24  ;;  %v7258_v34 = vld [vmem:[%s8494_s22 + $0x90] sm:$0xff]   ;;  %v4394_v24 = vld [vmem:[%s13507_s2 + $0xf8] sm:$0xff] }
  0x31   : > { %1673 = vperm.xlu0 %7802, %v1577_v35   ;;  %v4368_v35 = vld [vmem:[%s13507_s2 + $0x28] sm:$0xff]  ;;  %v7123_v38 = vunpack.c.l.bf16 %v7258_v34 }
  0x33   : > { %7444 = vmatmul.mubr.msk.f32.gmra.mrb[8].mxu0 %vm699_vm3, %v7068_v36  ;;  %v1598_v36 = vld [vmem:[%s13504_s1 + $0x108] sm:$0xff] }
  0x34   : > { %7446 = vmatprep.mubr.msk.f32.mxu0 %vm699_vm3, %v7071_v37  ;;  %1688 = vperm.xlu1 %7803, %v1580_v39   ;;  %v7120_v37 = vunpack.c.h.bf16 %v7257_v29  ;;  %v7259_v39 = vld [vmem:[%s8494_s22 + $0x98] sm:$0xff]   ;;  %v4397_v29 = vld [vmem:[%s13507_s2 + $0x110] sm:$0xff] }
  0x35   : > { %1683 = vperm.xlu0 %7802, %v1579_v40   ;;  %v4369_v40 = vld [vmem:[%s13507_s2 + $0x30] sm:$0xff]  ;;  %v7127_v43 = vunpack.c.l.bf16 %v7259_v39 }
  0x37   : > { %7447 = vmatmul.mubr.msk.f32.gmra.mrb[10].mxu0 %vm699_vm3, %v7072_v41  ;;  %v1599_v41 = vld [vmem:[%s13504_s1 + $0x110] sm:$0xff] }
  0x38   : > { %7449 = vmatprep.mubr.msk.f32.mxu0 %vm699_vm3, %v7075_v42  ;;  %1698 = vperm.xlu1 %7803, %v1582_v44   ;;  %v7124_v42 = vunpack.c.h.bf16 %v7258_v34  ;;  %v7260_v44 = vld [vmem:[%s8494_s22 + $0xa0] sm:$0xff]  }
  0x39   : > { %1693 = vperm.xlu0 %7802, %v1581_v45   ;;  %v4370_v45 = vld [vmem:[%s13507_s2 + $0x38] sm:$0xff]  ;;  %v7131_v48 = vunpack.c.l.bf16 %v7260_v44  ;;  %v4403_v34 = vld [vmem:[%s13507_s2 + $0x140] sm:$0xf] }
  0x3b   : > { %7450 = vmatmul.mubr.msk.f32.gmra.mrb[12].mxu0 %vm699_vm3, %v7076_v46  ;;  %v1600_v46 = vld [vmem:[%s13504_s1 + $0x118] sm:$0xff] }
  0x3c   : > { %7452 = vmatprep.mubr.msk.f32.mxu0 %vm699_vm3, %v7079_v47  ;;  %1708 = vperm.xlu1 %7803, %v1584_v49   ;;  %v7128_v47 = vunpack.c.h.bf16 %v7259_v39  ;;  %v7261_v49 = vld [vmem:[%s8494_s22 + $0xa8] sm:$0xff]  }
  0x3d   : > { %1703 = vperm.xlu0 %7802, %v1583_v50   ;;  %v4371_v50 = vld [vmem:[%s13507_s2 + $0x40] sm:$0xff]  ;;  %v7135_v53 = vunpack.c.l.bf16 %v7261_v49 }
  0x3f   : > { %7453 = vmatmul.mubr.msk.f32.gmra.mrb[14].mxu0 %vm699_vm3, %v7080_v51  ;;  %v1601_v51 = vld [vmem:[%s13504_s1 + $0x120] sm:$0xff] }
  0x40   : > { %7455 = vmatprep.mubr.msk.f32.mxu0 %vm699_vm3, %v7083_v52  ;;  %1718 = vperm.xlu1 %7803, %v1586_v54   ;;  %v7132_v52 = vunpack.c.h.bf16 %v7260_v44  ;;  %v7262_v54 = vld [vmem:[%s8494_s22 + $0xb0] sm:$0xff]  }
  0x41   : > { %1713 = vperm.xlu0 %7802, %v1585_v55   ;;  %v4372_v55 = vld [vmem:[%s13507_s2 + $0x48] sm:$0xff]  ;;  %v7139_v58 = vunpack.c.l.bf16 %v7262_v54 }
  0x43   : > { %7456 = vmatmul.mubr.msk.f32.gmra.mrb[16].mxu0 %vm699_vm3, %v7084_v56  ;;  %v1602_v56 = vld [vmem:[%s13504_s1 + $0x128] sm:$0xff] }
  0x44   : > { %7458 = vmatprep.mubr.msk.f32.mxu0 %vm699_vm3, %v7087_v57  ;;  %1728 = vperm.xlu1 %7803, %v1588_v59   ;;  %v7136_v57 = vunpack.c.h.bf16 %v7261_v49  ;;  %v4373_v59 = vld [vmem:[%s13507_s2 + $0x50] sm:$0xff] }
  0x45   : > { %1723 = vperm.xlu0 %7802, %v1587_v60   ;;  %v1603_v60 = vld [vmem:[%s13504_s1 + $0x130] sm:$0xff] }
  0x47   : > { %7459 = vmatmul.mubr.msk.f32.gmra.mrb[18].mxu0 %vm699_vm3, %v7088_v61  ;;  %v7140_v61 = vunpack.c.h.bf16 %v7262_v54 }
  0x48   : > { %7461 = vmatprep.mubr.msk.f32.mxu0 %vm699_vm3, %v7091_v62  ;;  %1738 = vperm.xlu1 %7803, %v1590_v0   ;;  %v4374_v62 = vld [vmem:[%s13507_s2 + $0x58] sm:$0xff]  ;;  %v4375_v0 = vld [vmem:[%s13507_s2 + $0x60] sm:$0xff] }
  0x49   : > { %1733 = vperm.xlu0 %7802, %v1589_v1   ;;  %v1605_v1 = vld [vmem:[%s13504_s1 + $0x140] sm:$0xff] }
  0x4b   : > { %7462 = vmatmul.mubr.msk.f32.gmra.mrb[20].mxu0 %vm699_vm3, %v7092_v2  ;;  %v4376_v2 = vld [vmem:[%s13507_s2 + $0x68] sm:$0xff] }
  0x4c   : > { %7464 = vmatprep.mubr.msk.f32.mxu0 %vm699_vm3, %v7095_v3  ;;  %1748 = vperm.xlu1 %7803, %v1592_v5   ;;  %v1606_v3 = vld [vmem:[%s13504_s1 + $0x148] sm:$0xff]  ;;  %v1607_v5 = vld [vmem:[%s13504_s1 + $0x150] sm:$0xff] }
  0x4d   : > { %1743 = vperm.xlu0 %7802, %v1591_v6   ;;  %v1608_v6 = vld [vmem:[%s13504_s1 + $0x158] sm:$0xff] }
  0x4f   : > { %7465 = vmatmul.mubr.msk.f32.gmra.mrb[22].mxu0 %vm699_vm3, %v7096_v7  ;;  %v4378_v7 = vld [vmem:[%s13507_s2 + $0x78] sm:$0xff] }
  0x50   : > { %7467 = vmatprep.mubr.msk.f32.mxu0 %vm699_vm3, %v7099_v8  ;;  %1758 = vperm.xlu1 %7803, %v1594_v10   ;;  %v1609_v8 = vld [vmem:[%s13504_s1 + $0x160] sm:$0xff]  ;;  %v4381_v10 = vld [vmem:[%s13507_s2 + $0x90] sm:$0xff] }
  0x51   : > { %1753 = vperm.xlu0 %7802, %v1593_v11   ;;  %v4380_v11 = vld [vmem:[%s13507_s2 + $0x88] sm:$0xff] }
  0x53   : > { %7468 = vmatmul.mubr.msk.f32.gmra.mrb[24].mxu0 %vm699_vm3, %v7100_v12  ;;  %v4382_v12 = vld [vmem:[%s13507_s2 + $0x98] sm:$0xff] }
  0x54   : > { %7470 = vmatprep.mubr.msk.f32.mxu0 %vm699_vm3, %v7103_v13  ;;  %4411 = vperm.xlu1 %7803, %v4364_v15   ;;  %v1610_v13 = vld [vmem:[%s13504_s1 + $0x168] sm:$0xff]  ;;  %v4383_v15 = vld [vmem:[%s13507_s2 + $0xa0] sm:$0xff] }
  0x55   : > { %4406 = vperm.xlu0 %7802, %v4363_v16   ;;  %v4386_v16 = vld [vmem:[%s13507_s2 + $0xb8] sm:$0xff] }
  0x57   : > { %7471 = vmatmul.mubr.msk.f32.gmra.mrb[26].mxu0 %vm699_vm3, %v7104_v17  ;;  %v4385_v17 = vld [vmem:[%s13507_s2 + $0xb0] sm:$0xff] }
  0x58   : > { %7473 = vmatprep.mubr.msk.f32.mxu0 %vm699_vm3, %v7107_v18  ;;  %4416 = vperm.xlu1 %7803, %v4365_v20   ;;  %v4388_v18 = vld [vmem:[%s13507_s2 + $0xc8] sm:$0xff]  ;;  %v4390_v20 = vld [vmem:[%s13507_s2 + $0xd8] sm:$0xff] }
  0x59   : > { %1763 = vperm.xlu0 %7802, %v1595_v21   ;;  %v4389_v21 = vld [vmem:[%s13507_s2 + $0xd0] sm:$0xff] }
  0x5b   : > { %7474 = vmatmul.mubr.msk.f32.gmra.mrb[28].mxu0 %vm699_vm3, %v7108_v22  ;;  %v4392_v22 = vld [vmem:[%s13507_s2 + $0xe8] sm:$0xff] }
  0x5c   : > { %7476 = vmatprep.mubr.msk.f32.mxu0 %vm699_vm3, %v7111_v23  ;;  %4421 = vperm.xlu1 %7803, %v4366_v25   ;;  %v4391_v23 = vld [vmem:[%s13507_s2 + $0xe0] sm:$0xff]  ;;  %v4393_v25 = vld [vmem:[%s13507_s2 + $0xf0] sm:$0xff] }
  0x5d   : > { %1768 = vperm.xlu0 %7802, %v1596_v26   ;;  %v4396_v26 = vld [vmem:[%s13507_s2 + $0x108] sm:$0xff] }
  0x5f   : > { %7477 = vmatmul.mubr.msk.f32.gmra.mrb[30].mxu0 %vm699_vm3, %v7112_v27  ;;  %v4395_v27 = vld [vmem:[%s13507_s2 + $0x100] sm:$0xff] }
  0x60   : > { %7479 = vmatprep.mubr.msk.f32.mxu0 %vm699_vm3, %v7115_v28  ;;  %4426 = vperm.xlu1 %7803, %v4367_v30   ;;  %v4398_v28 = vld [vmem:[%s13507_s2 + $0x118] sm:$0xff]  ;;  %v4400_v30 = vld [vmem:[%s13507_s2 + $0x128] sm:$0xff] }
  0x61   : > { %1773 = vperm.xlu0 %7802, %v1597_v31   ;;  %v4399_v31 = vld [vmem:[%s13507_s2 + $0x120] sm:$0xff] }
  0x63   : > { %7480 = vmatmul.mubr.msk.f32.gmra.mrb[32].mxu0 %vm699_vm3, %v7116_v32  ;;  %v4402_v32 = vld [vmem:[%s13507_s2 + $0x138] sm:$0xff] }
  0x64   : > { %7482 = vmatprep.mubr.msk.f32.mxu0 %vm699_vm3, %v7119_v33  ;;  %4431 = vperm.xlu1 %7803, %v4368_v35   ;;  %v4401_v33 = vld [vmem:[%s13507_s2 + $0x130] sm:$0xff]  ;;  %v8811_v35 = vld [vmem:[%s13307_s4] ss:$0 sm:$0xff] }
  0x65   : > { %1778 = vperm.xlu0 %7802, %v1598_v36   ;;  %13508 = vst [vmem:[#allocation2_spill] sm:$0xff] %v8811_v35 }
  0x67   : > { %7483 = vmatmul.mubr.msk.f32.gmra.mrb[34].mxu0 %vm699_vm3, %v7120_v37  ;;  %v8816_v37 = vld [vmem:[%s13308_s5] ss:$0 sm:$0xff] }
  0x68   : > { %7485 = vmatprep.mubr.msk.f32.mxu0 %vm699_vm3, %v7123_v38  ;;  %4436 = vperm.xlu1 %7803, %v4369_v40  }
  0x69   : > { %1783 = vperm.xlu0 %7802, %v1599_v41  }
  0x6b   : > { %7486 = vmatmul.mubr.msk.f32.gmra.mrb[36].mxu0 %vm699_vm3, %v7124_v42 }
  0x6c   : > { %7488 = vmatprep.mubr.msk.f32.mxu0 %vm699_vm3, %v7127_v43  ;;  %4441 = vperm.xlu1 %7803, %v4370_v45  }
  0x6d   : > { %1788 = vperm.xlu0 %7802, %v1600_v46  }
  0x6f   : > { %7489 = vmatmul.mubr.msk.f32.gmra.mrb[38].mxu0 %vm699_vm3, %v7128_v47 }
  0x70   : > { %7491 = vmatprep.mubr.msk.f32.mxu0 %vm699_vm3, %v7131_v48  ;;  %4446 = vperm.xlu1 %7803, %v4371_v50  }
  0x71   : > { %1793 = vperm.xlu0 %7802, %v1601_v51  }
  0x73   : > { %7492 = vmatmul.mubr.msk.f32.gmra.mrb[40].mxu0 %vm699_vm3, %v7132_v52 }
  0x74   : > { %7494 = vmatprep.mubr.msk.f32.mxu0 %vm699_vm3, %v7135_v53  ;;  %4451 = vperm.xlu1 %7803, %v4372_v55  }
  0x75   : > { %1798 = vperm.xlu0 %7802, %v1602_v56  }
  0x77   : > { %7495 = vmatmul.mubr.msk.f32.gmra.mrb[42].mxu0 %vm699_vm3, %v7136_v57 }
  0x78   : > { %7497 = vmatprep.mubr.msk.f32.mxu0 %vm699_vm3, %v7139_v58  ;;  %4456 = vperm.xlu1 %7803, %v4373_v59  }
  0x79   : > { %1803 = vperm.xlu0 %7802, %v1603_v60  }
  0x7b   : > { %7498 = vmatmul.mubr.msk.f32.gmra.mrb[44].mxu0 %vm699_vm3, %v7140_v61 }
  0x7c   : > { %4461 = vperm.xlu1 %7803, %v4374_v62  }
  0x7d   : > { %1808 = vperm.xlu0 %7802, %v1604_v63  }
  0x80   : > { %4466 = vperm.xlu1 %7803, %v4375_v0  }
  0x81   : > { %1813 = vperm.xlu0 %7802, %v1605_v1  }
  0x84   : > { %4471 = vperm.xlu1 %7803, %v4376_v2  }
  0x85   : > { %1818 = vperm.xlu0 %7802, %v1606_v3  }
  0x88   : > { %4476 = vperm.xlu1 %7803, %v4377_v4   ;;  %v1889_v4 = vlaneseq }
  0x89   : > { %1823 = vperm.xlu0 %7802, %v1607_v5  }
  0x8c   : > { %1828 = vperm.xlu1 %7803, %v1608_v6  }
  0x8d   : > { %4481 = vperm.xlu0 %7802, %v4378_v7  }
  0x90   : > { %1833 = vperm.xlu1 %7803, %v1609_v8  }
  0x91   : > { %4486 = vperm.xlu0 %7802, %v4379_v9  }
  0x94   : > { %4496 = vperm.xlu1 %7803, %v4381_v10  }
  0x95   : > { %4491 = vperm.xlu0 %7802, %v4380_v11   ;;  %v8853_v11 = vshrl.u32 %v1889_v4, 7 }
  0x97   : > { %13509 = vst [vmem:[#allocation3_spill] sm:$0xff] %v8853_v11 }
  0x98   : > { %4501 = vperm.xlu1 %7803, %v4382_v12  }
  0x99   : > { %1838 = vperm.xlu0 %7802, %v1610_v13  }
  0x9c   : > { %4511 = vperm.xlu1 %7803, %v4384_v14  }
  0x9d   : > { %4506 = vperm.xlu0 %7802, %v4383_v15   ;;  %v1614_v15 = vpop.permute.xlu0 %1613 }
  0xa0   : > { %4521 = vperm.xlu1 %7803, %v4386_v16   ;;  %v1977_v16 = vsub.s32 1, %v8853_v11 }
  0xa1   : > { %4516 = vperm.xlu0 %7802, %v4385_v17   ;;  %v2227_v17 = vsub.s32 2, %v8853_v11 }
  0xa4   : > { %4531 = vperm.xlu1 %7803, %v4388_v18  }
  0xa5   : > { %4526 = vperm.xlu0 %7802, %v4387_v19   ;;  %v8864_v19 = vld [vmem:[%s13309_s6] sm:$0xff] }
  0xa8   : > { %4541 = vperm.xlu1 %7803, %v4390_v20  }
  0xa9   : > { %4536 = vperm.xlu0 %7802, %v4389_v21  }
  0xac   : > { %4551 = vperm.xlu1 %7803, %v4392_v22   ;;  %v13326_v22 = vsub.s32 0, %v8853_v11 }
  0xad   : > { %4546 = vperm.xlu0 %7802, %v4391_v23  }
  0xb0   : > { %4561 = vperm.xlu1 %7803, %v4394_v24  }
  0xb1   : > { %4556 = vperm.xlu0 %7802, %v4393_v25  }
  0xb4   : > { %4571 = vperm.xlu1 %7803, %v4396_v26  }
  0xb5   : > { %4566 = vperm.xlu0 %7802, %v4395_v27   ;;  %v1624_v27 = vpop.permute.xlu1 %1623 }
  0xb8   : > { %4581 = vperm.xlu1 %7803, %v4398_v28  }
  0xb9   : > { %4576 = vperm.xlu0 %7802, %v4397_v29   ;;  %v8873_v29 = vrot.slane %v8864_v19, %v1977_v16 }
  0xbc   : > { %4591 = vperm.xlu1 %7803, %v4400_v30   ;;  %v8876_v30 = vrot.slane %v8864_v19, %v2227_v17 }
  0xbd   : > { %4586 = vperm.xlu0 %7802, %v4399_v31  }
  0xc0   : > { %4601 = vperm.xlu1 %7803, %v4402_v32   ;;  %v1619_v32 = vpop.permute.xlu0 %1618 }
  0xc1   : > { %4596 = vperm.xlu0 %7802, %v4401_v33  }
  0xc5   : > { %4606 = vperm.xlu0 %7802, %v4403_v34  }
  0xf6   : > { %v7433_v36 = vpop.f32.mrb[0].mxu0 }
  0xf7   : > { %v1145_v38 = vmul.f32 %v7433_v36, %v8811_v35  ;;  %v908_v39 = vpop.f32.mrb[1].mxu0 }
  0xf8   : > { %v1144_v40 = vmul.f32 %v8811_v35, %v908_v39  ;;  %v8887_v39 = vrot.slane %v8864_v19, %v13326_v22 }
  0xf9   : > { %v1198_v41 = vadd.f32 %v8816_v37, %v1145_v38 }
  0xfa   : > { %v8822_v42 = vadd.f32 %v8816_v37, %v1144_v40  ;;  %v7436_v43 = vpop.f32.mrb[2].mxu0 }
  0xfb   : > { %v6744_v44 = vmul.f32 -1.442695, %v1198_v41  ;;  %v1147_v45 = vmul.f32 %v7436_v43, %v8811_v35  ;;  %v918_v46 = vpop.f32.mrb[3].mxu0 }
  0xfc   : > { %v6743_v47 = vmul.f32 -1.442695, %v8822_v42  ;;  %v1146_v48 = vmul.f32 %v8811_v35, %v918_v46 }
  0xfd   : > { %7804 = vpow2.f32 %v6744_v44  ;;  %v8828_v49 = vadd.f32 %v8816_v37, %v1147_v45 }
  0xfe   : > { %7806 = vpow2.f32 %v6743_v47  ;;  %v8831_v50 = vadd.f32 %v8816_v37, %v1146_v48  ;;  %v7439_v51 = vpop.f32.mrb[4].mxu0 }
  0xff   : > { %v6746_v52 = vmul.f32 -1.442695, %v8828_v49  ;;  %v1149_v53 = vmul.f32 %v7439_v51, %v8811_v35  ;;  %v928_v54 = vpop.f32.mrb[5].mxu0 }
 0x100   : > { %v6745_v55 = vmul.f32 -1.442695, %v8831_v50  ;;  %v1148_v56 = vmul.f32 %v8811_v35, %v928_v54 }
 0x101   : > { %7808 = vpow2.f32 %v6746_v52  ;;  %v8838_v57 = vadd.f32 %v8816_v37, %v1149_v53 }
 0x102   : > { %7810 = vpow2.f32 %v6745_v55  ;;  %v8841_v58 = vadd.f32 %v8816_v37, %v1148_v56  ;;  %v7442_v59 = vpop.f32.mrb[6].mxu0 }
 0x103   : > { %v938_v60 = vpop.f32.mrb[7].mxu0  ;;  %v6748_v61 = vmul.f32 -1.442695, %v8838_v57  ;;  %v1151_v23 = vmul.f32 %v7442_v59, %v8811_v35 }
 0x104   : > { %v6747_v62 = vmul.f32 -1.442695, %v8841_v58  ;;  %v1150_v31 = vmul.f32 %v8811_v35, %v938_v60 }
 0x105   : > { %7812 = vpow2.f32 %v6748_v61  ;;  %v1629_v61 = vpop.permute.xlu1 %1628 }
 0x106   : > { %v8845_v63 = vpop.f32.mrb[8].mxu0  ;;  %7814 = vpow2.f32 %v6747_v62  ;;  %v8905_v52 = vadd.f32 %v8816_v37, %v1150_v31 }
 0x107   : > { %v7805_v0 = vpop.eup %7804  ;;  %v8847_v1 = vpop.f32.mrb[9].mxu0 }
 0x108   : > { %v7807_v2 = vpop.eup %7806  ;;  %v1382_v3 = vadd.f32 1.0, %v7805_v0 }
 0x109   : > { %v1381_v5 = vadd.f32 1.0, %v7807_v2  ;;  %v1153_v2 = vmul.f32 %v8845_v63, %v8811_v35 }
 0x10a   : > { %7816 = vrcp.f32 %v1382_v3  ;;  %v8849_v6 = vpop.f32.mrb[10].mxu0 }
 0x10b   : > { %v7809_v7 = vpop.eup %7808  ;;  %7818 = vrcp.f32 %v1381_v5  ;;  %v8851_v8 = vpop.f32.mrb[11].mxu0  ;;  %v6749_v5 = vmul.f32 -1.442695, %v8905_v52  ;;  %v8932_v63 = vadd.f32 %v8816_v37, %v1153_v2 }
 0x10c   : > { %v7811_v9 = vpop.eup %7810  ;;  %v1384_v10 = vadd.f32 1.0, %v7809_v7 }
 0x10d   : > { %v1383_v12 = vadd.f32 1.0, %v7811_v9 }
 0x10e   : > { %7820 = vrcp.f32 %v1384_v10  ;;  %v8855_v13 = vpop.f32.mrb[12].mxu0 }
 0x10f   : > { %7822 = vrcp.f32 %v1383_v12  ;;  %v8857_v14 = vpop.f32.mrb[13].mxu0  ;;  %v7813_v18 = vpop.eup %7812  ;;  %v2726_v12 = vsub.s32 4, %v8853_v11 }
 0x110   : > { %v7815_v21 = vpop.eup %7814  ;;  %v1386_v34 = vadd.f32 1.0, %v7813_v18  ;;  %v2976_v18 = vsub.s32 5, %v8853_v11 }
 0x111   : > { %v1385_v40 = vadd.f32 1.0, %v7815_v21  ;;  %v8942_v21 = vrot.slane %v8864_v19, %v2726_v12  ;;  %v1156_v12 = vmul.f32 %v8811_v35, %v8857_v14 }
 0x112   : > { %v8866_v20 = vpop.f32.mrb[14].mxu0  ;;  %7824 = vrcp.f32 %v1386_v34  ;;  %v3226_v34 = vsub.s32 6, %v8853_v11 }
 0x113   : > { %v8870_v24 = vpop.f32.mrb[15].mxu0  ;;  %7826 = vrcp.f32 %v1385_v40  ;;  %13513 = vst [vmem:[#allocation7_spill] sm:$0xff] %v8942_v21  ;;  %v1155_v40 = vmul.f32 %v8849_v6, %v8811_v35  ;;  %v3475_v6 = vsub.s32 7, %v8853_v11 }
 0x114   : > { %v7817_v25 = vpop.eup %7816 }
 0x115   : > { %v7819_v26 = vpop.eup %7818  ;;  %v1520_v28 = vmul.f32 %v7817_v25, %v1198_v41  ;;  %v8890_v41 = vadd.f32 %v8816_v37, %v1151_v23  ;;  %v1634_v25 = vpop.permute.xlu0 %1633 }
 0x116   : > { %v1519_v33 = vmul.f32 %v7819_v26, %v8822_v42  ;;  %v8880_v36 = vpop.f32.mrb[16].mxu0  ;;  %v2477_v42 = vsub.s32 3, %v8853_v11  ;;  %v6752_v26 = vmul.f32 -1.442695, %v8932_v63 }
 0x117   : > { %v8882_v38 = vmul.f32 %v1619_v32, %v1520_v28  ;;  %v8892_v43 = vpop.f32.mrb[17].mxu0  ;;  %v6750_v60 = vmul.f32 -1.442695, %v8890_v41  ;;  %v1152_v32 = vmul.f32 %v8811_v35, %v8847_v1 }
 0x118   : > { %13510 = vst [vmem:[#allocation4_spill] sm:$0xff] %v8892_v43  ;;  %v7821_v44 = vpop.eup %7820  ;;  %v1841_v45 = vmul.f32 %v1614_v15, %v1519_v33  ;;  %v8914_v0 = vrot.slane %v8864_v19, %v2477_v42  ;;  %v8949_v33 = vrot.slane %v8864_v19, %v2976_v18 }
 0x119   : > { %v7823_v46 = vpop.eup %7822  ;;  %v8897_v47 = vmul.f32 %v8873_v29, %v8882_v38  ;;  %v8901_v48 = vmul.f32 %v8876_v30, %v8882_v38  ;;  %v1522_v51 = vmul.f32 %v7821_v44, %v8828_v49  ;;  %7828 = vpow2.f32 %v6750_v60  ;;  %v8971_v60 = vpop.permute.xlu0 %1643 }
 0x11a   : > { %v1979_v53 = vmul.f32 %v8873_v29, %v1841_v45  ;;  %v2229_v54 = vmul.f32 %v8876_v30, %v1841_v45  ;;  %v1521_v55 = vmul.f32 %v7823_v46, %v8831_v50  ;;  %v1893_v3 = vmul.f32 %v8887_v39, %v1841_v45 }
 0x11b   : > { %v2063_v56 = vrot.slane %v8897_v47, 1  ;;  %v13331_v59 = vrot.slane %v8901_v48, 2  ;;  %v8919_v50 = vmul.f32 %v1629_v61, %v1522_v51  ;;  %7830 = vpow2.f32 %v6749_v5 }
 0x11c   : > { %v2062_v62 = vrot.slane %v1979_v53, 1  ;;  %v2312_v49 = vrot.slane %v2229_v54, 2  ;;  %v8921_v4 = vmul.f32 %v1624_v27, %v1521_v55  ;;  %v7825_v23 = vpop.eup %7824  ;;  %7832 = vpow2.f32 %v6752_v26  ;;  %v1639_v55 = vpop.permute.xlu1 %1638 }
 0x11d   : > { %13511 = vst [vmem:[#allocation5_spill] sm:$0xff] %v8919_v50  ;;  %v8936_v16 = vmul.f32 %v8914_v0, %v8919_v50  ;;  %v7827_v27 = vpop.eup %7826  ;;  %v8956_v44 = vmul.f32 %v8942_v21, %v8919_v50  ;;  %v1524_v42 = vmul.f32 %v7825_v23, %v8838_v57  ;;  %v8967_v53 = vadd.f32 %v8816_v37, %v1152_v32  ;;  %v9015_v32 = vpop.f32.mrb[18].mxu0 }
 0x11e   : > { %13512 = vst [vmem:[#allocation6_spill] sm:$0xff] %v8921_v4  ;;  %v2064_v7 = vsel %vm2061_vm4, %v2062_v62, %v2063_v56  ;;  %v2314_v9 = vsel %vm2311_vm5, %v2312_v49, %v13331_v59  ;;  %v2479_v17 = vmul.f32 %v8914_v0, %v8921_v4  ;;  %v2728_v45 = vmul.f32 %v8942_v21, %v8921_v4 }
 0x11f   : > { %v2184_v10 = vadd.f32 %v2064_v7, %v1893_v3  ;;  %v13330_v28 = vrot.slane %v8936_v16, 2  ;;  %v1523_v1 = vmul.f32 %v7827_v27, %v8841_v58  ;;  %v1154_v54 = vmul.f32 %v8811_v35, %v8851_v8  ;;  %13517 = vst [vmem:[#allocation11_spill] sm:$0xff] %v9015_v32 }
 0x120   : > { %v2561_v31 = vrot.slane %v2479_v17, 2  ;;  %v8975_v57 = vmul.f32 %v8949_v33, %v8919_v50  ;;  %v8978_v58 = vrot.slane %v8864_v19, %v3226_v34  ;;  %v8981_v61 = vadd.f32 %v8816_v37, %v1155_v40  ;;  %v9017_v34 = vpop.permute.xlu0 %1653 }
 0x121   : > { %v2434_v15 = vadd.f32 %v2314_v9, %v2184_v10  ;;  %v1157_v62 = vmul.f32 %v8855_v13, %v8811_v35  ;;  %v13329_v2 = vrot.slane %v8956_v44, 3  ;;  %v2811_v8 = vrot.slane %v2728_v45, 3 }
 0x122   : > { %v2563_v51 = vsel %vm2311_vm5, %v2561_v31, %v13330_v28  ;;  %v2978_v3 = vmul.f32 %v8949_v33, %v8921_v4  ;;  %v8988_v5 = vmul.f32 %v1639_v55, %v1524_v42  ;;  %v8990_v9 = vmul.f32 %v1634_v25, %v1523_v1 }
 0x123   : > { %v7829_v46 = vpop.eup %7828  ;;  %v2683_v7 = vadd.f32 %v2563_v51, %v2434_v15  ;;  %v8995_v17 = vrot.slane %v8864_v19, %v3475_v6  ;;  %v6751_v13 = vmul.f32 -1.442695, %v8967_v53  ;;  %v8999_v18 = vadd.f32 %v8816_v37, %v1154_v54 }
 0x124   : > { %13514 = vst [vmem:[#allocation8_spill] sm:$0xff] %v8988_v5  ;;  %13515 = vst [vmem:[#allocation9_spill] sm:$0xff] %v8990_v9  ;;  %v1388_v10 = vadd.f32 1.0, %v7829_v46  ;;  %v13327_v23 = vrot.slane %v8975_v57, 4  ;;  %v6754_v15 = vmul.f32 -1.442695, %v8981_v61  ;;  %v9004_v25 = vadd.f32 %v8816_v37, %v1157_v62 }
 0x125   : > { %v7831_v49 = vpop.eup %7830  ;;  %v2813_v14 = vsel %vm2810_vm6, %v2811_v8, %v13329_v2  ;;  %v3061_v27 = vrot.slane %v2978_v3, 4  ;;  %v9011_v19 = vmul.f32 %v8978_v58, %v8988_v5  ;;  %v3228_v31 = vmul.f32 %v8978_v58, %v8990_v9 }
 0x126   : > { %v1387_v26 = vadd.f32 1.0, %v7831_v49  ;;  %13516 = vst [vmem:[#allocation10_spill] sm:$0xff] %v9004_v25  ;;  %v2933_v40 = vadd.f32 %v2813_v14, %v2683_v7  ;;  %7834 = vrcp.f32 %v1388_v10  ;;  %v9020_v45 = vadd.f32 %v8816_v37, %v1156_v12  ;;  %v7833_v6 = vpop.eup %7832  ;;  %v9047_v7 = vld [vmem:[%s13309_s6 + $0x8] ss:$0 sm:$0xff] }
 0x127   : > { %v1159_v42 = vmul.f32 %v8866_v20, %v8811_v35  ;;  %v1981_v1 = vmul.f32 %v8873_v29, %v8921_v4  ;;  %7836 = vpow2.f32 %v6751_v13  ;;  %v6753_v46 = vmul.f32 -1.442695, %v8999_v18 }
 0x128   : > { %13518 = vst [vmem:[#allocation12_spill] sm:$0xff] %v9020_v45  ;;  %v1158_v51 = vmul.f32 %v8811_v35, %v8870_v24  ;;  %v9031_v54 = vmul.f32 %v8873_v29, %v8919_v50  ;;  %v9035_v55 = vmul.f32 %v8995_v17, %v8988_v5  ;;  %7838 = vrcp.f32 %v1387_v26 }
 0x129   : > { %v6756_v20 = vmul.f32 -1.442695, %v9004_v25  ;;  %v3063_v62 = vsel %vm3060_vm7, %v3061_v27, %v13327_v23  ;;  %v13328_v49 = vrot.slane %v9011_v19, 4  ;;  %v3310_v8 = vrot.slane %v3228_v31, 4  ;;  %v9056_v27 = vpop.permute.xlu0 %1663 }
 0x12a   : > { %v3477_v24 = vmul.f32 %v8995_v17, %v8990_v9  ;;  %v3183_v3 = vadd.f32 %v3063_v62, %v2933_v40  ;;  %7840 = vpow2.f32 %v6754_v15  ;;  %v6755_v10 = vmul.f32 -1.442695, %v9020_v45 }
 0x12b   : > { %v9051_v12 = vadd.f32 %v8816_v37, %v1159_v42  ;;  %v2065_v13 = vrot.slane %v1981_v1, 1  ;;  %v1390_v26 = vadd.f32 1.0, %v7833_v6  ;;  %7842 = vpow2.f32 %v6753_v46  ;;  %v9071_v6 = vpop.f32.mrb[19].mxu0 }
 0x12c   : > { %v9054_v14 = vadd.f32 %v8816_v37, %v1158_v51  ;;  %v13333_v31 = vrot.slane %v9031_v54, 1  ;;  %v2231_v40 = vmul.f32 %v8876_v30, %v8921_v4  ;;  %v13336_v15 = vrot.slane %v9035_v55, 5  ;;  %13521 = vst [vmem:[#allocation15_spill] sm:$0xff] %v9071_v6 }
 0x12d   : > { %13519 = vst [vmem:[#allocation13_spill] sm:$0xff] %v9051_v12  ;;  %7844 = vpow2.f32 %v6756_v20  ;;  %v9064_v42 = vmul.f32 %v9047_v7, %v8988_v5  ;;  %v3312_v1 = vsel %vm3060_vm7, %v3310_v8, %v13328_v49  ;;  %v3561_v46 = vrot.slane %v3477_v24, 5  ;;  %v9105_v11 = vpop.permute.xlu0 %1673 }
 0x12e   : > { %13520 = vst [vmem:[#allocation14_spill] sm:$0xff] %v9054_v14  ;;  %v3730_v51 = vmul.f32 %v9047_v7, %v8990_v9  ;;  %v9075_v62 = vmul.f32 %v8876_v30, %v8919_v50  ;;  %v3432_v22 = vadd.f32 %v3312_v1, %v3183_v3  ;;  %7846 = vpow2.f32 %v6755_v10  ;;  %13524 = vst [vmem:[#allocation18_spill] sm:$0xff] %v9105_v11 }
 0x12f   : > { %v9078_v20 = vmul.f32 -1.442695, %v9051_v12  ;;  %v2066_v23 = vsel %vm2061_vm4, %v2063_v56, %v2065_v13  ;;  %v2481_v8 = vmul.f32 %v8914_v0, %v8990_v9  ;;  %7848 = vrcp.f32 %v1390_v26 }
 0x130   : > { %v9086_v24 = vmul.f32 -1.442695, %v9054_v14  ;;  %v7835_v49 = vpop.eup %7834  ;;  %v1894_v2 = vmul.f32 %v8887_v39, %v8882_v38  ;;  %v2068_v3 = vsel %vm2061_vm4, %v2065_v13, %v13333_v31  ;;  %v2315_v10 = vrot.slane %v2231_v40, 2 }
 0x131   : > { %13522 = vst [vmem:[#allocation16_spill] sm:$0xff] %v9078_v20  ;;  %v9095_v47 = vmul.f32 %v8880_v36, %v8811_v35  ;;  %v7837_v56 = vpop.eup %7836  ;;  %v9099_v26 = vmul.f32 %v8914_v0, %v8988_v5  ;;  %v3563_v38 = vsel %vm838_vm0, %v3561_v46, %v13336_v15  ;;  %v3815_v28 = vrot.slane %v3730_v51, 6  ;;  %v9202_v20 = vpop.f32.mrb[20].mxu0 }
 0x132   : > { %13523 = vst [vmem:[#allocation17_spill] sm:$0xff] %v9086_v24  ;;  %v7839_v59 = vpop.eup %7838  ;;  %v1895_v36 = vmul.f32 %v8887_v39, %v8921_v4  ;;  %v2185_v40 = vadd.f32 %v2066_v23, %v1894_v2  ;;  %v3685_v31 = vadd.f32 %v3563_v38, %v3432_v22  ;;  %v1896_v14 = vmul.f32 %v8887_v39, %v8919_v50  ;;  %v1649_v50 = vpop.permute.xlu1 %1648 }
 0x133   : > { %v1983_v1 = vmul.f32 %v8873_v29, %v8990_v9  ;;  %v2564_v12 = vrot.slane %v2481_v8, 2  ;;  %v1526_v46 = vmul.f32 %v7835_v49, %v8890_v41  ;;  %v13525_v11 = vrot.slane %v8901_v48, 2  ;;  %13536 = vst [vmem:[#allocation22_spill] sm:$0xff] %v9202_v20 }
 0x134   : > { %v7841_v51 = vpop.eup %7840  ;;  %v2186_v15 = vadd.f32 %v2068_v3, %v1895_v36  ;;  %v9120_v4 = vmul.f32 %v8873_v29, %v8988_v5  ;;  %v1389_v22 = vadd.f32 1.0, %v7837_v56  ;;  %v2730_v38 = vmul.f32 %v8942_v21, %v8990_v9 }
 0x135   : > { %v2316_v13 = vsel %vm2311_vm5, %v13525_v11, %v2315_v10  ;;  %v7843_v2 = vpop.eup %7842  ;;  %v13526_v8 = vrot.slane %v9064_v42, 6  ;;  %v1525_v49 = vmul.f32 %v7839_v59, %v8905_v52  ;;  %v13527_v11 = vrot.slane %v9075_v62, 2 }
 0x136   : > { %v2435_v36 = vadd.f32 %v2316_v13, %v2185_v40  ;;  %v9136_v56 = vmul.f32 %v8876_v30, %v8988_v5  ;;  %v9140_v45 = vmul.f32 %v8942_v21, %v8988_v5  ;;  %v9144_v52 = vmul.f32 %v8949_v33, %v8988_v5  ;;  %v9152_v13 = vld [vmem:[%s13310_s7] ss:$0 sm:$0xff]  ;;  %v9156_v40 = vpop.permute.xlu0 %1683 }
 0x137   : > { %v3817_v41 = vsel %vm3814_vm8, %v3815_v28, %v13526_v8  ;;  %v9129_v48 = vpop.eup %7844  ;;  %v2318_v3 = vsel %vm2311_vm5, %v2315_v10, %v13527_v11  ;;  %v2069_v59 = vrot.slane %v1983_v1, 1  ;;  %v13528_v28 = vrot.slane %v8936_v16, 2  ;;  %13529 = vst [vmem:[#allocation19_spill] sm:$0xff] %v9156_v40 }
 0x138   : > { %v3939_v23 = vadd.f32 %v3817_v41, %v3685_v31  ;;  %v9154_v31 = vpop.eup %7846  ;;  %v2436_v8 = vadd.f32 %v2318_v3, %v2186_v15  ;;  %v2233_v11 = vmul.f32 %v8876_v30, %v8990_v9  ;;  %7850 = vrcp.f32 %v1389_v22 }
 0x139   : > { %v2565_v10 = vsel %vm2311_vm5, %v13528_v28, %v2564_v12  ;;  %v7849_v1 = vpop.eup %7848  ;;  %v13530_v16 = vrot.slane %v9099_v26, 2  ;;  %v2814_v6 = vrot.slane %v2730_v38, 3  ;;  %v2980_v24 = vmul.f32 %v8949_v33, %v8990_v9 }
 0x13a   : > { %v9167_v25 = vmul.f32 %v8971_v60, %v1525_v49  ;;  %v9171_v15 = vmul.f32 %v8887_v39, %v8988_v5  ;;  %v2684_v41 = vadd.f32 %v2565_v10, %v2435_v36  ;;  %v3987_v22 = vmul.f32 %v9152_v13, %v3939_v23  ;;  %v9183_v60 = vld [vmem:[%s13311_s8] ss:$0 sm:$0xff] }
 0x13b   : > { %v2567_v28 = vsel %vm2311_vm5, %v2564_v12, %v13530_v16  ;;  %v13532_v38 = vrot.slane %v9031_v54, 1  ;;  %v9185_v49 = vmul.f32 %v1649_v50, %v1526_v46  ;;  %v13534_v3 = vrot.slane %v9120_v4, 1  ;;  %v9193_v12 = vpop.permute.xlu1 %1658 }
 0x13c   : > { %13531 = vst [vmem:[#allocation20_spill] sm:$0xff] %v9167_v25  ;;  %v2319_v23 = vrot.slane %v2233_v11, 2  ;;  %v2685_v10 = vadd.f32 %v2567_v28, %v2436_v8  ;;  %v9191_v40 = vmul.f32 %v7849_v1, %v8932_v63  ;;  %v1897_v54 = vmul.f32 %v8887_v39, %v8990_v9 }
 0x13d   : > { %v2070_v16 = vsel %vm2061_vm4, %v13532_v38, %v2069_v59  ;;  %13533 = vst [vmem:[#allocation21_spill] sm:$0xff] %v9185_v49  ;;  %v2072_v36 = vsel %vm2061_vm4, %v2069_v59, %v13534_v3  ;;  %v13535_v38 = vrot.slane %v8956_v44, 3  ;;  %v3064_v50 = vrot.slane %v2980_v24, 4  ;;  %v9204_v59 = vpop.permute.xlu0 %1693 }
 0x13e   : > { %v3230_v46 = vmul.f32 %v8978_v58, %v9167_v25  ;;  %13537 = vst [vmem:[#allocation23_spill] sm:$0xff] %v9204_v59  ;;  %v2187_v8 = vadd.f32 %v2070_v16, %v1896_v14  ;;  %v9207_v11 = vadd.f32 %v9183_v60, %v3987_v22  ;;  %v2483_v1 = vmul.f32 %v8914_v0, %v9167_v25  ;;  %v9238_v59 = vpop.f32.mrb[21].mxu0 }
 0x13f   : > { %v2815_v5 = vsel %vm2810_vm6, %v13535_v38, %v2814_v6  ;;  %v2188_v28 = vadd.f32 %v2072_v36, %v1897_v54  ;;  %v13538_v44 = vrot.slane %v9140_v45, 3  ;;  %v9214_v3 = vadd.f32 1.0, %v7841_v51  ;;  %13542 = vst [vmem:[#allocation24_spill] sm:$0xff] %v9238_v59  ;;  %v9240_v20 = vpop.permute.xlu1 %1668 }
 0x140   : > { %v2934_v63 = vadd.f32 %v2815_v5, %v2684_v41  ;;  %v9216_v38 = vadd.f32 1.0, %v7843_v2  ;;  %v13539_v9 = vrot.slane %v9075_v62, 2  ;;  %v9223_v41 = vmul.f32 %v8914_v0, %v9185_v49  ;;  %13543 = vst [vmem:[#allocation25_spill] sm:$0xff] %v9240_v20 }
 0x141   : > { %v2817_v24 = vsel %vm2810_vm6, %v2814_v6, %v13538_v44  ;;  %v9227_v22 = vmul.f32 %v8978_v58, %v9185_v49  ;;  %v13540_v16 = vrot.slane %v9136_v56, 2  ;;  %v13541_v51 = vrot.slane %v8975_v57, 4 }
 0x142   : > { %v2320_v14 = vsel %vm2311_vm5, %v13539_v9, %v2319_v23  ;;  %v2935_v5 = vadd.f32 %v2817_v24, %v2685_v10  ;;  %v3313_v62 = vrot.slane %v3230_v46, 4  ;;  %v3479_v9 = vmul.f32 %v8995_v17, %v9167_v25  ;;  %v7851_v36 = vpop.eup %7850 }
 0x143   : > { %v2322_v6 = vsel %vm2311_vm5, %v2319_v23, %v13540_v16  ;;  %v3065_v2 = vsel %vm3060_vm7, %v13541_v51, %v3064_v50  ;;  %v2437_v10 = vadd.f32 %v2320_v14, %v2187_v8  ;;  %v6792_v44 = vmul.f32 -1.442695, %v9207_v11 }
 0x144   : > { %v3184_v54 = vadd.f32 %v3065_v2, %v2934_v63  ;;  %v2568_v24 = vrot.slane %v2483_v1, 2  ;;  %v2438_v32 = vadd.f32 %v2322_v6, %v2188_v28  ;;  %v13544_v23 = vrot.slane %v9144_v52, 4  ;;  %v9253_v63 = vpop.permute.xlu0 %1703 }
 0x145   : > { %v9247_v46 = vmul.f32 %v8873_v29, %v9185_v49  ;;  %v9251_v8 = vmul.f32 %v8995_v17, %v9185_v49  ;;  %13545 = vst [vmem:[#allocation26_spill] sm:$0xff] %v9253_v63  ;;  %v2732_v28 = vmul.f32 %v8942_v21, %v9167_v25  ;;  %v3564_v51 = vrot.slane %v3479_v9, 5 }
 0x146   : > { %v3067_v57 = vsel %vm3060_vm7, %v3064_v50, %v13544_v23  ;;  %v13546_v50 = vrot.slane %v9011_v19, 4  ;;  %v3732_v2 = vmul.f32 %v9047_v7, %v9167_v25  ;;  %v1527_v23 = vmul.f32 %v7851_v36, %v8967_v53 }
 0x147   : > { %v3185_v1 = vadd.f32 %v3067_v57, %v2935_v5  ;;  %7852 = vpow2.f32 %v6792_v44  ;;  %v9267_v5 = vmul.f32 %v8942_v21, %v9185_v49  ;;  %v13547_v57 = vrot.slane %v9099_v26, 2 }
 0x148   : > { %v3314_v6 = vsel %vm3060_vm7, %v13546_v50, %v3313_v62  ;;  %v9274_v19 = vmul.f32 %v8876_v30, %v9185_v49  ;;  %v9279_v50 = vmul.f32 %v9047_v7, %v9185_v49  ;;  %v1985_v53 = vmul.f32 %v8873_v29, %v9167_v25 }
 0x149   : > { %v2569_v16 = vsel %vm2311_vm5, %v13547_v57, %v2568_v24  ;;  %v3433_v14 = vadd.f32 %v3314_v6, %v3184_v54  ;;  %v13548_v36 = vrot.slane %v9223_v41, 2  ;;  %v2818_v44 = vrot.slane %v2732_v28, 3  ;;  %v9291_v57 = vpop.permute.xlu1 %1678 }
 0x14a   : > { %v2982_v54 = vmul.f32 %v8949_v33, %v9167_v25  ;;  %v9289_v6 = vmul.f32 %v9017_v34, %v1527_v23  ;;  %v2686_v9 = vadd.f32 %v2569_v16, %v2437_v10  ;;  %v13550_v63 = vrot.slane %v9227_v22, 4 }
 0x14b   : > { %v2571_v26 = vsel %vm2311_vm5, %v2568_v24, %v13548_v36  ;;  %v13551_v35 = vrot.slane %v9035_v55, 5  ;;  %v3818_v20 = vrot.slane %v3732_v2, 6  ;;  %v9299_v24 = vpop.permute.xlu0 %1713  ;;  %v9304_v34 = vmul.f32 %v8949_v33, %v9185_v49 }
 0x14c   : > { %13549 = vst [vmem:[#allocation27_spill] sm:$0xff] %v9289_v6  ;;  %v3316_v59 = vsel %vm3060_vm7, %v3313_v62, %v13550_v63  ;;  %13552 = vst [vmem:[#allocation28_spill] sm:$0xff] %v9299_v24  ;;  %v2687_v62 = vadd.f32 %v2571_v26, %v2438_v32  ;;  %v9310_v55 = vmul.f32 %v9193_v12, %v9191_v40  ;;  %v13554_v63 = vrot.slane %v9140_v45, 3 }
 0x14d   : > { %v3565_v43 = vsel %vm838_vm0, %v13551_v35, %v3564_v51  ;;  %v3434_v23 = vadd.f32 %v3316_v59, %v3185_v1  ;;  %v2235_v35 = vmul.f32 %v8876_v30, %v9167_v25  ;;  %v3068_v28 = vrot.slane %v2982_v54, 4  ;;  %v9329_v16 = vpop.permute.xlu1 %1688 }
 0x14e   : > { %v3686_v36 = vadd.f32 %v3565_v43, %v3433_v14  ;;  %13553 = vst [vmem:[#allocation29_spill] sm:$0xff] %v9310_v55  ;;  %v2819_v2 = vsel %vm2810_vm6, %v13554_v63, %v2818_v44  ;;  %v3232_v43 = vmul.f32 %v8978_v58, %v9289_v6  ;;  %v2073_v59 = vrot.slane %v1985_v53, 1 }
 0x14f   : > { %v2936_v1 = vadd.f32 %v2819_v2, %v2686_v9  ;;  %v13555_v14 = vrot.slane %v9251_v8, 5  ;;  %v13556_v40 = vrot.slane %v9064_v42, 6  ;;  %v13557_v45 = vrot.slane %v9267_v5, 3 }
 0x150   : > { %v9333_v9 = vmul.f32 %v8887_v39, %v9185_v49  ;;  %v9338_v42 = vmul.f32 %v8978_v58, %v9310_v55  ;;  %v13562_v49 = vrot.slane %v9247_v46, 1  ;;  %7854 = vrcp.f32 %v9216_v38 }
 0x151   : > { %v3567_v32 = vsel %vm838_vm0, %v3564_v51, %v13555_v14  ;;  %v3819_v12 = vsel %vm3814_vm8, %v13556_v40, %v3818_v20  ;;  %v2821_v63 = vsel %vm2810_vm6, %v2818_v44, %v13557_v45  ;;  %v7853_v2 = vpop.eup %7852  ;;  %v9340_v14 = vpop.permute.xlu0 %1723  ;;  %v1899_v44 = vmul.f32 %v8887_v39, %v9167_v25 }
 0x152   : > { %v3687_v54 = vadd.f32 %v3567_v32, %v3434_v23  ;;  %v3940_v10 = vadd.f32 %v3819_v12, %v3686_v36  ;;  %v2937_v53 = vadd.f32 %v2821_v63, %v2687_v62  ;;  %13558 = vst [vmem:[#allocation30_spill] sm:$0xff] %v9340_v14  ;;  %v13559_v23 = vrot.slane %v9144_v52, 4 }
 0x153   : > { %v3317_v32 = vrot.slane %v3232_v43, 4  ;;  %v3481_v40 = vmul.f32 %v8995_v17, %v9289_v6  ;;  %v13560_v62 = vrot.slane %v9120_v4, 1  ;;  %v2323_v45 = vrot.slane %v2235_v35, 2 }
 0x154   : > { %v3069_v36 = vsel %vm3060_vm7, %v13559_v23, %v3068_v28  ;;  %v13561_v51 = vrot.slane %v9279_v50, 6  ;;  %v2076_v52 = vsel %vm2061_vm4, %v2073_v59, %v13562_v49  ;;  %v13563_v23 = vrot.slane %v9304_v34, 4 }
 0x155   : > { %v2074_v12 = vsel %vm2061_vm4, %v13560_v62, %v2073_v59  ;;  %v3186_v63 = vadd.f32 %v3069_v36, %v2936_v1  ;;  %v3988_v14 = vmul.f32 %v9152_v13, %v3940_v10  ;;  %v4199_v4 = vadd.f32 1.0, %v7853_v2  ;;  %v9375_v10 = vpop.permute.xlu1 %1698 }
 0x156   : > { %v3821_v26 = vsel %vm3814_vm8, %v3818_v20, %v13561_v51  ;;  %v3071_v43 = vsel %vm3060_vm7, %v3068_v28, %v13563_v23  ;;  %v13347_v35 = vrot.slane %v9338_v42, 4  ;;  %v9365_v1 = vmul.f32 %v8995_v17, %v9310_v55  ;;  %v9367_v20 = vpop.f32.mrb[22].mxu0  ;;  %13566 = vst [vmem:[#allocation32_spill] sm:$0xff] %v9375_v10 }
 0x157   : > { %v3941_v25 = vadd.f32 %v3821_v26, %v3687_v54  ;;  %v3187_v24 = vadd.f32 %v3071_v43, %v2937_v53  ;;  %13564 = vst [vmem:[#allocation31_spill] sm:$0xff] %v9367_v20  ;;  %v13565_v51 = vrot.slane %v9227_v22, 4  ;;  %v3568_v59 = vrot.slane %v3481_v40, 5  ;;  %v9382_v22 = vpop.permute.xlu0 %1733  ;;  %v13619_v20 = vld [vmem:[#allocation24_spill] sm:$0xff] }
 0x158   : > { %v3734_v28 = vmul.f32 %v9047_v7, %v9289_v6  ;;  %v2189_v26 = vadd.f32 %v2074_v12, %v9171_v15  ;;  %v13567_v54 = vrot.slane %v9136_v56, 2  ;;  %7856 = vrcp.f32 %v9214_v3  ;;  %13568 = vst [vmem:[#allocation33_spill] sm:$0xff] %v9382_v22 }
 0x159   : > { %v3318_v49 = vsel %vm3060_vm7, %v13565_v51, %v3317_v32  ;;  %v2190_v36 = vadd.f32 %v2076_v52, %v1899_v44  ;;  %v13569_v40 = vrot.slane %v9274_v19, 2  ;;  %v3989_v38 = vmul.f32 %v9152_v13, %v3941_v25 }
 0x15a   : > { %v2324_v53 = vsel %vm2311_vm5, %v13567_v54, %v2323_v45  ;;  %v3435_v2 = vadd.f32 %v3318_v49, %v3186_v63  ;;  %v9389_v23 = vadd.f32 %v9183_v60, %v3988_v14  ;;  %7858 = vrcp.f32 %v4199_v4  ;;  %v9404_v63 = vpop.f32.mrb[23].mxu0  ;;  %v7855_v54 = vpop.eup %7854 }
 0x15b   : > { %v2326_v62 = vsel %vm2311_vm5, %v2323_v45, %v13569_v40  ;;  %v13348_v56 = vrot.slane %v9365_v1, 5  ;;  %v9394_v15 = vmul.f32 %v9047_v7, %v9310_v55  ;;  %v3320_v3 = vsel %vm3060_vm7, %v3317_v32, %v13347_v35  ;;  %13571 = vst [vmem:[#allocation34_spill] sm:$0xff] %v9404_v63 }
 0x15c   : > { %v2485_v44 = vmul.f32 %v8914_v0, %v9289_v6  ;;  %v3436_v12 = vadd.f32 %v3320_v3, %v3187_v24  ;;  %v13570_v25 = vrot.slane %v9251_v8, 5  ;;  %v3822_v45 = vrot.slane %v3734_v28, 6  ;;  %v9422_v28 = vpop.permute.xlu1 %1708 }
 0x15d   : > { %v2439_v52 = vadd.f32 %v2324_v53, %v2189_v26  ;;  %v9408_v43 = vmul.f32 %v8873_v29, %v9310_v55  ;;  %v9412_v4 = vmul.f32 %v8914_v0, %v9310_v55  ;;  %v2440_v51 = vadd.f32 %v2326_v62, %v2190_v36  ;;  %13572 = vst [vmem:[#allocation35_spill] sm:$0xff] %v9422_v28  ;;  %v9434_v36 = vpop.permute.xlu0 %1743 }
 0x15e   : > { %v3569_v14 = vsel %vm838_vm0, %v13570_v25, %v3568_v59  ;;  %v9415_v24 = vadd.f32 %v9183_v60, %v3989_v38  ;;  %v6793_v8 = vmul.f32 -1.442695, %v9389_v23  ;;  %v9420_v49 = vmul.f32 %v8876_v30, %v9310_v55  ;;  %13573 = vst [vmem:[#allocation36_spill] sm:$0xff] %v9434_v36 }
 0x15f   : > { %v3688_v32 = vadd.f32 %v3569_v14, %v3435_v2  ;;  %v9426_v26 = vmul.f32 %v8942_v21, %v9310_v55  ;;  %v1987_v53 = vmul.f32 %v8873_v29, %v9289_v6  ;;  %v3571_v2 = vsel %vm838_vm0, %v3568_v59, %v13348_v56 }
 0x160   : > { %v9438_v40 = vmul.f32 %v8949_v33, %v9310_v55  ;;  %v2572_v62 = vrot.slane %v2485_v44, 2  ;;  %v3689_v38 = vadd.f32 %v3571_v2, %v3436_v12  ;;  %v13574_v3 = vrot.slane %v9279_v50, 6  ;;  %v9466_v2 = vpop.permute.xlu1 %1718 }
 0x161   : > { %v9445_v14 = vmul.f32 %v8887_v39, %v9310_v55  ;;  %7860 = vpow2.f32 %v6793_v8  ;;  %v6794_v36 = vmul.f32 -1.442695, %v9415_v24  ;;  %v2734_v50 = vmul.f32 %v8942_v21, %v9289_v6  ;;  %13578 = vst [vmem:[#allocation38_spill] sm:$0xff] %v9466_v2 }
 0x162   : > { %v3823_v25 = vsel %vm3814_vm8, %v13574_v3, %v3822_v45  ;;  %v7857_v12 = vpop.eup %7856  ;;  %v2077_v3 = vrot.slane %v1987_v53, 1  ;;  %v13575_v55 = vrot.slane %v9394_v15, 6  ;;  %v1529_v22 = vmul.f32 %v7855_v54, %v8999_v18 }
 0x163   : > { %v3942_v56 = vadd.f32 %v3823_v25, %v3688_v32  ;;  %v9459_v32 = vadd.f32 %v8816_v37, %v9095_v47  ;;  %v13577_v25 = vrot.slane %v9223_v41, 2  ;;  %v2237_v53 = vmul.f32 %v8876_v30, %v9289_v6  ;;  %v9475_v41 = vpop.permute.xlu0 %1753 }
 0x164   : > { %v3825_v35 = vsel %vm3814_vm8, %v3822_v45, %v13575_v55  ;;  %v7859_v28 = vpop.eup %7858  ;;  %v13579_v55 = vrot.slane %v9412_v4, 2  ;;  %v1394_v45 = vadd.f32 1.0, %v9129_v48  ;;  %13580 = vst [vmem:[#allocation39_spill] sm:$0xff] %v9475_v41  ;;  %7862 = vpow2.f32 %v6794_v36 }
 0x165   : > { %13576 = vst [vmem:[#allocation37_spill] sm:$0xff] %v9459_v32  ;;  %v2573_v44 = vsel %vm2311_vm5, %v13577_v25, %v2572_v62  ;;  %v3943_v59 = vadd.f32 %v3825_v35, %v3689_v38  ;;  %v3990_v47 = vmul.f32 %v9152_v13, %v3942_v56  ;;  %v2822_v35 = vrot.slane %v2734_v50, 3 }
 0x166   : > { %v2575_v37 = vsel %vm2311_vm5, %v2572_v62, %v13579_v55  ;;  %v2984_v18 = vmul.f32 %v8949_v33, %v9289_v6  ;;  %v1530_v54 = vmul.f32 %v7857_v12, %v8981_v61  ;;  %v13581_v38 = vrot.slane %v9247_v46, 1 }
 0x167   : > { %v2688_v8 = vadd.f32 %v2573_v44, %v2439_v52  ;;  %v1393_v62 = vadd.f32 1.0, %v9154_v31  ;;  %v9485_v56 = vmul.f32 -1.442695, %v9459_v32  ;;  %v13582_v48 = vrot.slane %v9408_v43, 1 }
 0x168   : > { %v2078_v25 = vsel %vm2061_vm4, %v13581_v38, %v2077_v3  ;;  %v2689_v50 = vadd.f32 %v2575_v37, %v2440_v51  ;;  %v3991_v55 = vmul.f32 %v9152_v13, %v3943_v59  ;;  %v9492_v41 = vmul.f32 %v9056_v27, %v1529_v22  ;;  %v9509_v22 = vpop.permute.xlu1 %1728  ;;  %v13591_v38 = vld [vmem:[#allocation2_spill] sm:$0xff] }
 0x169   : > { %v2080_v36 = vsel %vm2061_vm4, %v2077_v3, %v13582_v48  ;;  %v9495_v61 = vmul.f32 %v7859_v28, %v9207_v11  ;;  %v1901_v46 = vmul.f32 %v8887_v39, %v9289_v6  ;;  %v2327_v31 = vrot.slane %v2237_v53, 2  ;;  %v13586_v3 = vld [vmem:[#allocation25_spill] sm:$0xff]  ;;  %13588 = vst [vmem:[#allocation42_spill] sm:$0xff] %v9509_v22 }
 0x16a   : > { %13583 = vst [vmem:[#allocation40_spill] sm:$0xff] %v9492_v41  ;;  %v9500_v52 = vadd.f32 %v9183_v60, %v3990_v47  ;;  %v2191_v44 = vadd.f32 %v2078_v25, %v9333_v9  ;;  %v13585_v12 = vrot.slane %v9267_v5, 3  ;;  %v3072_v59 = vrot.slane %v2984_v18, 4  ;;  %v13590_v47 = vld [vmem:[#allocation4_spill] sm:$0xff]  ;;  %v4407_v25 = vpop.permute.xlu0 %4406 }
 0x16b   : > { %13584 = vst [vmem:[#allocation41_spill] sm:$0xff] %v9495_v61  ;;  %v9507_v27 = vmul.f32 %v13586_v3, %v1530_v54  ;;  %v2192_v11 = vadd.f32 %v2080_v36, %v1901_v46  ;;  %v13589_v28 = vrot.slane %v9426_v26, 3  ;;  %v1160_v48 = vmul.f32 %v13591_v38, %v13590_v47  ;;  %v7861_v9 = vpop.eup %7860  ;;  %v13592_v54 = vld [vmem:[#allocation11_spill] sm:$0xff]  ;;  %v9525_v46 = vpop.f32.mrb[24].mxu0 }
 0x16c   : > { %v2823_v51 = vsel %vm2810_vm6, %v13585_v12, %v2822_v35  ;;  %v9517_v12 = vadd.f32 %v9183_v60, %v3991_v55  ;;  %v3234_v18 = vmul.f32 %v8978_v58, %v9492_v41  ;;  %v9523_v36 = vmul.f32 %v13592_v54, %v13591_v38  ;;  %13593 = vst [vmem:[#allocation4_spill] sm:$0xff] %v9525_v46  ;;  %v13609_v46 = vld [vmem:[#allocation17_spill] sm:$0xff] }
 0x16d   : > { %13587 = vst [vmem:[#allocation25_spill] sm:$0xff] %v9507_v27  ;;  %v2825_v53 = vsel %vm2810_vm6, %v2822_v35, %v13589_v28  ;;  %v2938_v37 = vadd.f32 %v2823_v51, %v2688_v8  ;;  %v4609_v8 = vmul.f32 %v4407_v25, %v9495_v61  ;;  %v13594_v35 = vrot.slane %v9274_v19, 2 }
 0x16e   : > { %v2939_v5 = vadd.f32 %v2825_v53, %v2689_v50  ;;  %v6795_v50 = vmul.f32 -1.442695, %v9500_v52  ;;  %7864 = vrcp.f32 %v1394_v45  ;;  %v13595_v55 = vrot.slane %v9420_v49, 2  ;;  %v7863_v6 = vpop.eup %7862 }
 0x16f   : > { %v2328_v51 = vsel %vm2311_vm5, %v13594_v35, %v2327_v31  ;;  %v13596_v53 = vrot.slane %v9304_v34, 4  ;;  %v9542_v38 = vmul.f32 %v8978_v58, %v9507_v27  ;;  %v4200_v19 = vadd.f32 1.0, %v7861_v9  ;;  %v9550_v34 = vpop.permute.xlu1 %1738 }
 0x170   : > { %v2330_v3 = vsel %vm2311_vm5, %v2327_v31, %v13595_v55  ;;  %v9535_v28 = vadd.f32 %v2328_v51, %v2191_v44  ;;  %v13597_v54 = vrot.slane %v9438_v40, 4  ;;  %v6796_v44 = vmul.f32 -1.442695, %v9517_v12  ;;  %13598 = vst [vmem:[#allocation2_spill] sm:$0xff] %v9550_v34 }
 0x171   : > { %v3073_v47 = vsel %vm3060_vm7, %v13596_v53, %v3072_v59  ;;  %v9544_v25 = vadd.f32 %v2330_v3, %v2192_v11  ;;  %v3321_v51 = vrot.slane %v3234_v18, 4  ;;  %7866 = vrcp.f32 %v1393_v62 }
 0x172   : > { %v3075_v45 = vsel %vm3060_vm7, %v3072_v59, %v13597_v54  ;;  %v3188_v35 = vadd.f32 %v3073_v47, %v2938_v37  ;;  %v9553_v55 = vsel %vm4650_vm9, %v4609_v8, 0.0  ;;  %7868 = vpow2.f32 %v6795_v50  ;;  %v9569_v8 = vpop.f32.mrb[25].mxu0 }
 0x173   : > { %v3189_v31 = vadd.f32 %v3075_v45, %v2939_v5  ;;  %v9557_v11 = vmul.f32 %v8995_v17, %v9507_v27  ;;  %v3483_v59 = vmul.f32 %v8995_v17, %v9492_v41  ;;  %v13353_v37 = vrot.slane %v9542_v38, 4  ;;  %13600 = vst [vmem:[#allocation11_spill] sm:$0xff] %v9569_v8  ;;  %v9602_v22 = vpop.permute.xlu1 %1748 }
 0x174   : > { %v2487_v9 = vmul.f32 %v8914_v0, %v9492_v41  ;;  %v13599_v62 = vrot.slane %v9338_v42, 4  ;;  %v3736_v18 = vmul.f32 %v9047_v7, %v9492_v41  ;;  %v4201_v50 = vadd.f32 1.0, %v7863_v6  ;;  %13602 = vst [vmem:[#allocation43_spill] sm:$0xff] %v9602_v22 }
 0x175   : > { %7870 = vrcp.f32 %v4200_v19  ;;  %v3572_v53 = vrot.slane %v3483_v59, 5  ;;  %v9573_v47 = vmul.f32 %v8887_v39, %v9507_v27  ;;  %v9577_v54 = vmul.f32 %v8873_v29, %v9507_v27 }
 0x176   : > { %v3322_v5 = vsel %vm3060_vm7, %v13599_v62, %v3321_v51  ;;  %7872 = vpow2.f32 %v6796_v44  ;;  %v9581_v42 = vmul.f32 %v8914_v0, %v9507_v27  ;;  %v9585_v45 = vmul.f32 %v8876_v30, %v9507_v27 }
 0x177   : > { %v3437_v3 = vadd.f32 %v3322_v5, %v3188_v35  ;;  %v9589_v6 = vmul.f32 %v8942_v21, %v9507_v27  ;;  %v9594_v35 = vmul.f32 %v9047_v7, %v9507_v27  ;;  %v2576_v44 = vrot.slane %v2487_v9, 2 }
 0x178   : > { %v3324_v59 = vsel %vm3060_vm7, %v3321_v51, %v13353_v37  ;;  %v13601_v62 = vrot.slane %v9365_v1, 5  ;;  %v3826_v61 = vrot.slane %v3736_v18, 6  ;;  %v7865_v34 = vpop.eup %7864  ;;  %7874 = vrcp.f32 %v4201_v50  ;;  %v9615_v51 = vld [vmem:[%s13308_s5] ss:$0 sm:$0xff] }
 0x179   : > { %v9606_v19 = vmul.f32 %v8949_v33, %v9507_v27  ;;  %v3438_v2 = vadd.f32 %v3324_v59, %v3189_v31  ;;  %v2736_v1 = vmul.f32 %v8942_v21, %v9492_v41  ;;  %v9618_v18 = vadd.f32 %v9615_v51, %v1160_v48  ;;  %v13604_v59 = vld [vmem:[#allocation16_spill] sm:$0xff]  ;;  %v13608_v50 = vld [vmem:[#allocation10_spill] sm:$0xff] }
 0x17a   : > { %v3573_v5 = vsel %vm838_vm0, %v13601_v62, %v3572_v53  ;;  %7876 = vpow2.f32 %v13604_v59  ;;  %v13606_v37 = vrot.slane %v9557_v11, 5  ;;  %v13607_v48 = vrot.slane %v9394_v15, 6 }
 0x17b   : > { %v3690_v10 = vadd.f32 %v3573_v5, %v3437_v3  ;;  %13603 = vst [vmem:[#allocation44_spill] sm:$0xff] %v9618_v18  ;;  %v7867_v62 = vpop.eup %7866  ;;  %v13605_v5 = vrot.slane %v9412_v4, 2  ;;  %v1532_v22 = vmul.f32 %v7865_v34, %v13608_v50  ;;  %7878 = vpow2.f32 %v13609_v46  ;;  %v9644_v34 = vpop.permute.xlu1 %1758  ;;  %v13614_v46 = vld [vmem:[#allocation22_spill] sm:$0xff] }
 0x17c   : > { %v3575_v32 = vsel %vm838_vm0, %v3572_v53, %v13606_v37  ;;  %v3827_v27 = vsel %vm3814_vm8, %v13607_v48, %v3826_v61  ;;  %v7869_v31 = vpop.eup %7868  ;;  %v13610_v4 = vrot.slane %v9581_v42, 2  ;;  %v2826_v63 = vrot.slane %v2736_v1, 3  ;;  %13611 = vst [vmem:[#allocation16_spill] sm:$0xff] %v9644_v34 }
 0x17d   : > { %v2577_v9 = vsel %vm2311_vm5, %v13605_v5, %v2576_v44  ;;  %v3691_v8 = vadd.f32 %v3575_v32, %v3438_v2  ;;  %v3944_v59 = vadd.f32 %v3827_v27, %v3690_v10  ;;  %v2986_v37 = vmul.f32 %v8949_v33, %v9492_v41  ;;  %v9654_v2 = vld [vmem:[%s13307_s4] ss:$0 sm:$0xff]  ;;  %v13613_v32 = vld [vmem:[#allocation15_spill] sm:$0xff] }
 0x17e   : > { %v2579_v5 = vsel %vm2311_vm5, %v2576_v44, %v13610_v4  ;;  %v9642_v15 = vmul.f32 -1.442695, %v9618_v18  ;;  %v2690_v50 = vadd.f32 %v2577_v9, %v9535_v28  ;;  %v9649_v10 = vadd.f32 %v9615_v51, %v9523_v36  ;;  %v13618_v4 = vld [vmem:[#allocation12_spill] sm:$0xff] }
 0x17f   : > { %v7871_v53 = vpop.eup %7870  ;;  %v1162_v27 = vmul.f32 %v9654_v2, %v13613_v32  ;;  %v9660_v44 = vmul.f32 %v9654_v2, %v13614_v46  ;;  %v4202_v48 = vadd.f32 1.0, %v7869_v31  ;;  %v13616_v28 = vrot.slane %v9594_v35, 6 }
 0x180   : > { %13612 = vst [vmem:[#allocation10_spill] sm:$0xff] %v9649_v10  ;;  %v7873_v1 = vpop.eup %7872  ;;  %v9666_v36 = vmul.f32 %v9291_v57, %v1532_v22  ;;  %v1531_v3 = vmul.f32 %v7867_v62, %v13618_v4  ;;  %v2691_v34 = vadd.f32 %v2579_v5, %v9544_v25  ;;  %v3992_v32 = vmul.f32 %v9152_v13, %v3944_v59 }
 0x181   : > { %13615 = vst [vmem:[#allocation17_spill] sm:$0xff] %v9660_v44  ;;  %v3829_v9 = vsel %vm3814_vm8, %v3826_v61, %v13616_v28  ;;  %v9673_v46 = vmul.f32 %v9654_v2, %v13619_v20  ;;  %v9675_v44 = vpop.f32.mrb[26].mxu0  ;;  %v9678_v31 = vmul.f32 %v7871_v53, %v9389_v23  ;;  %v13622_v61 = vrot.slane %v9426_v26, 3 }
 0x182   : > { %13617 = vst [vmem:[#allocation15_spill] sm:$0xff] %v9666_v36  ;;  %v3945_v18 = vadd.f32 %v3829_v9, %v3691_v8  ;;  %13620 = vst [vmem:[#allocation22_spill] sm:$0xff] %v9675_v44  ;;  %v3076_v22 = vrot.slane %v2986_v37, 4  ;;  %7880 = vpow2.f32 %v9485_v56  ;;  %v7875_v25 = vpop.eup %7874  ;;  %v4203_v8 = vadd.f32 1.0, %v7873_v1  ;;  %v13626_v37 = vld [vmem:[#allocation18_spill] sm:$0xff]  ;;  %v4412_v1 = vpop.permute.xlu1 %4411 }
 0x183   : > { %13621 = vst [vmem:[#allocation12_spill] sm:$0xff] %v9678_v31  ;;  %v2827_v57 = vsel %vm2810_vm6, %v13622_v61, %v2826_v63  ;;  %v1989_v62 = vmul.f32 %v8873_v29, %v9492_v41  ;;  %v9687_v20 = vmul.f32 -1.442695, %v9649_v10  ;;  %7882 = vrcp.f32 %v4202_v48 }
 0x184   : > { %v2940_v59 = vadd.f32 %v2827_v57, %v2690_v50  ;;  %v13624_v23 = vrot.slane %v9589_v6, 3  ;;  %v9694_v26 = vmul.f32 %v8978_v58, %v9666_v36  ;;  %v9697_v56 = vmul.f32 %v13626_v37, %v1531_v3  ;;  %v7877_v53 = vpop.eup %7876 }
 0x185   : > { %13623 = vst [vmem:[#allocation24_spill] sm:$0xff] %v9687_v20  ;;  %v3993_v50 = vmul.f32 %v9152_v13, %v3945_v18  ;;  %v9701_v9 = vadd.f32 %v9183_v60, %v3992_v32  ;;  %v9704_v48 = vadd.f32 %v9615_v51, %v1162_v27  ;;  %v1903_v4 = vmul.f32 %v8887_v39, %v9492_v41  ;;  %v7879_v57 = vpop.eup %7878 }
 0x186   : > { %v2829_v5 = vsel %vm2810_vm6, %v2826_v63, %v13624_v23  ;;  %13625 = vst [vmem:[#allocation45_spill] sm:$0xff] %v9694_v26  ;;  %13627 = vst [vmem:[#allocation18_spill] sm:$0xff] %v9697_v56  ;;  %v4610_v63 = vmul.f32 %v4412_v1, %v9678_v31  ;;  %v2239_v3 = vmul.f32 %v8876_v30, %v9492_v41  ;;  %v13630_v61 = vrot.slane %v9438_v40, 4  ;;  %v4417_v44 = vpop.permute.xlu1 %4416 }
 0x187   : > { %v2941_v28 = vadd.f32 %v2829_v5, %v2691_v34  ;;  %13628 = vst [vmem:[#allocation46_spill] sm:$0xff] %v9701_v9  ;;  %13629 = vst [vmem:[#allocation47_spill] sm:$0xff] %v9704_v48  ;;  %7884 = vrcp.f32 %v4203_v8  ;;  %v2081_v18 = vrot.slane %v1989_v62, 1  ;;  %v13631_v32 = vrot.slane %v9606_v19, 4  ;;  %v9717_v5 = vpop.f32.mrb[27].mxu0 }
 0x188   : > { %v3077_v34 = vsel %vm3060_vm7, %v13630_v61, %v3076_v22  ;;  %13632 = vst [vmem:[#allocation48_spill] sm:$0xff] %v9717_v5  ;;  %v9722_v1 = vmul.f32 %v8995_v17, %v9666_v36  ;;  %v3236_v40 = vmul.f32 %v8978_v58, %v9697_v56  ;;  %v3485_v8 = vmul.f32 %v8995_v17, %v9697_v56 }
 0x189   : > { %v3079_v27 = vsel %vm3060_vm7, %v3076_v22, %v13631_v32  ;;  %v3190_v23 = vadd.f32 %v3077_v34, %v2940_v59  ;;  %v9729_v61 = vadd.f32 %v9183_v60, %v3993_v50  ;;  %v6797_v22 = vmul.f32 -1.442695, %v9701_v9 }
 0x18a   : > { %v3191_v62 = vadd.f32 %v3079_v27, %v2941_v28  ;;  %v3738_v59 = vmul.f32 %v9047_v7, %v9697_v56  ;;  %v9735_v34 = vmul.f32 %v7875_v25, %v9415_v24  ;;  %v2331_v32 = vrot.slane %v2239_v3, 2 }
 0x18b   : > { %v3325_v37 = vrot.slane %v3236_v40, 4  ;;  %v3576_v41 = vrot.slane %v3485_v8, 5  ;;  %v4652_v31 = vsel %vm4650_vm9, %v4610_v63, 0.0  ;;  %v13634_v10 = vrot.slane %v9408_v43, 1 }
 0x18c   : > { %13633 = vst [vmem:[#allocation49_spill] sm:$0xff] %v9735_v34  ;;  %v9743_v50 = vmul.f32 %v9047_v7, %v9666_v36  ;;  %v1396_v27 = vadd.f32 1.0, %v7877_v53  ;;  %v7881_v5 = vpop.eup %7880  ;;  %v13635_v24 = vrot.slane %v9542_v38, 4  ;;  %v13636_v3 = vrot.slane %v9694_v26, 4 }
 0x18d   : > { %v2082_v28 = vsel %vm2061_vm4, %v13634_v10, %v2081_v18  ;;  %v3830_v43 = vrot.slane %v3738_v59, 6  ;;  %7886 = vpow2.f32 %v6797_v22  ;;  %v6798_v10 = vmul.f32 -1.442695, %v9729_v61  ;;  %v7883_v8 = vpop.eup %7882 }
 0x18e   : > { %v3326_v25 = vsel %vm3060_vm7, %v13635_v24, %v3325_v37  ;;  %v3328_v63 = vsel %vm3060_vm7, %v3325_v37, %v13636_v3  ;;  %v4611_v53 = vmul.f32 %v4417_v44, %v9735_v34  ;;  %v13637_v20 = vrot.slane %v9577_v54, 1 }
 0x18f   : > { %v3439_v40 = vadd.f32 %v3326_v25, %v3190_v23  ;;  %v3440_v7 = vadd.f32 %v3328_v63, %v3191_v62  ;;  %v13638_v38 = vrot.slane %v9420_v49, 2  ;;  %v13639_v26 = vrot.slane %v9557_v11, 5 }
 0x190   : > { %v2084_v9 = vsel %vm2061_vm4, %v2081_v18, %v13637_v20  ;;  %v4653_v22 = vadd.f32 %v4652_v31, %v9553_v55  ;;  %v2193_v23 = vadd.f32 %v2082_v28, %v9445_v14  ;;  %7888 = vrcp.f32 %v1396_v27  ;;  %v4422_v31 = vpop.permute.xlu1 %4421 }
 0x191   : > { %v2332_v24 = vsel %vm2311_vm5, %v13638_v38, %v2331_v32  ;;  %v3577_v37 = vsel %vm838_vm0, %v13639_v26, %v3576_v41  ;;  %v13361_v44 = vrot.slane %v9743_v50, 6  ;;  %v13640_v59 = vrot.slane %v9722_v1, 5  ;;  %v7885_v11 = vpop.eup %7884 }
 0x192   : > { %v3692_v62 = vadd.f32 %v3577_v37, %v3439_v40  ;;  %v13641_v49 = vrot.slane %v9594_v35, 6  ;;  %v1395_v25 = vadd.f32 1.0, %v7879_v57  ;;  %v9773_v26 = vmul.f32 %v7883_v8, %v9500_v52 }
 0x193   : > { %v3579_v20 = vsel %vm838_vm0, %v3576_v41, %v13640_v59  ;;  %7890 = vpow2.f32 %v6798_v10  ;;  %v4654_v28 = vsel %vm4650_vm9, %v4611_v53, 0.0  ;;  %v2194_v27 = vadd.f32 %v2084_v9, %v1903_v4 }
 0x194   : > { %v3831_v18 = vsel %vm3814_vm8, %v13641_v49, %v3830_v43  ;;  %13642 = vst [vmem:[#allocation50_spill] sm:$0xff] %v9773_v26  ;;  %v3693_v55 = vadd.f32 %v3579_v20, %v3440_v7  ;;  %v13643_v3 = vrot.slane %v9585_v45, 2  ;;  %v1991_v35 = vmul.f32 %v8873_v29, %v9697_v56 }
 0x195   : > { %v3946_v14 = vadd.f32 %v3831_v18, %v3692_v62  ;;  %v4655_v63 = vadd.f32 %v4654_v28, %v4653_v22  ;;  %v9783_v57 = vmul.f32 %v8914_v0, %v9666_v36  ;;  %v2489_v52 = vmul.f32 %v8914_v0, %v9697_v56 }
 0x196   : > { %v2334_v41 = vsel %vm2311_vm5, %v2331_v32, %v13643_v3  ;;  %v9790_v9 = vmul.f32 %v8873_v29, %v9666_v36  ;;  %v9794_v4 = vmul.f32 %v8876_v30, %v9666_v36  ;;  %v3833_v32 = vsel %vm3814_vm8, %v3830_v43, %v13361_v44  ;;  %v13647_v44 = vld [vmem:[#allocation13_spill] sm:$0xff] }
 0x197   : > { %v3994_v10 = vmul.f32 %v9152_v13, %v3946_v14  ;;  %7892 = vrcp.f32 %v1395_v25  ;;  %v9800_v40 = vmul.f32 %v7885_v11, %v9517_v12  ;;  %v4612_v7 = vmul.f32 %v4422_v31, %v9773_v26  ;;  %v7887_v59 = vpop.eup %7886 }
 0x198   : > { %v2443_v8 = vadd.f32 %v2332_v24, %v2193_v23  ;;  %v3947_v53 = vadd.f32 %v3833_v32, %v3693_v55  ;;  %v2444_v38 = vadd.f32 %v2334_v41, %v2194_v27  ;;  %v9805_v37 = vmul.f32 %v8942_v21, %v9666_v36  ;;  %v4427_v24 = vpop.permute.xlu1 %4426 }
 0x199   : > { %13644 = vst [vmem:[#allocation51_spill] sm:$0xff] %v9800_v40  ;;  %v2085_v22 = vrot.slane %v1991_v35, 1  ;;  %v9807_v62 = vadd.f32 1.0, %v7881_v5  ;;  %v9811_v43 = vmul.f32 %v8887_v39, %v9666_v36  ;;  %v13362_v12 = vrot.slane %v9783_v57, 2 }
 0x19a   : > { %v2580_v20 = vrot.slane %v2489_v52, 2  ;;  %v9815_v49 = vadd.f32 %v9183_v60, %v3994_v10  ;;  %v13366_v23 = vrot.slane %v9790_v9, 1  ;;  %v9821_v5 = vmul.f32 %v8949_v33, %v9666_v36  ;;  %v7889_v11 = vpop.eup %7888 }
 0x19b   : > { %v2241_v25 = vmul.f32 %v8876_v30, %v9697_v56  ;;  %v4613_v55 = vmul.f32 %v4427_v24, %v9800_v40  ;;  %v4656_v14 = vsel %vm4650_vm9, %v4612_v7, 0.0  ;;  %v2738_v31 = vmul.f32 %v8942_v21, %v9697_v56 }
 0x19c   : > { %v3995_v28 = vmul.f32 %v9152_v13, %v3947_v53  ;;  %v4204_v27 = vadd.f32 1.0, %v7887_v59  ;;  %v1905_v41 = vmul.f32 %v8887_v39, %v9697_v56  ;;  %v13645_v35 = vrot.slane %v9577_v54, 1 }
 0x19d   : > { %v7891_v10 = vpop.eup %7890  ;;  %v13646_v32 = vrot.slane %v9581_v42, 2  ;;  %v2583_v24 = vsel %vm2311_vm5, %v2580_v20, %v13362_v12  ;;  %v2988_v13 = vmul.f32 %v8949_v33, %v9697_v56  ;;  %v6799_v53 = vmul.f32 -1.442695, %v9815_v49 }
 0x19e   : > { %v2086_v52 = vsel %vm2061_vm4, %v13645_v35, %v2085_v22  ;;  %v4657_v59 = vadd.f32 %v4656_v14, %v4655_v63  ;;  %v2088_v54 = vsel %vm2061_vm4, %v2085_v22, %v13366_v23  ;;  %v2335_v35 = vrot.slane %v2241_v25, 2  ;;  %v13648_v22 = vld [vmem:[#allocation14_spill] sm:$0xff] }
 0x19f   : > { %v2581_v7 = vsel %vm2311_vm5, %v13646_v32, %v2580_v20  ;;  %v1534_v3 = vmul.f32 %v7889_v11, %v13647_v44  ;;  %v4658_v42 = vsel %vm4650_vm9, %v4613_v55, 0.0  ;;  %v2195_v32 = vadd.f32 %v2086_v52, %v9573_v47  ;;  %v13654_v52 = vld [vmem:[#allocation19_spill] sm:$0xff] }
 0x1a0   : > { %v2830_v18 = vrot.slane %v2738_v31, 3  ;;  %v9852_v20 = vadd.f32 %v9183_v60, %v3995_v28  ;;  %v4205_v36 = vadd.f32 1.0, %v7891_v10  ;;  %7894 = vrcp.f32 %v4204_v27 }
 0x1a1   : > { %v7893_v12 = vpop.eup %7892  ;;  %v2692_v56 = vadd.f32 %v2581_v7, %v2443_v8  ;;  %v2693_v63 = vadd.f32 %v2583_v24, %v2444_v38  ;;  %v2196_v14 = vadd.f32 %v2088_v54, %v1905_v41  ;;  %v3080_v40 = vrot.slane %v2988_v13, 4  ;;  %v13658_v13 = vld [vmem:[#allocation31_spill] sm:$0xff] }
 0x1a2   : > { %7896 = vpow2.f32 %v6799_v53  ;;  %v1533_v25 = vmul.f32 %v7893_v12, %v13648_v22  ;;  %v9855_v23 = vadd.f32 %v4658_v42, %v4657_v59  ;;  %v13367_v44 = vrot.slane %v9821_v5, 4  ;;  %v9910_v59 = vpop.f32.mrb[28].mxu0 }
 0x1a3   : > { %v13649_v47 = vrot.slane %v9585_v45, 2  ;;  %v9862_v60 = vmul.f32 %v9329_v16, %v1534_v3  ;;  %v13651_v55 = vrot.slane %v9794_v4, 2  ;;  %v13652_v38 = vrot.slane %v9589_v6, 3 }
 0x1a4   : > { %v13653_v12 = vrot.slane %v9805_v37, 3  ;;  %v6800_v27 = vmul.f32 -1.442695, %v9852_v20  ;;  %7898 = vrcp.f32 %v4205_v36  ;;  %v9875_v16 = vmul.f32 %v13654_v52, %v1533_v25 }
 0x1a5   : > { %v2336_v11 = vsel %vm2311_vm5, %v13649_v47, %v2335_v35  ;;  %13650 = vst [vmem:[#allocation13_spill] sm:$0xff] %v9862_v60  ;;  %v2338_v8 = vsel %vm2311_vm5, %v2335_v35, %v13651_v55  ;;  %v2831_v31 = vsel %vm2810_vm6, %v13652_v38, %v2830_v18  ;;  %v13656_v6 = vrot.slane %v9606_v19, 4 }
 0x1a6   : > { %v2833_v28 = vsel %vm2810_vm6, %v2830_v18, %v13653_v12  ;;  %v2942_v45 = vadd.f32 %v2831_v31, %v2692_v56  ;;  %13655 = vst [vmem:[#allocation14_spill] sm:$0xff] %v9875_v16  ;;  %v9877_v3 = vadd.f32 %v2336_v11, %v2195_v32  ;;  %v9879_v10 = vadd.f32 %v2338_v8, %v2196_v14  ;;  %v13659_v32 = vld [vmem:[#allocation17_spill] sm:$0xff] }
 0x1a7   : > { %v2943_v41 = vadd.f32 %v2833_v28, %v2693_v63  ;;  %v3081_v7 = vsel %vm3060_vm7, %v13656_v6, %v3080_v40  ;;  %7900 = vpow2.f32 %v9642_v15  ;;  %v9887_v18 = vmul.f32 %v8873_v29, %v9862_v60 }
 0x1a8   : > { %v9891_v36 = vmul.f32 %v8876_v30, %v9862_v60  ;;  %v9895_v56 = vmul.f32 %v8914_v0, %v9862_v60  ;;  %v9899_v24 = vmul.f32 %v8942_v21, %v9862_v60  ;;  %v3083_v19 = vsel %vm3060_vm7, %v3080_v40, %v13367_v44  ;;  %v13666_v44 = vld [vmem:[#allocation46_spill] sm:$0xff] }
 0x1a9   : > { %13657 = vst [vmem:[#allocation19_spill] sm:$0xff] %v9887_v18  ;;  %7902 = vpow2.f32 %v6800_v27  ;;  %v9906_v15 = vmul.f32 %v8949_v33, %v9862_v60  ;;  %v1167_v53 = vmul.f32 %v9654_v2, %v13658_v13  ;;  %v3192_v54 = vadd.f32 %v3081_v7, %v2942_v45  ;;  %v13664_v45 = vld [vmem:[#allocation34_spill] sm:$0xff] }
 0x1aa   : > { %v3193_v35 = vadd.f32 %v3083_v19, %v2943_v41  ;;  %v3238_v42 = vmul.f32 %v8978_v58, %v9875_v16  ;;  %v9916_v63 = vadd.f32 %v9615_v51, %v13659_v32  ;;  %v9920_v40 = vmul.f32 %v8887_v39, %v9862_v60  ;;  %v7895_v47 = vpop.eup %7894  ;;  %v9948_v41 = vld [vmem:[%s13309_s6 + $0x8] ss:$0 sm:$0xff]  ;;  %v4432_v19 = vpop.permute.xlu1 %4431 }
 0x1ab   : > { %v9924_v14 = vmul.f32 %v8978_v58, %v9862_v60  ;;  %v9928_v22 = vmul.f32 %v8995_v17, %v9862_v60  ;;  %v9932_v25 = vadd.f32 %v9615_v51, %v9673_v46  ;;  %v6761_v28 = vmul.f32 -1.442695, %v9704_v48 }
 0x1ac   : > { %13660 = vst [vmem:[#allocation31_spill] sm:$0xff] %v9916_v63  ;;  %13661 = vst [vmem:[#allocation17_spill] sm:$0xff] %v9920_v40  ;;  %v7897_v31 = vpop.eup %7896  ;;  %v9941_v27 = vadd.f32 %v9615_v51, %v1167_v53  ;;  %v1166_v46 = vmul.f32 %v9654_v2, %v13664_v45  ;;  %v9952_v52 = vmul.f32 %v9948_v41, %v9862_v60  ;;  %v3329_v6 = vrot.slane %v3238_v42, 4  ;;  %v13665_v53 = vld [vmem:[#allocation24_spill] sm:$0xff]  ;;  %v9960_v45 = vpop.f32.mrb[29].mxu0  ;;  %v13670_v60 = vld [vmem:[#allocation11_spill] sm:$0xff] }
 0x1ad   : > { %13662 = vst [vmem:[#allocation52_spill] sm:$0xff] %v9932_v25  ;;  %7904 = vrcp.f32 %v9807_v62  ;;  %v6764_v7 = vmul.f32 -1.442695, %v9916_v63  ;;  %v6763_v32 = vmul.f32 -1.442695, %v9932_v25  ;;  %v9963_v38 = vmul.f32 %v7895_v47, %v13666_v44  ;;  %v13668_v42 = vld [vmem:[#allocation4_spill] sm:$0xff] }
 0x1ae   : > { %13663 = vst [vmem:[#allocation53_spill] sm:$0xff] %v9941_v27  ;;  %7906 = vpow2.f32 %v13665_v53  ;;  %v7899_v12 = vpop.eup %7898  ;;  %v4206_v55 = vadd.f32 1.0, %v7897_v31  ;;  %v3487_v62 = vmul.f32 %v8995_v17, %v9875_v16  ;;  %v1169_v8 = vmul.f32 %v9654_v2, %v13668_v42  ;;  %v13671_v44 = vld [vmem:[#allocation45_spill] sm:$0xff] }
 0x1af   : > { %13667 = vst [vmem:[#allocation34_spill] sm:$0xff] %v9963_v38  ;;  %7908 = vpow2.f32 %v6761_v28  ;;  %v6766_v53 = vmul.f32 -1.442695, %v9941_v27  ;;  %v9971_v13 = vadd.f32 %v9615_v51, %v1166_v46  ;;  %v1168_v26 = vmul.f32 %v9654_v2, %v13670_v60  ;;  %v13674_v46 = vld [vmem:[#allocation22_spill] sm:$0xff] }
 0x1b0   : > { %v13672_v47 = vrot.slane %v13671_v44, 4  ;;  %v3580_v34 = vrot.slane %v3487_v62, 5  ;;  %v3740_v25 = vmul.f32 %v9948_v41, %v9875_v16  ;;  %7910 = vpow2.f32 %v6764_v7 }
 0x1b1   : > { %v7901_v11 = vpop.eup %7900  ;;  %13669 = vst [vmem:[#allocation24_spill] sm:$0xff] %v9971_v13  ;;  %v9981_v28 = vmul.f32 %v7899_v12, %v9729_v61  ;;  %7912 = vpow2.f32 %v6763_v32  ;;  %v1171_v63 = vmul.f32 %v9654_v2, %v13674_v46  ;;  %v4614_v60 = vmul.f32 %v4432_v19, %v9963_v38  ;;  %v13682_v46 = vld [vmem:[#allocation48_spill] sm:$0xff] }
 0x1b2   : > { %v3330_v31 = vsel %vm3060_vm7, %v13672_v47, %v3329_v6  ;;  %7914 = vrcp.f32 %v4206_v55  ;;  %v1397_v44 = vadd.f32 1.0, %v7901_v11  ;;  %v9987_v47 = vadd.f32 %v9615_v51, %v1169_v8 }
 0x1b3   : > { %v7903_v42 = vpop.eup %7902  ;;  %13673 = vst [vmem:[#allocation46_spill] sm:$0xff] %v9981_v28  ;;  %v3441_v27 = vadd.f32 %v3330_v31, %v3192_v54  ;;  %v1993_v62 = vmul.f32 %v8873_v29, %v9875_v16  ;;  %v2491_v7 = vmul.f32 %v8914_v0, %v9875_v16  ;;  %v13676_v61 = vrot.slane %v9924_v14, 4  ;;  %v4437_v31 = vpop.permute.xlu1 %4436 }
 0x1b4   : > { %13675 = vst [vmem:[#allocation4_spill] sm:$0xff] %v9987_v47  ;;  %v9997_v12 = vadd.f32 %v9615_v51, %v1168_v26  ;;  %v4207_v32 = vadd.f32 1.0, %v7903_v42  ;;  %v13678_v11 = vrot.slane %v9722_v1, 5  ;;  %v3834_v8 = vrot.slane %v3740_v25, 6 }
 0x1b5   : > { %v3332_v54 = vsel %vm3060_vm7, %v3329_v6, %v13676_v61  ;;  %7916 = vpow2.f32 %v6766_v53  ;;  %v6765_v40 = vmul.f32 -1.442695, %v9971_v13  ;;  %v4615_v6 = vmul.f32 %v4437_v31, %v9981_v28  ;;  %v10017_v31 = vpop.f32.mrb[30].mxu0 }
 0x1b6   : > { %13677 = vst [vmem:[#allocation11_spill] sm:$0xff] %v9997_v12  ;;  %v3442_v19 = vadd.f32 %v3332_v54, %v3193_v35  ;;  %v3581_v55 = vsel %vm838_vm0, %v13678_v11, %v3580_v34  ;;  %7918 = vrcp.f32 %v1397_v44  ;;  %v6768_v26 = vmul.f32 -1.442695, %v9987_v47 }
 0x1b7   : > { %v3694_v38 = vadd.f32 %v3581_v55, %v3441_v27  ;;  %v7905_v48 = vpop.eup %7904  ;;  %v10007_v35 = vadd.f32 %v9615_v51, %v1171_v63  ;;  %v4660_v42 = vsel %vm4650_vm9, %v4614_v60, 0.0  ;;  %v2584_v25 = vrot.slane %v2491_v7, 2 }
 0x1b8   : > { %v7907_v1 = vpop.eup %7906  ;;  %v13680_v61 = vrot.slane %v9928_v22, 5  ;;  %v6767_v53 = vmul.f32 -1.442695, %v9997_v12  ;;  %7920 = vrcp.f32 %v4207_v32  ;;  %v2089_v54 = vrot.slane %v1993_v62, 1 }
 0x1b9   : > { %13679 = vst [vmem:[#allocation45_spill] sm:$0xff] %v10007_v35  ;;  %v13681_v44 = vrot.slane %v9743_v50, 6  ;;  %v10019_v63 = vpop.eup %7908  ;;  %v2740_v60 = vmul.f32 %v8942_v21, %v9875_v16  ;;  %7922 = vpow2.f32 %v6765_v40  ;;  %v4661_v62 = vadd.f32 %v4660_v42, %v9855_v23  ;;  %v10041_v23 = vpop.f32.mrb[31].mxu0 }
 0x1ba   : > { %v3583_v27 = vsel %vm838_vm0, %v3580_v34, %v13680_v61  ;;  %v1170_v34 = vmul.f32 %v9654_v2, %v13682_v46  ;;  %v10025_v61 = vpop.eup %7910  ;;  %v4662_v50 = vsel %vm4650_vm9, %v4615_v6, 0.0  ;;  %v2243_v32 = vmul.f32 %v8876_v30, %v9875_v16 }
 0x1bb   : > { %v3695_v11 = vadd.f32 %v3583_v27, %v3442_v19  ;;  %v3835_v55 = vsel %vm3814_vm8, %v13681_v44, %v3834_v8  ;;  %v6770_v19 = vmul.f32 -1.442695, %v10007_v35  ;;  %v10032_v27 = vpop.eup %7912  ;;  %v13683_v44 = vrot.slane %v9783_v57, 2 }
 0x1bc   : > { %v3948_v7 = vadd.f32 %v3835_v55, %v3694_v38  ;;  %v13684_v38 = vrot.slane %v9952_v52, 6  ;;  %v13685_v55 = vld [vmem:[#allocation37_spill] sm:$0xff]  ;;  %7924 = vpow2.f32 %v6768_v26  ;;  %v7915_v6 = vpop.eup %7914  ;;  %v13686_v42 = vrot.slane %v9790_v9, 1 }
 0x1bd   : > { %v2585_v40 = vsel %vm2311_vm5, %v13683_v44, %v2584_v25  ;;  %v1536_v28 = vmul.f32 %v7905_v48, %v13685_v55  ;;  %v2990_v12 = vmul.f32 %v8949_v33, %v9875_v16  ;;  %7926 = vpow2.f32 %v6767_v53  ;;  %v10054_v48 = vld [vmem:[%s13310_s7] ss:$0 sm:$0xff] }
 0x1be   : > { %v3837_v46 = vsel %vm3814_vm8, %v3834_v8, %v13684_v38  ;;  %v2090_v35 = vsel %vm2061_vm4, %v13686_v42, %v2089_v54  ;;  %v13687_v44 = vrot.slane %v9887_v18, 1  ;;  %v2834_v8 = vrot.slane %v2740_v60, 3 }
 0x1bf   : > { %v3949_v57 = vadd.f32 %v3837_v46, %v3695_v11  ;;  %v3996_v26 = vmul.f32 %v10054_v48, %v3948_v7  ;;  %v10058_v9 = vadd.f32 %v9615_v51, %v1170_v34  ;;  %v1907_v38 = vmul.f32 %v8887_v39, %v9875_v16  ;;  %v10066_v60 = vpop.eup %7916  ;;  %v13691_v16 = vld [vmem:[#allocation32_spill] sm:$0xff] }
 0x1c0   : > { %v2092_v47 = vsel %vm2061_vm4, %v2089_v54, %v13687_v44  ;;  %v2339_v11 = vrot.slane %v2243_v32, 2  ;;  %v13689_v53 = vrot.slane %v9895_v56, 2  ;;  %v2694_v54 = vadd.f32 %v2585_v40, %v9877_v3  ;;  %v7919_v34 = vpop.eup %7918  ;;  %v10095_v40 = vpop.f32.mrb[32].mxu0 }
 0x1c1   : > { %13688 = vst [vmem:[#allocation22_spill] sm:$0xff] %v10058_v9  ;;  %v4663_v55 = vadd.f32 %v4662_v50, %v4661_v62  ;;  %v10069_v42 = vmul.f32 %v7915_v6, %v9815_v49  ;;  %v2197_v7 = vadd.f32 %v2090_v35, %v9811_v43  ;;  %7928 = vpow2.f32 %v6770_v19  ;;  %v10083_v49 = vld [vmem:[%s13311_s8] ss:$0 sm:$0xff]  ;;  %v4442_v50 = vpop.permute.xlu1 %4441 }
 0x1c2   : > { %v2587_v46 = vsel %vm2311_vm5, %v2584_v25, %v13689_v53  ;;  %v2198_v44 = vadd.f32 %v2092_v47, %v1907_v38  ;;  %v3084_v13 = vrot.slane %v2990_v12, 4  ;;  %v3997_v32 = vmul.f32 %v10054_v48, %v3949_v57  ;;  %v13694_v47 = vld [vmem:[#allocation44_spill] sm:$0xff]  ;;  %v7921_v35 = vpop.eup %7920 }
 0x1c3   : > { %13690 = vst [vmem:[#allocation48_spill] sm:$0xff] %v10069_v42  ;;  %v10074_v18 = vmul.f32 %v13691_v16, %v1536_v28  ;;  %v2695_v25 = vadd.f32 %v2587_v46, %v9879_v10  ;;  %v13693_v3 = vrot.slane %v9805_v37, 3  ;;  %v10086_v43 = vadd.f32 %v10083_v49, %v3996_v26  ;;  %v7923_v6 = vpop.eup %7922 }
 0x1c4   : > { %v1535_v12 = vmul.f32 %v7919_v34, %v13694_v47  ;;  %v13695_v16 = vrot.slane %v9794_v4, 2  ;;  %v1400_v37 = vadd.f32 1.0, %v7907_v1  ;;  %v10093_v19 = vmul.f32 -1.442695, %v10058_v9 }
 0x1c5   : > { %13692 = vst [vmem:[#allocation37_spill] sm:$0xff] %v10074_v18  ;;  %v2835_v62 = vsel %vm2810_vm6, %v13693_v3, %v2834_v8  ;;  %v4616_v57 = vmul.f32 %v4442_v50, %v10069_v42  ;;  %v13697_v26 = vrot.slane %v9891_v36, 2  ;;  %v13698_v4 = vrot.slane %v9899_v24, 3  ;;  %v10117_v50 = vpop.f32.mrb[33].mxu0 }
 0x1c6   : > { %v2340_v10 = vsel %vm2311_vm5, %v13695_v16, %v2339_v11  ;;  %v2944_v28 = vadd.f32 %v2835_v62, %v2694_v54  ;;  %13696 = vst [vmem:[#allocation32_spill] sm:$0xff] %v10093_v19  ;;  %v13699_v1 = vrot.slane %v9821_v5, 4  ;;  %v10112_v3 = vadd.f32 %v10083_v49, %v3997_v32  ;;  %v13701_v62 = vld [vmem:[#allocation23_spill] sm:$0xff]  ;;  %13703 = vst [vmem:[#allocation54_spill] sm:$0xff] %v10117_v50 }
 0x1c7   : > { %v2342_v38 = vsel %vm2311_vm5, %v2339_v11, %v13697_v26  ;;  %v10101_v53 = vadd.f32 %v2340_v10, %v2197_v7  ;;  %v2837_v46 = vsel %vm2810_vm6, %v2834_v8, %v13698_v4  ;;  %v10115_v47 = vmul.f32 %v13701_v62, %v1535_v12  ;;  %v7925_v11 = vpop.eup %7924 }
 0x1c8   : > { %v10106_v54 = vadd.f32 %v2342_v38, %v2198_v44  ;;  %v3085_v34 = vsel %vm3060_vm7, %v13699_v1, %v3084_v13  ;;  %13700 = vst [vmem:[#allocation44_spill] sm:$0xff] %v10112_v3  ;;  %v10120_v7 = vmul.f32 %v7921_v35, %v9852_v20  ;;  %v2945_v16 = vadd.f32 %v2837_v46, %v2695_v25  ;;  %v7927_v10 = vpop.eup %7926  ;;  %v4447_v38 = vpop.permute.xlu1 %4446 }
 0x1c9   : > { %13702 = vst [vmem:[#allocation23_spill] sm:$0xff] %v10115_v47  ;;  %v13705_v8 = vrot.slane %v9906_v15, 4  ;;  %v6801_v5 = vmul.f32 -1.442695, %v10086_v43  ;;  %v3194_v26 = vadd.f32 %v3085_v34, %v2944_v28  ;;  %v10128_v32 = vmul.f32 %v8887_v39, %v10074_v18 }
 0x1ca   : > { %13704 = vst [vmem:[#allocation55_spill] sm:$0xff] %v10120_v7  ;;  %v10132_v12 = vmul.f32 %v8873_v29, %v10074_v18  ;;  %v1399_v20 = vadd.f32 1.0, %v10019_v63  ;;  %v4664_v25 = vsel %vm4650_vm9, %v4616_v57, 0.0  ;;  %v10138_v35 = vmul.f32 %v8876_v30, %v10074_v18 }
 0x1cb   : > { %v3087_v44 = vsel %vm3060_vm7, %v3084_v13, %v13705_v8  ;;  %13706 = vst [vmem:[#allocation56_spill] sm:$0xff] %v10128_v32  ;;  %v10142_v13 = vmul.f32 %v8914_v0, %v10074_v18  ;;  %v10146_v28 = vmul.f32 %v8942_v21, %v10074_v18  ;;  %v6802_v4 = vmul.f32 -1.442695, %v10112_v3  ;;  %v7929_v46 = vpop.eup %7928 }
 0x1cc   : > { %v10151_v63 = vmul.f32 %v8949_v33, %v10074_v18  ;;  %v3240_v57 = vmul.f32 %v8978_v58, %v10115_v47  ;;  %7930 = vrcp.f32 %v1400_v37  ;;  %v4617_v1 = vmul.f32 %v4447_v38, %v10120_v7 }
 0x1cd   : > { %7932 = vpow2.f32 %v6801_v5  ;;  %v10158_v34 = vmul.f32 %v8978_v58, %v10074_v18  ;;  %v10162_v62 = vmul.f32 %v8995_v17, %v10074_v18  ;;  %v4665_v8 = vadd.f32 %v4664_v25, %v4663_v55 }
 0x1ce   : > { %v3195_v42 = vadd.f32 %v3087_v44, %v2945_v16  ;;  %v10166_v9 = vmul.f32 %v9948_v41, %v10074_v18  ;;  %7934 = vrcp.f32 %v1399_v20  ;;  %v3333_v19 = vrot.slane %v3240_v57, 4  ;;  %v10190_v20 = vpop.f32.mrb[34].mxu0 }
 0x1cf   : > { %7936 = vpow2.f32 %v6802_v4  ;;  %v3489_v55 = vmul.f32 %v8995_v17, %v10115_v47  ;;  %v4666_v16 = vsel %vm4650_vm9, %v4617_v1, 0.0  ;;  %v13387_v44 = vrot.slane %v10158_v34, 4  ;;  %13708 = vst [vmem:[#allocation58_spill] sm:$0xff] %v10190_v20 }
 0x1d0   : > { %v1402_v25 = vadd.f32 1.0, %v10025_v61  ;;  %v10179_v38 = vadd.f32 %v4666_v16, %v4665_v8  ;;  %v1401_v4 = vadd.f32 1.0, %v10032_v27  ;;  %v1404_v50 = vadd.f32 1.0, %v10066_v60 }
 0x1d1   : > { %v2493_v57 = vmul.f32 %v8914_v0, %v10115_v47  ;;  %v1403_v7 = vadd.f32 1.0, %v7923_v6  ;;  %v1173_v1 = vmul.f32 %v9654_v2, %v9910_v59  ;;  %v1172_v5 = vmul.f32 %v9654_v2, %v9960_v45 }
 0x1d2   : > { %13707 = vst [vmem:[#allocation57_spill] sm:$0xff] %v10179_v38  ;;  %v13709_v61 = vrot.slane %v9924_v14, 4  ;;  %v3584_v16 = vrot.slane %v3489_v55, 5  ;;  %v3742_v27 = vmul.f32 %v9948_v41, %v10115_v47  ;;  %v1175_v60 = vmul.f32 %v9654_v2, %v10017_v31 }
 0x1d3   : > { %v3336_v59 = vsel %vm3060_vm7, %v3333_v19, %v13387_v44  ;;  %7938 = vrcp.f32 %v1402_v25  ;;  %v1406_v45 = vadd.f32 1.0, %v7925_v11  ;;  %v10202_v20 = vadd.f32 1.0, %v7927_v10 }
 0x1d4   : > { %v3334_v8 = vsel %vm3060_vm7, %v13709_v61, %v3333_v19  ;;  %v3444_v18 = vadd.f32 %v3336_v59, %v3195_v42  ;;  %v10204_v14 = vadd.f32 1.0, %v7929_v46  ;;  %v1174_v55 = vmul.f32 %v9654_v2, %v10041_v23 }
 0x1d5   : > { %v3443_v6 = vadd.f32 %v3334_v8, %v3194_v26  ;;  %v2588_v32 = vrot.slane %v2493_v57, 2  ;;  %7940 = vrcp.f32 %v1401_v4  ;;  %v10209_v31 = vadd.f32 %v9615_v51, %v1173_v1  ;;  %v10214_v26 = vpop.f32.mrb[35].mxu0 }
 0x1d6   : > { %v7931_v37 = vpop.eup %7930  ;;  %v10212_v19 = vadd.f32 %v9615_v51, %v1172_v5  ;;  %13712 = vst [vmem:[#allocation61_spill] sm:$0xff] %v10214_v26  ;;  %v1995_v42 = vmul.f32 %v8873_v29, %v10115_v47  ;;  %v13713_v10 = vrot.slane %v9928_v22, 5  ;;  %v3838_v23 = vrot.slane %v3742_v27, 6  ;;  %v10232_v27 = vpop.f32.mrb[36].mxu0  ;;  %v13719_v26 = vld [vmem:[#allocation10_spill] sm:$0xff] }
 0x1d7   : > { %v7933_v61 = vpop.eup %7932  ;;  %13710 = vst [vmem:[#allocation59_spill] sm:$0xff] %v10209_v31  ;;  %v10222_v25 = vadd.f32 %v9615_v51, %v1175_v60  ;;  %v2742_v4 = vmul.f32 %v8942_v21, %v10115_v47  ;;  %v13715_v5 = vrot.slane %v10162_v62, 5  ;;  %7942 = vrcp.f32 %v1404_v50  ;;  %13717 = vst [vmem:[#allocation64_spill] sm:$0xff] %v10232_v27  ;;  %v13720_v21 = vld [vmem:[#allocation47_spill] sm:$0xff]  ;;  %v10242_v50 = vpop.f32.mrb[37].mxu0 }
 0x1d8   : > { %13711 = vst [vmem:[#allocation60_spill] sm:$0xff] %v10212_v19  ;;  %v7935_v11 = vpop.eup %7934  ;;  %v3585_v46 = vsel %vm838_vm0, %v13713_v10, %v3584_v16  ;;  %v4208_v59 = vadd.f32 1.0, %v7933_v61  ;;  %7944 = vrcp.f32 %v1403_v7  ;;  %v10230_v22 = vadd.f32 %v9615_v51, %v1174_v55  ;;  %13721 = vst [vmem:[#allocation10_spill] sm:$0xff] %v10242_v50 }
 0x1d9   : > { %13714 = vst [vmem:[#allocation62_spill] sm:$0xff] %v10222_v25  ;;  %v3587_v57 = vsel %vm838_vm0, %v3584_v16, %v13715_v5  ;;  %v3696_v1 = vadd.f32 %v3585_v46, %v3443_v6  ;;  %v7937_v8 = vpop.eup %7936  ;;  %v13718_v60 = vrot.slane %v9895_v56, 2  ;;  %v1538_v38 = vmul.f32 %v7931_v37, %v13719_v26 }
 0x1da   : > { %v3697_v44 = vadd.f32 %v3587_v57, %v3444_v18  ;;  %13716 = vst [vmem:[#allocation63_spill] sm:$0xff] %v10230_v22  ;;  %v1537_v3 = vmul.f32 %v7935_v11, %v13720_v21  ;;  %v10240_v16 = vmul.f32 -1.442695, %v10209_v31  ;;  %v2093_v18 = vrot.slane %v1995_v42, 1  ;;  %v10258_v57 = vpop.f32.mrb[38].mxu0 }
 0x1db   : > { %v2589_v10 = vsel %vm2311_vm5, %v13718_v60, %v2588_v32  ;;  %v2245_v51 = vmul.f32 %v8876_v30, %v10115_v47  ;;  %v2992_v7 = vmul.f32 %v8949_v33, %v10115_v47  ;;  %v13722_v56 = vrot.slane %v9952_v52, 6  ;;  %13725 = vst [vmem:[#allocation47_spill] sm:$0xff] %v10258_v57  ;;  %v13726_v60 = vld [vmem:[#allocation26_spill] sm:$0xff] }
 0x1dc   : > { %v4209_v55 = vadd.f32 1.0, %v7937_v8  ;;  %v2838_v37 = vrot.slane %v2742_v4, 3  ;;  %v13723_v21 = vrot.slane %v10166_v9, 6  ;;  %7946 = vrcp.f32 %v4208_v59  ;;  %v13730_v8 = vld [vmem:[#allocation19_spill] sm:$0xff] }
 0x1dd   : > { %v3839_v6 = vsel %vm3814_vm8, %v13722_v56, %v3838_v23  ;;  %v13724_v11 = vrot.slane %v10142_v13, 2  ;;  %v2696_v46 = vadd.f32 %v2589_v10, %v10101_v53  ;;  %v7939_v52 = vpop.eup %7938  ;;  %v10261_v56 = vmul.f32 %v13726_v60, %v1537_v3  ;;  %v13732_v59 = vld [vmem:[#allocation35_spill] sm:$0xff] }
 0x1de   : > { %v3841_v61 = vsel %vm3814_vm8, %v3838_v23, %v13723_v21  ;;  %v3950_v26 = vadd.f32 %v3839_v6, %v3696_v1  ;;  %7948 = vrcp.f32 %v1406_v45  ;;  %v10264_v4 = vmul.f32 -1.442695, %v10212_v19  ;;  %v10269_v1 = vpop.f32.mrb[39].mxu0 }
 0x1df   : > { %v2591_v42 = vsel %vm2311_vm5, %v2588_v32, %v13724_v11  ;;  %v3951_v5 = vadd.f32 %v3841_v61, %v3697_v44  ;;  %13727 = vst [vmem:[#allocation26_spill] sm:$0xff] %v10261_v56  ;;  %v10267_v23 = vmul.f32 -1.442695, %v10222_v25  ;;  %13729 = vst [vmem:[#allocation66_spill] sm:$0xff] %v10269_v1  ;;  %v13731_v32 = vrot.slane %v13730_v8, 1  ;;  %v10280_v45 = vpop.eup %7940 }
 0x1e0   : > { %v2343_v44 = vrot.slane %v2245_v51, 2  ;;  %v10275_v10 = vmul.f32 %v13732_v59, %v1538_v38  ;;  %v10278_v3 = vmul.f32 -1.442695, %v10230_v22  ;;  %v2697_v6 = vadd.f32 %v2591_v42, %v10106_v54  ;;  %v10291_v59 = vpop.f32.mrb[40].mxu0  ;;  %v13738_v54 = vld [vmem:[#allocation17_spill] sm:$0xff] }
 0x1e1   : > { %13728 = vst [vmem:[#allocation65_spill] sm:$0xff] %v10267_v23  ;;  %v2094_v53 = vsel %vm2061_vm4, %v13731_v32, %v2093_v18  ;;  %v13735_v21 = vrot.slane %v9899_v24, 3  ;;  %v3088_v11 = vrot.slane %v2992_v7, 4  ;;  %v3998_v60 = vmul.f32 %v10054_v48, %v3950_v26  ;;  %13737 = vst [vmem:[#allocation67_spill] sm:$0xff] %v10291_v59  ;;  %v10293_v22 = vpop.eup %7942 }
 0x1e2   : > { %13733 = vst [vmem:[#allocation19_spill] sm:$0xff] %v10275_v10  ;;  %13734 = vst [vmem:[#allocation35_spill] sm:$0xff] %v10278_v3  ;;  %7950 = vrcp.f32 %v4209_v55  ;;  %v13736_v51 = vrot.slane %v10132_v12, 1  ;;  %v3999_v32 = vmul.f32 %v10054_v48, %v3951_v5  ;;  %v1909_v24 = vmul.f32 %v8887_v39, %v10115_v47  ;;  %v10301_v55 = vpop.f32.mrb[41].mxu0 }
 0x1e3   : > { %v2839_v61 = vsel %vm2810_vm6, %v13735_v21, %v2838_v37  ;;  %v2199_v42 = vadd.f32 %v2094_v53, %v13738_v54  ;;  %v3242_v7 = vmul.f32 %v8978_v58, %v10261_v56  ;;  %7952 = vrcp.f32 %v10202_v20  ;;  %13739 = vst [vmem:[#allocation17_spill] sm:$0xff] %v10301_v55  ;;  %v10384_v55 = vpop.f32.mrb[42].mxu0 }
 0x1e4   : > { %v2096_v38 = vsel %vm2061_vm4, %v2093_v18, %v13736_v51  ;;  %v2946_v8 = vadd.f32 %v2839_v61, %v2696_v46  ;;  %v10303_v18 = vpop.eup %7944  ;;  %v13740_v26 = vrot.slane %v10146_v28, 3  ;;  %v10310_v5 = vmul.f32 %v8978_v58, %v10275_v10  ;;  %13750 = vst [vmem:[#allocation69_spill] sm:$0xff] %v10384_v55  ;;  %v13754_v55 = vld [vmem:[#allocation7_spill] sm:$0xff] }
 0x1e5   : > { %v3491_v53 = vmul.f32 %v8995_v17, %v10261_v56  ;;  %v10316_v21 = vmul.f32 %v9654_v2, %v10095_v40  ;;  %v2200_v20 = vadd.f32 %v2096_v38, %v1909_v24  ;;  %v13742_v51 = vrot.slane %v9906_v15, 4 }
 0x1e6   : > { %v2841_v46 = vsel %vm2810_vm6, %v2838_v37, %v13740_v26  ;;  %v10322_v47 = vadd.f32 %v10083_v49, %v3998_v60  ;;  %v13743_v37 = vrot.slane %v9891_v36, 2  ;;  %v10328_v19 = vadd.f32 %v10083_v49, %v3999_v32  ;;  %v7947_v36 = vpop.eup %7946 }
 0x1e7   : > { %13741 = vst [vmem:[#allocation68_spill] sm:$0xff] %v10316_v21  ;;  %v2947_v61 = vadd.f32 %v2841_v46, %v2697_v6  ;;  %v3089_v54 = vsel %vm3060_vm7, %v13742_v51, %v3088_v11  ;;  %7954 = vrcp.f32 %v10204_v14  ;;  %v13744_v2 = vrot.slane %v10138_v35, 2 }
 0x1e8   : > { %v2344_v26 = vsel %vm2311_vm5, %v13743_v37, %v2343_v44  ;;  %v3196_v25 = vadd.f32 %v3089_v54, %v2946_v8  ;;  %v10338_v6 = vmul.f32 %v8995_v17, %v10275_v10  ;;  %v3337_v60 = vrot.slane %v3242_v7, 4  ;;  %v10346_v46 = vpop.eup %7948 }
 0x1e9   : > { %v2346_v40 = vsel %vm2311_vm5, %v2343_v44, %v13744_v2  ;;  %v10334_v15 = vadd.f32 %v2344_v26, %v2199_v42  ;;  %v13745_v38 = vrot.slane %v10151_v63, 4  ;;  %v13396_v32 = vrot.slane %v10310_v5, 4  ;;  %v13747_v26 = vld [vmem:[#allocation31_spill] sm:$0xff] }
 0x1ea   : > { %v3588_v24 = vrot.slane %v3491_v53, 5  ;;  %v3744_v14 = vmul.f32 %v9948_v41, %v10261_v56  ;;  %v10348_v44 = vadd.f32 %v2346_v40, %v2200_v20  ;;  %v6803_v51 = vmul.f32 -1.442695, %v10322_v47 }
 0x1eb   : > { %v3091_v8 = vsel %vm3060_vm7, %v3088_v11, %v13745_v38  ;;  %v13746_v7 = vrot.slane %v10158_v34, 4  ;;  %v6804_v37 = vmul.f32 -1.442695, %v10328_v19  ;;  %v2495_v11 = vmul.f32 %v8914_v0, %v10261_v56 }
 0x1ec   : > { %v3197_v42 = vadd.f32 %v3091_v8, %v2947_v61  ;;  %v1540_v2 = vmul.f32 %v7939_v52, %v13747_v26  ;;  %v10359_v38 = vmul.f32 %v7947_v36, %v10086_v43  ;;  %v10363_v20 = vmul.f32 %v8914_v0, %v10275_v10  ;;  %v7951_v40 = vpop.eup %7950  ;;  %v4452_v8 = vpop.permute.xlu1 %4451 }
 0x1ed   : > { %v3338_v54 = vsel %vm3060_vm7, %v13746_v7, %v3337_v60  ;;  %v10368_v34 = vmul.f32 %v9948_v41, %v10275_v10  ;;  %v3340_v43 = vsel %vm3060_vm7, %v3337_v60, %v13396_v32  ;;  %v13749_v52 = vrot.slane %v10162_v62, 5 }
 0x1ee   : > { %v3445_v53 = vadd.f32 %v3338_v54, %v3196_v25  ;;  %13748 = vst [vmem:[#allocation31_spill] sm:$0xff] %v10359_v38  ;;  %v1997_v25 = vmul.f32 %v8873_v29, %v10261_v56  ;;  %v3842_v7 = vrot.slane %v3744_v14, 6  ;;  %v10378_v54 = vpop.eup %7952  ;;  %7956 = vpow2.f32 %v6803_v51  ;;  %v13752_v51 = vld [vmem:[#allocation44_spill] sm:$0xff] }
 0x1ef   : > { %v3589_v36 = vsel %vm838_vm0, %v13749_v52, %v3588_v24  ;;  %v10382_v26 = vmul.f32 %v8887_v39, %v10275_v10  ;;  %v3446_v61 = vadd.f32 %v3340_v43, %v3197_v42  ;;  %7958 = vpow2.f32 %v6804_v37  ;;  %v10394_v52 = vpop.f32.mrb[43].mxu0 }
 0x1f0   : > { %v3698_v31 = vadd.f32 %v3589_v36, %v3445_v53  ;;  %v10388_v60 = vmul.f32 %v8873_v29, %v10275_v10  ;;  %v10392_v62 = vmul.f32 %v8876_v30, %v10275_v10  ;;  %v2592_v14 = vrot.slane %v2495_v11, 2  ;;  %13751 = vst [vmem:[#allocation70_spill] sm:$0xff] %v10394_v52  ;;  %v13757_v53 = vld [vmem:[#allocation52_spill] sm:$0xff]  ;;  %v4457_v57 = vpop.permute.xlu1 %4456 }
 0x1f1   : > { %v10397_v32 = vmul.f32 %v7951_v40, %v13752_v51  ;;  %v4618_v42 = vmul.f32 %v4452_v8, %v10359_v38  ;;  %v10402_v43 = vpop.eup %7954  ;;  %v2097_v36 = vrot.slane %v1997_v25, 1  ;;  %v2744_v59 = vmul.f32 %v13754_v55, %v10261_v56  ;;  %v10418_v38 = vpop.f32.mrb[44].mxu0 }
 0x1f2   : > { %v13755_v1 = vrot.slane %v10338_v6, 5  ;;  %v13756_v52 = vrot.slane %v10166_v9, 6  ;;  %v10414_v8 = vmul.f32 %v13754_v55, %v10275_v10  ;;  %v1539_v25 = vmul.f32 %v10280_v45, %v13757_v53  ;;  %13758 = vst [vmem:[#allocation7_spill] sm:$0xff] %v10418_v38  ;;  %v13764_v38 = vld [vmem:[#allocation28_spill] sm:$0xff] }
 0x1f3   : > { %13753 = vst [vmem:[#allocation44_spill] sm:$0xff] %v10397_v32  ;;  %v10424_v9 = vmul.f32 %v8949_v33, %v10275_v10  ;;  %v4668_v45 = vsel %vm4650_vm9, %v4618_v42, 0.0  ;;  %v2247_v53 = vmul.f32 %v8876_v30, %v10261_v56  ;;  %v2842_v50 = vrot.slane %v2744_v59, 3 }
 0x1f4   : > { %v3591_v11 = vsel %vm838_vm0, %v3588_v24, %v13755_v1  ;;  %v3843_v40 = vsel %vm3814_vm8, %v13756_v52, %v3842_v7  ;;  %v13759_v24 = vrot.slane %v10142_v13, 2  ;;  %v13762_v13 = vrot.slane %v10363_v20, 2 }
 0x1f5   : > { %v3699_v51 = vadd.f32 %v3591_v11, %v3446_v61  ;;  %v3952_v37 = vadd.f32 %v3843_v40, %v3698_v31  ;;  %v10429_v61 = vpop.f32.mrb[45].mxu0  ;;  %v4619_v31 = vmul.f32 %v4457_v57, %v10397_v32  ;;  %v2994_v11 = vmul.f32 %v8949_v33, %v10261_v56 }
 0x1f6   : > { %v2593_v52 = vsel %vm2311_vm5, %v13759_v24, %v2592_v14  ;;  %13760 = vst [vmem:[#allocation52_spill] sm:$0xff] %v10429_v61  ;;  %v13761_v40 = vrot.slane %v10132_v12, 1  ;;  %v2595_v24 = vsel %vm2311_vm5, %v2592_v14, %v13762_v13  ;;  %v13763_v10 = vrot.slane %v10368_v34, 6  ;;  %v13766_v12 = vld [vmem:[#allocation57_spill] sm:$0xff]  ;;  %v13767_v14 = vld [vmem:[#allocation38_spill] sm:$0xff] }
 0x1f7   : > { %v2698_v42 = vadd.f32 %v2593_v52, %v10334_v15  ;;  %v4000_v61 = vmul.f32 %v10054_v48, %v3952_v37  ;;  %v10449_v27 = vmul.f32 %v13764_v38, %v1539_v25  ;;  %v4669_v3 = vadd.f32 %v4668_v45, %v13766_v12  ;;  %v13770_v52 = vld [vmem:[#allocation56_spill] sm:$0xff] }
 0x1f8   : > { %v2098_v1 = vsel %vm2061_vm4, %v13761_v40, %v2097_v36  ;;  %v3845_v57 = vsel %vm3814_vm8, %v3842_v7, %v13763_v10  ;;  %v13401_v40 = vrot.slane %v10414_v8, 3  ;;  %v10455_v59 = vmul.f32 %v13767_v14, %v1540_v2  ;;  %v7957_v13 = vpop.eup %7956 }
 0x1f9   : > { %v3953_v32 = vadd.f32 %v3845_v57, %v3699_v51  ;;  %13765 = vst [vmem:[#allocation28_spill] sm:$0xff] %v10449_v27  ;;  %v4670_v10 = vsel %vm4650_vm9, %v4619_v31, 0.0  ;;  %v1911_v15 = vmul.f32 %v8887_v39, %v10261_v56  ;;  %v2347_v7 = vrot.slane %v2247_v53, 2  ;;  %v7959_v38 = vpop.eup %7958 }
 0x1fa   : > { %13768 = vst [vmem:[#allocation57_spill] sm:$0xff] %v10455_v59  ;;  %v2699_v37 = vadd.f32 %v2595_v24, %v10348_v44  ;;  %v13769_v51 = vrot.slane %v10388_v60, 1  ;;  %v2201_v45 = vadd.f32 %v2098_v1, %v13770_v52  ;;  %v13771_v57 = vrot.slane %v10146_v28, 3 }
 0x1fb   : > { %v3092_v12 = vrot.slane %v2994_v11, 4  ;;  %v4001_v31 = vmul.f32 %v10054_v48, %v3953_v32  ;;  %v10470_v23 = vadd.f32 %v10083_v49, %v4000_v61  ;;  %v3244_v44 = vmul.f32 %v8978_v58, %v10449_v27 }
 0x1fc   : > { %v2100_v25 = vsel %vm2061_vm4, %v2097_v36, %v13769_v51  ;;  %v2843_v2 = vsel %vm2810_vm6, %v13771_v57, %v2842_v50  ;;  %v10474_v53 = vadd.f32 %v4670_v10, %v4669_v3  ;;  %v4210_v24 = vadd.f32 1.0, %v7957_v13 }
 0x1fd   : > { %v2948_v14 = vadd.f32 %v2843_v2, %v2698_v42  ;;  %v2845_v36 = vsel %vm2810_vm6, %v2842_v50, %v13401_v40  ;;  %v10481_v28 = vmul.f32 %v8978_v58, %v10455_v59  ;;  %v4211_v1 = vadd.f32 1.0, %v7959_v38 }
 0x1fe   : > { %13772 = vst [vmem:[#allocation38_spill] sm:$0xff] %v10474_v53  ;;  %v2202_v11 = vadd.f32 %v2100_v25, %v1911_v15  ;;  %v13773_v32 = vrot.slane %v10138_v35, 2  ;;  %v2949_v42 = vadd.f32 %v2845_v36, %v2699_v37  ;;  %v13774_v51 = vrot.slane %v10392_v62, 2 }
 0x1ff   : > { %v13775_v10 = vrot.slane %v10151_v63, 4  ;;  %v3493_v52 = vmul.f32 %v8995_v17, %v10449_v27  ;;  %v10497_v15 = vadd.f32 %v10083_v49, %v4001_v31  ;;  %v6805_v35 = vmul.f32 -1.442695, %v10470_v23 }
 0x200   : > { %v2348_v61 = vsel %vm2311_vm5, %v13773_v32, %v2347_v7  ;;  %v2350_v3 = vsel %vm2311_vm5, %v2347_v7, %v13774_v51  ;;  %v3341_v37 = vrot.slane %v3244_v44, 4  ;;  %7960 = vrcp.f32 %v4210_v24 }
 0x201   : > { %v10489_v13 = vadd.f32 %v2348_v61, %v2201_v45  ;;  %v3093_v50 = vsel %vm3060_vm7, %v13775_v10, %v3092_v12  ;;  %v13776_v25 = vrot.slane %v10424_v9, 4  ;;  %v13400_v45 = vrot.slane %v10481_v28, 4  ;;  %v4462_v61 = vpop.permute.xlu1 %4461 }
 0x202   : > { %v3198_v38 = vadd.f32 %v3093_v50, %v2948_v14  ;;  %v10506_v63 = vmul.f32 %v8995_v17, %v10455_v59  ;;  %7962 = vrcp.f32 %v4211_v1  ;;  %v10508_v57 = vadd.f32 %v2350_v3, %v2202_v11 }
 0x203   : > { %v3095_v7 = vsel %vm3060_vm7, %v3092_v12, %v13776_v25  ;;  %v10512_v14 = vmul.f32 %v8873_v29, %v10455_v59  ;;  %v10516_v31 = vmul.f32 %v8876_v30, %v10455_v59  ;;  %v13777_v12 = vrot.slane %v10310_v5, 4 }
 0x204   : > { %v3199_v2 = vadd.f32 %v3095_v7, %v2949_v42  ;;  %v3592_v24 = vrot.slane %v3493_v52, 5  ;;  %v3746_v36 = vmul.f32 %v9948_v41, %v10449_v27  ;;  %7964 = vpow2.f32 %v6805_v35 }
 0x205   : > { %v3342_v44 = vsel %vm3060_vm7, %v13777_v12, %v3341_v37  ;;  %v6806_v1 = vmul.f32 -1.442695, %v10497_v15  ;;  %v1999_v11 = vmul.f32 %v8873_v29, %v10449_v27  ;;  %v10529_v42 = vmul.f32 %v9948_v41, %v10455_v59 }
 0x206   : > { %v3447_v32 = vadd.f32 %v3342_v44, %v3198_v38  ;;  %v2497_v5 = vmul.f32 %v8914_v0, %v10449_v27  ;;  %v3344_v51 = vsel %vm3060_vm7, %v3341_v37, %v13400_v45  ;;  %v10538_v3 = vmul.f32 %v8887_v39, %v10455_v59  ;;  %v13779_v45 = vld [vmem:[#allocation53_spill] sm:$0xff] }
 0x207   : > { %v10542_v10 = vmul.f32 %v8914_v0, %v10455_v59  ;;  %v10546_v50 = vmul.f32 %v13754_v55, %v10455_v59  ;;  %v3448_v52 = vadd.f32 %v3344_v51, %v3199_v2  ;;  %v10551_v35 = vmul.f32 %v8949_v33, %v10455_v59 }
 0x208   : > { %v13778_v37 = vrot.slane %v10338_v6, 5  ;;  %v3846_v7 = vrot.slane %v3746_v36, 6  ;;  %7966 = vpow2.f32 %v6806_v1  ;;  %v2101_v12 = vrot.slane %v1999_v11, 1  ;;  %v13784_v6 = vld [vmem:[#allocation42_spill] sm:$0xff] }
 0x209   : > { %v1542_v40 = vmul.f32 %v10293_v22, %v13779_v45  ;;  %v2596_v51 = vrot.slane %v2497_v5, 2  ;;  %v13780_v38 = vrot.slane %v10506_v63, 5  ;;  %v2249_v36 = vmul.f32 %v8876_v30, %v10449_v27 }
 0x20a   : > { %v3593_v25 = vsel %vm838_vm0, %v13778_v37, %v3592_v24  ;;  %v7961_v11 = vpop.eup %7960  ;;  %v2746_v45 = vmul.f32 %v13754_v55, %v10449_v27  ;;  %v1913_v37 = vmul.f32 %v8887_v39, %v10449_v27  ;;  %v13787_v56 = vrot.slane %v10363_v20, 2 }
 0x20b   : > { %v3700_v44 = vadd.f32 %v3593_v25, %v3447_v32  ;;  %v3595_v59 = vsel %vm838_vm0, %v3592_v24, %v13780_v38  ;;  %v13781_v32 = vrot.slane %v10368_v34, 6  ;;  %v13782_v25 = vld [vmem:[#allocation24_spill] sm:$0xff]  ;;  %v10581_v2 = vmul.f32 %v13784_v6, %v1542_v40 }
 0x20c   : > { %v3701_v1 = vadd.f32 %v3595_v59, %v3448_v52  ;;  %v1541_v24 = vmul.f32 %v10303_v18, %v13782_v25  ;;  %v7963_v38 = vpop.eup %7962  ;;  %v13783_v59 = vrot.slane %v10388_v60, 1  ;;  %v13786_v34 = vrot.slane %v10512_v14, 1 }
 0x20d   : > { %v3847_v5 = vsel %vm3814_vm8, %v13781_v32, %v3846_v7  ;;  %13785 = vst [vmem:[#allocation56_spill] sm:$0xff] %v10581_v2  ;;  %v2597_v18 = vsel %vm2311_vm5, %v13787_v56, %v2596_v51  ;;  %v2996_v25 = vmul.f32 %v8949_v33, %v10449_v27  ;;  %v13788_v53 = vrot.slane %v10529_v42, 6  ;;  %v13792_v27 = vld [vmem:[#allocation30_spill] sm:$0xff] }
 0x20e   : > { %v2102_v52 = vsel %vm2061_vm4, %v13783_v59, %v2101_v12  ;;  %v3954_v22 = vadd.f32 %v3847_v5, %v3700_v44  ;;  %v2104_v32 = vsel %vm2061_vm4, %v2101_v12, %v13786_v34  ;;  %v7965_v59 = vpop.eup %7964  ;;  %v10595_v44 = vmul.f32 %v7961_v11, %v10322_v47 }
 0x20f   : > { %v3849_v60 = vsel %vm3814_vm8, %v3846_v7, %v13788_v53  ;;  %v2351_v40 = vrot.slane %v2249_v36, 2  ;;  %v13790_v6 = vrot.slane %v10542_v10, 2  ;;  %v10601_v20 = vmul.f32 %v7963_v38, %v10328_v19  ;;  %v13794_v36 = vld [vmem:[#allocation4_spill] sm:$0xff]  ;;  %v13795_v38 = vld [vmem:[#allocation11_spill] sm:$0xff] }
 0x210   : > { %13789 = vst [vmem:[#allocation53_spill] sm:$0xff] %v10595_v44  ;;  %v3955_v5 = vadd.f32 %v3849_v60, %v3701_v1  ;;  %v2203_v56 = vadd.f32 %v2102_v52, %v10382_v26  ;;  %v2846_v34 = vrot.slane %v2746_v45, 3  ;;  %v10605_v21 = vmul.f32 %v13792_v27, %v1541_v24  ;;  %v4467_v27 = vpop.permute.xlu1 %4466 }
 0x211   : > { %v2599_v12 = vsel %vm2311_vm5, %v2596_v51, %v13790_v6  ;;  %13791 = vst [vmem:[#allocation24_spill] sm:$0xff] %v10601_v20  ;;  %v2204_v53 = vadd.f32 %v2104_v32, %v1913_v37  ;;  %v2700_v7 = vadd.f32 %v2597_v18, %v10489_v13  ;;  %v4002_v47 = vmul.f32 %v10054_v48, %v3954_v22 }
 0x212   : > { %13793 = vst [vmem:[#allocation42_spill] sm:$0xff] %v10605_v21  ;;  %v10611_v11 = vmul.f32 %v10346_v46, %v13794_v36  ;;  %v4212_v51 = vadd.f32 1.0, %v7965_v59  ;;  %v2701_v1 = vadd.f32 %v2599_v12, %v10508_v57  ;;  %v3096_v19 = vrot.slane %v2996_v25, 4  ;;  %v7967_v45 = vpop.eup %7966 }
 0x213   : > { %v10616_v26 = vmul.f32 %v10378_v54, %v13795_v38  ;;  %v4620_v37 = vmul.f32 %v4462_v61, %v10595_v44  ;;  %v13796_v13 = vrot.slane %v10392_v62, 2  ;;  %v13797_v24 = vrot.slane %v10516_v31, 2 }
 0x214   : > { %v4003_v52 = vmul.f32 %v10054_v48, %v3955_v5  ;;  %v10627_v57 = vmul.f32 %v4467_v27, %v10601_v20  ;;  %v13799_v54 = vrot.slane %v10414_v8, 3  ;;  %v10636_v62 = vmul.f32 %v8978_v58, %v10605_v21 }
 0x215   : > { %v2352_v22 = vsel %vm2311_vm5, %v13796_v13, %v2351_v40  ;;  %v2354_v46 = vsel %vm2311_vm5, %v2351_v40, %v13797_v24  ;;  %v13800_v25 = vrot.slane %v10546_v50, 3  ;;  %v10644_v40 = vadd.f32 %v10083_v49, %v4002_v47 }
 0x216   : > { %13798 = vst [vmem:[#allocation30_spill] sm:$0xff] %v10627_v57  ;;  %v10629_v32 = vadd.f32 %v2352_v22, %v2203_v56  ;;  %v2847_v18 = vsel %vm2810_vm6, %v13799_v54, %v2846_v34  ;;  %v10638_v61 = vadd.f32 %v2354_v46, %v2204_v53  ;;  %v4213_v6 = vadd.f32 1.0, %v7967_v45 }
 0x217   : > { %v2849_v60 = vsel %vm2810_vm6, %v2846_v34, %v13800_v25  ;;  %v2950_v59 = vadd.f32 %v2847_v18, %v2700_v7  ;;  %7968 = vrcp.f32 %v4212_v51  ;;  %v10648_v8 = vmul.f32 %v8873_v29, %v10581_v2 }
 0x218   : > { %v2951_v12 = vadd.f32 %v2849_v60, %v2701_v1  ;;  %v10651_v5 = vsel %vm4650_vm9, %v4620_v37, 0.0  ;;  %v13802_v56 = vrot.slane %v10424_v9, 4  ;;  %v13803_v34 = vrot.slane %v10551_v35, 4 }
 0x219   : > { %13801 = vst [vmem:[#allocation4_spill] sm:$0xff] %v10651_v5  ;;  %v10660_v47 = vadd.f32 %v10083_v49, %v4003_v52  ;;  %v10664_v36 = vmul.f32 %v8887_v39, %v10581_v2  ;;  %v2499_v51 = vmul.f32 %v8914_v0, %v10605_v21  ;;  %v3345_v1 = vrot.slane %v10636_v62, 4 }
 0x21a   : > { %v3097_v53 = vsel %vm3060_vm7, %v13802_v56, %v3096_v19  ;;  %v3099_v7 = vsel %vm3060_vm7, %v3096_v19, %v13803_v34  ;;  %v10671_v9 = vmul.f32 %v8995_v17, %v10605_v21  ;;  %v6807_v45 = vmul.f32 -1.442695, %v10644_v40 }
 0x21b   : > { %13804 = vst [vmem:[#allocation11_spill] sm:$0xff] %v10660_v47  ;;  %v3200_v38 = vadd.f32 %v3097_v53, %v2950_v59  ;;  %v10676_v19 = vmul.f32 %v8876_v30, %v10581_v2  ;;  %v2001_v27 = vmul.f32 %v8873_v29, %v10605_v21  ;;  %7970 = vrcp.f32 %v4213_v6 }
 0x21c   : > { %v3201_v37 = vadd.f32 %v3099_v7, %v2951_v12  ;;  %v13406_v13 = vrot.slane %v10648_v8, 1  ;;  %v10683_v22 = vmul.f32 %v8914_v0, %v10581_v2  ;;  %v6808_v24 = vmul.f32 -1.442695, %v10660_v47 }
 0x21d   : > { %v10688_v46 = vmul.f32 %v13754_v55, %v10581_v2  ;;  %v10692_v52 = vmul.f32 %v8949_v33, %v10581_v2  ;;  %v10696_v54 = vmul.f32 %v8978_v58, %v10581_v2  ;;  %v2600_v18 = vrot.slane %v2499_v51, 2 }
 0x21e   : > { %v13805_v62 = vrot.slane %v10481_v28, 4  ;;  %v3596_v60 = vrot.slane %v10671_v9, 5  ;;  %v10704_v59 = vmul.f32 %v9948_v41, %v10605_v21  ;;  %7972 = vpow2.f32 %v6807_v45 }
 0x21f   : > { %v2105_v12 = vrot.slane %v2001_v27, 1  ;;  %v10710_v34 = vmul.f32 %v8995_v17, %v10581_v2  ;;  %v2251_v28 = vmul.f32 %v8876_v30, %v10605_v21  ;;  %v2748_v7 = vmul.f32 %v13754_v55, %v10605_v21 }
 0x220   : > { %v3346_v25 = vsel %vm3060_vm7, %v13805_v62, %v3345_v1  ;;  %7974 = vpow2.f32 %v6808_v24  ;;  %v13806_v62 = vrot.slane %v10542_v10, 2  ;;  %v13807_v6 = vrot.slane %v10506_v63, 5 }
 0x221   : > { %v3449_v56 = vadd.f32 %v3346_v25, %v3200_v38  ;;  %v10720_v38 = vmul.f32 %v9948_v41, %v10581_v2  ;;  %v7969_v45 = vpop.eup %7968  ;;  %v3850_v24 = vrot.slane %v10704_v59, 6  ;;  %v13808_v51 = vrot.slane %v10512_v14, 1 }
 0x222   : > { %v2601_v25 = vsel %vm2311_vm5, %v13806_v62, %v2600_v18  ;;  %v3597_v53 = vsel %vm838_vm0, %v13807_v6, %v3596_v60  ;;  %v2108_v41 = vsel %vm2061_vm4, %v2105_v12, %v13406_v13  ;;  %v2998_v27 = vmul.f32 %v8949_v33, %v10605_v21 }
 0x223   : > { %v2106_v9 = vsel %vm2061_vm4, %v13808_v51, %v2105_v12  ;;  %v3702_v10 = vadd.f32 %v3597_v53, %v3449_v56  ;;  %v1915_v62 = vmul.f32 %v8887_v39, %v10605_v21  ;;  %v2355_v63 = vrot.slane %v2251_v28, 2  ;;  %v4472_v12 = vpop.permute.xlu1 %4471 }
 0x224   : > { %v13809_v6 = vrot.slane %v10683_v22, 2  ;;  %v2850_v2 = vrot.slane %v2748_v7, 3  ;;  %v10744_v14 = vmul.f32 %v7969_v45, %v10470_v23  ;;  %v2702_v13 = vadd.f32 %v2601_v25, %v10629_v32 }
 0x225   : > { %v7971_v20 = vpop.eup %7970  ;;  %v2205_v56 = vadd.f32 %v2106_v9, %v10538_v3  ;;  %v2206_v53 = vadd.f32 %v2108_v41, %v1915_v62  ;;  %v13811_v28 = vrot.slane %v10696_v54, 4  ;;  %v3100_v45 = vrot.slane %v2998_v27, 4  ;;  %v13816_v41 = vld [vmem:[#allocation2_spill] sm:$0xff]  ;;  %v13820_v27 = vld [vmem:[#allocation33_spill] sm:$0xff] }
 0x226   : > { %v2603_v59 = vsel %vm2311_vm5, %v2600_v18, %v13809_v6  ;;  %13810 = vst [vmem:[#allocation71_spill] sm:$0xff] %v10744_v14  ;;  %v13812_v18 = vrot.slane %v10529_v42, 6  ;;  %v13813_v32 = vrot.slane %v10516_v31, 2  ;;  %v13814_v3 = vrot.slane %v10676_v19, 2 }
 0x227   : > { %v3348_v21 = vsel %vm3060_vm7, %v3345_v1, %v13811_v28  ;;  %v2703_v23 = vadd.f32 %v2603_v59, %v10638_v61  ;;  %v13815_v1 = vrot.slane %v10546_v50, 3  ;;  %v10768_v62 = vmul.f32 %v13816_v41, %v10611_v11 }
 0x228   : > { %v3851_v7 = vsel %vm3814_vm8, %v13812_v18, %v3850_v24  ;;  %v3450_v6 = vadd.f32 %v3348_v21, %v3201_v37  ;;  %v2356_v25 = vsel %vm2311_vm5, %v13813_v32, %v2355_v63  ;;  %v2358_v9 = vsel %vm2311_vm5, %v2355_v63, %v13814_v3  ;;  %v7973_v61 = vpop.eup %7972 }
 0x229   : > { %v3956_v51 = vadd.f32 %v3851_v7, %v3702_v10  ;;  %v2851_v42 = vsel %vm2810_vm6, %v13815_v1, %v2850_v2  ;;  %13817 = vst [vmem:[#allocation2_spill] sm:$0xff] %v10768_v62  ;;  %v10771_v21 = vmul.f32 %v7971_v20, %v10497_v15  ;;  %v10774_v31 = vmul.f32 %v4472_v12, %v10744_v14 }
 0x22a   : > { %v2952_v37 = vadd.f32 %v2851_v42, %v2702_v13  ;;  %v10778_v10 = vmul.f32 %v13820_v27, %v10616_v26  ;;  %v10780_v63 = vadd.f32 %v2356_v25, %v2205_v56  ;;  %v10782_v50 = vadd.f32 %v2358_v9, %v2206_v53  ;;  %v7975_v20 = vpop.eup %7974  ;;  %v13826_v25 = vld [vmem:[#allocation45_spill] sm:$0xff] }
 0x22b   : > { %13818 = vst [vmem:[#allocation72_spill] sm:$0xff] %v10771_v21  ;;  %13819 = vst [vmem:[#allocation73_spill] sm:$0xff] %v10774_v31  ;;  %v13822_v59 = vrot.slane %v10688_v46, 3  ;;  %v13823_v28 = vrot.slane %v10710_v34, 5  ;;  %v13824_v13 = vrot.slane %v10551_v35, 4  ;;  %v4004_v56 = vmul.f32 %v10054_v48, %v3956_v51  ;;  %v13872_v21 = vld [vmem:[#allocation17_spill] sm:$0xff] }
 0x22c   : > { %13821 = vst [vmem:[#allocation33_spill] sm:$0xff] %v10778_v10  ;;  %v4214_v7 = vadd.f32 1.0, %v7973_v61  ;;  %v13825_v53 = vrot.slane %v10692_v52, 4  ;;  %v10809_v35 = vmul.f32 %v8876_v30, %v10768_v62  ;;  %v2003_v51 = vmul.f32 %v8873_v29, %v10778_v10  ;;  %v13873_v31 = vld [vmem:[#allocation69_spill] sm:$0xff] }
 0x22d   : > { %v2853_v11 = vsel %vm2810_vm6, %v2850_v2, %v13822_v59  ;;  %v3599_v15 = vsel %vm838_vm0, %v3596_v60, %v13823_v28  ;;  %v3101_v18 = vsel %vm3060_vm7, %v13824_v13, %v3100_v45  ;;  %v10799_v2 = vmul.f32 %v8873_v29, %v10768_v62 }
 0x22e   : > { %v2953_v12 = vadd.f32 %v2853_v11, %v2703_v23  ;;  %v3703_v26 = vadd.f32 %v3599_v15, %v3450_v6  ;;  %v3103_v32 = vsel %vm3060_vm7, %v3100_v45, %v13825_v53  ;;  %v10803_v60 = vmul.f32 %v10402_v43, %v13826_v25  ;;  %v13827_v6 = vld [vmem:[#allocation32_spill] sm:$0xff]  ;;  %v10864_v25 = vld [vmem:[%s13309_s6 + $0x8] ss:$0 sm:$0xff] }
 0x22f   : > { %v10805_v23 = vadd.f32 %v3101_v18, %v2952_v37  ;;  %7976 = vpow2.f32 %v13827_v6  ;;  %v4215_v45 = vadd.f32 1.0, %v7975_v20  ;;  %v13828_v3 = vrot.slane %v10720_v38, 6 }
 0x230   : > { %v10819_v43 = vmul.f32 %v8914_v0, %v10768_v62  ;;  %v2501_v1 = vmul.f32 %v8914_v0, %v10778_v10  ;;  %v3203_v42 = vadd.f32 %v3103_v32, %v2953_v12  ;;  %v10824_v61 = vadd.f32 %v10083_v49, %v4004_v56 }
 0x231   : > { %v3853_v9 = vsel %vm3814_vm8, %v3850_v24, %v13828_v3  ;;  %v10828_v37 = vmul.f32 %v8887_v39, %v10768_v62  ;;  %7978 = vrcp.f32 %v4214_v7  ;;  %v13411_v27 = vrot.slane %v10799_v2, 1 }
 0x232   : > { %v3957_v41 = vadd.f32 %v3853_v9, %v3703_v26  ;;  %13829 = vst [vmem:[#allocation45_spill] sm:$0xff] %v10824_v61  ;;  %v10833_v24 = vmul.f32 %v13754_v55, %v10768_v62  ;;  %v10837_v59 = vmul.f32 %v8949_v33, %v10768_v62  ;;  %v10842_v49 = vmul.f32 %v8978_v58, %v10768_v62 }
 0x233   : > { %v2109_v28 = vrot.slane %v2003_v51, 1  ;;  %v2253_v15 = vmul.f32 %v8876_v30, %v10778_v10  ;;  %7980 = vrcp.f32 %v4215_v45  ;;  %v13413_v20 = vrot.slane %v10819_v43, 2 }
 0x234   : > { %v2604_v12 = vrot.slane %v2501_v1, 2  ;;  %v2750_v13 = vmul.f32 %v13754_v55, %v10778_v10  ;;  %v10850_v18 = vmul.f32 %v10054_v48, %v3957_v41  ;;  %v6809_v26 = vmul.f32 -1.442695, %v10824_v61 }
 0x235   : > { %v10855_v56 = vmul.f32 %v8995_v17, %v10768_v62  ;;  %v3248_v7 = vmul.f32 %v8978_v58, %v10778_v10  ;;  %v10868_v48 = vmul.f32 %v10864_v25, %v10768_v62  ;;  %v3000_v51 = vmul.f32 %v8949_v33, %v10778_v10 }
 0x236   : > { %13830 = vst [vmem:[#allocation32_spill] sm:$0xff] %v10850_v18  ;;  %v1917_v45 = vmul.f32 %v8887_v39, %v10778_v10  ;;  %v13831_v3 = vrot.slane %v10648_v8, 1  ;;  %v2359_v1 = vrot.slane %v2253_v15, 2  ;;  %v2112_v41 = vsel %vm2061_vm4, %v2109_v28, %v13411_v27 }
 0x237   : > { %v13832_v32 = vrot.slane %v10683_v22, 2  ;;  %v2607_v6 = vsel %vm2311_vm5, %v2604_v12, %v13413_v20  ;;  %v2854_v11 = vrot.slane %v2750_v13, 3  ;;  %7982 = vpow2.f32 %v6809_v26 }
 0x238   : > { %v2110_v9 = vsel %vm2061_vm4, %v13831_v3, %v2109_v28  ;;  %v3349_v14 = vrot.slane %v3248_v7, 4  ;;  %v3497_v15 = vmul.f32 %v8995_v17, %v10778_v10  ;;  %v3104_v22 = vrot.slane %v3000_v51, 4 }
 0x239   : > { %v2605_v53 = vsel %vm2311_vm5, %v13832_v32, %v2604_v12  ;;  %v7977_v62 = vpop.eup %7976  ;;  %v2207_v28 = vadd.f32 %v2110_v9, %v10664_v36  ;;  %v10892_v32 = vpop.permute.xlu0 %1763  ;;  %v2208_v44 = vadd.f32 %v2112_v41, %v1917_v45  ;;  %v13833_v12 = vrot.slane %v10676_v19, 2 }
 0x23a   : > { %v1407_v27 = vadd.f32 1.0, %v7977_v62  ;;  %v2704_v26 = vadd.f32 %v2605_v53, %v10780_v63  ;;  %v2705_v7 = vadd.f32 %v2607_v6, %v10782_v50  ;;  %v13834_v8 = vrot.slane %v10809_v35, 2 }
 0x23b   : > { %v2360_v13 = vsel %vm2311_vm5, %v13833_v12, %v2359_v1  ;;  %v7979_v20 = vpop.eup %7978  ;;  %v13835_v36 = vrot.slane %v10688_v46, 3  ;;  %v3750_v51 = vmul.f32 %v10864_v25, %v10778_v10  ;;  %7984 = vpow2.f32 %v10240_v16 }
 0x23c   : > { %v2362_v3 = vsel %vm2311_vm5, %v2359_v1, %v13834_v8  ;;  %v13836_v19 = vrot.slane %v10696_v54, 4  ;;  %v13837_v50 = vrot.slane %v10842_v49, 4  ;;  %v3600_v6 = vrot.slane %v3497_v15, 5 }
 0x23d   : > { %v2855_v62 = vsel %vm2810_vm6, %v13835_v36, %v2854_v11  ;;  %7986 = vpow2.f32 %v10264_v4  ;;  %v10915_v45 = vpop.eup %7980  ;;  %v13839_v46 = vrot.slane %v10833_v24, 3  ;;  %v10922_v54 = vmul.f32 %v7979_v20, %v10644_v40  ;;  %v10942_v40 = vld [vmem:[%s13307_s4] ss:$0 sm:$0xff]  ;;  %v10946_v20 = vpop.permute.xlu0 %1768 }
 0x23e   : > { %v3350_v63 = vsel %vm3060_vm7, %v13836_v19, %v3349_v14  ;;  %v3352_v53 = vsel %vm3060_vm7, %v3349_v14, %v13837_v50  ;;  %13838 = vst [vmem:[#allocation74_spill] sm:$0xff] %v10915_v45  ;;  %7988 = vrcp.f32 %v1407_v27  ;;  %v2954_v41 = vadd.f32 %v2855_v62, %v2704_v26  ;;  %v13841_v14 = vld [vmem:[#allocation43_spill] sm:$0xff]  ;;  %v13844_v27 = vld [vmem:[#allocation54_spill] sm:$0xff]  ;;  %v13859_v45 = vld [vmem:[#allocation64_spill] sm:$0xff] }
 0x23f   : > { %v2857_v9 = vsel %vm2810_vm6, %v2854_v11, %v13839_v46  ;;  %v3451_v1 = vadd.f32 %v3350_v63, %v10805_v23  ;;  %v3452_v16 = vadd.f32 %v3352_v53, %v3203_v42  ;;  %13840 = vst [vmem:[#allocation75_spill] sm:$0xff] %v10922_v54  ;;  %v10926_v15 = vmul.f32 %v13841_v14, %v10803_v60  ;;  %v10933_v11 = vld [vmem:[%s13308_s5] ss:$0 sm:$0xff]  ;;  %v13843_v23 = vld [vmem:[#allocation68_spill] sm:$0xff] }
 0x240   : > { %v2955_v8 = vadd.f32 %v2857_v9, %v2705_v7  ;;  %v10928_v4 = vadd.f32 %v2360_v13, %v2207_v28  ;;  %v3854_v12 = vrot.slane %v3750_v51, 6  ;;  %v10937_v42 = vadd.f32 %v10933_v11, %v13843_v23  ;;  %v13847_v62 = vld [vmem:[#allocation58_spill] sm:$0xff] }
 0x241   : > { %13842 = vst [vmem:[#allocation43_spill] sm:$0xff] %v10926_v15  ;;  %v1176_v60 = vmul.f32 %v10942_v40, %v13844_v27  ;;  %v10948_v28 = vadd.f32 %v2362_v3, %v2208_v44  ;;  %v13845_v13 = vrot.slane %v10710_v34, 5  ;;  %v13846_v7 = vrot.slane %v10855_v56, 5  ;;  %v7983_v34 = vpop.eup %7982 }
 0x242   : > { %v1179_v51 = vmul.f32 %v10942_v40, %v13847_v62  ;;  %v13848_v19 = vrot.slane %v10692_v52, 4  ;;  %v13849_v50 = vrot.slane %v10837_v59, 4  ;;  %v10974_v52 = vmul.f32 %v8873_v29, %v10926_v15 }
 0x243   : > { %v3601_v26 = vsel %vm838_vm0, %v13845_v13, %v3600_v6  ;;  %v3603_v36 = vsel %vm838_vm0, %v3600_v6, %v13846_v7  ;;  %v10970_v6 = vmul.f32 %v8887_v39, %v10926_v15  ;;  %v13850_v14 = vrot.slane %v10720_v38, 6 }
 0x244   : > { %v3105_v63 = vsel %vm3060_vm7, %v13848_v19, %v3104_v22  ;;  %v3107_v44 = vsel %vm3060_vm7, %v3104_v22, %v13849_v50  ;;  %v3704_v3 = vadd.f32 %v3601_v26, %v3451_v1  ;;  %v3705_v53 = vadd.f32 %v3603_v36, %v3452_v16 }
 0x245   : > { %v10964_v46 = vadd.f32 %v3105_v63, %v2954_v41  ;;  %v10966_v9 = vadd.f32 %v3107_v44, %v2955_v8  ;;  %v3855_v23 = vsel %vm3814_vm8, %v13850_v14, %v3854_v12  ;;  %v10981_v22 = vmul.f32 %v8876_v30, %v10926_v15  ;;  %v4740_v41 = vld [vmem:[%s13312_s9] sm:$0xff]  ;;  %v4741_v8 = vld [vmem:[%s13312_s9 + $0x8] sm:$0xff]  ;;  %v7985_v7 = vpop.eup %7984  ;;  %v13855_v63 = vld [vmem:[#allocation65_spill] sm:$0xff] }
 0x246   : > { %v6776_v1 = vmul.f32 -1.442695, %v10937_v42  ;;  %v10985_v16 = vadd.f32 %v10933_v11, %v1176_v60  ;;  %v13852_v38 = vrot.slane %v10868_v48, 6  ;;  %v10998_v13 = vmul.f32 %v8914_v0, %v10926_v15  ;;  %v13857_v44 = vld [vmem:[#allocation35_spill] sm:$0xff]  ;;  %v13858_v14 = vld [vmem:[#allocation61_spill] sm:$0xff] }
 0x247   : > { %v11002_v60 = vmul.f32 %v13754_v55, %v10926_v15  ;;  %v11005_v26 = vadd.f32 %v10933_v11, %v1179_v51  ;;  %v4216_v36 = vadd.f32 1.0, %v7983_v34  ;;  %v3958_v62 = vadd.f32 %v3855_v23, %v3704_v3  ;;  %v7987_v50 = vpop.eup %7986 }
 0x248   : > { %13851 = vst [vmem:[#allocation68_spill] sm:$0xff] %v10985_v16  ;;  %v3857_v27 = vsel %vm3814_vm8, %v3854_v12, %v13852_v38  ;;  %7990 = vpow2.f32 %v13855_v63  ;;  %v11010_v12 = vpop.permute.xlu0 %1773  ;;  %v1178_v38 = vmul.f32 %v10942_v40, %v13858_v14  ;;  %v7777_v10 = vpack.c.bf16 %v4741_v8, %v4740_v41  ;;  %v7989_v61 = vpop.eup %7988  ;;  %v13871_v41 = vld [vmem:[#allocation67_spill] sm:$0xff] }
 0x249   : > { %13853 = vst [vmem:[#allocation54_spill] sm:$0xff] %v11005_v26  ;;  %v11007_v19 = vadd.f32 %v3857_v27, %v3705_v53  ;;  %13856 = vst [vmem:[#allocation65_spill] sm:$0xff] %v11010_v12  ;;  %7992 = vpow2.f32 %v13857_v44  ;;  %v6775_v51 = vmul.f32 -1.442695, %v10985_v16  ;;  %v1181_v3 = vmul.f32 %v10942_v40, %v13859_v45  ;;  %v13860_v27 = vld [vmem:[#allocation10_spill] sm:$0xff]  ;;  %v13861_v44 = vld [vmem:[#allocation47_spill] sm:$0xff] }
 0x24a   : > { %7994 = vpow2.f32 %v6776_v1  ;;  %v13416_v53 = vmov 0.0|0.0   ;;  %v6778_v23 = vmul.f32 -1.442695, %v11005_v26  ;;  %v1180_v63 = vmul.f32 %v10942_v40, %v13860_v27  ;;  %v13893_v16 = vld [vmem:[#allocation60_spill] sm:$0xff] }
 0x24b   : > { %13854 = vst [vmem:[#allocation58_spill] sm:$0xff] %v11007_v19  ;;  %7776 = vmatprep.subr.bf16.mxu1 %v13416_v53  ;;  %7782 = vmatprep.subr.bf16.mxu0 %v13416_v53  ;;  %v1410_v8 = vadd.f32 1.0, %v7985_v7  ;;  %v1183_v45 = vmul.f32 %v10942_v40, %v13861_v44  ;;  %v13418_v14 = vmov 0.0   ;;  %7996 = vrcp.f32 %v4216_v36  ;;  %v13862_v53 = vld [vmem:[#allocation22_spill] sm:$0xff] }
 0x24c   : > { %7778 = vmatpush3.bf16.msra.mxu1 %v7777_v10  ;;  %7504 = vmatprep.mubr.msk.f32.mxu1 %vm8347_vm10, %v13418_v14  ;;  %v1545_v34 = vmul.f32 %v7989_v61, %v13862_v53  ;;  %v1409_v27 = vadd.f32 1.0, %v7987_v50  ;;  %v11033_v10 = vadd.f32 %v10933_v11, %v1178_v38  ;;  %v11040_v44 = vmul.f32 %v8949_v33, %v10926_v15  ;;  %v11045_v36 = vpop.permute.xlu0 %1778  ;;  %v8332_v61 = vld [vmem:[%s13310_s7] ss:$0 sm:$0xff] }
 0x24d   : > { %7507 = vmatprep.subr.mxu1 %v13418_v14  ;;  %7643 = vmatprep.mubr.msk.f32.mxu0 %vm8347_vm10, %v13418_v14  ;;  %7998 = vpow2.f32 %v6775_v51  ;;  %v11043_v1 = vadd.f32 %v10933_v11, %v1181_v3  ;;  %v11050_v50 = vmul.f32 %v8332_v61, %v3958_v62  ;;  %v11054_v38 = vmul.f32 %v8978_v58, %v10926_v15  ;;  %v13868_v14 = vld [vmem:[#allocation66_spill] sm:$0xff]  ;;  %v13869_v61 = vld [vmem:[#allocation36_spill] sm:$0xff] }
 0x24e   : > { %13863 = vst [vmem:[#allocation35_spill] sm:$0xff] %v11033_v10  ;;  %8000 = vpow2.f32 %v6778_v23  ;;  %v11057_v53 = vadd.f32 %v10933_v11, %v1180_v63  ;;  %v11061_v51 = vmul.f32 %v8995_v17, %v10926_v15  ;;  %v11064_v3 = vadd.f32 %v10933_v11, %v1183_v45 }
 0x24f   : > { %13864 = vst [vmem:[#allocation61_spill] sm:$0xff] %v11043_v1  ;;  %13865 = vst [vmem:[#allocation64_spill] sm:$0xff] %v11050_v50  ;;  %8002 = vrcp.f32 %v1410_v8  ;;  %v1182_v62 = vmul.f32 %v10942_v40, %v13868_v14  ;;  %v11069_v7 = vmul.f32 %v13869_v61, %v1545_v34  ;;  %v6777_v23 = vmul.f32 -1.442695, %v11033_v10  ;;  %v13875_v61 = vld [vmem:[#allocation70_spill] sm:$0xff] }
 0x250   : > { %13866 = vst [vmem:[#allocation10_spill] sm:$0xff] %v11057_v53  ;;  %13867 = vst [vmem:[#allocation47_spill] sm:$0xff] %v11064_v3  ;;  %8004 = vrcp.f32 %v1409_v27  ;;  %v1185_v63 = vmul.f32 %v10942_v40, %v13871_v41  ;;  %v6780_v8 = vmul.f32 -1.442695, %v11043_v1  ;;  %v1184_v45 = vmul.f32 %v10942_v40, %v13872_v21  ;;  %v11095_v19 = vpop.permute.xlu0 %1783 }
 0x251   : > { %13870 = vst [vmem:[#allocation22_spill] sm:$0xff] %v11069_v7  ;;  %v1187_v14 = vmul.f32 %v10942_v40, %v13873_v31  ;;  %v11083_v27 = vmul.f32 %v10864_v25, %v10926_v15  ;;  %v6779_v41 = vmul.f32 -1.442695, %v11057_v53  ;;  %v1186_v54 = vmul.f32 %v10942_v40, %v13875_v61  ;;  %v13877_v31 = vld [vmem:[#allocation7_spill] sm:$0xff]  ;;  %13878 = vst [vmem:[#allocation67_spill] sm:$0xff] %v11095_v19 }
 0x252   : > { %v7991_v47 = vpop.eup %7990  ;;  %v6782_v21 = vmul.f32 -1.442695, %v11064_v3  ;;  %v11091_v18 = vadd.f32 %v10933_v11, %v1182_v62  ;;  %v1189_v34 = vmul.f32 %v10942_v40, %v13877_v31  ;;  %v2503_v15 = vmul.f32 %v8914_v0, %v11069_v7 }
 0x253   : > { %v7993_v57 = vpop.eup %7992  ;;  %13874 = vst [vmem:[#allocation66_spill] sm:$0xff] %v11083_v27  ;;  %v1412_v53 = vadd.f32 1.0, %v7991_v47  ;;  %8006 = vpow2.f32 %v6777_v23  ;;  %v11100_v61 = vadd.f32 %v10933_v11, %v1185_v63  ;;  %v11103_v50 = vadd.f32 %v10933_v11, %v1184_v45 }
 0x254   : > { %v7995_v5 = vpop.eup %7994  ;;  %13876 = vst [vmem:[#allocation36_spill] sm:$0xff] %v11091_v18  ;;  %v1411_v1 = vadd.f32 1.0, %v7993_v57  ;;  %8008 = vpow2.f32 %v6780_v8  ;;  %v11106_v62 = vadd.f32 %v10933_v11, %v1187_v14  ;;  %v2005_v31 = vmul.f32 %v8873_v29, %v11069_v7  ;;  %v13885_v8 = vld [vmem:[#allocation52_spill] sm:$0xff] }
 0x255   : > { %13879 = vst [vmem:[#allocation17_spill] sm:$0xff] %v11100_v61  ;;  %13880 = vst [vmem:[#allocation69_spill] sm:$0xff] %v11103_v50  ;;  %v11108_v10 = vpop.eup %7996  ;;  %v1414_v19 = vadd.f32 1.0, %v7995_v5  ;;  %8010 = vpow2.f32 %v6779_v41  ;;  %v11113_v47 = vadd.f32 %v10933_v11, %v1186_v54  ;;  %v11117_v63 = vadd.f32 %v10933_v11, %v1189_v34 }
 0x256   : > { %13881 = vst [vmem:[#allocation70_spill] sm:$0xff] %v11106_v62  ;;  %13882 = vst [vmem:[#allocation7_spill] sm:$0xff] %v11108_v10  ;;  %8012 = vpow2.f32 %v6782_v21  ;;  %v1188_v45 = vmul.f32 %v10942_v40, %v13885_v8  ;;  %v2608_v10 = vrot.slane %v2503_v15, 2  ;;  %v6781_v26 = vmul.f32 -1.442695, %v11091_v18  ;;  %v11131_v40 = vpop.permute.xlu0 %1788 }
 0x257   : > { %13883 = vst [vmem:[#allocation76_spill] sm:$0xff] %v11113_v47  ;;  %v7999_v23 = vpop.eup %7998  ;;  %13884 = vst [vmem:[#allocation77_spill] sm:$0xff] %v11117_v63  ;;  %8014 = vrcp.f32 %v1412_v53  ;;  %v6784_v5 = vmul.f32 -1.442695, %v11100_v61  ;;  %v3250_v54 = vmul.f32 %v8978_v58, %v11069_v7  ;;  %v11126_v21 = vmul.f32 -1.442695, %v11103_v50 }
 0x258   : > { %v8001_v14 = vpop.eup %8000  ;;  %8016 = vrcp.f32 %v1411_v1  ;;  %v11129_v34 = vmul.f32 -1.442695, %v11106_v62  ;;  %13886 = vst [vmem:[#allocation52_spill] sm:$0xff] %v11131_v40  ;;  %v2113_v15 = vrot.slane %v2005_v31, 1  ;;  %v2752_v53 = vmul.f32 %v13754_v55, %v11069_v7 }
 0x259   : > { %v8003_v41 = vpop.eup %8002  ;;  %8018 = vrcp.f32 %v1414_v19  ;;  %v11136_v8 = vmul.f32 -1.442695, %v11113_v47  ;;  %v2255_v1 = vmul.f32 %v8876_v30, %v11069_v7  ;;  %v11140_v61 = vadd.f32 1.0, %v7999_v23 }
 0x25a   : > { %v8005_v57 = vpop.eup %8004  ;;  %v11143_v50 = vmul.f32 -1.442695, %v11117_v63  ;;  %v11146_v62 = vadd.f32 %v10933_v11, %v1188_v45  ;;  %v13889_v31 = vrot.slane %v10819_v43, 2  ;;  %v3499_v19 = vmul.f32 %v8995_v17, %v11069_v7  ;;  %v13892_v63 = vld [vmem:[#allocation59_spill] sm:$0xff] }
 0x25b   : > { %v11153_v47 = vadd.f32 1.0, %v8001_v14  ;;  %8020 = vpow2.f32 %v6781_v26  ;;  %v13891_v18 = vrot.slane %v10998_v13, 2  ;;  %v3353_v3 = vrot.slane %v3250_v54, 4 }
 0x25c   : > { %13887 = vst [vmem:[#allocation78_spill] sm:$0xff] %v11143_v50  ;;  %13888 = vst [vmem:[#allocation79_spill] sm:$0xff] %v11146_v62  ;;  %v2609_v40 = vsel %vm2311_vm5, %v13889_v31, %v2608_v10  ;;  %v1548_v12 = vmul.f32 %v8003_v41, %v13892_v63  ;;  %v1547_v11 = vmul.f32 %v8005_v57, %v13893_v16  ;;  %v13894_v43 = vrot.slane %v10799_v2, 1  ;;  %v11178_v41 = vpop.permute.xlu0 %1793 }
 0x25d   : > { %13890 = vst [vmem:[#allocation80_spill] sm:$0xff] %v11153_v47  ;;  %v2611_v23 = vsel %vm2311_vm5, %v2608_v10, %v13891_v18  ;;  %v11160_v45 = vpop.eup %8006  ;;  %v2858_v50 = vrot.slane %v2752_v53, 3  ;;  %v3002_v14 = vmul.f32 %v8949_v33, %v11069_v7  ;;  %8022 = vpow2.f32 %v6784_v5  ;;  %13898 = vst [vmem:[#allocation81_spill] sm:$0xff] %v11178_v41  ;;  %v13902_v41 = vld [vmem:[#allocation39_spill] sm:$0xff] }
 0x25e   : > { %v2114_v31 = vsel %vm2061_vm4, %v13894_v43, %v2113_v15  ;;  %v11167_v26 = vpop.eup %8008  ;;  %v13895_v18 = vrot.slane %v10974_v52, 1  ;;  %v2363_v63 = vrot.slane %v2255_v1, 2  ;;  %v2706_v16 = vadd.f32 %v2609_v40, %v10928_v4 }
 0x25f   : > { %v11174_v57 = vmul.f32 -1.442695, %v11146_v62  ;;  %v11176_v2 = vpop.eup %8010  ;;  %v1919_v54 = vmul.f32 %v8887_v39, %v11069_v7  ;;  %v2707_v5 = vadd.f32 %v2611_v23, %v10948_v28  ;;  %v3604_v53 = vrot.slane %v3499_v19, 5 }
 0x260   : > { %v2116_v10 = vsel %vm2061_vm4, %v2113_v15, %v13895_v18  ;;  %13897 = vst [vmem:[#allocation60_spill] sm:$0xff] %v11176_v2  ;;  %v3752_v43 = vmul.f32 %v10864_v25, %v11069_v7  ;;  %v11185_v15 = vpop.eup %8012  ;;  %v2209_v4 = vadd.f32 %v2114_v31, %v10828_v37  ;;  %v13899_v40 = vrot.slane %v10842_v49, 4  ;;  %v13900_v18 = vld [vmem:[#allocation16_spill] sm:$0xff] }
 0x261   : > { %13896 = vst [vmem:[#allocation59_spill] sm:$0xff] %v11174_v57  ;;  %v11192_v62 = vmul.f32 %v13900_v18, %v1548_v12  ;;  %v11195_v47 = vmul.f32 %v13902_v41, %v1547_v11  ;;  %v8015_v57 = vpop.eup %8014  ;;  %v2210_v28 = vadd.f32 %v2116_v10, %v1919_v54  ;;  %v13904_v19 = vrot.slane %v10833_v24, 3 }
 0x262   : > { %v3354_v1 = vsel %vm3060_vm7, %v13899_v40, %v3353_v3  ;;  %v3108_v7 = vrot.slane %v3002_v14, 4  ;;  %v8017_v37 = vpop.eup %8016  ;;  %v13905_v49 = vrot.slane %v10809_v35, 2  ;;  %v13906_v12 = vrot.slane %v11002_v60, 3 }
 0x263   : > { %13901 = vst [vmem:[#allocation16_spill] sm:$0xff] %v11192_v62  ;;  %13903 = vst [vmem:[#allocation39_spill] sm:$0xff] %v11195_v47  ;;  %v2859_v23 = vsel %vm2810_vm6, %v13904_v19, %v2858_v50  ;;  %v3453_v2 = vadd.f32 %v3354_v1, %v10964_v46  ;;  %v13907_v41 = vrot.slane %v11054_v38, 4  ;;  %v8019_v24 = vpop.eup %8018  ;;  %v13908_v54 = vrot.slane %v10981_v22, 2 }
 0x264   : > { %v2364_v31 = vsel %vm2311_vm5, %v13905_v49, %v2363_v63  ;;  %v2861_v40 = vsel %vm2810_vm6, %v2858_v50, %v13906_v12  ;;  %v2956_v11 = vadd.f32 %v2859_v23, %v2706_v16  ;;  %v3858_v35 = vrot.slane %v3752_v43, 6  ;;  %v11225_v23 = vpop.permute.xlu0 %1798 }
 0x265   : > { %v3356_v10 = vsel %vm3060_vm7, %v3353_v3, %v13907_v41  ;;  %v2366_v14 = vsel %vm2311_vm5, %v2363_v63, %v13908_v54  ;;  %v2957_v46 = vadd.f32 %v2861_v40, %v2707_v5  ;;  %v2459_v18 = vadd.f32 %v2364_v31, %v2209_v4  ;;  %v11223_v16 = vpop.eup %8020  ;;  %13910 = vst [vmem:[#allocation82_spill] sm:$0xff] %v11225_v23 }
 0x266   : > { %v3454_v1 = vadd.f32 %v3356_v10, %v10966_v9  ;;  %v13909_v19 = vrot.slane %v10855_v56, 5  ;;  %v11219_v50 = vmul.f32 %v8873_v29, %v11192_v62  ;;  %v2007_v3 = vmul.f32 %v8873_v29, %v11195_v47  ;;  %v13912_v56 = vld [vmem:[#allocation62_spill] sm:$0xff] }
 0x267   : > { %v2460_v63 = vadd.f32 %v2366_v14, %v2210_v28  ;;  %v13911_v9 = vrot.slane %v10837_v59, 4  ;;  %v1550_v4 = vmul.f32 %v8015_v57, %v13912_v56  ;;  %v13913_v31 = vrot.slane %v11040_v44, 4  ;;  %v11241_v54 = vpop.eup %8022 }
 0x268   : > { %v3605_v49 = vsel %vm838_vm0, %v13909_v19, %v3604_v53  ;;  %v13914_v41 = vrot.slane %v11061_v51, 5  ;;  %v2505_v28 = vmul.f32 %v8914_v0, %v11195_v47  ;;  %v13917_v57 = vrot.slane %v10868_v48, 6 }
 0x269   : > { %v3109_v5 = vsel %vm3060_vm7, %v13911_v9, %v3108_v7  ;;  %v3706_v43 = vadd.f32 %v3605_v49, %v3453_v2  ;;  %v3111_v12 = vsel %vm3060_vm7, %v3108_v7, %v13913_v31  ;;  %v11252_v7 = vmul.f32 %v8914_v0, %v11192_v62  ;;  %v11281_v31 = vpop.permute.xlu0 %1803 }
 0x26a   : > { %v11234_v40 = vadd.f32 %v3109_v5, %v2956_v11  ;;  %v3607_v10 = vsel %vm838_vm0, %v3604_v53, %v13914_v41  ;;  %v11243_v59 = vadd.f32 %v3111_v12, %v2957_v46  ;;  %v3859_v14 = vsel %vm3814_vm8, %v13917_v57, %v3858_v35  ;;  %v13920_v46 = vld [vmem:[#allocation63_spill] sm:$0xff] }
 0x26b   : > { %v11245_v2 = vadd.f32 %v3607_v10, %v3454_v1  ;;  %v13918_v11 = vrot.slane %v11083_v27, 6  ;;  %v13438_v19 = vrot.slane %v11219_v50, 1  ;;  %v2117_v49 = vrot.slane %v2007_v3, 1 }
 0x26c   : > { %13915 = vst [vmem:[#allocation62_spill] sm:$0xff] %v11243_v59  ;;  %v1549_v9 = vmul.f32 %v8017_v37, %v13920_v46  ;;  %v11261_v1 = vadd.f32 %v3859_v14, %v3706_v43  ;;  %v11265_v48 = vmul.f32 %v8876_v30, %v11192_v62  ;;  %v11268_v5 = vmul.f32 %v10946_v20, %v1550_v4 }
 0x26d   : > { %13916 = vst [vmem:[#allocation83_spill] sm:$0xff] %v11245_v2  ;;  %v11257_v53 = vsel %vm3814_vm8, %v3858_v35, %v13918_v11  ;;  %v11271_v56 = vmul.f32 %v8019_v24, %v10937_v42  ;;  %v11275_v35 = vmul.f32 %v13754_v55, %v11192_v62  ;;  %v2257_v3 = vmul.f32 %v8876_v30, %v11195_v47 }
 0x26e   : > { %13919 = vst [vmem:[#allocation84_spill] sm:$0xff] %v11257_v53  ;;  %13921 = vst [vmem:[#allocation63_spill] sm:$0xff] %v11261_v1  ;;  %v2612_v37 = vrot.slane %v2505_v28, 2  ;;  %v2754_v43 = vmul.f32 %v13754_v55, %v11195_v47  ;;  %v11285_v20 = vmul.f32 %v8887_v39, %v11192_v62  ;;  %v11290_v24 = vmul.f32 %v8949_v33, %v11192_v62 }
 0x26f   : > { %13922 = vst [vmem:[#allocation85_spill] sm:$0xff] %v11268_v5  ;;  %v11294_v4 = vmul.f32 %v8949_v33, %v11195_v47  ;;  %v11298_v12 = vmul.f32 %v8978_v58, %v11192_v62  ;;  %v13926_v41 = vrot.slane %v10974_v52, 1  ;;  %v2120_v28 = vsel %vm2061_vm4, %v2117_v49, %v13438_v19 }
 0x270   : > { %13923 = vst [vmem:[#allocation86_spill] sm:$0xff] %v11290_v24  ;;  %v3252_v57 = vmul.f32 %v8978_v58, %v11195_v47  ;;  %v11311_v11 = vmul.f32 %v8995_v17, %v11192_v62  ;;  %v11315_v46 = vmul.f32 %v10864_v25, %v11192_v62  ;;  %v1921_v52 = vmul.f32 %v8887_v39, %v11195_v47 }
 0x271   : > { %13924 = vst [vmem:[#allocation87_spill] sm:$0xff] %v11294_v4  ;;  %13925 = vst [vmem:[#allocation88_spill] sm:$0xff] %v11298_v12  ;;  %v2118_v10 = vsel %vm2061_vm4, %v13926_v41, %v2117_v49  ;;  %v2367_v42 = vrot.slane %v2257_v3, 2  ;;  %v13929_v49 = vrot.slane %v10998_v13, 2  ;;  %v2862_v1 = vrot.slane %v2754_v43, 3  ;;  %v11334_v3 = vpop.permute.xlu0 %1808 }
 0x272   : > { %13927 = vst [vmem:[#allocation89_spill] sm:$0xff] %v11311_v11  ;;  %13928 = vst [vmem:[#allocation90_spill] sm:$0xff] %v11315_v46  ;;  %v2211_v14 = vadd.f32 %v2118_v10, %v10970_v6  ;;  %v2212_v53 = vadd.f32 %v2120_v28, %v1921_v52  ;;  %v13930_v2 = vrot.slane %v11252_v7, 2  ;;  %v13443_v62 = vrot.slane %v11294_v4, 4 }
 0x273   : > { %v2613_v19 = vsel %vm2311_vm5, %v13929_v49, %v2612_v37  ;;  %v13442_v23 = vrot.slane %v11298_v12, 4  ;;  %v3357_v41 = vrot.slane %v3252_v57, 4  ;;  %v11332_v13 = vmul.f32 %v8995_v17, %v11195_v47 }
 0x274   : > { %v2615_v27 = vsel %vm2311_vm5, %v2612_v37, %v13930_v2  ;;  %v2708_v10 = vadd.f32 %v2613_v19, %v2459_v18  ;;  %v11340_v2 = vmul.f32 %v10864_v25, %v11195_v47  ;;  %v13933_v37 = vrot.slane %v10981_v22, 2 }
 0x275   : > { %13931 = vst [vmem:[#allocation91_spill] sm:$0xff] %v11332_v13  ;;  %v13934_v57 = vrot.slane %v11265_v48, 2  ;;  %v11348_v49 = vadd.f32 %v2615_v27, %v2460_v63  ;;  %v13935_v59 = vrot.slane %v11002_v60, 3  ;;  %v13936_v19 = vrot.slane %v11275_v35, 3 }
 0x276   : > { %13932 = vst [vmem:[#allocation92_spill] sm:$0xff] %v11340_v2  ;;  %v2368_v28 = vsel %vm2311_vm5, %v13933_v37, %v2367_v42  ;;  %v13937_v37 = vrot.slane %v11040_v44, 4  ;;  %v13939_v60 = vrot.slane %v11054_v38, 4  ;;  %8024 = vrcp.f32 %v11140_v61 }
 0x277   : > { %v2370_v52 = vsel %vm2311_vm5, %v2367_v42, %v13934_v57  ;;  %v2863_v6 = vsel %vm2810_vm6, %v13935_v59, %v2862_v1  ;;  %v11353_v43 = vadd.f32 %v2368_v28, %v2211_v14  ;;  %v11360_v22 = vsel %vm2810_vm6, %v2862_v1, %v13936_v19  ;;  %v11405_v28 = vpop.permute.xlu0 %1813 }
 0x278   : > { %v11355_v18 = vadd.f32 %v2370_v52, %v2212_v53  ;;  %v11367_v27 = vsel %vm3060_vm7, %v13937_v37, %v13443_v62  ;;  %v3358_v63 = vsel %vm3060_vm7, %v13939_v60, %v3357_v41  ;;  %v13441_v59 = vrot.slane %v11332_v13, 5 }
 0x279   : > { %13938 = vst [vmem:[#allocation93_spill] sm:$0xff] %v11367_v27  ;;  %v11375_v53 = vmul.f32 %v8873_v29, %v11268_v5  ;;  %v11378_v1 = vadd.f32 %v2863_v6, %v2708_v10  ;;  %v11382_v44 = vmul.f32 %v8876_v30, %v11268_v5  ;;  %v11386_v42 = vmul.f32 %v8914_v0, %v11268_v5 }
 0x27a   : > { %v11389_v38 = vmul.f32 %v10892_v32, %v1549_v9  ;;  %v11394_v14 = vsel %vm3060_vm7, %v3357_v41, %v13442_v23  ;;  %v11398_v61 = vmul.f32 %v13754_v55, %v11268_v5  ;;  %v11402_v6 = vmul.f32 %v8949_v33, %v11268_v5 }
 0x27b   : > { %13940 = vst [vmem:[#allocation94_spill] sm:$0xff] %v11378_v1  ;;  %13942 = vst [vmem:[#allocation96_spill] sm:$0xff] %v11394_v14  ;;  %v1420_v10 = vadd.f32 1.0, %v11185_v15  ;;  %v11408_v32 = vadd.f32 %v3358_v63, %v11234_v40  ;;  %v11412_v9 = vmul.f32 %v8978_v58, %v11268_v5  ;;  %v11416_v41 = vmul.f32 %v8995_v17, %v11268_v5  ;;  %v11462_v23 = vpop.permute.xlu0 %1818 }
 0x27c   : > { %13941 = vst [vmem:[#allocation95_spill] sm:$0xff] %v11389_v38  ;;  %13943 = vst [vmem:[#allocation97_spill] sm:$0xff] %v11398_v61  ;;  %v1419_v57 = vadd.f32 1.0, %v11223_v16  ;;  %v13948_v52 = vrot.slane %v11061_v51, 5  ;;  %v11429_v19 = vmul.f32 %v8887_v39, %v11268_v5  ;;  %v2009_v16 = vmul.f32 %v8873_v29, %v11389_v38 }
 0x27d   : > { %13944 = vst [vmem:[#allocation98_spill] sm:$0xff] %v11402_v6  ;;  %13945 = vst [vmem:[#allocation99_spill] sm:$0xff] %v11408_v32  ;;  %8026 = vpow2.f32 %v11126_v21  ;;  %v11441_v40 = vmul.f32 %v10864_v25, %v11268_v5  ;;  %v11447_v62 = vmul.f32 %v8914_v0, %v11389_v38  ;;  %v11451_v21 = vmul.f32 %v8876_v30, %v11389_v38 }
 0x27e   : > { %13946 = vst [vmem:[#allocation100_spill] sm:$0xff] %v11412_v9  ;;  %13947 = vst [vmem:[#allocation101_spill] sm:$0xff] %v11416_v41  ;;  %v11424_v15 = vsel %vm838_vm0, %v13948_v52, %v13441_v59  ;;  %8028 = vrcp.f32 %v1420_v10  ;;  %v11455_v52 = vmul.f32 %v13754_v55, %v11389_v38  ;;  %v11459_v10 = vmul.f32 %v11045_v36, %v11271_v56  ;;  %v13954_v56 = vld [vmem:[#allocation78_spill] sm:$0xff] }
 0x27f   : > { %13949 = vst [vmem:[#allocation102_spill] sm:$0xff] %v11424_v15  ;;  %13950 = vst [vmem:[#allocation103_spill] sm:$0xff] %v11441_v40  ;;  %8030 = vrcp.f32 %v1419_v57  ;;  %v2121_v59 = vrot.slane %v2009_v16, 1  ;;  %v11466_v57 = vmul.f32 %v8949_v33, %v11389_v38  ;;  %v1415_v51 = vadd.f32 1.0, %v11160_v45  ;;  %v13956_v45 = vld [vmem:[#allocation60_spill] sm:$0xff]  ;;  %v11507_v32 = vpop.permute.xlu0 %1823  ;;  %v13969_v15 = vld [vmem:[#allocation47_spill] sm:$0xff] }
 0x280   : > { %13951 = vst [vmem:[#allocation104_spill] sm:$0xff] %v11459_v10  ;;  %8032 = vpow2.f32 %v11129_v34  ;;  %v8025_v60 = vpop.eup %8024  ;;  %v11472_v63 = vmul.f32 %v8978_v58, %v11389_v38  ;;  %v1418_v36 = vadd.f32 1.0, %v11167_v26  ;;  %v1422_v34 = vadd.f32 1.0, %v11241_v54 }
 0x281   : > { %13952 = vst [vmem:[#allocation105_spill] sm:$0xff] %v11466_v57  ;;  %8034 = vpow2.f32 %v11136_v8  ;;  %v2616_v16 = vrot.slane %v11447_v62, 2  ;;  %v11480_v37 = vmul.f32 %v8995_v17, %v11389_v38  ;;  %v1417_v5 = vadd.f32 1.0, %v13956_v45  ;;  %v13957_v8 = vld [vmem:[#allocation59_spill] sm:$0xff]  ;;  %v13960_v45 = vld [vmem:[#allocation68_spill] sm:$0xff] }
 0x282   : > { %13953 = vst [vmem:[#allocation106_spill] sm:$0xff] %v11472_v63  ;;  %8036 = vpow2.f32 %v13954_v56  ;;  %v1923_v47 = vmul.f32 %v8887_v39, %v11389_v38  ;;  %v2371_v46 = vrot.slane %v11451_v21, 2  ;;  %v2866_v26 = vrot.slane %v11455_v52, 3 }
 0x283   : > { %13955 = vst [vmem:[#allocation78_spill] sm:$0xff] %v11480_v37  ;;  %8038 = vpow2.f32 %v13957_v8  ;;  %v11490_v54 = vmul.f32 %v10864_v25, %v11389_v38  ;;  %v13959_v62 = vrot.slane %v11375_v53, 1  ;;  %v1551_v40 = vmul.f32 %v8025_v60, %v13960_v45  ;;  %v13961_v8 = vld [vmem:[#allocation80_spill] sm:$0xff]  ;;  %v11547_v12 = vpop.permute.xlu0 %4481 }
 0x284   : > { %8040 = vrcp.f32 %v13961_v8  ;;  %v11501_v21 = vmul.f32 %v8873_v29, %v11459_v10  ;;  %v11505_v52 = vmul.f32 %v8914_v0, %v11459_v10  ;;  %v13963_v45 = vrot.slane %v11252_v7, 2  ;;  %v13965_v7 = vld [vmem:[#allocation65_spill] sm:$0xff] }
 0x285   : > { %13958 = vst [vmem:[#allocation60_spill] sm:$0xff] %v11490_v54  ;;  %v2124_v56 = vsel %vm2061_vm4, %v2121_v59, %v13959_v62  ;;  %8042 = vrcp.f32 %v1422_v34  ;;  %v13962_v62 = vrot.slane %v11219_v50, 1  ;;  %v11519_v14 = vmul.f32 %v8876_v30, %v11459_v10  ;;  %13972 = vst [vmem:[#allocation65_spill] sm:$0xff] %v11547_v12 }
 0x286   : > { %v2617_v8 = vsel %vm2311_vm5, %v13963_v45, %v2616_v16  ;;  %8044 = vrcp.f32 %v1415_v51  ;;  %v2214_v41 = vadd.f32 %v2124_v56, %v1923_v47  ;;  %v11523_v50 = vmul.f32 %v13754_v55, %v11459_v10  ;;  %v13970_v47 = vld [vmem:[#allocation36_spill] sm:$0xff] }
 0x287   : > { %v8027_v38 = vpop.eup %8026  ;;  %v2122_v60 = vsel %vm2061_vm4, %v13962_v62, %v2121_v59  ;;  %8046 = vrcp.f32 %v1418_v36  ;;  %v11526_v59 = vmul.f32 %v13965_v7, %v1551_v40  ;;  %v11536_v45 = vmul.f32 %v8887_v39, %v11459_v10 }
 0x288   : > { %v8029_v2 = vpop.eup %8028  ;;  %v1421_v34 = vadd.f32 1.0, %v8027_v38  ;;  %13964 = vst [vmem:[#allocation59_spill] sm:$0xff] %v11523_v50  ;;  %8048 = vrcp.f32 %v1417_v5  ;;  %v11532_v38 = vmul.f32 %v8978_v58, %v11459_v10  ;;  %v2213_v40 = vadd.f32 %v2122_v60, %v11285_v20 }
 0x289   : > { %v8031_v11 = vpop.eup %8030  ;;  %13966 = vst [vmem:[#allocation68_spill] sm:$0xff] %v11526_v59  ;;  %v13968_v5 = vrot.slane %v11265_v48, 2  ;;  %v1558_v56 = vmul.f32 %v8029_v2, %v13969_v15  ;;  %v2011_v20 = vmul.f32 %v8873_v29, %v11526_v59  ;;  %v13973_v48 = vrot.slane %v11382_v44, 2 }
 0x28a   : > { %v8033_v51 = vpop.eup %8032  ;;  %13967 = vst [vmem:[#allocation80_spill] sm:$0xff] %v11532_v38  ;;  %8050 = vrcp.f32 %v1421_v34  ;;  %v1557_v54 = vmul.f32 %v8031_v11, %v13970_v47  ;;  %v13971_v34 = vrot.slane %v11386_v42, 2  ;;  %v2710_v47 = vadd.f32 %v2617_v8, %v11353_v43 }
 0x28b   : > { %v8035_v36 = vpop.eup %8034  ;;  %v1424_v62 = vadd.f32 1.0, %v8033_v51  ;;  %v2372_v7 = vsel %vm2311_vm5, %v13968_v5, %v2371_v46  ;;  %v2374_v60 = vsel %vm2311_vm5, %v2371_v46, %v13973_v48  ;;  %v11567_v48 = vmul.f32 %v11334_v3, %v1558_v56 }
 0x28c   : > { %v8037_v13 = vpop.eup %8036  ;;  %v1423_v37 = vadd.f32 1.0, %v8035_v36  ;;  %v2619_v51 = vsel %vm2311_vm5, %v2616_v16, %v13971_v34  ;;  %v11556_v16 = vadd.f32 %v2372_v7, %v2213_v40  ;;  %v11558_v5 = vadd.f32 %v2374_v60, %v2214_v41  ;;  %v11596_v40 = vpop.permute.xlu0 %4486 }
 0x28d   : > { %v8039_v9 = vpop.eup %8038  ;;  %8052 = vrcp.f32 %v1424_v62  ;;  %v1426_v11 = vadd.f32 1.0, %v8037_v13  ;;  %v11561_v34 = vadd.f32 %v2619_v51, %v11355_v18  ;;  %v13975_v62 = vrot.slane %v11275_v35, 3  ;;  %13976 = vst [vmem:[#allocation36_spill] sm:$0xff] %v11567_v48  ;;  %13983 = vst [vmem:[#allocation112_spill] sm:$0xff] %v11596_v40 }
 0x28e   : > { %8054 = vrcp.f32 %v1423_v37  ;;  %v1425_v15 = vadd.f32 1.0, %v8039_v9  ;;  %v8041_v36 = vpop.eup %8040  ;;  %v11570_v13 = vmul.f32 %v11281_v31, %v1557_v54  ;;  %v13978_v43 = vrot.slane %v11398_v61, 3 }
 0x28f   : > { %13974 = vst [vmem:[#allocation47_spill] sm:$0xff] %v11561_v34  ;;  %v2867_v12 = vsel %vm2810_vm6, %v13975_v62, %v2866_v26  ;;  %v8043_v46 = vpop.eup %8042  ;;  %8056 = vrcp.f32 %v1426_v11  ;;  %v2125_v18 = vrot.slane %v2011_v20, 1  ;;  %v11579_v35 = vmul.f32 %v8876_v30, %v11526_v59  ;;  %v13985_v20 = vld [vmem:[#allocation54_spill] sm:$0xff]  ;;  %v13986_v11 = vld [vmem:[#allocation17_spill] sm:$0xff] }
 0x290   : > { %13977 = vst [vmem:[#allocation107_spill] sm:$0xff] %v11570_v13  ;;  %v11575_v9 = vsel %vm2810_vm6, %v2866_v26, %v13978_v43  ;;  %v8045_v41 = vpop.eup %8044  ;;  %8058 = vrcp.f32 %v1425_v15  ;;  %v11584_v31 = vmul.f32 %v8914_v0, %v11526_v59  ;;  %v11588_v54 = vmul.f32 %v13754_v55, %v11526_v59  ;;  %v11606_v43 = vpop.permute.xlu1 %4476 }
 0x291   : > { %13979 = vst [vmem:[#allocation108_spill] sm:$0xff] %v11575_v9  ;;  %v8047_v3 = vpop.eup %8046  ;;  %v11592_v26 = vadd.f32 %v11360_v22, %v11348_v49  ;;  %v11594_v8 = vadd.f32 %v2867_v12, %v2710_v47  ;;  %v1925_v7 = vmul.f32 %v8887_v39, %v11526_v59  ;;  %v11602_v51 = vmul.f32 %v8949_v33, %v11526_v59 }
 0x292   : > { %13980 = vst [vmem:[#allocation109_spill] sm:$0xff] %v11588_v54  ;;  %v8049_v56 = vpop.eup %8048  ;;  %v1554_v60 = vmul.f32 %v8041_v36, %v13985_v20  ;;  %v1560_v15 = vmul.f32 %v8043_v46, %v13986_v11  ;;  %13987 = vst [vmem:[#allocation54_spill] sm:$0xff] %v11606_v43  ;;  %v11610_v12 = vmul.f32 %v8978_v58, %v11526_v59  ;;  %v13990_v46 = vld [vmem:[#allocation35_spill] sm:$0xff]  ;;  %v13991_v11 = vld [vmem:[#allocation69_spill] sm:$0xff]  ;;  %v13992_v2 = vrot.slane %v11375_v53, 1 }
 0x293   : > { %13981 = vst [vmem:[#allocation110_spill] sm:$0xff] %v11592_v26  ;;  %13982 = vst [vmem:[#allocation111_spill] sm:$0xff] %v11594_v8  ;;  %v11614_v49 = vmul.f32 %v8995_v17, %v11526_v59  ;;  %v11618_v22 = vmul.f32 %v8873_v29, %v11570_v13  ;;  %v2018_v47 = vmul.f32 %v8873_v29, %v11567_v48  ;;  %v13994_v38 = vrot.slane %v11501_v21, 1  ;;  %v13995_v36 = vld [vmem:[#allocation52_spill] sm:$0xff]  ;;  %v14003_v59 = vld [vmem:[#allocation82_spill] sm:$0xff] }
 0x294   : > { %13984 = vst [vmem:[#allocation113_spill] sm:$0xff] %v11602_v51  ;;  %v8051_v62 = vpop.eup %8050  ;;  %13988 = vst [vmem:[#allocation17_spill] sm:$0xff] %v11610_v12  ;;  %v1553_v20 = vmul.f32 %v8045_v41, %v13990_v46  ;;  %v2126_v40 = vsel %vm2061_vm4, %v13992_v2, %v2125_v18  ;;  %v11635_v27 = vmul.f32 %v13995_v36, %v1554_v60  ;;  %v13996_v41 = vld [vmem:[#allocation10_spill] sm:$0xff]  ;;  %v14000_v60 = vld [vmem:[#allocation67_spill] sm:$0xff] }
 0x295   : > { %13989 = vst [vmem:[#allocation114_spill] sm:$0xff] %v11614_v49  ;;  %v1559_v37 = vmul.f32 %v8051_v62, %v13991_v11  ;;  %v13993_v49 = vld [vmem:[#allocation61_spill] sm:$0xff]  ;;  %v2128_v8 = vsel %vm2061_vm4, %v2125_v18, %v13994_v38  ;;  %v1555_v62 = vmul.f32 %v8049_v56, %v13996_v41  ;;  %v11639_v53 = vmul.f32 %v11462_v23, %v1560_v15  ;;  %v11649_v18 = vpop.permute.xlu0 %4491  ;;  %v14001_v56 = vld [vmem:[#allocation70_spill] sm:$0xff]  ;;  %v14002_v15 = vld [vmem:[#allocation76_spill] sm:$0xff]  ;;  %v1829_v11 = vpop.permute.xlu1 %1828 }
 0x296   : > { %v1556_v63 = vmul.f32 %v8047_v3, %v13993_v49  ;;  %v13471_v3 = vrot.slane %v11618_v22, 1  ;;  %v2139_v49 = vrot.slane %v2018_v47, 1  ;;  %v11647_v38 = vadd.f32 %v2126_v40, %v11429_v19  ;;  %13999 = vst [vmem:[#allocation61_spill] sm:$0xff] %v11649_v18  ;;  %v14009_v12 = vld [vmem:[#allocation79_spill] sm:$0xff] }
 0x297   : > { %v8053_v26 = vpop.eup %8052  ;;  %13997 = vst [vmem:[#allocation35_spill] sm:$0xff] %v11639_v53  ;;  %v11642_v2 = vmul.f32 %v11405_v28, %v1559_v37  ;;  %v11652_v36 = vmul.f32 %v14000_v60, %v1553_v20  ;;  %v11663_v19 = vmul.f32 %v8876_v30, %v11570_v13  ;;  %v11667_v47 = vadd.f32 %v2128_v8, %v1925_v7  ;;  %v14005_v20 = vld [vmem:[#allocation81_spill] sm:$0xff] }
 0x298   : > { %v8055_v46 = vpop.eup %8054  ;;  %v1562_v23 = vmul.f32 %v8053_v26, %v14001_v56  ;;  %v11659_v43 = vmul.f32 %v14003_v59, %v1556_v63  ;;  %v11674_v60 = vmul.f32 %v8876_v30, %v11567_v48  ;;  %v11678_v63 = vmul.f32 %v8914_v0, %v11639_v53  ;;  %v14007_v56 = vld [vmem:[#allocation77_spill] sm:$0xff] }
 0x299   : > { %13998 = vst [vmem:[#allocation69_spill] sm:$0xff] %v11642_v2  ;;  %v1561_v41 = vmul.f32 %v8055_v46, %v14002_v15  ;;  %v2019_v28 = vmul.f32 %v8873_v29, %v11642_v2  ;;  %v8057_v37 = vpop.eup %8056  ;;  %v2269_v40 = vmul.f32 %v8876_v30, %v11642_v2  ;;  %v11670_v46 = vmul.f32 %v14005_v20, %v1555_v62  ;;  %v1839_v57 = vpop.permute.xlu0 %1838 }
 0x29a   : > { %14004 = vst [vmem:[#allocation52_spill] sm:$0xff] %v11659_v43  ;;  %v8059_v26 = vpop.eup %8058  ;;  %v11682_v59 = vmul.f32 %v8873_v29, %v11635_v27  ;;  %v1564_v15 = vmul.f32 %v8057_v37, %v14007_v56  ;;  %v2140_v8 = vsel %vm2061_vm4, %v13471_v3, %v2139_v49  ;;  %v11690_v62 = vmul.f32 %v13754_v55, %v11639_v53 }
 0x29b   : > { %14006 = vst [vmem:[#allocation10_spill] sm:$0xff] %v11670_v46  ;;  %v2141_v7 = vrot.slane %v2019_v28, 1  ;;  %v1884_v20 = vmul.f32 %v1829_v11, %v1562_v23  ;;  %v11693_v18 = vmul.f32 %v11507_v32, %v1561_v41  ;;  %v1563_v1 = vmul.f32 %v8059_v26, %v14009_v12  ;;  %v1834_v23 = vpop.permute.xlu1 %1833 }
 0x29c   : > { %v1931_v6 = vmul.f32 %v8887_v39, %v11570_v13  ;;  %v1932_v37 = vmul.f32 %v8887_v39, %v11567_v48  ;;  %v1933_v56 = vmul.f32 %v8887_v39, %v11642_v2  ;;  %v2391_v3 = vrot.slane %v2269_v40, 2 }
 0x29d   : > { %14008 = vst [vmem:[#allocation67_spill] sm:$0xff] %v11693_v18  ;;  %v2389_v11 = vrot.slane %v11674_v60, 2  ;;  %v2638_v32 = vrot.slane %v11678_v63, 2  ;;  %v11707_v12 = vmul.f32 %v8949_v33, %v11639_v53  ;;  %v1886_v41 = vmul.f32 %v1839_v57, %v1564_v15 }
 0x29e   : > { %v2222_v4 = vadd.f32 %v2140_v8, %v1931_v6  ;;  %v2142_v26 = vsel %vm2061_vm4, %v2139_v49, %v2141_v7  ;;  %v2224_v24 = vadd.f32 %v2141_v7, %v1933_v56  ;;  %v11712_v28 = vmul.f32 %v8978_v58, %v1884_v20 }
 0x29f   : > { %v1885_v40 = vmul.f32 %v1834_v23, %v1563_v1  ;;  %v2223_v6 = vadd.f32 %v2142_v26, %v1932_v37  ;;  %v2519_v60 = vmul.f32 %v8914_v0, %v11693_v18  ;;  %v11717_v63 = vmul.f32 %v8995_v17, %v1884_v20 }
 0x2a0   : > { %v2392_v8 = vsel %vm2311_vm5, %v2389_v11, %v2391_v3  ;;  %v2474_v10 = vadd.f32 %v2391_v3, %v2224_v24  ;;  %v2768_v57 = vmul.f32 %v13754_v55, %v11693_v18  ;;  %v11723_v49 = vmul.f32 %v10864_v25, %v1884_v20 }
 0x2a1   : > { %v2473_v15 = vadd.f32 %v2392_v8, %v2223_v6  ;;  %v2640_v7 = vrot.slane %v2519_v60, 2  ;;  %v3018_v1 = vmul.f32 %v8949_v33, %v11693_v18  ;;  %v3518_v37 = vmul.f32 %v8995_v17, %v1886_v41 }
 0x2a2   : > { %14010 = vst [vmem:[#allocation70_spill] sm:$0xff] %v11723_v49  ;;  %v3771_v56 = vmul.f32 %v10864_v25, %v1886_v41  ;;  %v2890_v23 = vrot.slane %v2768_v57, 3  ;;  %v3268_v9 = vmul.f32 %v8978_v58, %v1885_v40  ;;  %v11736_v60 = vmul.f32 %v8914_v0, %v11642_v2 }
 0x2a3   : > { %v2641_v24 = vsel %vm2311_vm5, %v2638_v32, %v2640_v7  ;;  %v2723_v3 = vadd.f32 %v2640_v7, %v2474_v10  ;;  %v3140_v51 = vrot.slane %v3018_v1, 4  ;;  %v14011_v57 = vrot.slane %v11690_v62, 3 }
 0x2a4   : > { %v2722_v8 = vadd.f32 %v2641_v24, %v2473_v15  ;;  %v3389_v10 = vrot.slane %v3268_v9, 4  ;;  %v3642_v7 = vrot.slane %v3518_v37, 5  ;;  %v3517_v50 = vmul.f32 %v8995_v17, %v1885_v40 }
 0x2a5   : > { %v2891_v26 = vsel %vm2810_vm6, %v14011_v57, %v2890_v23  ;;  %v2973_v34 = vadd.f32 %v2890_v23, %v2723_v3  ;;  %v3770_v20 = vmul.f32 %v10864_v25, %v1885_v40  ;;  %v3896_v6 = vrot.slane %v3771_v56, 6 }
 0x2a6   : > { %v2972_v1 = vadd.f32 %v2891_v26, %v2722_v8  ;;  %v14012_v61 = vrot.slane %v11707_v12, 4  ;;  %v14013_v24 = vrot.slane %v11712_v28, 4  ;;  %v13484_v57 = vrot.slane %v11736_v60, 2 }
 0x2a7   : > { %v3223_v15 = vadd.f32 %v3140_v51, %v2973_v34  ;;  %v3640_v9 = vrot.slane %v3517_v50, 5  ;;  %v3894_v37 = vrot.slane %v3770_v20, 6  ;;  %v2013_v26 = vmul.f32 %v8873_v29, %v11652_v36 }
 0x2a8   : > { %v3141_v54 = vsel %vm3060_vm7, %v14012_v61, %v3140_v51  ;;  %v3390_v41 = vsel %vm3060_vm7, %v14013_v24, %v3389_v10  ;;  %v14014_v25 = vrot.slane %v11663_v19, 2  ;;  %v11758_v61 = vmul.f32 %v13754_v55, %v11642_v2 }
 0x2a9   : > { %v3222_v23 = vadd.f32 %v3141_v54, %v2972_v1  ;;  %v3472_v34 = vadd.f32 %v3389_v10, %v3223_v15  ;;  %v14015_v56 = vrot.slane %v11717_v63, 5  ;;  %v3643_v50 = vsel %vm838_vm0, %v3640_v9, %v3642_v7 }
 0x2aa   : > { %v2390_v40 = vsel %vm2311_vm5, %v14014_v25, %v2389_v11  ;;  %v14016_v54 = vrot.slane %v11723_v49, 6  ;;  %v3897_v11 = vsel %vm3814_vm8, %v3894_v37, %v3896_v6  ;;  %v2015_v24 = vmul.f32 %v8873_v29, %v11670_v46 }
 0x2ab   : > { %v3471_v51 = vadd.f32 %v3390_v41, %v3222_v23  ;;  %v3641_v3 = vsel %vm838_vm0, %v14015_v56, %v3640_v9  ;;  %v2472_v8 = vadd.f32 %v2390_v40, %v2222_v4  ;;  %v3725_v1 = vadd.f32 %v3643_v50, %v3472_v34 }
 0x2ac   : > { %v3895_v20 = vsel %vm3814_vm8, %v14016_v54, %v3894_v37  ;;  %v2639_v41 = vsel %vm2311_vm5, %v13484_v57, %v2638_v32  ;;  %v2016_v15 = vmul.f32 %v8873_v29, %v11659_v43  ;;  %v14017_v7 = vrot.slane %v11579_v35, 2 }
 0x2ad   : > { %v3724_v10 = vadd.f32 %v3641_v3, %v3471_v51  ;;  %v14018_v23 = vrot.slane %v11382_v44, 2  ;;  %v11782_v6 = vmul.f32 %v8978_v58, %v11639_v53  ;;  %v11786_v9 = vmul.f32 %v8995_v17, %v11639_v53 }
 0x2ae   : > { %v11788_v37 = vadd.f32 %v3897_v11, %v3725_v1  ;;  %v2129_v32 = vrot.slane %v2013_v26, 1  ;;  %v13485_v25 = vrot.slane %v11758_v61, 3  ;;  %v11793_v29 = vmul.f32 %v8949_v33, %v11642_v2  ;;  %v11807_v26 = vld [vmem:[%s13309_s6 + $0x8] ss:$0 sm:$0xff] }
 0x2af   : > { %v2376_v4 = vsel %vm2311_vm5, %v14018_v23, %v14017_v7  ;;  %v11795_v44 = vadd.f32 %v3895_v20, %v3724_v10  ;;  %v2131_v40 = vrot.slane %v11682_v59, 1  ;;  %v11800_v34 = vmul.f32 %v8914_v0, %v11652_v36  ;;  %14021 = vst [vmem:[#allocation81_spill] sm:$0xff] %v11807_v26 }
 0x2b0   : > { %14019 = vst [vmem:[#allocation76_spill] sm:$0xff] %v11788_v37  ;;  %v2721_v51 = vadd.f32 %v2639_v41, %v2472_v8  ;;  %v1928_v56 = vmul.f32 %v8887_v39, %v11635_v27  ;;  %v2133_v3 = vrot.slane %v2015_v24, 1  ;;  %v11811_v50 = vmul.f32 %v11807_v26, %v11639_v53 }
 0x2b1   : > { %14020 = vst [vmem:[#allocation82_spill] sm:$0xff] %v11795_v44  ;;  %v1927_v59 = vmul.f32 %v8887_v39, %v11652_v36  ;;  %v1930_v54 = vmul.f32 %v8887_v39, %v11659_v43  ;;  %v2135_v20 = vrot.slane %v2016_v15, 1  ;;  %v1929_v11 = vmul.f32 %v8887_v39, %v11670_v46 }
 0x2b2   : > { %14022 = vst [vmem:[#allocation77_spill] sm:$0xff] %v11811_v50  ;;  %v14023_v24 = vrot.slane %v11501_v21, 1  ;;  %v11826_v10 = vmul.f32 %v8978_v58, %v11693_v18  ;;  %v14024_v7 = vrot.slane %v11690_v62, 3  ;;  %v2132_v1 = vsel %vm2061_vm4, %v2129_v32, %v2131_v40 }
 0x2b3   : > { %v2134_v39 = vsel %vm2061_vm4, %v2131_v40, %v2133_v3  ;;  %v2263_v21 = vmul.f32 %v8876_v30, %v11652_v36  ;;  %v2136_v62 = vsel %vm2061_vm4, %v2133_v3, %v2135_v20  ;;  %v14025_v40 = vrot.slane %v11618_v22, 1 }
 0x2b4   : > { %v2130_v41 = vsel %vm2061_vm4, %v14023_v24, %v2129_v32  ;;  %v2889_v15 = vsel %vm2810_vm6, %v13485_v25, %v14024_v7  ;;  %v2264_v24 = vmul.f32 %v8876_v30, %v11635_v27  ;;  %v2265_v7 = vmul.f32 %v8876_v30, %v11670_v46 }
 0x2b5   : > { %v2971_v8 = vadd.f32 %v2889_v15, %v2721_v51  ;;  %v2266_v25 = vmul.f32 %v8876_v30, %v11659_v43  ;;  %v11848_v32 = vmul.f32 %v8995_v17, %v11693_v18  ;;  %v2138_v51 = vsel %vm2061_vm4, %v2135_v20, %v14025_v40 }
 0x2b6   : > { %v2217_v15 = vadd.f32 %v2130_v41, %v11536_v45  ;;  %v2218_v23 = vadd.f32 %v2132_v1, %v1927_v59  ;;  %v11857_v3 = vmul.f32 %v11807_v26, %v11693_v18  ;;  %v14027_v53 = vrot.slane %v11707_v12, 4  ;;  %v14072_v26 = vld [vmem:[#allocation106_spill] sm:$0xff] }
 0x2b7   : > { %v14028_v30 = vrot.slane %v11793_v29, 4  ;;  %v2219_v44 = vadd.f32 %v2134_v39, %v1928_v56  ;;  %v2220_v22 = vadd.f32 %v2136_v62, %v1929_v11  ;;  %v2379_v50 = vrot.slane %v2263_v21, 2 }
 0x2b8   : > { %14026 = vst [vmem:[#allocation79_spill] sm:$0xff] %v11857_v3  ;;  %v2381_v20 = vrot.slane %v2264_v24, 2  ;;  %v2221_v40 = vadd.f32 %v2138_v51, %v1930_v54  ;;  %v14029_v45 = vrot.slane %v11519_v14, 2  ;;  %v14030_v59 = vrot.slane %v11579_v35, 2 }
 0x2b9   : > { %v3139_v37 = vsel %vm3060_vm7, %v14028_v30, %v14027_v53  ;;  %v2383_v41 = vrot.slane %v2265_v7, 2  ;;  %v2385_v57 = vrot.slane %v2266_v25, 2  ;;  %v2465_v18 = vadd.f32 %v2376_v4, %v11647_v38 }
 0x2ba   : > { %v3221_v49 = vadd.f32 %v3139_v37, %v2971_v8  ;;  %v2378_v1 = vsel %vm2311_vm5, %v14030_v59, %v14029_v45  ;;  %v2512_v53 = vmul.f32 %v8914_v0, %v11635_v27  ;;  %v2513_v37 = vmul.f32 %v8914_v0, %v11670_v46 }
 0x2bb   : > { %v14031_v54 = vrot.slane %v11712_v28, 4  ;;  %v14032_v35 = vrot.slane %v11826_v10, 4  ;;  %v2514_v25 = vmul.f32 %v8914_v0, %v11659_v43  ;;  %v2515_v38 = vmul.f32 %v8914_v0, %v11570_v13 }
 0x2bc   : > { %v14034_v11 = vmov %v14029_v45  ;;  %v2382_v21 = vsel %vm2311_vm5, %v2379_v50, %v2381_v20  ;;  %v2516_v28 = vmul.f32 %v8914_v0, %v11567_v48  ;;  %v2384_v24 = vsel %vm2311_vm5, %v2381_v20, %v2383_v41 }
 0x2bd   : > { %v3388_v8 = vsel %vm3060_vm7, %v14032_v35, %v14031_v54  ;;  %v2380_v39 = vsel %vm2311_vm5, %v14034_v11, %v2379_v50  ;;  %v2386_v62 = vsel %vm2311_vm5, %v2383_v41, %v2385_v57  ;;  %v14035_v7 = vrot.slane %v11663_v19, 2 }
 0x2be   : > { %v11885_v4 = vadd.f32 %v3388_v8, %v3221_v49  ;;  %v2624_v49 = vrot.slane %v11800_v34, 2  ;;  %v2466_v30 = vadd.f32 %v2378_v1, %v11667_v47  ;;  %v2467_v14 = vadd.f32 %v2380_v39, %v2217_v15 }
 0x2bf   : > { %v2388_v51 = vsel %vm2311_vm5, %v2385_v57, %v14035_v7  ;;  %v2626_v45 = vrot.slane %v2512_v53, 2  ;;  %v2628_v59 = vrot.slane %v2513_v37, 2  ;;  %v2468_v54 = vadd.f32 %v2382_v21, %v2218_v23 }
 0x2c0   : > { %14033 = vst [vmem:[#allocation115_spill] sm:$0xff] %v11885_v4  ;;  %v14036_v50 = vrot.slane %v11584_v31, 2  ;;  %v14037_v0 = vrot.slane %v11386_v42, 2  ;;  %v2630_v35 = vrot.slane %v2514_v25, 2  ;;  %v2632_v41 = vrot.slane %v2515_v38, 2 }
 0x2c1   : > { %v2469_v8 = vadd.f32 %v2384_v24, %v2219_v44  ;;  %v2470_v19 = vadd.f32 %v2386_v62, %v2220_v22  ;;  %v2471_v11 = vadd.f32 %v2388_v51, %v2221_v40  ;;  %v2634_v57 = vrot.slane %v2516_v28, 2 }
 0x2c2   : > { %v2621_v20 = vsel %vm2311_vm5, %v14037_v0, %v14036_v50  ;;  %v14038_v34 = vrot.slane %v11505_v52, 2  ;;  %v14039_v47 = vmov %v14036_v50  ;;  %v2760_v42 = vmul.f32 %v13754_v55, %v11652_v36 }
 0x2c3   : > { %v2761_v53 = vmul.f32 %v13754_v55, %v11635_v27  ;;  %v2627_v44 = vsel %vm2311_vm5, %v2624_v49, %v2626_v45  ;;  %v2629_v22 = vsel %vm2311_vm5, %v2626_v45, %v2628_v59  ;;  %v2712_v40 = vadd.f32 %v2621_v20, %v11556_v16 }
 0x2c4   : > { %v2623_v15 = vsel %vm2311_vm5, %v14039_v47, %v14038_v34  ;;  %v14040_v23 = vmov %v14038_v34  ;;  %v2762_v31 = vmul.f32 %v13754_v55, %v11670_v46  ;;  %v2631_v37 = vsel %vm2311_vm5, %v2628_v59, %v2630_v35 }
 0x2c5   : > { %v2625_v1 = vsel %vm2311_vm5, %v14040_v23, %v2624_v49  ;;  %v2633_v52 = vsel %vm2311_vm5, %v2630_v35, %v2632_v41  ;;  %v2763_v25 = vmul.f32 %v13754_v55, %v11659_v43  ;;  %v2764_v38 = vmul.f32 %v13754_v55, %v11570_v13 }
 0x2c6   : > { %v2635_v39 = vsel %vm2311_vm5, %v2632_v41, %v2634_v57  ;;  %v14041_v21 = vrot.slane %v11736_v60, 2  ;;  %v2713_v16 = vadd.f32 %v2623_v15, %v11558_v5  ;;  %v2765_v24 = vmul.f32 %v13754_v55, %v11567_v48  ;;  %v14042_v60 = vld [vmem:[#allocation109_spill] sm:$0xff]  ;;  %v14046_v15 = vld [vmem:[#allocation59_spill] sm:$0xff] }
 0x2c7   : > { %v2714_v62 = vadd.f32 %v2625_v1, %v2465_v18  ;;  %v2715_v7 = vadd.f32 %v2627_v44, %v2466_v30  ;;  %v2874_v51 = vrot.slane %v2760_v42, 3  ;;  %v2876_v49 = vrot.slane %v2761_v53, 3  ;;  %v14052_v53 = vld [vmem:[#allocation104_spill] sm:$0xff] }
 0x2c8   : > { %v2637_v28 = vsel %vm2311_vm5, %v2634_v57, %v14041_v21  ;;  %v2716_v45 = vadd.f32 %v2629_v22, %v2467_v14  ;;  %v2717_v59 = vadd.f32 %v2631_v37, %v2468_v54  ;;  %v2718_v50 = vadd.f32 %v2633_v52, %v2469_v8  ;;  %v14044_v57 = vld [vmem:[#allocation97_spill] sm:$0xff]  ;;  %v14049_v54 = vld [vmem:[#allocation47_spill] sm:$0xff]  ;;  %v14050_v8 = vld [vmem:[#allocation108_spill] sm:$0xff] }
 0x2c9   : > { %v2878_v0 = vrot.slane %v2762_v31, 3  ;;  %v2719_v20 = vadd.f32 %v2635_v39, %v2470_v19  ;;  %v2720_v35 = vadd.f32 %v2637_v28, %v2471_v11  ;;  %v2880_v41 = vrot.slane %v2763_v25, 3 }
 0x2ca   : > { %v2882_v34 = vrot.slane %v2764_v38, 3  ;;  %v14043_v47 = vrot.slane %v14042_v60, 3  ;;  %v14045_v23 = vrot.slane %v14044_v57, 3  ;;  %v14047_v55 = vrot.slane %v14046_v15, 3 }
 0x2cb   : > { %v2884_v14 = vrot.slane %v2765_v24, 3  ;;  %v2961_v1 = vadd.f32 %v14050_v8, %v14049_v54  ;;  %v2877_v42 = vsel %vm2810_vm6, %v2874_v51, %v2876_v49  ;;  %v3009_v44 = vmul.f32 %v8949_v33, %v14052_v53 }
 0x2cc   : > { %v2871_v5 = vsel %vm2810_vm6, %v14045_v23, %v14043_v47  ;;  %v14048_v18 = vmov %v14043_v47  ;;  %v14051_v19 = vmov %v14047_v55  ;;  %v3010_v22 = vmul.f32 %v8949_v33, %v11652_v36  ;;  %v14054_v23 = vld [vmem:[#allocation113_spill] sm:$0xff] }
 0x2cd   : > { %v2873_v30 = vsel %vm2810_vm6, %v14048_v18, %v14047_v55  ;;  %v2875_v11 = vsel %vm2810_vm6, %v14051_v19, %v2874_v51  ;;  %v2879_v31 = vsel %vm2810_vm6, %v2876_v49, %v2878_v0  ;;  %v3011_v37 = vmul.f32 %v8949_v33, %v11635_v27 }
 0x2ce   : > { %v3012_v52 = vmul.f32 %v8949_v33, %v11670_v46  ;;  %v3013_v25 = vmul.f32 %v8949_v33, %v11659_v43  ;;  %v2881_v38 = vsel %vm2810_vm6, %v2878_v0, %v2880_v41  ;;  %v2883_v39 = vsel %vm2810_vm6, %v2880_v41, %v2882_v34 }
 0x2cf   : > { %v2962_v21 = vadd.f32 %v2871_v5, %v2712_v40  ;;  %v3014_v28 = vmul.f32 %v8949_v33, %v11570_v13  ;;  %v2885_v24 = vsel %vm2810_vm6, %v2882_v34, %v2884_v14  ;;  %v14053_v51 = vrot.slane %v11758_v61, 3 }
 0x2d0   : > { %v2963_v60 = vadd.f32 %v2873_v30, %v2713_v16  ;;  %v2964_v47 = vadd.f32 %v2875_v11, %v2714_v62  ;;  %v2965_v57 = vadd.f32 %v2877_v42, %v2715_v7  ;;  %v3120_v15 = vrot.slane %v14054_v23, 4  ;;  %v14057_v62 = vld [vmem:[#allocation87_spill] sm:$0xff]  ;;  %v14059_v11 = vld [vmem:[#allocation105_spill] sm:$0xff]  ;;  %v14068_v23 = vld [vmem:[#allocation110_spill] sm:$0xff] }
 0x2d1   : > { %v2887_v49 = vsel %vm2810_vm6, %v2884_v14, %v14053_v51  ;;  %v3122_v55 = vrot.slane %v3009_v44, 4  ;;  %v3124_v18 = vrot.slane %v3010_v22, 4  ;;  %v3015_v0 = vmul.f32 %v8949_v33, %v11567_v48  ;;  %v14055_v14 = vld [vmem:[#allocation86_spill] sm:$0xff]  ;;  %v14067_v51 = vld [vmem:[#allocation93_spill] sm:$0xff] }
 0x2d2   : > { %v3126_v40 = vrot.slane %v3011_v37, 4  ;;  %v3128_v41 = vrot.slane %v3012_v52, 4  ;;  %v3130_v5 = vrot.slane %v3013_v25, 4  ;;  %v2966_v54 = vadd.f32 %v2879_v31, %v2716_v45  ;;  %v14062_v22 = vld [vmem:[#allocation98_spill] sm:$0xff] }
 0x2d3   : > { %v2967_v8 = vadd.f32 %v2881_v38, %v2717_v59  ;;  %v2968_v34 = vadd.f32 %v2883_v39, %v2718_v50  ;;  %v3132_v19 = vrot.slane %v3014_v28, 4  ;;  %v2969_v61 = vadd.f32 %v2885_v24, %v2719_v20  ;;  %v14066_v24 = vld [vmem:[#allocation94_spill] sm:$0xff] }
 0x2d4   : > { %v2970_v56 = vadd.f32 %v2887_v49, %v2720_v35  ;;  %v14056_v16 = vrot.slane %v14055_v14, 4  ;;  %v14058_v7 = vrot.slane %v14057_v62, 4  ;;  %v14060_v42 = vrot.slane %v14059_v11, 4 }
 0x2d5   : > { %v14063_v37 = vrot.slane %v14062_v22, 4  ;;  %v3123_v35 = vsel %vm3060_vm7, %v3120_v15, %v3122_v55  ;;  %v3125_v31 = vsel %vm3060_vm7, %v3122_v55, %v3124_v18  ;;  %v3127_v52 = vsel %vm3060_vm7, %v3124_v18, %v3126_v40 }
 0x2d6   : > { %v3115_v30 = vsel %vm3060_vm7, %v14058_v7, %v14056_v16  ;;  %v14061_v44 = vmov %v14056_v16  ;;  %v14064_v45 = vmov %v14060_v42  ;;  %v3129_v25 = vsel %vm3060_vm7, %v3126_v40, %v3128_v41  ;;  %v14069_v40 = vld [vmem:[#allocation111_spill] sm:$0xff] }
 0x2d7   : > { %v3117_v33 = vsel %vm3060_vm7, %v14061_v44, %v14060_v42  ;;  %v3119_v59 = vsel %vm3060_vm7, %v14064_v45, %v14063_v37  ;;  %v14065_v50 = vmov %v14063_v37  ;;  %v3131_v38 = vsel %vm3060_vm7, %v3128_v41, %v3130_v5 }
 0x2d8   : > { %v3121_v20 = vsel %vm3060_vm7, %v14065_v50, %v3120_v15  ;;  %v3134_v39 = vrot.slane %v3015_v0, 4  ;;  %v3133_v28 = vsel %vm3060_vm7, %v3130_v5, %v3132_v19  ;;  %v3208_v49 = vadd.f32 %v14067_v51, %v14066_v24  ;;  %v14071_v50 = vld [vmem:[#allocation80_spill] sm:$0xff] }
 0x2d9   : > { %v3209_v14 = vadd.f32 %v3115_v30, %v14068_v23  ;;  %v3258_v16 = vmul.f32 %v8978_v58, %v11652_v36  ;;  %v3259_v15 = vmul.f32 %v8978_v58, %v11635_v27  ;;  %v3260_v55 = vmul.f32 %v8978_v58, %v11670_v46 }
 0x2da   : > { %v3261_v18 = vmul.f32 %v8978_v58, %v11659_v43  ;;  %v3262_v0 = vmul.f32 %v8978_v58, %v11570_v13  ;;  %v3210_v41 = vadd.f32 %v3117_v33, %v14069_v40  ;;  %v3211_v5 = vadd.f32 %v3119_v59, %v2961_v1 }
 0x2db   : > { %v3263_v62 = vmul.f32 %v8978_v58, %v11567_v48  ;;  %v3264_v7 = vmul.f32 %v8978_v58, %v11642_v2  ;;  %v3135_v30 = vsel %vm3060_vm7, %v3132_v19, %v3134_v39  ;;  %v14070_v11 = vrot.slane %v11793_v29, 4 }
 0x2dc   : > { %v3212_v44 = vadd.f32 %v3121_v20, %v2962_v21  ;;  %v3213_v22 = vadd.f32 %v3123_v35, %v2963_v60  ;;  %v3214_v37 = vadd.f32 %v3125_v31, %v2964_v47  ;;  %v3215_v45 = vadd.f32 %v3127_v52, %v2965_v57  ;;  %v14074_v21 = vld [vmem:[#allocation88_spill] sm:$0xff]  ;;  %v14079_v52 = vld [vmem:[#allocation17_spill] sm:$0xff] }
 0x2dd   : > { %v3137_v42 = vsel %vm3060_vm7, %v3134_v39, %v14070_v11  ;;  %v3367_v24 = vrot.slane %v14071_v50, 4  ;;  %v3369_v33 = vrot.slane %v3258_v16, 4  ;;  %v3371_v1 = vrot.slane %v3259_v15, 4  ;;  %v14076_v57 = vld [vmem:[#allocation100_spill] sm:$0xff]  ;;  %v14086_v11 = vld [vmem:[#allocation62_spill] sm:$0xff] }
 0x2de   : > { %v3373_v59 = vrot.slane %v3260_v55, 4  ;;  %v3375_v51 = vrot.slane %v3261_v18, 4  ;;  %v3377_v23 = vrot.slane %v3262_v0, 4  ;;  %v3216_v40 = vadd.f32 %v3129_v25, %v2966_v54 }
 0x2df   : > { %v3217_v12 = vadd.f32 %v3131_v38, %v2967_v8  ;;  %v3379_v58 = vrot.slane %v3263_v62, 4  ;;  %v3381_v3 = vrot.slane %v3264_v7, 4  ;;  %v3218_v19 = vadd.f32 %v3133_v28, %v2968_v34 }
 0x2e0   : > { %v3219_v4 = vadd.f32 %v3135_v30, %v2969_v61  ;;  %v3220_v29 = vadd.f32 %v3137_v42, %v2970_v56  ;;  %v14073_v39 = vrot.slane %v14072_v26, 4  ;;  %v14075_v60 = vrot.slane %v14074_v21, 4  ;;  %v14087_v42 = vld [vmem:[#allocation96_spill] sm:$0xff] }
 0x2e1   : > { %v14077_v20 = vrot.slane %v14076_v57, 4  ;;  %v14080_v54 = vrot.slane %v14079_v52, 4  ;;  %v3370_v25 = vsel %vm3060_vm7, %v3367_v24, %v3369_v33  ;;  %v3372_v38 = vsel %vm3060_vm7, %v3369_v33, %v3371_v1 }
 0x2e2   : > { %v3362_v47 = vsel %vm3060_vm7, %v14075_v60, %v14073_v39  ;;  %v14078_v35 = vmov %v14073_v39  ;;  %v3374_v28 = vsel %vm3060_vm7, %v3371_v1, %v3373_v59  ;;  %v3376_v26 = vsel %vm3060_vm7, %v3373_v59, %v3375_v51 }
 0x2e3   : > { %v3364_v31 = vsel %vm3060_vm7, %v14078_v35, %v14077_v20  ;;  %v14081_v8 = vmov %v14077_v20  ;;  %v14082_v56 = vmov %v14080_v54  ;;  %v3378_v16 = vsel %vm3060_vm7, %v3375_v51, %v3377_v23  ;;  %v14088_v20 = vld [vmem:[#allocation114_spill] sm:$0xff] }
 0x2e4   : > { %v3366_v34 = vsel %vm3060_vm7, %v14081_v8, %v14080_v54  ;;  %v3368_v61 = vsel %vm3060_vm7, %v14082_v56, %v3367_v24  ;;  %v3380_v15 = vsel %vm3060_vm7, %v3377_v23, %v3379_v58  ;;  %v3382_v55 = vsel %vm3060_vm7, %v3379_v58, %v3381_v3 }
 0x2e5   : > { %v14083_v18 = vrot.slane %v11782_v6, 4  ;;  %v14084_v62 = vrot.slane %v11826_v10, 4  ;;  %v3456_v50 = vadd.f32 %v14087_v42, %v14086_v11  ;;  %v3457_v24 = vadd.f32 %v3362_v47, %v3208_v49 }
 0x2e6   : > { %v3458_v33 = vadd.f32 %v3364_v31, %v3209_v14  ;;  %v3506_v1 = vmul.f32 %v8995_v17, %v14052_v53  ;;  %v3507_v59 = vmul.f32 %v8995_v17, %v11652_v36  ;;  %v3509_v10 = vmul.f32 %v8995_v17, %v11670_v46 }
 0x2e7   : > { %v3384_v0 = vsel %vm3060_vm7, %v3381_v3, %v14083_v18  ;;  %v14085_v7 = vmov %v14083_v18  ;;  %v3508_v3 = vmul.f32 %v8995_v17, %v11635_v27  ;;  %v3510_v6 = vmul.f32 %v8995_v17, %v11659_v43 }
 0x2e8   : > { %v3386_v30 = vsel %vm3060_vm7, %v14085_v7, %v14084_v62  ;;  %v3459_v51 = vadd.f32 %v3366_v34, %v3210_v41  ;;  %v3460_v23 = vadd.f32 %v3368_v61, %v3211_v5  ;;  %v3511_v49 = vmul.f32 %v8995_v17, %v11570_v13  ;;  %v14096_v62 = vld [vmem:[#allocation101_spill] sm:$0xff] }
 0x2e9   : > { %v3512_v14 = vmul.f32 %v8995_v17, %v11567_v48  ;;  %v3461_v58 = vadd.f32 %v3370_v25, %v3212_v44  ;;  %v3462_v39 = vadd.f32 %v3372_v38, %v3213_v22  ;;  %v3463_v21 = vadd.f32 %v3374_v28, %v3214_v37  ;;  %v14089_v22 = vld [vmem:[#allocation89_spill] sm:$0xff]  ;;  %v14091_v25 = vld [vmem:[#allocation91_spill] sm:$0xff] }
 0x2ea   : > { %v3513_v60 = vmul.f32 %v8995_v17, %v11642_v2  ;;  %v3464_v47 = vadd.f32 %v3376_v26, %v3215_v45  ;;  %v3465_v57 = vadd.f32 %v3378_v16, %v3216_v40  ;;  %v3616_v35 = vrot.slane %v14088_v20, 5  ;;  %v14093_v40 = vld [vmem:[#allocation78_spill] sm:$0xff] }
 0x2eb   : > { %v3618_v31 = vrot.slane %v3506_v1, 5  ;;  %v3620_v52 = vrot.slane %v3507_v59, 5  ;;  %v3622_v41 = vrot.slane %v3508_v3, 5  ;;  %v3624_v5 = vrot.slane %v3509_v10, 5 }
 0x2ec   : > { %v3626_v54 = vrot.slane %v3510_v6, 5  ;;  %v3466_v8 = vadd.f32 %v3380_v15, %v3217_v12  ;;  %v3467_v34 = vadd.f32 %v3382_v55, %v3218_v19  ;;  %v3628_v56 = vrot.slane %v3511_v49, 5 }
 0x2ed   : > { %v3630_v61 = vrot.slane %v3512_v14, 5  ;;  %v3468_v18 = vadd.f32 %v3384_v0, %v3219_v4  ;;  %v3469_v44 = vadd.f32 %v3386_v30, %v3220_v29  ;;  %v14090_v37 = vrot.slane %v14089_v22, 5 }
 0x2ee   : > { %v14092_v38 = vrot.slane %v14091_v25, 5  ;;  %v3632_v45 = vrot.slane %v3513_v60, 5  ;;  %v14094_v28 = vrot.slane %v14093_v40, 5  ;;  %v14097_v12 = vrot.slane %v14096_v62, 5  ;;  %v14110_v62 = vld [vmem:[#allocation115_spill] sm:$0xff] }
 0x2ef   : > { %v14095_v26 = vmov %v14090_v37  ;;  %v3619_v55 = vsel %vm838_vm0, %v3616_v35, %v3618_v31  ;;  %v3621_v0 = vsel %vm838_vm0, %v3618_v31, %v3620_v52  ;;  %v3623_v7 = vsel %vm838_vm0, %v3620_v52, %v3622_v41  ;;  %v14105_v31 = vld [vmem:[#allocation99_spill] sm:$0xff]  ;;  %v14106_v52 = vld [vmem:[#allocation102_spill] sm:$0xff] }
 0x2f0   : > { %v3611_v17 = vsel %vm838_vm0, %v14092_v38, %v14090_v37  ;;  %v3613_v16 = vsel %vm838_vm0, %v14095_v26, %v14094_v28  ;;  %v14098_v19 = vmov %v14094_v28  ;;  %v14099_v29 = vmov %v14097_v12  ;;  %v14108_v38 = vld [vmem:[#allocation81_spill] sm:$0xff] }
 0x2f1   : > { %v3615_v4 = vsel %vm838_vm0, %v14098_v19, %v14097_v12  ;;  %v3617_v15 = vsel %vm838_vm0, %v14099_v29, %v3616_v35  ;;  %v3625_v30 = vsel %vm838_vm0, %v3622_v41, %v3624_v5  ;;  %v3627_v11 = vsel %vm838_vm0, %v3624_v5, %v3626_v54 }
 0x2f2   : > { %v3629_v42 = vsel %vm838_vm0, %v3626_v54, %v3628_v56  ;;  %v3631_v1 = vsel %vm838_vm0, %v3628_v56, %v3630_v61  ;;  %v14100_v59 = vrot.slane %v11848_v32, 5  ;;  %v14101_v3 = vrot.slane %v11786_v9, 5 }
 0x2f3   : > { %v14102_v6 = vrot.slane %v11717_v63, 5  ;;  %v3633_v60 = vsel %vm838_vm0, %v3630_v61, %v3632_v45  ;;  %v3708_v41 = vadd.f32 %v14106_v52, %v14105_v31  ;;  %v3709_v5 = vadd.f32 %v3611_v17, %v3456_v50  ;;  %v14107_v63 = vld [vmem:[#allocation68_spill] sm:$0xff] }
 0x2f4   : > { %v3637_v10 = vsel %vm838_vm0, %v14101_v3, %v14100_v59  ;;  %v14103_v49 = vmov %v14100_v59  ;;  %v14104_v20 = vmov %v14101_v3  ;;  %v3710_v54 = vadd.f32 %v3613_v16, %v3457_v24  ;;  %v14118_v59 = vld [vmem:[#allocation60_spill] sm:$0xff] }
 0x2f5   : > { %v3639_v14 = vsel %vm838_vm0, %v14103_v49, %v14102_v6  ;;  %v3635_v35 = vsel %vm838_vm0, %v3632_v45, %v14104_v20  ;;  %v3711_v56 = vadd.f32 %v3615_v4, %v3458_v33  ;;  %v3712_v22 = vadd.f32 %v3617_v15, %v3459_v51  ;;  %v14111_v4 = vld [vmem:[#allocation92_spill] sm:$0xff]  ;;  %v14113_v15 = vld [vmem:[#allocation66_spill] sm:$0xff]  ;;  %v14122_v20 = vld [vmem:[#allocation83_spill] sm:$0xff] }
 0x2f6   : > { %v3713_v37 = vadd.f32 %v3619_v55, %v3460_v23  ;;  %v3714_v25 = vadd.f32 %v3621_v0, %v3461_v58  ;;  %v3758_v32 = vmul.f32 %v14108_v38, %v14107_v63  ;;  %v3759_v40 = vmul.f32 %v14108_v38, %v14052_v53  ;;  %v14115_v0 = vld [vmem:[#allocation90_spill] sm:$0xff] }
 0x2f7   : > { %v3760_v9 = vmul.f32 %v14108_v38, %v11652_v36  ;;  %v3715_v61 = vadd.f32 %v3623_v7, %v3462_v39  ;;  %v3716_v45 = vadd.f32 %v3625_v30, %v3463_v21  ;;  %v3717_v28 = vadd.f32 %v3627_v11, %v3464_v47  ;;  %v14109_v21 = vld [vmem:[#allocation103_spill] sm:$0xff] }
 0x2f8   : > { %v3761_v50 = vmul.f32 %v14108_v38, %v11635_v27  ;;  %v3718_v24 = vadd.f32 %v3629_v42, %v3465_v57  ;;  %v12121_v33 = vadd.f32 %v3631_v1, %v3466_v8  ;;  %v3762_v51 = vmul.f32 %v14108_v38, %v11670_v46 }
 0x2f9   : > { %v3763_v23 = vmul.f32 %v14108_v38, %v11659_v43  ;;  %v12127_v58 = vadd.f32 %v3633_v60, %v3467_v34  ;;  %v12129_v17 = vadd.f32 %v3635_v35, %v3468_v18  ;;  %v3764_v39 = vmul.f32 %v14108_v38, %v11570_v13  ;;  %v14123_v35 = vld [vmem:[#allocation84_spill] sm:$0xff] }
 0x2fa   : > { %v3868_v47 = vrot.slane %v14109_v21, 6  ;;  %v12134_v26 = vadd.f32 %v3637_v10, %v3469_v44  ;;  %v3870_v57 = vrot.slane %v3758_v32, 6  ;;  %v3872_v8 = vrot.slane %v3759_v40, 6 }
 0x2fb   : > { %v3874_v16 = vrot.slane %v3760_v9, 6  ;;  %v12137_v12 = vadd.f32 %v3639_v14, %v14110_v62  ;;  %v12141_v19 = vmul.f32 %v14108_v38, %v11567_v48  ;;  %v12145_v34 = vmul.f32 %v14108_v38, %v11642_v2 }
 0x2fc   : > { %v3876_v18 = vrot.slane %v3761_v50, 6  ;;  %v14112_v29 = vrot.slane %v14111_v4, 6  ;;  %v14114_v44 = vrot.slane %v14113_v15, 6  ;;  %v14116_v7 = vrot.slane %v14115_v0, 6  ;;  %v14126_v15 = vld [vmem:[#allocation32_spill] sm:$0xff] }
 0x2fd   : > { %v3878_v42 = vrot.slane %v3762_v51, 6  ;;  %v3880_v1 = vrot.slane %v3763_v23, 6  ;;  %v14119_v3 = vrot.slane %v14118_v59, 6  ;;  %v3882_v60 = vrot.slane %v3764_v39, 6  ;;  %v12175_v23 = vld [vmem:[%s13310_s7] ss:$0 sm:$0xff] }
 0x2fe   : > { %v3863_v55 = vsel %vm3814_vm8, %v14114_v44, %v14112_v29  ;;  %v14117_v30 = vmov %v14112_v29  ;;  %v14120_v10 = vmov %v14116_v7  ;;  %v3961_v31 = vadd.f32 %v14123_v35, %v14122_v20  ;;  %v14124_v39 = vld [vmem:[#allocation58_spill] sm:$0xff]  ;;  %v14127_v0 = vld [vmem:[#allocation64_spill] sm:$0xff] }
 0x2ff   : > { %v3865_v11 = vsel %vm3814_vm8, %v14117_v30, %v14116_v7  ;;  %v3867_v6 = vsel %vm3814_vm8, %v14120_v10, %v14119_v3  ;;  %v14121_v49 = vmov %v14119_v3  ;;  %v3871_v52 = vsel %vm3814_vm8, %v3868_v47, %v3870_v57  ;;  %v12188_v29 = vld [vmem:[%s13311_s8] ss:$0 sm:$0xff] }
 0x300   : > { %v3869_v14 = vsel %vm3814_vm8, %v14121_v49, %v3868_v47  ;;  %v3873_v38 = vsel %vm3814_vm8, %v3870_v57, %v3872_v8  ;;  %v3875_v32 = vsel %vm3814_vm8, %v3872_v8, %v3874_v16  ;;  %v3962_v40 = vadd.f32 %v3863_v55, %v3708_v41  ;;  %v14125_v8 = vld [vmem:[#allocation63_spill] sm:$0xff] }
 0x301   : > { %v3877_v9 = vsel %vm3814_vm8, %v3874_v16, %v3876_v18  ;;  %v3884_v50 = vrot.slane %v12141_v19, 6  ;;  %v3963_v51 = vadd.f32 %v3865_v11, %v3709_v5  ;;  %v4007_v21 = vmul.f32 %v12175_v23, %v14124_v39 }
 0x302   : > { %v3879_v47 = vsel %vm3814_vm8, %v3876_v18, %v3878_v42  ;;  %v3881_v57 = vsel %vm3814_vm8, %v3878_v42, %v3880_v1  ;;  %v3964_v62 = vadd.f32 %v3867_v6, %v3710_v54  ;;  %v4008_v41 = vmul.f32 %v12175_v23, %v14125_v8 }
 0x303   : > { %v3883_v16 = vsel %vm3814_vm8, %v3880_v1, %v3882_v60  ;;  %v3965_v4 = vadd.f32 %v3869_v14, %v3711_v56  ;;  %v4009_v5 = vmul.f32 %v12175_v23, %v3961_v31  ;;  %v12192_v44 = vadd.f32 %v12188_v29, %v14126_v15 }
 0x304   : > { %v3886_v18 = vrot.slane %v12145_v34, 6  ;;  %v3966_v54 = vadd.f32 %v3871_v52, %v3712_v22  ;;  %v4010_v55 = vmul.f32 %v12175_v23, %v3962_v40  ;;  %v12198_v7 = vadd.f32 %v12188_v29, %v14127_v0  ;;  %v12232_v40 = vpop.permute.xlu1 %4496  ;;  %v14128_v0 = vld [vmem:[#allocation38_spill] sm:$0xff] }
 0x305   : > { %v3885_v56 = vsel %vm3814_vm8, %v3882_v60, %v3884_v50  ;;  %v3967_v30 = vadd.f32 %v3873_v38, %v3713_v37  ;;  %v4011_v11 = vmul.f32 %v12175_v23, %v3963_v51  ;;  %v12205_v42 = vadd.f32 %v12188_v29, %v4007_v21 }
 0x306   : > { %v3968_v1 = vadd.f32 %v3875_v32, %v3714_v25  ;;  %v3969_v59 = vadd.f32 %v3877_v9, %v3715_v61  ;;  %v4012_v22 = vmul.f32 %v12175_v23, %v3964_v62  ;;  %v12209_v3 = vadd.f32 %v12188_v29, %v4008_v41 }
 0x307   : > { %v3970_v10 = vadd.f32 %v3879_v47, %v3716_v45  ;;  %v4013_v6 = vmul.f32 %v12175_v23, %v3965_v4  ;;  %v12213_v49 = vadd.f32 %v12188_v29, %v4009_v5  ;;  %v6810_v37 = vmul.f32 -1.442695, %v12192_v44 }
 0x308   : > { %v3971_v14 = vadd.f32 %v3881_v57, %v3717_v28  ;;  %v4014_v60 = vmul.f32 %v12175_v23, %v3966_v54  ;;  %v12218_v20 = vadd.f32 %v12188_v29, %v4010_v55  ;;  %v6811_v25 = vmul.f32 -1.442695, %v12198_v7 }
 0x309   : > { %v3972_v61 = vadd.f32 %v3883_v16, %v3718_v24  ;;  %v4015_v35 = vmul.f32 %v12175_v23, %v3967_v30  ;;  %v12223_v45 = vadd.f32 %v12188_v29, %v4011_v11  ;;  %v6812_v31 = vmul.f32 -1.442695, %v12205_v42  ;;  %v12265_v11 = vpop.permute.xlu1 %4501 }
 0x30a   : > { %v3973_v52 = vadd.f32 %v3885_v56, %v12121_v33  ;;  %v4016_v38 = vmul.f32 %v12175_v23, %v3968_v1  ;;  %v12229_v28 = vadd.f32 %v12188_v29, %v4012_v22  ;;  %v6813_v32 = vmul.f32 -1.442695, %v12209_v3  ;;  %v14129_v56 = vld [vmem:[#allocation4_spill] sm:$0xff]  ;;  %v14130_v1 = vld [vmem:[#allocation79_spill] sm:$0xff]  ;;  %v14132_v22 = vld [vmem:[#allocation77_spill] sm:$0xff] }
 0x30b   : > { %v4017_v24 = vmul.f32 %v12175_v23, %v3969_v59  ;;  %v12236_v9 = vadd.f32 %v12188_v29, %v4013_v6  ;;  %8060 = vpow2.f32 %v6810_v37  ;;  %v6814_v51 = vmul.f32 -1.442695, %v12213_v49 }
 0x30c   : > { %v4018_v39 = vmul.f32 %v12175_v23, %v3970_v10  ;;  %v12241_v33 = vadd.f32 %v12188_v29, %v4014_v60  ;;  %8062 = vpow2.f32 %v6811_v25  ;;  %v6815_v21 = vmul.f32 -1.442695, %v12218_v20 }
 0x30d   : > { %v4019_v47 = vmul.f32 %v12175_v23, %v3971_v14  ;;  %v12246_v57 = vadd.f32 %v12188_v29, %v4015_v35  ;;  %8064 = vpow2.f32 %v6812_v31  ;;  %v6816_v62 = vmul.f32 -1.442695, %v12223_v45  ;;  %v12306_v34 = vpop.permute.xlu1 %4511 }
 0x30e   : > { %v4020_v8 = vmul.f32 %v12175_v23, %v3972_v61  ;;  %v12251_v41 = vadd.f32 %v12188_v29, %v4016_v38  ;;  %8066 = vpow2.f32 %v6813_v32  ;;  %v6817_v16 = vmul.f32 -1.442695, %v12229_v28 }
 0x30f   : > { %v4021_v4 = vmul.f32 %v12175_v23, %v3973_v52  ;;  %v12256_v5 = vadd.f32 %v12188_v29, %v4017_v24  ;;  %8068 = vpow2.f32 %v6814_v51  ;;  %v6818_v15 = vmul.f32 -1.442695, %v12236_v9  ;;  %v14134_v52 = vld [vmem:[#allocation30_spill] sm:$0xff] }
 0x310   : > { %v12260_v54 = vadd.f32 %v12188_v29, %v4018_v39  ;;  %8070 = vpow2.f32 %v6815_v21  ;;  %v6819_v55 = vmul.f32 -1.442695, %v12241_v33  ;;  %v4673_v30 = vadd.f32 %v14129_v56, %v14128_v0 }
 0x311   : > { %v14131_v59 = vrot.slane %v14130_v1, 6  ;;  %v14133_v10 = vrot.slane %v14132_v22, 6  ;;  %v12273_v37 = vadd.f32 %v12188_v29, %v4019_v47  ;;  %8072 = vpow2.f32 %v6816_v62  ;;  %v14136_v47 = vld [vmem:[#allocation73_spill] sm:$0xff]  ;;  %v14140_v22 = vld [vmem:[#allocation72_spill] sm:$0xff]  ;;  %v14142_v1 = vld [vmem:[#allocation75_spill] sm:$0xff] }
 0x312   : > { %v6820_v14 = vmul.f32 -1.442695, %v12246_v57  ;;  %v3887_v60 = vsel %vm3814_vm8, %v3884_v50, %v3886_v18  ;;  %v12282_v25 = vadd.f32 %v12188_v29, %v4020_v8  ;;  %8074 = vpow2.f32 %v6817_v16  ;;  %v12301_v16 = vpop.permute.xlu0 %4506 }
 0x313   : > { %v3891_v6 = vsel %vm3814_vm8, %v14133_v10, %v14131_v59  ;;  %v6821_v61 = vmul.f32 -1.442695, %v12251_v41  ;;  %v12286_v35 = vadd.f32 %v12188_v29, %v4021_v4  ;;  %8076 = vpow2.f32 %v6818_v15 }
 0x314   : > { %v6822_v31 = vmul.f32 -1.442695, %v12256_v5  ;;  %v4674_v38 = vsel %vm4650_vm9, %v14134_v52, 0.0  ;;  %v3974_v32 = vadd.f32 %v3887_v60, %v12127_v58  ;;  %8078 = vpow2.f32 %v6819_v55 }
 0x315   : > { %v6823_v19 = vmul.f32 -1.442695, %v12260_v54  ;;  %v4675_v50 = vadd.f32 %v4674_v38, %v4673_v30  ;;  %v8061_v24 = vpop.eup %8060  ;;  %v14135_v51 = vmov %v14133_v10  ;;  %8080 = vpow2.f32 %v6820_v14  ;;  %v14141_v10 = vld [vmem:[#allocation54_spill] sm:$0xff] }
 0x316   : > { %v3889_v39 = vsel %vm3814_vm8, %v3886_v18, %v14135_v51  ;;  %v6824_v21 = vmul.f32 -1.442695, %v12273_v37  ;;  %v4676_v62 = vsel %vm4650_vm9, %v14136_v47, 0.0  ;;  %v8063_v8 = vpop.eup %8062  ;;  %v3976_v4 = vadd.f32 %v3891_v6, %v12134_v26  ;;  %v14137_v18 = vld [vmem:[#allocation70_spill] sm:$0xff]  ;;  %v14143_v51 = vld [vmem:[#allocation65_spill] sm:$0xff] }
 0x317   : > { %v3975_v58 = vadd.f32 %v3889_v39, %v12129_v17  ;;  %8082 = vpow2.f32 %v6821_v61  ;;  %v6825_v15 = vmul.f32 -1.442695, %v12282_v25  ;;  %v8065_v55 = vpop.eup %8064  ;;  %v14138_v0 = vrot.slane %v14137_v18, 6 }
 0x318   : > { %v14139_v56 = vmov %v14131_v59  ;;  %8084 = vpow2.f32 %v6822_v31  ;;  %v6826_v59 = vmul.f32 -1.442695, %v12286_v35  ;;  %v4623_v17 = vmul.f32 %v14141_v10, %v14140_v22  ;;  %v8067_v14 = vpop.eup %8066  ;;  %v14147_v10 = vld [vmem:[#allocation7_spill] sm:$0xff] }
 0x319   : > { %v3893_v30 = vsel %vm3814_vm8, %v14139_v56, %v14138_v0  ;;  %v4022_v26 = vmul.f32 %v12175_v23, %v3974_v32  ;;  %8086 = vpow2.f32 %v6823_v19  ;;  %v4217_v6 = vadd.f32 1.0, %v8061_v24  ;;  %v8069_v61 = vpop.eup %8068  ;;  %v14144_v19 = vld [vmem:[#allocation11_spill] sm:$0xff] }
 0x31a   : > { %v4677_v60 = vadd.f32 %v4676_v62, %v4675_v50  ;;  %v3977_v52 = vadd.f32 %v3893_v30, %v12137_v12  ;;  %8088 = vpow2.f32 %v6824_v21  ;;  %v4218_v38 = vadd.f32 1.0, %v8063_v8  ;;  %v8071_v31 = vpop.eup %8070  ;;  %v14145_v50 = vld [vmem:[#allocation74_spill] sm:$0xff]  ;;  %v12327_v62 = vpop.permute.xlu0 %4516 }
 0x31b   : > { %v4624_v39 = vmul.f32 %v14143_v51, %v14142_v1  ;;  %v4023_v47 = vmul.f32 %v12175_v23, %v3975_v58  ;;  %v4024_v18 = vmul.f32 %v12175_v23, %v3976_v4  ;;  %8090 = vpow2.f32 %v6825_v15  ;;  %v8073_v56 = vpop.eup %8072 }
 0x31c   : > { %v4219_v0 = vadd.f32 1.0, %v8065_v55  ;;  %8092 = vpow2.f32 %v6826_v59  ;;  %v4220_v32 = vadd.f32 1.0, %v8067_v14  ;;  %v12324_v24 = vmul.f32 %v14145_v50, %v14144_v19  ;;  %v8075_v21 = vpop.eup %8074  ;;  %v12332_v55 = vpop.permute.xlu1 %4521  ;;  %v14146_v59 = vld [vmem:[#allocation45_spill] sm:$0xff]  ;;  %v14148_v19 = vld [vmem:[#allocation82_spill] sm:$0xff] }
 0x31d   : > { %v4678_v12 = vsel %vm4650_vm9, %v4623_v17, 0.0  ;;  %v12330_v8 = vadd.f32 %v12188_v29, %v4022_v26  ;;  %v4221_v58 = vadd.f32 1.0, %v8069_v61  ;;  %8094 = vrcp.f32 %v4217_v6  ;;  %v8077_v15 = vpop.eup %8076 }
 0x31e   : > { %v4679_v4 = vadd.f32 %v4678_v12, %v4677_v60  ;;  %v4222_v30 = vadd.f32 1.0, %v8071_v31  ;;  %8096 = vrcp.f32 %v4218_v38  ;;  %v12336_v14 = vmul.f32 %v14147_v10, %v14146_v59  ;;  %v8079_v51 = vpop.eup %8078  ;;  %v14149_v38 = vld [vmem:[#allocation112_spill] sm:$0xff] }
 0x31f   : > { %v4680_v17 = vsel %vm4650_vm9, %v4624_v39, 0.0  ;;  %v4026_v50 = vmul.f32 %v12175_v23, %v14148_v19  ;;  %v4025_v26 = vmul.f32 %v12175_v23, %v3977_v52  ;;  %v4223_v61 = vadd.f32 1.0, %v8073_v56  ;;  %v8081_v6 = vpop.eup %8080 }
 0x320   : > { %8098 = vrcp.f32 %v4219_v0  ;;  %v12343_v60 = vadd.f32 %v12188_v29, %v4023_v47  ;;  %v4224_v31 = vadd.f32 1.0, %v8075_v21  ;;  %v4625_v12 = vmul.f32 %v14149_v38, %v12324_v24  ;;  %v14150_v0 = vld [vmem:[#allocation61_spill] sm:$0xff]  ;;  %v12353_v21 = vpop.permute.xlu0 %4526  ;;  %v12357_v13 = vpop.permute.xlu1 %4531 }
 0x321   : > { %8100 = vrcp.f32 %v4220_v32  ;;  %v8083_v59 = vpop.eup %8082  ;;  %v12348_v39 = vadd.f32 %v12188_v29, %v4024_v18  ;;  %v6827_v10 = vmul.f32 -1.442695, %v12330_v8  ;;  %v4681_v19 = vadd.f32 %v4680_v17, %v4679_v4  ;;  %v14151_v32 = vld [vmem:[#allocation76_spill] sm:$0xff] }
 0x322   : > { %8102 = vrcp.f32 %v4221_v58  ;;  %v8085_v52 = vpop.eup %8084  ;;  %v4225_v56 = vadd.f32 1.0, %v8077_v15  ;;  %v4626_v47 = vmul.f32 %v14150_v0, %v12336_v14  ;;  %v4027_v38 = vmul.f32 %v12175_v23, %v14151_v32 }
 0x323   : > { %8104 = vrcp.f32 %v4222_v30  ;;  %v8087_v2 = vpop.eup %8086  ;;  %v4226_v48 = vadd.f32 1.0, %v8079_v51  ;;  %v12360_v58 = vadd.f32 %v12188_v29, %v4026_v50  ;;  %v6828_v4 = vmul.f32 -1.442695, %v12343_v60 }
 0x324   : > { %8106 = vrcp.f32 %v4223_v61  ;;  %v8089_v18 = vpop.eup %8088  ;;  %v4682_v15 = vsel %vm4650_vm9, %v4625_v12, 0.0  ;;  %v12365_v17 = vadd.f32 %v12188_v29, %v4025_v26  ;;  %v6829_v23 = vmul.f32 -1.442695, %v12348_v39 }
 0x325   : > { %8108 = vrcp.f32 %v4224_v31  ;;  %v8091_v30 = vpop.eup %8090  ;;  %v4683_v51 = vadd.f32 %v4682_v15, %v4681_v19  ;;  %v4227_v0 = vadd.f32 1.0, %v8081_v6  ;;  %v4684_v32 = vsel %vm4650_vm9, %v4626_v47, 0.0  ;;  %v12376_v19 = vpop.permute.xlu0 %4536 }
 0x326   : > { %8110 = vpow2.f32 %v6827_v10  ;;  %v8093_v61 = vpop.eup %8092  ;;  %v4228_v43 = vadd.f32 1.0, %v8083_v59  ;;  %v6831_v31 = vmul.f32 -1.442695, %v12360_v58  ;;  %v12371_v12 = vadd.f32 %v12188_v29, %v4027_v38  ;;  %v12382_v47 = vpop.permute.xlu1 %4541 }
 0x327   : > { %8112 = vrcp.f32 %v4225_v56  ;;  %v8095_v50 = vpop.eup %8094  ;;  %v6830_v6 = vmul.f32 -1.442695, %v12365_v17  ;;  %v4229_v15 = vadd.f32 1.0, %v8085_v52 }
 0x328   : > { %8114 = vrcp.f32 %v4226_v48  ;;  %v8097_v46 = vpop.eup %8096  ;;  %v12374_v26 = vmul.f32 %v8095_v50, %v12192_v44  ;;  %v4685_v48 = vadd.f32 %v4684_v32, %v4683_v51 }
 0x329   : > { %8116 = vpow2.f32 %v6828_v4  ;;  %v12380_v56 = vmul.f32 %v8097_v46, %v12198_v7  ;;  %v4230_v4 = vadd.f32 1.0, %v8087_v2 }
 0x32a   : > { %v8099_v10 = vpop.eup %8098  ;;  %8118 = vpow2.f32 %v6829_v23  ;;  %v4627_v44 = vmul.f32 %v12232_v40, %v12374_v26 }
 0x32b   : > { %v8101_v59 = vpop.eup %8100  ;;  %8120 = vrcp.f32 %v4227_v0  ;;  %v12385_v29 = vmul.f32 %v8099_v10, %v12205_v42  ;;  %v4628_v46 = vmul.f32 %v12265_v11, %v12380_v56  ;;  %v4231_v11 = vadd.f32 1.0, %v8089_v18 }
 0x32c   : > { %v8103_v38 = vpop.eup %8102  ;;  %8122 = vrcp.f32 %v4228_v43  ;;  %v12390_v23 = vmul.f32 %v8101_v59, %v12209_v3  ;;  %v4686_v51 = vsel %vm4650_vm9, %v4627_v44, 0.0  ;;  %v6832_v43 = vmul.f32 -1.442695, %v12371_v12 }
 0x32d   : > { %v8105_v7 = vpop.eup %8104  ;;  %8124 = vpow2.f32 %v6831_v31  ;;  %v12395_v52 = vmul.f32 %v8103_v38, %v12213_v49  ;;  %v4629_v42 = vmul.f32 %v12301_v16, %v12385_v29  ;;  %v4687_v3 = vadd.f32 %v4686_v51, %v4685_v48  ;;  %v4547_v16 = vpop.permute.xlu0 %4546 }
 0x32e   : > { %v8107_v40 = vpop.eup %8106  ;;  %8126 = vpow2.f32 %v6830_v6  ;;  %v12402_v2 = vmul.f32 %v8105_v7, %v12218_v20  ;;  %v4630_v49 = vmul.f32 %v12306_v34, %v12390_v23  ;;  %v4688_v32 = vsel %vm4650_vm9, %v4628_v46, 0.0  ;;  %v4552_v20 = vpop.permute.xlu1 %4551 }
 0x32f   : > { %v8109_v0 = vpop.eup %8108  ;;  %8128 = vrcp.f32 %v4229_v15  ;;  %v4232_v31 = vadd.f32 1.0, %v8091_v30  ;;  %v12408_v10 = vmul.f32 %v8107_v40, %v12223_v45  ;;  %v4689_v6 = vadd.f32 %v4688_v32, %v4687_v3 }
 0x330   : > { %v8111_v50 = vpop.eup %8110  ;;  %8130 = vrcp.f32 %v4230_v4  ;;  %v12411_v48 = vmul.f32 %v8109_v0, %v12229_v28  ;;  %v4631_v18 = vmul.f32 %v12327_v62, %v12395_v52  ;;  %v4632_v34 = vmul.f32 %v12332_v55, %v12402_v2 }
 0x331   : > { %v8113_v59 = vpop.eup %8112  ;;  %v4690_v15 = vsel %vm4650_vm9, %v4629_v42, 0.0  ;;  %8132 = vpow2.f32 %v6832_v43  ;;  %v4233_v45 = vadd.f32 1.0, %v8093_v61  ;;  %v4234_v4 = vadd.f32 1.0, %v8111_v50  ;;  %v4557_v0 = vpop.permute.xlu0 %4556 }
 0x332   : > { %v8115_v44 = vpop.eup %8114  ;;  %v4691_v30 = vadd.f32 %v4690_v15, %v4689_v6  ;;  %8134 = vrcp.f32 %v4231_v11  ;;  %v4692_v46 = vsel %vm4650_vm9, %v4630_v49, 0.0  ;;  %v12420_v28 = vmul.f32 %v8113_v59, %v12236_v9  ;;  %v4562_v49 = vpop.permute.xlu1 %4561 }
 0x333   : > { %v8117_v38 = vpop.eup %8116  ;;  %8136 = vrcp.f32 %v4232_v31  ;;  %v4633_v62 = vmul.f32 %v12353_v21, %v12408_v10  ;;  %v12425_v42 = vmul.f32 %v8115_v44, %v12241_v33  ;;  %v4634_v61 = vmul.f32 %v12357_v13, %v12411_v48 }
 0x334   : > { %v8119_v7 = vpop.eup %8118  ;;  %v4693_v55 = vadd.f32 %v4692_v46, %v4691_v30  ;;  %v4694_v40 = vsel %vm4650_vm9, %v4631_v18, 0.0  ;;  %v4696_v43 = vsel %vm4650_vm9, %v4632_v34, 0.0  ;;  %v4235_v32 = vadd.f32 1.0, %v8117_v38 }
 0x335   : > { %v8121_v51 = vpop.eup %8120  ;;  %v4236_v50 = vadd.f32 1.0, %v8119_v7  ;;  %8138 = vrcp.f32 %v4233_v45  ;;  %v4635_v13 = vmul.f32 %v12376_v19, %v12420_v28  ;;  %v4636_v18 = vmul.f32 %v12382_v47, %v12425_v42 }
 0x336   : > { %v8123_v3 = vpop.eup %8122  ;;  %v4695_v11 = vadd.f32 %v4694_v40, %v4693_v55  ;;  %8140 = vrcp.f32 %v4234_v4  ;;  %v12432_v33 = vmul.f32 %v8121_v51, %v12246_v57  ;;  %v4698_v34 = vsel %vm4650_vm9, %v4633_v62, 0.0  ;;  %v4567_v4 = vpop.permute.xlu0 %4566 }
 0x337   : > { %v8125_v9 = vpop.eup %8124  ;;  %v12437_v59 = vmul.f32 %v8123_v3, %v12251_v41  ;;  %v4700_v15 = vsel %vm4650_vm9, %v4634_v61, 0.0  ;;  %8142 = vrcp.f32 %v4235_v32  ;;  %v4572_v47 = vpop.permute.xlu1 %4571  ;;  %v4702_v51 = vsel %vm4650_vm9, %v4635_v13, 0.0 }
 0x338   : > { %v8127_v21 = vpop.eup %8126  ;;  %v4697_v31 = vadd.f32 %v4696_v43, %v4695_v11  ;;  %v4238_v30 = vadd.f32 1.0, %v8125_v9  ;;  %8144 = vrcp.f32 %v4236_v50  ;;  %v4637_v41 = vmul.f32 %v4547_v16, %v12432_v33 }
 0x339   : > { %v8129_v6 = vpop.eup %8128  ;;  %v4237_v57 = vadd.f32 1.0, %v8127_v21  ;;  %v4638_v55 = vmul.f32 %v4552_v20, %v12437_v59  ;;  %v4704_v61 = vsel %vm4650_vm9, %v4636_v18, 0.0 }
 0x33a   : > { %v8131_v44 = vpop.eup %8130  ;;  %v4699_v38 = vadd.f32 %v4698_v34, %v4697_v31  ;;  %v12444_v19 = vmul.f32 %v8129_v6, %v12256_v5  ;;  %8146 = vrcp.f32 %v4238_v30  ;;  %v4706_v32 = vsel %vm4650_vm9, %v4637_v41, 0.0  ;;  %v4577_v13 = vpop.permute.xlu0 %4576 }
 0x33b   : > { %v8133_v45 = vpop.eup %8132  ;;  %v12448_v62 = vmul.f32 %v8131_v44, %v12260_v54  ;;  %8148 = vrcp.f32 %v4237_v57  ;;  %v4708_v50 = vsel %vm4650_vm9, %v4638_v55, 0.0  ;;  %v4582_v6 = vpop.permute.xlu1 %4581 }
 0x33c   : > { %v4701_v46 = vadd.f32 %v4700_v15, %v4699_v38  ;;  %v8135_v7 = vpop.eup %8134  ;;  %v4239_v5 = vadd.f32 1.0, %v8133_v45  ;;  %v4639_v16 = vmul.f32 %v4557_v0, %v12444_v19 }
 0x33d   : > { %v8137_v40 = vpop.eup %8136  ;;  %v12454_v3 = vmul.f32 %v8135_v7, %v12273_v37  ;;  %v4640_v20 = vmul.f32 %v4562_v49, %v12448_v62 }
 0x33e   : > { %v4703_v43 = vadd.f32 %v4702_v51, %v4701_v46  ;;  %v12458_v54 = vmul.f32 %v8137_v40, %v12282_v25  ;;  %8150 = vrcp.f32 %v4239_v5  ;;  %v4710_v15 = vsel %vm4650_vm9, %v4639_v16, 0.0  ;;  %v4587_v45 = vpop.permute.xlu0 %4586 }
 0x33f   : > { %v8139_v9 = vpop.eup %8138  ;;  %v4641_v0 = vmul.f32 %v4567_v4, %v12454_v3  ;;  %v4712_v44 = vsel %vm4650_vm9, %v4640_v20, 0.0  ;;  %v4592_v7 = vpop.permute.xlu1 %4591 }
 0x340   : > { %v4705_v11 = vadd.f32 %v4704_v61, %v4703_v43  ;;  %v8141_v21 = vpop.eup %8140  ;;  %v12464_v37 = vmul.f32 %v8139_v9, %v12286_v35  ;;  %v4642_v49 = vmul.f32 %v4572_v47, %v12458_v54 }
 0x341   : > { %v8143_v34 = vpop.eup %8142  ;;  %v12468_v25 = vmul.f32 %v8141_v21, %v12330_v8  ;;  %v4714_v55 = vsel %vm4650_vm9, %v4641_v0, 0.0 }
 0x342   : > { %v4707_v31 = vadd.f32 %v4706_v32, %v4705_v11  ;;  %v8145_v30 = vpop.eup %8144  ;;  %v12474_v35 = vmul.f32 %v8143_v34, %v12343_v60  ;;  %v4643_v4 = vmul.f32 %v4577_v13, %v12464_v37  ;;  %v4716_v51 = vsel %vm4650_vm9, %v4642_v49, 0.0  ;;  %v4597_v20 = vpop.permute.xlu0 %4596 }
 0x343   : > { %v12478_v8 = vmul.f32 %v8145_v30, %v12348_v39  ;;  %v4644_v47 = vmul.f32 %v4582_v6, %v12468_v25 }
 0x344   : > { %v4709_v18 = vadd.f32 %v4708_v50, %v4707_v31  ;;  %v8147_v57 = vpop.eup %8146  ;;  %v4645_v5 = vmul.f32 %v4587_v45, %v12474_v35  ;;  %v4718_v39 = vsel %vm4650_vm9, %v4643_v4, 0.0  ;;  %v4602_v50 = vpop.permute.xlu1 %4601 }
 0x345   : > { %v8149_v46 = vpop.eup %8148  ;;  %v12487_v60 = vmul.f32 %v8147_v57, %v12360_v58  ;;  %v4646_v16 = vmul.f32 %v4592_v7, %v12478_v8  ;;  %v4720_v11 = vsel %vm4650_vm9, %v4644_v47, 0.0 }
 0x346   : > { %v4711_v38 = vadd.f32 %v4710_v15, %v4709_v18  ;;  %v12484_v40 = vmul.f32 %v8149_v46, %v12365_v17  ;;  %v4722_v31 = vsel %vm4650_vm9, %v4645_v5, 0.0  ;;  %v4607_v18 = vpop.permute.xlu0 %4606  ;;  %v4742_v5 = vld [vmem:[%s13313_s10] sm:$0x1] }
 0x347   : > { %v4648_v21 = vmul.f32 %v4602_v50, %v12487_v60  ;;  %v4724_v6 = vsel %vm4650_vm9, %v4646_v16, 0.0 }
 0x348   : > { %v4713_v41 = vadd.f32 %v4712_v44, %v4711_v38  ;;  %v8151_v9 = vpop.eup %8150  ;;  %v4647_v58 = vmul.f32 %v4597_v20, %v12484_v40 }
 0x349   : > { %v12495_v13 = vmul.f32 %v8151_v9, %v12371_v12  ;;  %v4728_v44 = vsel %vm4650_vm9, %v4648_v21, 0.0 }
 0x34a   : > { %v4715_v61 = vadd.f32 %v4714_v55, %v4713_v41  ;;  %v4726_v15 = vsel %vm4650_vm9, %v4647_v58, 0.0  ;;  %v4954_v58 = vld [vmem:[%s13316_s13 + $0x8] sm:$0xff] }
 0x34b   : > { %v4649_v49 = vmul.f32 %v4607_v18, %v12495_v13 }
 0x34c   : > { %v4717_v43 = vadd.f32 %v4716_v51, %v4715_v61  ;;  %v14152_v51 = vmov 0.0   ;;  %v4823_v61 = vld [vmem:[%s13314_s11] sm:$0xf] }
 0x34d   : > { %v4731_v12 = vsel %vm4730_vm11, %v4649_v49, 0.0 }
 0x34e   : > { %v4719_v32 = vadd.f32 %v4718_v39, %v4717_v43  ;;  %v14153_v43 = vmov 0.0|0.0  }
 0x350   : > { %v4721_v17 = vadd.f32 %v4720_v11, %v4719_v32 }
 0x352   : > { %v4723_v0 = vadd.f32 %v4722_v31, %v4721_v17  ;;  %v4953_v17 = vld [vmem:[%s13316_s13] sm:$0xff] }
 0x353   : > { %v7780_v31 = vpack.c.bf16 %v4954_v58, %v4953_v17  ;;  %v5648_v17 = vld [vmem:[%s13319_s16] sm:$0xff]  ;;  %v5649_v58 = vld [vmem:[%s13319_s16 + $0x8] sm:$0xff] }
 0x354   : > { %v4725_v34 = vadd.f32 %v4724_v6, %v4723_v0  ;;  %v4824_v6 = vld [vmem:[%s13315_s12] sm:$0x1] }
 0x356   : > { %v4727_v30 = vadd.f32 %v4726_v15, %v4725_v34 }
 0x358   : > { %v4729_v38 = vadd.f32 %v4728_v44, %v4727_v30 }
 0x35a   : > { %v4732_v57 = vadd.f32 %v4731_v12, %v4729_v38  ;;  %v14154_v38 = vld [vmem:[#allocation3_spill] sm:$0xff] }
 0x35b   : > { %v14155_v12 = vsub.s32 0, %v14154_v38  ;;  %v14169_v38 = vld [vmem:[#allocation71_spill] sm:$0xff] }
 0x35c   : > { %v4733_v45 = vrot.slane %v4732_v57, 4 }
 0x35e   : > { %v4734_v4 = vadd.f32 %v4733_v45, %v4732_v57  ;;  %v14156_v45 = vld [vmem:[#allocation41_spill] sm:$0xff] }
 0x360   : > { %v4735_v41 = vrot.slane %v4734_v4, 2 }
 0x362   : > { %v4736_v46 = vadd.f32 %v4735_v41, %v4734_v4  ;;  %v14157_v41 = vld [vmem:[#allocation12_spill] sm:$0xff] }
 0x364   : > { %v4737_v7 = vrot.slane %v4736_v46, 1 }
 0x366   : > { %v4738_v47 = vadd.f32 %v4737_v7, %v4736_v46  ;;  %v14158_v7 = vld [vmem:[#allocation49_spill] sm:$0xff] }
 0x368   : > { %v4739_v55 = vmul.f32 0.00390625, %v4738_v47 }
 0x36a   : > { %7505 = vmatmul.mubr.msk.f32.vlgmr.msra.gmra.mrb[0].mxu1 %vm4650_vm9, %v4739_v55  ;;  %v14159_v55 = vld [vmem:[#allocation50_spill] sm:$0xff] }
 0x36b   : > { %7509 = vmatprep.mubr.msk.f32.mxu1 %vm8347_vm10, %v14152_v51  ;;  %7508 = vmatpush3.msk.msra.mxu1 %vm3060_vm7, %v4823_v61 }
 0x36c   : > { %7779 = vmatprep.subr.bf16.mxu1 %v14153_v43 }
 0x43d   : > { %v4812_v16 = vpop.f32.mrb[0].mxu1 }
 0x43e   : > { %v4813_v39 = vadd.f32 %v4812_v16, %v4742_v5  ;;  %v7506_v11 = vpop.f32.mrb[1].mxu1  ;;  %v14161_v16 = vld [vmem:[#allocation34_spill] sm:$0xff] }
 0x43f   : > { %v14162_v11 = vld [vmem:[#allocation46_spill] sm:$0xff] }
 0x440   : > { %v6834_v9 = vmul.f32 -1.442695, %v4813_v39 }
 0x442   : > { %8152 = vpow2.f32 %v6834_v9 }
 0x44c   : > { %v8153_v20 = vpop.eup %8152 }
 0x44d   : > { %v4819_v32 = vadd.f32 1.0, %v8153_v20  ;;  %v14163_v20 = vld [vmem:[#allocation48_spill] sm:$0xff] }
 0x44f   : > { %8154 = vrcp.f32 %v4819_v32 }
 0x459   : > { %v8155_v50 = vpop.eup %8154 }
 0x45a   : > { %v4822_v21 = vmul.f32 %v8155_v50, %v4813_v39  ;;  %v14164_v50 = vld [vmem:[#allocation55_spill] sm:$0xff] }
 0x45c   : > { %7510 = vmatmul.mubr.msk.f32.vlgmr.msra.gmra.mrb[2].mxu1 %vm4825_vm12, %v4822_v21 }
 0x45d   : > { %7516 = vmatprep.mubr.msk.f32.mxu1 %vm8347_vm10, %v14152_v51  ;;  %7781 = vmatpush3.bf16.msra.mxu1 %v7780_v31  ;;  %v7783_v31 = vpack.c.bf16 %v5649_v58, %v5648_v17  ;;  %v14173_v58 = vld [vmem:[#allocation8_spill] sm:$0xff] }
 0x45e   : > { %7785 = vmatprep.subr.bf16.mxu1 %v14153_v43  ;;  %v14160_v43 = vld [vmem:[#allocation51_spill] sm:$0xff] }
 0x45f   : > { %7784 = vmatpush3.bf16.msra.mxu0 %v7783_v31 }
 0x52f   : > { %v4898_v0 = vpop.f32.mrb[2].mxu1 }
 0x530   : > { %v4899_v18 = vadd.f32 %v4898_v0, %v4824_v6  ;;  %v7511_v34 = vpop.f32.mrb[3].mxu1  ;;  %v14165_v6 = vld [vmem:[#allocation31_spill] sm:$0xff] }
 0x532   : > { %v6837_v49 = vmul.f32 -1.442695, %v4899_v18  ;;  %v14166_v18 = vld [vmem:[#allocation44_spill] sm:$0xff] }
 0x534   : > { %8156 = vpow2.f32 %v6837_v49  ;;  %v14167_v49 = vld [vmem:[#allocation53_spill] sm:$0xff] }
 0x53e   : > { %v8157_v15 = vpop.eup %8156 }
 0x53f   : > { %v4905_v44 = vadd.f32 1.0, %v8157_v15 }
 0x541   : > { %8158 = vrcp.f32 %v4905_v44  ;;  %v14168_v44 = vld [vmem:[#allocation24_spill] sm:$0xff] }
 0x54b   : > { %v8159_v30 = vpop.eup %8158 }
 0x54c   : > { %v12528_v57 = vrot.slane %v8159_v30, %v14155_v12 }
 0x54e   : > { %v4912_v4 = vmul.f32 %v12528_v57, %v14156_v45  ;;  %v4913_v46 = vmul.f32 %v12528_v57, %v14157_v41  ;;  %v4914_v47 = vmul.f32 %v12528_v57, %v14158_v7  ;;  %v4915_v61 = vmul.f32 %v12528_v57, %v14159_v55  ;;  %v14170_v7 = vld [vmem:[#allocation6_spill] sm:$0xff]  ;;  %v14171_v55 = vld [vmem:[#allocation5_spill] sm:$0xff] }
 0x54f   : > { %v4916_v5 = vmul.f32 %v12528_v57, %v14160_v43  ;;  %v4917_v39 = vmul.f32 %v12528_v57, %v14161_v16  ;;  %v4918_v9 = vmul.f32 %v12528_v57, %v14162_v11  ;;  %v4919_v32 = vmul.f32 %v12528_v57, %v14163_v20 }
 0x550   : > { %7517 = vmatmul.mubr.msk.f32.vlgmr.msra.gmra.mrb[4].mxu1 %vm4650_vm9, %v4912_v4  ;;  %v4920_v21 = vmul.f32 %v12528_v57, %v14164_v50  ;;  %v4921_v0 = vmul.f32 %v12528_v57, %v14165_v6  ;;  %v4922_v34 = vmul.f32 %v12528_v57, %v14166_v18  ;;  %v4923_v15 = vmul.f32 %v12528_v57, %v14167_v49 }
 0x551   : > { %7519 = vmatprep.mubr.msk.f32.mxu1 %vm8347_vm10, %v14152_v51  ;;  %7786 = vmatpush3.bf16.msra.mxu1 %v7783_v31  ;;  %v4924_v30 = vmul.f32 %v12528_v57, %v14168_v44  ;;  %v4925_v12 = vmul.f32 %v12528_v57, %v14169_v38  ;;  %v4926_v45 = vmul.f32 %v12528_v57, %v14140_v22  ;;  %v5490_v31 = vrot.slane %v14173_v58, 3  ;;  %v14174_v44 = vld [vmem:[#allocation20_spill] sm:$0xff] }
 0x552   : > { %v4927_v4 = vmul.f32 %v12528_v57, %v14142_v1  ;;  %v4928_v41 = vmul.f32 %v12528_v57, %v12324_v24  ;;  %v4929_v22 = vmul.f32 %v12528_v57, %v12336_v14  ;;  %v4930_v1 = vmul.f32 %v12528_v57, %v12374_v26 }
 0x553   : > { %v4931_v24 = vmul.f32 %v12528_v57, %v12380_v56  ;;  %v4932_v14 = vmul.f32 %v12528_v57, %v12385_v29  ;;  %v4933_v26 = vmul.f32 %v12528_v57, %v12390_v23  ;;  %v4934_v56 = vmul.f32 %v12528_v57, %v12395_v52 }
 0x554   : > { %7520 = vmatmul.mubr.msk.f32.gmra.mrb[6].mxu1 %vm4650_vm9, %v4913_v46  ;;  %v4935_v29 = vmul.f32 %v12528_v57, %v12402_v2  ;;  %v4936_v23 = vmul.f32 %v12528_v57, %v12408_v10  ;;  %v4937_v52 = vmul.f32 %v12528_v57, %v12411_v48  ;;  %v4938_v2 = vmul.f32 %v12528_v57, %v12420_v28 }
 0x555   : > { %7522 = vmatprep.mubr.msk.f32.mxu1 %vm8347_vm10, %v14152_v51  ;;  %v4939_v10 = vmul.f32 %v12528_v57, %v12425_v42  ;;  %v4940_v48 = vmul.f32 %v12528_v57, %v12432_v33  ;;  %v4941_v28 = vmul.f32 %v12528_v57, %v12437_v59  ;;  %v4942_v42 = vmul.f32 %v12528_v57, %v12444_v19 }
 0x556   : > { %v4943_v33 = vmul.f32 %v12528_v57, %v12448_v62  ;;  %v4944_v59 = vmul.f32 %v12528_v57, %v12454_v3  ;;  %v4945_v19 = vmul.f32 %v12528_v57, %v12458_v54  ;;  %v4946_v62 = vmul.f32 %v12528_v57, %v12464_v37 }
 0x557   : > { %v4947_v3 = vmul.f32 %v12528_v57, %v12468_v25  ;;  %v4948_v54 = vmul.f32 %v12528_v57, %v12474_v35  ;;  %v4949_v37 = vmul.f32 %v12528_v57, %v12478_v8  ;;  %v4950_v25 = vmul.f32 %v12528_v57, %v12484_v40  ;;  %v12744_v40 = vld [vmem:[%s13317_s14] ss:$0 sm:$0xff] }
 0x558   : > { %7523 = vmatmul.mubr.msk.f32.gmra.mrb[8].mxu1 %vm4650_vm9, %v4914_v47  ;;  %v4951_v35 = vmul.f32 %v12528_v57, %v12487_v60  ;;  %v4952_v8 = vmul.f32 %v12528_v57, %v12495_v13  ;;  %v12749_v60 = vld [vmem:[%s13318_s15] ss:$0 sm:$0xff]  ;;  %v5485_v47 = vrot.slane %v14170_v7, 3  ;;  %v5486_v13 = vrot.slane %v14171_v55, 3  ;;  %v14178_v7 = vld [vmem:[#allocation40_spill] sm:$0xff] }
 0x559   : > { %7525 = vmatprep.mubr.msk.f32.mxu1 %vm8347_vm10, %v14152_v51 }
 0x55c   : > { %7526 = vmatmul.mubr.msk.f32.gmra.mrb[10].mxu1 %vm4650_vm9, %v4915_v61 }
 0x55d   : > { %7528 = vmatprep.mubr.msk.f32.mxu1 %vm8347_vm10, %v14152_v51 }
 0x560   : > { %7529 = vmatmul.mubr.msk.f32.gmra.mrb[12].mxu1 %vm4650_vm9, %v4916_v5  ;;  %v5487_v5 = vsel %vm2810_vm6, %v5485_v47, %v5486_v13  ;;  %v5500_v47 = vrot.slane %v14178_v7, 3 }
 0x561   : > { %7531 = vmatprep.mubr.msk.f32.mxu1 %vm8347_vm10, %v14152_v51 }
 0x564   : > { %7532 = vmatmul.mubr.msk.f32.gmra.mrb[14].mxu1 %vm4650_vm9, %v4917_v39  ;;  %v14172_v39 = vld [vmem:[#allocation9_spill] sm:$0xff] }
 0x565   : > { %7534 = vmatprep.mubr.msk.f32.mxu1 %vm8347_vm10, %v14152_v51  ;;  %v5488_v11 = vrot.slane %v14172_v39, 3 }
 0x567   : > { %v5491_v49 = vsel %vm2810_vm6, %v5488_v11, %v5490_v31 }
 0x568   : > { %7535 = vmatmul.mubr.msk.f32.gmra.mrb[16].mxu1 %vm4650_vm9, %v4918_v9 }
 0x569   : > { %7537 = vmatprep.mubr.msk.f32.mxu1 %vm8347_vm10, %v14152_v51 }
 0x56c   : > { %7538 = vmatmul.mubr.msk.f32.gmra.mrb[18].mxu1 %vm4650_vm9, %v4919_v32 }
 0x56d   : > { %7540 = vmatprep.mubr.msk.f32.mxu1 %vm8347_vm10, %v14152_v51 }
 0x570   : > { %7541 = vmatmul.mubr.msk.f32.gmra.mrb[20].mxu1 %vm4650_vm9, %v4920_v21  ;;  %v5489_v21 = vsel %vm2810_vm6, %v5486_v13, %v5488_v11 }
 0x571   : > { %7543 = vmatprep.mubr.msk.f32.mxu1 %vm8347_vm10, %v14152_v51 }
 0x574   : > { %7544 = vmatmul.mubr.msk.f32.gmra.mrb[22].mxu1 %vm4650_vm9, %v4921_v0 }
 0x575   : > { %7546 = vmatprep.mubr.msk.f32.mxu1 %vm8347_vm10, %v14152_v51 }
 0x578   : > { %7547 = vmatmul.mubr.msk.f32.gmra.mrb[24].mxu1 %vm4650_vm9, %v4922_v34 }
 0x579   : > { %7549 = vmatprep.mubr.msk.f32.mxu1 %vm8347_vm10, %v14152_v51 }
 0x57c   : > { %7550 = vmatmul.mubr.msk.f32.gmra.mrb[26].mxu1 %vm4650_vm9, %v4923_v15 }
 0x57d   : > { %7552 = vmatprep.mubr.msk.f32.mxu1 %vm8347_vm10, %v14152_v51 }
 0x580   : > { %7553 = vmatmul.mubr.msk.f32.gmra.mrb[28].mxu1 %vm4650_vm9, %v4924_v30  ;;  %v5492_v30 = vrot.slane %v14174_v44, 3 }
 0x581   : > { %7555 = vmatprep.mubr.msk.f32.mxu1 %vm8347_vm10, %v14152_v51 }
 0x584   : > { %7556 = vmatmul.mubr.msk.f32.gmra.mrb[30].mxu1 %vm4650_vm9, %v4925_v12 }
 0x585   : > { %7558 = vmatprep.mubr.msk.f32.mxu1 %vm8347_vm10, %v14152_v51 }
 0x588   : > { %7559 = vmatmul.mubr.msk.f32.gmra.mrb[32].mxu1 %vm4650_vm9, %v4926_v45 }
 0x589   : > { %7561 = vmatprep.mubr.msk.f32.mxu1 %vm8347_vm10, %v14152_v51 }
 0x58c   : > { %7562 = vmatmul.mubr.msk.f32.gmra.mrb[34].mxu1 %vm4650_vm9, %v4927_v4 }
 0x58d   : > { %7564 = vmatprep.mubr.msk.f32.mxu1 %vm8347_vm10, %v14152_v51 }
 0x590   : > { %7565 = vmatmul.mubr.msk.f32.gmra.mrb[36].mxu1 %vm4650_vm9, %v4928_v41  ;;  %v5493_v41 = vsel %vm2810_vm6, %v5490_v31, %v5492_v30 }
 0x591   : > { %7567 = vmatprep.mubr.msk.f32.mxu1 %vm8347_vm10, %v14152_v51 }
 0x594   : > { %7568 = vmatmul.mubr.msk.f32.gmra.mrb[38].mxu1 %vm4650_vm9, %v4929_v22 }
 0x595   : > { %7570 = vmatprep.mubr.msk.f32.mxu1 %vm8347_vm10, %v14152_v51 }
 0x598   : > { %7571 = vmatmul.mubr.msk.f32.gmra.mrb[40].mxu1 %vm4650_vm9, %v4930_v1  ;;  %v14175_v1 = vld [vmem:[#allocation21_spill] sm:$0xff] }
 0x599   : > { %7573 = vmatprep.mubr.msk.f32.mxu1 %vm8347_vm10, %v14152_v51 }
 0x59c   : > { %7574 = vmatmul.mubr.msk.f32.gmra.mrb[42].mxu1 %vm4650_vm9, %v4931_v24  ;;  %v5494_v24 = vrot.slane %v14175_v1, 3 }
 0x59d   : > { %7576 = vmatprep.mubr.msk.f32.mxu1 %vm8347_vm10, %v14152_v51 }
 0x5a0   : > { %7577 = vmatmul.mubr.msk.f32.gmra.mrb[44].mxu1 %vm4650_vm9, %v4932_v14 }
 0x5a1   : > { %7579 = vmatprep.mubr.msk.f32.mxu1 %vm8347_vm10, %v14152_v51 }
 0x5a4   : > { %7580 = vmatmul.mubr.msk.f32.gmra.mrb[46].mxu1 %vm4650_vm9, %v4933_v26 }
 0x5a5   : > { %7582 = vmatprep.mubr.msk.f32.mxu1 %vm8347_vm10, %v14152_v51 }
 0x5a8   : > { %7583 = vmatmul.mubr.msk.f32.gmra.mrb[48].mxu1 %vm4650_vm9, %v4934_v56 }
 0x5a9   : > { %7585 = vmatprep.mubr.msk.f32.mxu1 %vm8347_vm10, %v14152_v51 }
 0x5ac   : > { %7586 = vmatmul.mubr.msk.f32.gmra.mrb[50].mxu1 %vm4650_vm9, %v4935_v29 }
 0x5ad   : > { %7588 = vmatprep.mubr.msk.f32.mxu1 %vm8347_vm10, %v14152_v51 }
 0x5b0   : > { %7589 = vmatmul.mubr.msk.f32.gmra.mrb[52].mxu1 %vm4650_vm9, %v4936_v23  ;;  %v5495_v23 = vsel %vm2810_vm6, %v5492_v30, %v5494_v24 }
 0x5b1   : > { %7591 = vmatprep.mubr.msk.f32.mxu1 %vm8347_vm10, %v14152_v51 }
 0x5b4   : > { %7592 = vmatmul.mubr.msk.f32.gmra.mrb[54].mxu1 %vm4650_vm9, %v4937_v52 }
 0x5b5   : > { %7594 = vmatprep.mubr.msk.f32.mxu1 %vm8347_vm10, %v14152_v51 }
 0x5b8   : > { %7595 = vmatmul.mubr.msk.f32.gmra.mrb[56].mxu1 %vm4650_vm9, %v4938_v2  ;;  %v14176_v2 = vld [vmem:[#allocation27_spill] sm:$0xff] }
 0x5b9   : > { %7597 = vmatprep.mubr.msk.f32.mxu1 %vm8347_vm10, %v14152_v51 }
 0x5bc   : > { %7598 = vmatmul.mubr.msk.f32.gmra.mrb[58].mxu1 %vm4650_vm9, %v4939_v10  ;;  %v5496_v10 = vrot.slane %v14176_v2, 3 }
 0x5bd   : > { %7600 = vmatprep.mubr.msk.f32.mxu1 %vm8347_vm10, %v14152_v51 }
 0x5c0   : > { %7601 = vmatmul.mubr.msk.f32.gmra.mrb[60].mxu1 %vm4650_vm9, %v4940_v48 }
 0x5c1   : > { %7603 = vmatprep.mubr.msk.f32.mxu1 %vm8347_vm10, %v14152_v51 }
 0x5c4   : > { %7604 = vmatmul.mubr.msk.f32.gmra.mrb[62].mxu1 %vm4650_vm9, %v4941_v28 }
 0x5c5   : > { %7606 = vmatprep.mubr.msk.f32.mxu1 %vm8347_vm10, %v14152_v51 }
 0x5c8   : > { %7607 = vmatmul.mubr.msk.f32.gmra.mrb[64].mxu1 %vm4650_vm9, %v4942_v42 }
 0x5c9   : > { %7609 = vmatprep.mubr.msk.f32.mxu1 %vm8347_vm10, %v14152_v51 }
 0x5cc   : > { %7610 = vmatmul.mubr.msk.f32.gmra.mrb[66].mxu1 %vm4650_vm9, %v4943_v33 }
 0x5cd   : > { %7612 = vmatprep.mubr.msk.f32.mxu1 %vm8347_vm10, %v14152_v51 }
 0x5d0   : > { %7613 = vmatmul.mubr.msk.f32.gmra.mrb[68].mxu1 %vm4650_vm9, %v4944_v59  ;;  %v5497_v59 = vsel %vm2810_vm6, %v5494_v24, %v5496_v10 }
 0x5d1   : > { %7615 = vmatprep.mubr.msk.f32.mxu1 %vm8347_vm10, %v14152_v51 }
 0x5d4   : > { %7616 = vmatmul.mubr.msk.f32.gmra.mrb[70].mxu1 %vm4650_vm9, %v4945_v19 }
 0x5d5   : > { %7618 = vmatprep.mubr.msk.f32.mxu1 %vm8347_vm10, %v14152_v51 }
 0x5d8   : > { %7619 = vmatmul.mubr.msk.f32.gmra.mrb[72].mxu1 %vm4650_vm9, %v4946_v62  ;;  %v14177_v62 = vld [vmem:[#allocation29_spill] sm:$0xff] }
 0x5d9   : > { %7621 = vmatprep.mubr.msk.f32.mxu1 %vm8347_vm10, %v14152_v51 }
 0x5dc   : > { %7622 = vmatmul.mubr.msk.f32.gmra.mrb[74].mxu1 %vm4650_vm9, %v4947_v3  ;;  %v5498_v3 = vrot.slane %v14177_v62, 3 }
 0x5dd   : > { %7624 = vmatprep.mubr.msk.f32.mxu1 %vm8347_vm10, %v14152_v51 }
 0x5e0   : > { %7625 = vmatmul.mubr.msk.f32.gmra.mrb[76].mxu1 %vm4650_vm9, %v4948_v54 }
 0x5e1   : > { %7627 = vmatprep.mubr.msk.f32.mxu1 %vm8347_vm10, %v14152_v51 }
 0x5e4   : > { %7628 = vmatmul.mubr.msk.f32.gmra.mrb[78].mxu1 %vm4650_vm9, %v4949_v37 }
 0x5e5   : > { %7630 = vmatprep.mubr.msk.f32.mxu1 %vm8347_vm10, %v14152_v51 }
 0x5e8   : > { %7631 = vmatmul.mubr.msk.f32.gmra.mrb[80].mxu1 %vm4650_vm9, %v4950_v25 }
 0x5e9   : > { %7633 = vmatprep.mubr.msk.f32.mxu1 %vm8347_vm10, %v14152_v51 }
 0x5ec   : > { %7634 = vmatmul.mubr.msk.f32.gmra.mrb[82].mxu1 %vm4650_vm9, %v4951_v35 }
 0x5ed   : > { %7636 = vmatprep.mubr.msk.f32.mxu1 %vm8347_vm10, %v14152_v51 }
 0x5f0   : > { %7637 = vmatmul.mubr.msk.f32.gmra.mrb[84].mxu1 %vm4650_vm9, %v4952_v8  ;;  %v5499_v8 = vsel %vm2810_vm6, %v5496_v10, %v5498_v3 }
 0x5f1   : > { %7733 = vmatprep.mubr.msk.f32.mxu1 %vm8347_vm10, %v14152_v51 }
 0x623   : > { %v5144_v46 = vpop.f32.mrb[4].mxu1 }
 0x624   : > { %v5355_v57 = vmul.f32 %v12744_v40, %v5144_v46  ;;  %v7518_v61 = vpop.f32.mrb[5].mxu1 }
 0x626   : > { %v5403_v43 = vadd.f32 %v12749_v60, %v5355_v57 }
 0x627   : > { %v5149_v16 = vpop.f32.mrb[6].mxu1 }
 0x628   : > { %v5607_v9 = vadd.f32 %v5487_v5, %v5403_v43  ;;  %v5356_v20 = vmul.f32 %v12744_v40, %v5149_v16  ;;  %v7521_v32 = vpop.f32.mrb[7].mxu1  ;;  %v5501_v43 = vsel %vm2810_vm6, %v5498_v3, %v5500_v47  ;;  %v14179_v16 = vld [vmem:[#allocation25_spill] sm:$0xff] }
 0x629   : > { %v5502_v39 = vrot.slane %v14179_v16, 3 }
 0x62a   : > { %v5404_v50 = vadd.f32 %v12749_v60, %v5356_v20  ;;  %7644 = vmatmul.mubr.msk.f32.vlgmr.msra.gmra.mrb[46].mxu0 %vm4650_vm9, %v5607_v9 }
 0x62b   : > { %v5154_v17 = vpop.f32.mrb[8].mxu1  ;;  %7646 = vmatprep.mubr.msk.f32.mxu0 %vm8347_vm10, %v14152_v51 }
 0x62c   : > { %v5608_v6 = vadd.f32 %v5489_v21, %v5404_v50  ;;  %v5357_v0 = vmul.f32 %v12744_v40, %v5154_v17  ;;  %v7524_v18 = vpop.f32.mrb[9].mxu1  ;;  %v5503_v50 = vsel %vm2810_vm6, %v5500_v47, %v5502_v39  ;;  %v14180_v17 = vld [vmem:[#allocation18_spill] sm:$0xff] }
 0x62d   : > { %v5504_v58 = vrot.slane %v14180_v17, 3 }
 0x62e   : > { %v5405_v34 = vadd.f32 %v12749_v60, %v5357_v0  ;;  %7647 = vmatmul.mubr.msk.f32.gmra.mrb[48].mxu0 %vm4650_vm9, %v5608_v6 }
 0x62f   : > { %v5159_v15 = vpop.f32.mrb[10].mxu1  ;;  %7649 = vmatprep.mubr.msk.f32.mxu0 %vm8347_vm10, %v14152_v51 }
 0x630   : > { %v5609_v38 = vadd.f32 %v5491_v49, %v5405_v34  ;;  %v5358_v12 = vmul.f32 %v12744_v40, %v5159_v15  ;;  %v7527_v45 = vpop.f32.mrb[11].mxu1  ;;  %v5505_v34 = vsel %vm2810_vm6, %v5502_v39, %v5504_v58  ;;  %v14181_v15 = vld [vmem:[#allocation15_spill] sm:$0xff] }
 0x631   : > { %v5506_v44 = vrot.slane %v14181_v15, 3 }
 0x632   : > { %v5406_v4 = vadd.f32 %v12749_v60, %v5358_v12  ;;  %7650 = vmatmul.mubr.msk.f32.gmra.mrb[50].mxu0 %vm4650_vm9, %v5609_v38 }
 0x633   : > { %v5164_v22 = vpop.f32.mrb[12].mxu1  ;;  %7652 = vmatprep.mubr.msk.f32.mxu0 %vm8347_vm10, %v14152_v51 }
 0x634   : > { %v5610_v14 = vadd.f32 %v5493_v41, %v5406_v4  ;;  %v5359_v26 = vmul.f32 %v12744_v40, %v5164_v22  ;;  %v7530_v56 = vpop.f32.mrb[13].mxu1  ;;  %v5507_v4 = vsel %vm2810_vm6, %v5504_v58, %v5506_v44  ;;  %v14182_v22 = vld [vmem:[#allocation14_spill] sm:$0xff] }
 0x635   : > { %v5508_v1 = vrot.slane %v14182_v22, 3 }
 0x636   : > { %v5407_v29 = vadd.f32 %v12749_v60, %v5359_v26  ;;  %7653 = vmatmul.mubr.msk.f32.gmra.mrb[52].mxu0 %vm4650_vm9, %v5610_v14 }
 0x637   : > { %v5169_v52 = vpop.f32.mrb[14].mxu1  ;;  %7655 = vmatprep.mubr.msk.f32.mxu0 %vm8347_vm10, %v14152_v51 }
 0x638   : > { %v5611_v48 = vadd.f32 %v5495_v23, %v5407_v29  ;;  %v5360_v28 = vmul.f32 %v12744_v40, %v5169_v52  ;;  %v7533_v42 = vpop.f32.mrb[15].mxu1  ;;  %v5509_v29 = vsel %vm2810_vm6, %v5506_v44, %v5508_v1  ;;  %v14183_v52 = vld [vmem:[#allocation13_spill] sm:$0xff] }
 0x639   : > { %v5510_v2 = vrot.slane %v14183_v52, 3 }
 0x63a   : > { %v5408_v33 = vadd.f32 %v12749_v60, %v5360_v28  ;;  %7656 = vmatmul.mubr.msk.f32.gmra.mrb[54].mxu0 %vm4650_vm9, %v5611_v48 }
 0x63b   : > { %v5174_v19 = vpop.f32.mrb[16].mxu1  ;;  %7658 = vmatprep.mubr.msk.f32.mxu0 %vm8347_vm10, %v14152_v51 }
 0x63c   : > { %v5612_v54 = vadd.f32 %v5497_v59, %v5408_v33  ;;  %v5361_v37 = vmul.f32 %v12744_v40, %v5174_v19  ;;  %v7536_v25 = vpop.f32.mrb[17].mxu1  ;;  %v5511_v33 = vsel %vm2810_vm6, %v5508_v1, %v5510_v2  ;;  %v14184_v19 = vld [vmem:[#allocation23_spill] sm:$0xff] }
 0x63d   : > { %v5512_v62 = vrot.slane %v14184_v19, 3 }
 0x63e   : > { %v5409_v35 = vadd.f32 %v12749_v60, %v5361_v37  ;;  %7659 = vmatmul.mubr.msk.f32.gmra.mrb[56].mxu0 %vm4650_vm9, %v5612_v54 }
 0x63f   : > { %v5179_v46 = vpop.f32.mrb[18].mxu1  ;;  %7661 = vmatprep.mubr.msk.f32.mxu0 %vm8347_vm10, %v14152_v51 }
 0x640   : > { %v5613_v55 = vadd.f32 %v5499_v8, %v5409_v35  ;;  %v5362_v13 = vmul.f32 %v12744_v40, %v5179_v46  ;;  %v7539_v57 = vpop.f32.mrb[19].mxu1  ;;  %v5513_v35 = vsel %vm2810_vm6, %v5510_v2, %v5512_v62  ;;  %v14185_v46 = vld [vmem:[#allocation37_spill] sm:$0xff] }
 0x641   : > { %v5514_v7 = vrot.slane %v14185_v46, 3 }
 0x642   : > { %v5410_v61 = vadd.f32 %v12749_v60, %v5362_v13  ;;  %7662 = vmatmul.mubr.msk.f32.gmra.mrb[58].mxu0 %vm4650_vm9, %v5613_v55 }
 0x643   : > { %v5184_v5 = vpop.f32.mrb[20].mxu1  ;;  %7664 = vmatprep.mubr.msk.f32.mxu0 %vm8347_vm10, %v14152_v51 }
 0x644   : > { %v5614_v11 = vadd.f32 %v5501_v43, %v5410_v61  ;;  %v5363_v9 = vmul.f32 %v12744_v40, %v5184_v5  ;;  %v7542_v20 = vpop.f32.mrb[21].mxu1  ;;  %v5515_v61 = vsel %vm2810_vm6, %v5512_v62, %v5514_v7  ;;  %v14186_v5 = vld [vmem:[#allocation26_spill] sm:$0xff] }
 0x645   : > { %v5516_v16 = vrot.slane %v14186_v5, 3 }
 0x646   : > { %v5411_v32 = vadd.f32 %v12749_v60, %v5363_v9  ;;  %7665 = vmatmul.mubr.msk.f32.gmra.mrb[60].mxu0 %vm4650_vm9, %v5614_v11 }
 0x647   : > { %v5189_v21 = vpop.f32.mrb[22].mxu1  ;;  %7667 = vmatprep.mubr.msk.f32.mxu0 %vm8347_vm10, %v14152_v51 }
 0x648   : > { %v5615_v31 = vadd.f32 %v5503_v50, %v5411_v32  ;;  %v5364_v6 = vmul.f32 %v12744_v40, %v5189_v21  ;;  %v7545_v0 = vpop.f32.mrb[23].mxu1  ;;  %v5517_v32 = vsel %vm2810_vm6, %v5514_v7, %v5516_v16  ;;  %v14187_v21 = vld [vmem:[#allocation19_spill] sm:$0xff] }
 0x649   : > { %v5518_v17 = vrot.slane %v14187_v21, 3 }
 0x64a   : > { %v5412_v18 = vadd.f32 %v12749_v60, %v5364_v6  ;;  %7668 = vmatmul.mubr.msk.f32.gmra.mrb[62].mxu0 %vm4650_vm9, %v5615_v31 }
 0x64b   : > { %v5194_v49 = vpop.f32.mrb[24].mxu1  ;;  %7670 = vmatprep.mubr.msk.f32.mxu0 %vm8347_vm10, %v14152_v51 }
 0x64c   : > { %v5616_v30 = vadd.f32 %v5505_v34, %v5412_v18  ;;  %v5365_v38 = vmul.f32 %v12744_v40, %v5194_v49  ;;  %v7548_v12 = vpop.f32.mrb[25].mxu1  ;;  %v5519_v18 = vsel %vm2810_vm6, %v5516_v16, %v5518_v17  ;;  %v14188_v49 = vld [vmem:[#allocation28_spill] sm:$0xff] }
 0x64d   : > { %v5520_v15 = vrot.slane %v14188_v49, 3 }
 0x64e   : > { %v5413_v45 = vadd.f32 %v12749_v60, %v5365_v38  ;;  %7671 = vmatmul.mubr.msk.f32.gmra.mrb[64].mxu0 %vm4650_vm9, %v5616_v30 }
 0x64f   : > { %v5199_v41 = vpop.f32.mrb[26].mxu1  ;;  %7673 = vmatprep.mubr.msk.f32.mxu0 %vm8347_vm10, %v14152_v51 }
 0x650   : > { %v5617_v24 = vadd.f32 %v5507_v4, %v5413_v45  ;;  %v5366_v14 = vmul.f32 %v12744_v40, %v5199_v41  ;;  %v7551_v26 = vpop.f32.mrb[27].mxu1  ;;  %v5521_v45 = vsel %vm2810_vm6, %v5518_v17, %v5520_v15  ;;  %v14189_v41 = vld [vmem:[#allocation57_spill] sm:$0xff] }
 0x651   : > { %v5522_v22 = vrot.slane %v14189_v41, 3 }
 0x652   : > { %v5414_v56 = vadd.f32 %v12749_v60, %v5366_v14  ;;  %7674 = vmatmul.mubr.msk.f32.gmra.mrb[66].mxu0 %vm4650_vm9, %v5617_v24 }
 0x653   : > { %v5204_v23 = vpop.f32.mrb[28].mxu1  ;;  %7676 = vmatprep.mubr.msk.f32.mxu0 %vm8347_vm10, %v14152_v51 }
 0x654   : > { %v5618_v10 = vadd.f32 %v5509_v29, %v5414_v56  ;;  %v5367_v48 = vmul.f32 %v12744_v40, %v5204_v23  ;;  %v7554_v28 = vpop.f32.mrb[29].mxu1  ;;  %v5523_v56 = vsel %vm2810_vm6, %v5520_v15, %v5522_v22  ;;  %v14190_v23 = vld [vmem:[#allocation42_spill] sm:$0xff] }
 0x655   : > { %v5524_v52 = vrot.slane %v14190_v23, 3 }
 0x656   : > { %v5415_v42 = vadd.f32 %v12749_v60, %v5367_v48  ;;  %7677 = vmatmul.mubr.msk.f32.gmra.mrb[68].mxu0 %vm4650_vm9, %v5618_v10 }
 0x657   : > { %v5209_v59 = vpop.f32.mrb[30].mxu1  ;;  %7679 = vmatprep.mubr.msk.f32.mxu0 %vm8347_vm10, %v14152_v51 }
 0x658   : > { %v5619_v3 = vadd.f32 %v5511_v33, %v5415_v42  ;;  %v5368_v54 = vmul.f32 %v12744_v40, %v5209_v59  ;;  %v7557_v37 = vpop.f32.mrb[31].mxu1  ;;  %v5525_v42 = vsel %vm2810_vm6, %v5522_v22, %v5524_v52  ;;  %v14191_v59 = vld [vmem:[#allocation56_spill] sm:$0xff] }
 0x659   : > { %v5526_v19 = vrot.slane %v14191_v59, 3 }
 0x65a   : > { %v5416_v25 = vadd.f32 %v12749_v60, %v5368_v54  ;;  %7680 = vmatmul.mubr.msk.f32.gmra.mrb[70].mxu0 %vm4650_vm9, %v5619_v3 }
 0x65b   : > { %v5214_v8 = vpop.f32.mrb[32].mxu1  ;;  %7682 = vmatprep.mubr.msk.f32.mxu0 %vm8347_vm10, %v14152_v51 }
 0x65c   : > { %v5620_v47 = vadd.f32 %v5513_v35, %v5416_v25  ;;  %v5369_v55 = vmul.f32 %v12744_v40, %v5214_v8  ;;  %v7560_v13 = vpop.f32.mrb[33].mxu1  ;;  %v5527_v25 = vsel %vm2810_vm6, %v5524_v52, %v5526_v19  ;;  %v14192_v8 = vld [vmem:[#allocation33_spill] sm:$0xff] }
 0x65d   : > { %v5528_v46 = vrot.slane %v14192_v8, 3 }
 0x65e   : > { %v5417_v57 = vadd.f32 %v12749_v60, %v5369_v55  ;;  %7683 = vmatmul.mubr.msk.f32.gmra.mrb[72].mxu0 %vm4650_vm9, %v5620_v47 }
 0x65f   : > { %v5219_v43 = vpop.f32.mrb[34].mxu1  ;;  %7685 = vmatprep.mubr.msk.f32.mxu0 %vm8347_vm10, %v14152_v51 }
 0x660   : > { %v5621_v39 = vadd.f32 %v5515_v61, %v5417_v57  ;;  %v5370_v11 = vmul.f32 %v12744_v40, %v5219_v43  ;;  %v7563_v9 = vpop.f32.mrb[35].mxu1  ;;  %v5529_v57 = vsel %vm2810_vm6, %v5526_v19, %v5528_v46  ;;  %v14193_v43 = vld [vmem:[#allocation2_spill] sm:$0xff] }
 0x661   : > { %v5530_v5 = vrot.slane %v14193_v43, 3 }
 0x662   : > { %v5418_v20 = vadd.f32 %v12749_v60, %v5370_v11  ;;  %7686 = vmatmul.mubr.msk.f32.gmra.mrb[74].mxu0 %vm4650_vm9, %v5621_v39 }
 0x663   : > { %v5224_v50 = vpop.f32.mrb[36].mxu1  ;;  %7688 = vmatprep.mubr.msk.f32.mxu0 %vm8347_vm10, %v14152_v51 }
 0x664   : > { %v5622_v58 = vadd.f32 %v5517_v32, %v5418_v20  ;;  %v5371_v31 = vmul.f32 %v12744_v40, %v5224_v50  ;;  %v7566_v6 = vpop.f32.mrb[37].mxu1  ;;  %v5531_v20 = vsel %vm2810_vm6, %v5528_v46, %v5530_v5  ;;  %v14194_v50 = vld [vmem:[#allocation22_spill] sm:$0xff] }
 0x665   : > { %v5532_v21 = vrot.slane %v14194_v50, 3 }
 0x666   : > { %v5419_v0 = vadd.f32 %v12749_v60, %v5371_v31  ;;  %7689 = vmatmul.mubr.msk.f32.gmra.mrb[76].mxu0 %vm4650_vm9, %v5622_v58 }
 0x667   : > { %v5229_v34 = vpop.f32.mrb[38].mxu1  ;;  %7691 = vmatprep.mubr.msk.f32.mxu0 %vm8347_vm10, %v14152_v51 }
 0x668   : > { %v5623_v44 = vadd.f32 %v5519_v18, %v5419_v0  ;;  %v5372_v30 = vmul.f32 %v12744_v40, %v5229_v34  ;;  %v7569_v38 = vpop.f32.mrb[39].mxu1  ;;  %v5533_v0 = vsel %vm2810_vm6, %v5530_v5, %v5532_v21  ;;  %v14195_v34 = vld [vmem:[#allocation43_spill] sm:$0xff] }
 0x669   : > { %v5534_v49 = vrot.slane %v14195_v34, 3 }
 0x66a   : > { %v5420_v12 = vadd.f32 %v12749_v60, %v5372_v30  ;;  %7692 = vmatmul.mubr.msk.f32.gmra.mrb[78].mxu0 %vm4650_vm9, %v5623_v44 }
 0x66b   : > { %v5234_v4 = vpop.f32.mrb[40].mxu1  ;;  %7694 = vmatprep.mubr.msk.f32.mxu0 %vm8347_vm10, %v14152_v51 }
 0x66c   : > { %v5624_v1 = vadd.f32 %v5521_v45, %v5420_v12  ;;  %v5373_v24 = vmul.f32 %v12744_v40, %v5234_v4  ;;  %v7572_v14 = vpop.f32.mrb[41].mxu1  ;;  %v5535_v12 = vsel %vm2810_vm6, %v5532_v21, %v5534_v49  ;;  %v14196_v4 = vld [vmem:[#allocation39_spill] sm:$0xff] }
 0x66d   : > { %v5536_v41 = vrot.slane %v14196_v4, 3  ;;  %v14200_v4 = vld [vmem:[#allocation10_spill] sm:$0xff] }
 0x66e   : > { %v5421_v26 = vadd.f32 %v12749_v60, %v5373_v24  ;;  %7695 = vmatmul.mubr.msk.f32.gmra.mrb[80].mxu0 %vm4650_vm9, %v5624_v1 }
 0x66f   : > { %v5239_v29 = vpop.f32.mrb[42].mxu1  ;;  %7697 = vmatprep.mubr.msk.f32.mxu0 %vm8347_vm10, %v14152_v51 }
 0x670   : > { %v5625_v2 = vadd.f32 %v5523_v56, %v5421_v26  ;;  %v5374_v10 = vmul.f32 %v12744_v40, %v5239_v29  ;;  %v7575_v48 = vpop.f32.mrb[43].mxu1  ;;  %v5537_v26 = vsel %vm2810_vm6, %v5534_v49, %v5536_v41  ;;  %v14197_v29 = vld [vmem:[#allocation16_spill] sm:$0xff] }
 0x671   : > { %v5538_v23 = vrot.slane %v14197_v29, 3 }
 0x672   : > { %v5422_v28 = vadd.f32 %v12749_v60, %v5374_v10  ;;  %7698 = vmatmul.mubr.msk.f32.gmra.mrb[82].mxu0 %vm4650_vm9, %v5625_v2 }
 0x673   : > { %v5244_v33 = vpop.f32.mrb[44].mxu1  ;;  %7700 = vmatprep.mubr.msk.f32.mxu0 %vm8347_vm10, %v14152_v51 }
 0x674   : > { %v5626_v62 = vadd.f32 %v5525_v42, %v5422_v28  ;;  %v5375_v3 = vmul.f32 %v12744_v40, %v5244_v33  ;;  %v7578_v54 = vpop.f32.mrb[45].mxu1  ;;  %v5539_v28 = vsel %vm2810_vm6, %v5536_v41, %v5538_v23  ;;  %v14198_v33 = vld [vmem:[#allocation95_spill] sm:$0xff]  ;;  %v5552_v41 = vrot.slane %v14200_v4, 3  ;;  %v13036_v4 = vld [vmem:[%s13320_s17] ss:$0 sm:$0xff] }
 0x675   : > { %v5540_v59 = vrot.slane %v14198_v33, 3 }
 0x676   : > { %v5423_v37 = vadd.f32 %v12749_v60, %v5375_v3  ;;  %7701 = vmatmul.mubr.msk.f32.gmra.mrb[84].mxu0 %vm4650_vm9, %v5626_v62 }
 0x677   : > { %v5249_v35 = vpop.f32.mrb[46].mxu1  ;;  %7703 = vmatprep.mubr.msk.f32.mxu0 %vm8347_vm10, %v14152_v51 }
 0x678   : > { %v5627_v7 = vadd.f32 %v5527_v25, %v5423_v37  ;;  %v5376_v47 = vmul.f32 %v12744_v40, %v5249_v35  ;;  %v7581_v55 = vpop.f32.mrb[47].mxu1  ;;  %v5541_v37 = vsel %vm2810_vm6, %v5538_v23, %v5540_v59  ;;  %v14199_v35 = vld [vmem:[#allocation85_spill] sm:$0xff] }
 0x679   : > { %v5542_v8 = vrot.slane %v14199_v35, 3 }
 0x67a   : > { %v5424_v13 = vadd.f32 %v12749_v60, %v5376_v47  ;;  %7704 = vmatmul.mubr.msk.f32.gmra.mrb[86].mxu0 %vm4650_vm9, %v5627_v7 }
 0x67b   : > { %v5254_v61 = vpop.f32.mrb[48].mxu1  ;;  %7706 = vmatprep.mubr.msk.f32.mxu0 %vm8347_vm10, %v14152_v51 }
 0x67c   : > { %v5628_v16 = vadd.f32 %v5529_v57, %v5424_v13  ;;  %v5377_v39 = vmul.f32 %v12744_v40, %v5254_v61  ;;  %v7584_v11 = vpop.f32.mrb[49].mxu1  ;;  %v5543_v13 = vsel %vm2810_vm6, %v5540_v59, %v5542_v8  ;;  %v5544_v61 = vrot.slane %v14107_v63, 3 }
 0x67e   : > { %v5425_v9 = vadd.f32 %v12749_v60, %v5377_v39  ;;  %7707 = vmatmul.mubr.msk.f32.gmra.mrb[88].mxu0 %vm4650_vm9, %v5628_v16  ;;  %v5545_v11 = vsel %vm2810_vm6, %v5542_v8, %v5544_v61 }
 0x67f   : > { %v5259_v32 = vpop.f32.mrb[50].mxu1  ;;  %7709 = vmatprep.mubr.msk.f32.mxu0 %vm8347_vm10, %v14152_v51 }
 0x680   : > { %v5629_v17 = vadd.f32 %v5531_v20, %v5425_v9  ;;  %v5378_v58 = vmul.f32 %v12744_v40, %v5259_v32  ;;  %v7587_v31 = vpop.f32.mrb[51].mxu1  ;;  %v5546_v20 = vrot.slane %v14052_v53, 3 }
 0x681   : > { %v5548_v31 = vrot.slane %v11652_v36, 3 }
 0x682   : > { %v5426_v6 = vadd.f32 %v12749_v60, %v5378_v58  ;;  %7710 = vmatmul.mubr.msk.f32.gmra.mrb[90].mxu0 %vm4650_vm9, %v5629_v17  ;;  %v5547_v17 = vsel %vm2810_vm6, %v5544_v61, %v5546_v20 }
 0x683   : > { %v5264_v18 = vpop.f32.mrb[52].mxu1  ;;  %7712 = vmatprep.mubr.msk.f32.mxu0 %vm8347_vm10, %v14152_v51  ;;  %v5549_v34 = vsel %vm2810_vm6, %v5546_v20, %v5548_v31  ;;  %v14205_v20 = vld [vmem:[#allocation35_spill] sm:$0xff] }
 0x684   : > { %v5630_v15 = vadd.f32 %v5533_v0, %v5426_v6  ;;  %v5379_v44 = vmul.f32 %v12744_v40, %v5264_v18  ;;  %v7590_v30 = vpop.f32.mrb[53].mxu1 }
 0x686   : > { %v5427_v38 = vadd.f32 %v12749_v60, %v5379_v44  ;;  %7713 = vmatmul.mubr.msk.f32.gmra.mrb[92].mxu0 %vm4650_vm9, %v5630_v15  ;;  %v5550_v15 = vrot.slane %v11635_v27, 3 }
 0x687   : > { %v5269_v45 = vpop.f32.mrb[54].mxu1  ;;  %7715 = vmatprep.mubr.msk.f32.mxu0 %vm8347_vm10, %v14152_v51 }
 0x688   : > { %v5631_v22 = vadd.f32 %v5535_v12, %v5427_v38  ;;  %v5380_v1 = vmul.f32 %v12744_v40, %v5269_v45  ;;  %v7593_v24 = vpop.f32.mrb[55].mxu1  ;;  %v5551_v12 = vsel %vm2810_vm6, %v5548_v31, %v5550_v15 }
 0x68a   : > { %v5428_v14 = vadd.f32 %v12749_v60, %v5380_v1  ;;  %7716 = vmatmul.mubr.msk.f32.gmra.mrb[94].mxu0 %vm4650_vm9, %v5631_v22 }
 0x68b   : > { %v5274_v56 = vpop.f32.mrb[56].mxu1  ;;  %7718 = vmatprep.mubr.msk.f32.mxu0 %vm8347_vm10, %v14152_v51 }
 0x68c   : > { %v5632_v52 = vadd.f32 %v5537_v26, %v5428_v14  ;;  %v5381_v2 = vmul.f32 %v12744_v40, %v5274_v56  ;;  %v7596_v10 = vpop.f32.mrb[57].mxu1  ;;  %v5553_v14 = vsel %vm2810_vm6, %v5550_v15, %v5552_v41  ;;  %v14201_v56 = vld [vmem:[#allocation52_spill] sm:$0xff] }
 0x68d   : > { %v5554_v29 = vrot.slane %v14201_v56, 3 }
 0x68e   : > { %v5429_v48 = vadd.f32 %v12749_v60, %v5381_v2  ;;  %7719 = vmatmul.mubr.msk.f32.gmra.mrb[96].mxu0 %vm4650_vm9, %v5632_v52 }
 0x68f   : > { %v5279_v42 = vpop.f32.mrb[58].mxu1  ;;  %7721 = vmatprep.mubr.msk.f32.mxu0 %vm8347_vm10, %v14152_v51 }
 0x690   : > { %v5633_v19 = vadd.f32 %v5539_v28, %v5429_v48  ;;  %v5382_v62 = vmul.f32 %v12744_v40, %v5279_v42  ;;  %v7599_v3 = vpop.f32.mrb[59].mxu1  ;;  %v5555_v48 = vsel %vm2810_vm6, %v5552_v41, %v5554_v29  ;;  %v14202_v42 = vld [vmem:[#allocation107_spill] sm:$0xff] }
 0x691   : > { %v5556_v33 = vrot.slane %v14202_v42, 3 }
 0x692   : > { %v5430_v54 = vadd.f32 %v12749_v60, %v5382_v62  ;;  %7722 = vmatmul.mubr.msk.f32.gmra.mrb[98].mxu0 %vm4650_vm9, %v5633_v19 }
 0x693   : > { %v5284_v25 = vpop.f32.mrb[60].mxu1  ;;  %7724 = vmatprep.mubr.msk.f32.mxu0 %vm8347_vm10, %v14152_v51 }
 0x694   : > { %v5634_v46 = vadd.f32 %v5541_v37, %v5430_v54  ;;  %v5383_v7 = vmul.f32 %v12744_v40, %v5284_v25  ;;  %v7602_v47 = vpop.f32.mrb[61].mxu1  ;;  %v5557_v54 = vsel %vm2810_vm6, %v5554_v29, %v5556_v33  ;;  %v14203_v25 = vld [vmem:[#allocation36_spill] sm:$0xff] }
 0x695   : > { %v5558_v35 = vrot.slane %v14203_v25, 3 }
 0x696   : > { %v5431_v55 = vadd.f32 %v12749_v60, %v5383_v7  ;;  %7725 = vmatmul.mubr.msk.f32.gmra.mrb[100].mxu0 %vm4650_vm9, %v5634_v46 }
 0x697   : > { %v5289_v57 = vpop.f32.mrb[62].mxu1  ;;  %7727 = vmatprep.mubr.msk.f32.mxu0 %vm8347_vm10, %v14152_v51 }
 0x698   : > { %v5635_v43 = vadd.f32 %v5543_v13, %v5431_v55  ;;  %v5384_v5 = vmul.f32 %v12744_v40, %v5289_v57  ;;  %v7605_v16 = vpop.f32.mrb[63].mxu1  ;;  %v5559_v55 = vsel %vm2810_vm6, %v5556_v33, %v5558_v35  ;;  %v14204_v57 = vld [vmem:[#allocation69_spill] sm:$0xff] }
 0x699   : > { %v5560_v61 = vrot.slane %v14204_v57, 3 }
 0x69a   : > { %v5432_v39 = vadd.f32 %v12749_v60, %v5384_v5  ;;  %7728 = vmatmul.mubr.msk.f32.gmra.mrb[102].mxu0 %vm4650_vm9, %v5635_v43 }
 0x69b   : > { %v5294_v9 = vpop.f32.mrb[64].mxu1  ;;  %7730 = vmatprep.mubr.msk.f32.mxu0 %vm8347_vm10, %v14152_v51 }
 0x69c   : > { %v5636_v63 = vadd.f32 %v5545_v11, %v5432_v39  ;;  %v5385_v32 = vmul.f32 %v12744_v40, %v5294_v9  ;;  %v7608_v50 = vpop.f32.mrb[65].mxu1  ;;  %v5561_v11 = vsel %vm2810_vm6, %v5558_v35, %v5560_v61 }
 0x69e   : > { %v5433_v21 = vadd.f32 %v12749_v60, %v5385_v32  ;;  %7731 = vmatmul.mubr.msk.f32.gmra.mrb[104].mxu0 %vm4650_vm9, %v5636_v63  ;;  %v5562_v63 = vrot.slane %v14205_v20, 3 }
 0x69f   : > { %v5299_v58 = vpop.f32.mrb[66].mxu1 }
 0x6a0   : > { %v5637_v6 = vadd.f32 %v5547_v17, %v5433_v21  ;;  %v5386_v0 = vmul.f32 %v12744_v40, %v5299_v58  ;;  %v7611_v53 = vpop.f32.mrb[67].mxu1  ;;  %v5563_v58 = vsel %vm2810_vm6, %v5560_v61, %v5562_v63 }
 0x6a2   : > { %v5434_v18 = vadd.f32 %v12749_v60, %v5386_v0  ;;  %7734 = vmatmul.mubr.msk.f32.vlgmr.msra.gmra.mrb[86].mxu1 %vm4650_vm9, %v5637_v6  ;;  %v14206_v6 = vld [vmem:[#allocation67_spill] sm:$0xff] }
 0x6a3   : > { %v5304_v49 = vpop.f32.mrb[68].mxu1  ;;  %7736 = vmatprep.mubr.msk.f32.mxu1 %vm8347_vm10, %v14152_v51  ;;  %v5564_v0 = vrot.slane %v14206_v6, 3 }
 0x6a4   : > { %v5638_v44 = vadd.f32 %v5549_v34, %v5434_v18  ;;  %v5387_v30 = vmul.f32 %v12744_v40, %v5304_v49  ;;  %v7614_v36 = vpop.f32.mrb[69].mxu1 }
 0x6a5   : > { %v5565_v15 = vsel %vm2810_vm6, %v5562_v63, %v5564_v0 }
 0x6a6   : > { %v5435_v38 = vadd.f32 %v12749_v60, %v5387_v30  ;;  %7737 = vmatmul.mubr.msk.f32.gmra.mrb[88].mxu1 %vm4650_vm9, %v5638_v44 }
 0x6a7   : > { %v5309_v45 = vpop.f32.mrb[70].mxu1  ;;  %7739 = vmatprep.mubr.msk.f32.mxu1 %vm8347_vm10, %v14152_v51 }
 0x6a8   : > { %v5639_v27 = vadd.f32 %v5551_v12, %v5435_v38  ;;  %v5388_v22 = vmul.f32 %v12744_v40, %v5309_v45  ;;  %v7617_v1 = vpop.f32.mrb[71].mxu1 }
 0x6aa   : > { %v5436_v24 = vadd.f32 %v12749_v60, %v5388_v22  ;;  %7740 = vmatmul.mubr.msk.f32.gmra.mrb[90].mxu1 %vm4650_vm9, %v5639_v27 }
 0x6ab   : > { %v5314_v26 = vpop.f32.mrb[72].mxu1  ;;  %7742 = vmatprep.mubr.msk.f32.mxu1 %vm8347_vm10, %v14152_v51 }
 0x6ac   : > { %v5640_v23 = vadd.f32 %v5553_v14, %v5436_v24  ;;  %v5389_v52 = vmul.f32 %v12744_v40, %v5314_v26  ;;  %v7620_v2 = vpop.f32.mrb[73].mxu1 }
 0x6ae   : > { %v5437_v10 = vadd.f32 %v12749_v60, %v5389_v52  ;;  %7743 = vmatmul.mubr.msk.f32.gmra.mrb[92].mxu1 %vm4650_vm9, %v5640_v23 }
 0x6af   : > { %v5319_v28 = vpop.f32.mrb[74].mxu1  ;;  %7745 = vmatprep.mubr.msk.f32.mxu1 %vm8347_vm10, %v14152_v51 }
 0x6b0   : > { %v5641_v59 = vadd.f32 %v5555_v48, %v5437_v10  ;;  %v5390_v19 = vmul.f32 %v12744_v40, %v5319_v28  ;;  %v7623_v62 = vpop.f32.mrb[75].mxu1 }
 0x6b2   : > { %v5438_v3 = vadd.f32 %v12749_v60, %v5390_v19  ;;  %7746 = vmatmul.mubr.msk.f32.gmra.mrb[94].mxu1 %vm4650_vm9, %v5641_v59 }
 0x6b3   : > { %v5324_v37 = vpop.f32.mrb[76].mxu1  ;;  %7748 = vmatprep.mubr.msk.f32.mxu1 %vm8347_vm10, %v14152_v51 }
 0x6b4   : > { %v5642_v8 = vadd.f32 %v5557_v54, %v5438_v3  ;;  %v5391_v46 = vmul.f32 %v12744_v40, %v5324_v37  ;;  %v7626_v7 = vpop.f32.mrb[77].mxu1 }
 0x6b6   : > { %v5439_v47 = vadd.f32 %v12749_v60, %v5391_v46  ;;  %7749 = vmatmul.mubr.msk.f32.gmra.mrb[96].mxu1 %vm4650_vm9, %v5642_v8 }
 0x6b7   : > { %v5329_v13 = vpop.f32.mrb[78].mxu1  ;;  %7751 = vmatprep.mubr.msk.f32.mxu1 %vm8347_vm10, %v14152_v51 }
 0x6b8   : > { %v5643_v43 = vadd.f32 %v5559_v55, %v5439_v47  ;;  %v5392_v5 = vmul.f32 %v12744_v40, %v5329_v13  ;;  %v7629_v16 = vpop.f32.mrb[79].mxu1 }
 0x6ba   : > { %v5440_v39 = vadd.f32 %v12749_v60, %v5392_v5  ;;  %7752 = vmatmul.mubr.msk.f32.gmra.mrb[98].mxu1 %vm4650_vm9, %v5643_v43 }
 0x6bb   : > { %v5334_v9 = vpop.f32.mrb[80].mxu1  ;;  %7754 = vmatprep.mubr.msk.f32.mxu1 %vm8347_vm10, %v14152_v51 }
 0x6bc   : > { %v5644_v32 = vadd.f32 %v5561_v11, %v5440_v39  ;;  %v5393_v50 = vmul.f32 %v12744_v40, %v5334_v9  ;;  %v7632_v21 = vpop.f32.mrb[81].mxu1 }
 0x6be   : > { %v5441_v17 = vadd.f32 %v12749_v60, %v5393_v50  ;;  %7755 = vmatmul.mubr.msk.f32.gmra.mrb[100].mxu1 %vm4650_vm9, %v5644_v32 }
 0x6bf   : > { %v5339_v31 = vpop.f32.mrb[82].mxu1  ;;  %7757 = vmatprep.mubr.msk.f32.mxu1 %vm8347_vm10, %v14152_v51 }
 0x6c0   : > { %v5645_v53 = vadd.f32 %v5563_v58, %v5441_v17  ;;  %v5394_v18 = vmul.f32 %v12744_v40, %v5339_v31  ;;  %v7635_v34 = vpop.f32.mrb[83].mxu1 }
 0x6c2   : > { %v5442_v49 = vadd.f32 %v12749_v60, %v5394_v18  ;;  %7758 = vmatmul.mubr.msk.f32.gmra.mrb[102].mxu1 %vm4650_vm9, %v5645_v53 }
 0x6c3   : > { %v5344_v44 = vpop.f32.mrb[84].mxu1  ;;  %7760 = vmatprep.mubr.msk.f32.mxu1 %vm8347_vm10, %v14152_v51 }
 0x6c4   : > { %v5646_v30 = vadd.f32 %v5565_v15, %v5442_v49  ;;  %v5395_v36 = vmul.f32 %v12744_v40, %v5344_v44  ;;  %v7638_v38 = vpop.f32.mrb[85].mxu1  ;;  %v13041_v40 = vld [vmem:[%s13321_s18] ss:$0 sm:$0xff] }
 0x6c6   : > { %v5443_v12 = vadd.f32 %v12749_v60, %v5395_v36  ;;  %7761 = vmatmul.mubr.msk.f32.gmra.mrb[104].mxu1 %vm4650_vm9, %v5646_v30 }
 0x6c7   : > { %7763 = vmatprep.mubr.msk.f32.mxu1 %vm8347_vm10, %v14152_v51 }
 0x6c8   : > { %v5647_v45 = vadd.f32 %v5564_v0, %v5443_v12 }
 0x6ca   : > { %7764 = vmatmul.mubr.msk.f32.gmra.mrb[106].mxu1 %vm4650_vm9, %v5647_v45 }
 0x6fd   : > { %v5839_v41 = vpop.f32.mrb[46].mxu0 }
 0x6fe   : > { %v6050_v60 = vmul.f32 %v13036_v4, %v5839_v41  ;;  %v7645_v27 = vpop.f32.mrb[47].mxu0 }
 0x700   : > { %v13045_v22 = vadd.f32 %v13041_v40, %v6050_v60 }
 0x701   : > { %v5844_v51 = vpop.f32.mrb[48].mxu0 }
 0x702   : > { %v6924_v1 = vmul.f32 -1.442695, %v13045_v22  ;;  %v6051_v24 = vmul.f32 %v13036_v4, %v5844_v51  ;;  %v7648_v14 = vpop.f32.mrb[49].mxu0 }
 0x704   : > { %8160 = vpow2.f32 %v6924_v1  ;;  %v6099_v26 = vadd.f32 %v13041_v40, %v6051_v24 }
 0x705   : > { %v5849_v56 = vpop.f32.mrb[50].mxu0 }
 0x706   : > { %v6925_v29 = vmul.f32 -1.442695, %v6099_v26  ;;  %v6052_v23 = vmul.f32 %v13036_v4, %v5849_v56  ;;  %v7651_v52 = vpop.f32.mrb[51].mxu0 }
 0x708   : > { %8162 = vpow2.f32 %v6925_v29  ;;  %v13052_v2 = vadd.f32 %v13041_v40, %v6052_v23 }
 0x709   : > { %v5854_v10 = vpop.f32.mrb[52].mxu0 }
 0x70a   : > { %v6926_v48 = vmul.f32 -1.442695, %v13052_v2  ;;  %v6053_v28 = vmul.f32 %v13036_v4, %v5854_v10  ;;  %v7654_v42 = vpop.f32.mrb[53].mxu0 }
 0x70c   : > { %8164 = vpow2.f32 %v6926_v48  ;;  %v13057_v33 = vadd.f32 %v13041_v40, %v6053_v28 }
 0x70d   : > { %v5859_v59 = vpop.f32.mrb[54].mxu0 }
 0x70e   : > { %v8161_v19 = vpop.eup %8160  ;;  %v6927_v62 = vmul.f32 -1.442695, %v13057_v33  ;;  %v6054_v3 = vmul.f32 %v13036_v4, %v5859_v59  ;;  %v7657_v54 = vpop.f32.mrb[55].mxu0 }
 0x70f   : > { %v6262_v37 = vadd.f32 1.0, %v8161_v19 }
 0x710   : > { %8166 = vpow2.f32 %v6927_v62  ;;  %v13062_v25 = vadd.f32 %v13041_v40, %v6054_v3 }
 0x711   : > { %v5864_v35 = vpop.f32.mrb[56].mxu0  ;;  %8168 = vrcp.f32 %v6262_v37 }
 0x712   : > { %v8163_v8 = vpop.eup %8162  ;;  %v6928_v46 = vmul.f32 -1.442695, %v13062_v25  ;;  %v6055_v7 = vmul.f32 %v13036_v4, %v5864_v35  ;;  %v7660_v47 = vpop.f32.mrb[57].mxu0 }
 0x713   : > { %v6263_v55 = vadd.f32 1.0, %v8163_v8 }
 0x714   : > { %8170 = vpow2.f32 %v6928_v46  ;;  %v13067_v13 = vadd.f32 %v13041_v40, %v6055_v7 }
 0x715   : > { %8172 = vrcp.f32 %v6263_v55  ;;  %v5869_v57 = vpop.f32.mrb[58].mxu0 }
 0x716   : > { %v8165_v61 = vpop.eup %8164  ;;  %v6929_v43 = vmul.f32 -1.442695, %v13067_v13  ;;  %v6056_v5 = vmul.f32 %v13036_v4, %v5869_v57  ;;  %v7663_v16 = vpop.f32.mrb[59].mxu0 }
 0x717   : > { %v6264_v39 = vadd.f32 1.0, %v8165_v61 }
 0x718   : > { %8174 = vpow2.f32 %v6929_v43  ;;  %v13072_v11 = vadd.f32 %v13041_v40, %v6056_v5 }
 0x719   : > { %v5874_v9 = vpop.f32.mrb[60].mxu0  ;;  %8176 = vrcp.f32 %v6264_v39 }
 0x71a   : > { %v8167_v20 = vpop.eup %8166  ;;  %v6930_v63 = vmul.f32 -1.442695, %v13072_v11  ;;  %v6057_v32 = vmul.f32 %v13036_v4, %v5874_v9  ;;  %v7666_v50 = vpop.f32.mrb[61].mxu0 }
 0x71b   : > { %v6265_v21 = vadd.f32 1.0, %v8167_v20  ;;  %v8169_v58 = vpop.eup %8168 }
 0x71c   : > { %8178 = vpow2.f32 %v6930_v63  ;;  %v13077_v17 = vadd.f32 %v13041_v40, %v6057_v32  ;;  %v6385_v15 = vmul.f32 %v8169_v58, %v13045_v22 }
 0x71d   : > { %8180 = vrcp.f32 %v6265_v21  ;;  %v5879_v31 = vpop.f32.mrb[62].mxu0 }
 0x71e   : > { %v8171_v6 = vpop.eup %8170  ;;  %v6931_v0 = vmul.f32 -1.442695, %v13077_v17  ;;  %v6058_v53 = vmul.f32 %v13036_v4, %v5879_v31  ;;  %v7669_v18 = vpop.f32.mrb[63].mxu0 }
 0x71f   : > { %v8173_v34 = vpop.eup %8172  ;;  %v6266_v49 = vadd.f32 1.0, %v8171_v6 }
 0x720   : > { %v6386_v44 = vmul.f32 %v8173_v34, %v6099_v26  ;;  %8182 = vpow2.f32 %v6931_v0  ;;  %v13084_v30 = vadd.f32 %v13041_v40, %v6058_v53 }
 0x721   : > { %v5884_v36 = vpop.f32.mrb[64].mxu0  ;;  %8184 = vrcp.f32 %v6266_v49 }
 0x722   : > { %v8175_v38 = vpop.eup %8174  ;;  %v7144_v12 = vpack.c.bf16 %v6386_v44, %v6385_v15  ;;  %v6932_v45 = vmul.f32 -1.442695, %v13084_v30  ;;  %v6059_v41 = vmul.f32 %v13036_v4, %v5884_v36  ;;  %v7672_v60 = vpop.f32.mrb[65].mxu0 }
 0x723   : > { %v6267_v27 = vadd.f32 1.0, %v8175_v38  ;;  %v8177_v51 = vpop.eup %8176 }
 0x724   : > { %7145 = vst [vmem:[%s13089_s30] sm:$0xff] %v7144_v12   ;;  %8186 = vpow2.f32 %v6932_v45  ;;  %v13095_v22 = vadd.f32 %v13041_v40, %v6059_v41  ;;  %v6387_v52 = vmul.f32 %v8177_v51, %v13052_v2 }
 0x725   : > { %8188 = vrcp.f32 %v6267_v27  ;;  %v5889_v1 = vpop.f32.mrb[66].mxu0 }
 0x726   : > { %v8179_v24 = vpop.eup %8178  ;;  %v6933_v14 = vmul.f32 -1.442695, %v13095_v22  ;;  %v6060_v26 = vmul.f32 %v13036_v4, %v5889_v1  ;;  %v7675_v56 = vpop.f32.mrb[67].mxu0 }
 0x727   : > { %v8181_v29 = vpop.eup %8180  ;;  %v6268_v23 = vadd.f32 1.0, %v8179_v24 }
 0x728   : > { %v6388_v10 = vmul.f32 %v8181_v29, %v13057_v33  ;;  %8190 = vpow2.f32 %v6933_v14  ;;  %v13102_v48 = vadd.f32 %v13041_v40, %v6060_v26 }
 0x729   : > { %v5894_v28 = vpop.f32.mrb[68].mxu0  ;;  %8192 = vrcp.f32 %v6268_v23 }
 0x72a   : > { %v8183_v42 = vpop.eup %8182  ;;  %v7149_v59 = vpack.c.bf16 %v6388_v10, %v6387_v52  ;;  %v6934_v19 = vmul.f32 -1.442695, %v13102_v48  ;;  %v6061_v62 = vmul.f32 %v13036_v4, %v5894_v28  ;;  %v7678_v3 = vpop.f32.mrb[69].mxu0 }
 0x72b   : > { %v6269_v54 = vadd.f32 1.0, %v8183_v42  ;;  %v8185_v33 = vpop.eup %8184 }
 0x72c   : > { %7263 = vst [vmem:[%s13089_s30 + $0x8] sm:$0xff] %v7149_v59   ;;  %8194 = vpow2.f32 %v6934_v19  ;;  %v13108_v2 = vadd.f32 %v13041_v40, %v6061_v62  ;;  %v6389_v57 = vmul.f32 %v8185_v33, %v13062_v25 }
 0x72d   : > { %8196 = vrcp.f32 %v6269_v54  ;;  %v5899_v37 = vpop.f32.mrb[70].mxu0 }
 0x72e   : > { %v8187_v35 = vpop.eup %8186  ;;  %v6935_v8 = vmul.f32 -1.442695, %v13108_v2  ;;  %v6062_v46 = vmul.f32 %v13036_v4, %v5899_v37  ;;  %v7681_v7 = vpop.f32.mrb[71].mxu0 }
 0x72f   : > { %v8189_v47 = vpop.eup %8188  ;;  %v6270_v55 = vadd.f32 1.0, %v8187_v35 }
 0x730   : > { %v6390_v61 = vmul.f32 %v8189_v47, %v13067_v13  ;;  %8198 = vpow2.f32 %v6935_v8  ;;  %v13115_v43 = vadd.f32 %v13041_v40, %v6062_v46 }
 0x731   : > { %v5904_v5 = vpop.f32.mrb[72].mxu0  ;;  %8200 = vrcp.f32 %v6270_v55 }
 0x732   : > { %v8191_v16 = vpop.eup %8190  ;;  %v7154_v39 = vpack.c.bf16 %v6390_v61, %v6389_v57  ;;  %v6936_v9 = vmul.f32 -1.442695, %v13115_v43  ;;  %v6063_v20 = vmul.f32 %v13036_v4, %v5904_v5  ;;  %v7684_v63 = vpop.f32.mrb[73].mxu0 }
 0x733   : > { %v6271_v32 = vadd.f32 1.0, %v8191_v16  ;;  %v8193_v13 = vpop.eup %8192 }
 0x734   : > { %7264 = vst [vmem:[%s13089_s30 + $0x10] sm:$0xff] %v7154_v39   ;;  %8202 = vpow2.f32 %v6936_v9  ;;  %v13121_v25 = vadd.f32 %v13041_v40, %v6063_v20  ;;  %v6391_v18 = vmul.f32 %v8193_v13, %v13072_v11 }
 0x735   : > { %8204 = vrcp.f32 %v6271_v32  ;;  %v5909_v50 = vpop.f32.mrb[74].mxu0 }
 0x736   : > { %v8195_v21 = vpop.eup %8194  ;;  %v6937_v58 = vmul.f32 -1.442695, %v13121_v25  ;;  %v6064_v31 = vmul.f32 %v13036_v4, %v5909_v50  ;;  %v7687_v6 = vpop.f32.mrb[75].mxu0 }
 0x737   : > { %v8197_v0 = vpop.eup %8196  ;;  %v6272_v53 = vadd.f32 1.0, %v8195_v21 }
 0x738   : > { %v6392_v34 = vmul.f32 %v8197_v0, %v13077_v17  ;;  %8206 = vpow2.f32 %v6937_v58  ;;  %v13128_v49 = vadd.f32 %v13041_v40, %v6064_v31 }
 0x739   : > { %v5914_v15 = vpop.f32.mrb[76].mxu0  ;;  %8208 = vrcp.f32 %v6272_v53 }
 0x73a   : > { %v8199_v44 = vpop.eup %8198  ;;  %v7159_v36 = vpack.c.bf16 %v6392_v34, %v6391_v18  ;;  %v6938_v38 = vmul.f32 -1.442695, %v13128_v49  ;;  %v6065_v12 = vmul.f32 %v13036_v4, %v5914_v15  ;;  %v7690_v45 = vpop.f32.mrb[77].mxu0 }
 0x73b   : > { %v6273_v41 = vadd.f32 1.0, %v8199_v44  ;;  %v8201_v17 = vpop.eup %8200 }
 0x73c   : > { %7265 = vst [vmem:[%s13089_s30 + $0x18] sm:$0xff] %v7159_v36   ;;  %8210 = vpow2.f32 %v6938_v38  ;;  %v13134_v11 = vadd.f32 %v13041_v40, %v6065_v12  ;;  %v6393_v56 = vmul.f32 %v8201_v17, %v13084_v30 }
 0x73d   : > { %8212 = vrcp.f32 %v6273_v41  ;;  %v5919_v60 = vpop.f32.mrb[78].mxu0 }
 0x73e   : > { %v8203_v27 = vpop.eup %8202  ;;  %v6939_v51 = vmul.f32 -1.442695, %v13134_v11  ;;  %v6066_v1 = vmul.f32 %v13036_v4, %v5919_v60  ;;  %v7693_v24 = vpop.f32.mrb[79].mxu0 }
 0x73f   : > { %v8205_v14 = vpop.eup %8204  ;;  %v6274_v26 = vadd.f32 1.0, %v8203_v27 }
 0x740   : > { %v6394_v29 = vmul.f32 %v8205_v14, %v13095_v22  ;;  %8214 = vpow2.f32 %v6939_v51  ;;  %v13141_v23 = vadd.f32 %v13041_v40, %v6066_v1 }
 0x741   : > { %v5924_v52 = vpop.f32.mrb[80].mxu0  ;;  %8216 = vrcp.f32 %v6274_v26 }
 0x742   : > { %v8207_v10 = vpop.eup %8206  ;;  %v7164_v28 = vpack.c.bf16 %v6394_v29, %v6393_v56  ;;  %v6940_v42 = vmul.f32 -1.442695, %v13141_v23  ;;  %v6067_v59 = vmul.f32 %v13036_v4, %v5924_v52  ;;  %v7696_v19 = vpop.f32.mrb[81].mxu0 }
 0x743   : > { %v6275_v62 = vadd.f32 1.0, %v8207_v10  ;;  %v8209_v22 = vpop.eup %8208 }
 0x744   : > { %7266 = vst [vmem:[%s13089_s30 + $0x20] sm:$0xff] %v7164_v28   ;;  %8218 = vpow2.f32 %v6940_v42  ;;  %v13147_v30 = vadd.f32 %v13041_v40, %v6067_v59  ;;  %v6395_v7 = vmul.f32 %v8209_v22, %v13102_v48 }
 0x745   : > { %8220 = vrcp.f32 %v6275_v62  ;;  %v5929_v3 = vpop.f32.mrb[82].mxu0 }
 0x746   : > { %v8211_v54 = vpop.eup %8210  ;;  %v6941_v33 = vmul.f32 -1.442695, %v13147_v30  ;;  %v6068_v37 = vmul.f32 %v13036_v4, %v5929_v3  ;;  %v7699_v35 = vpop.f32.mrb[83].mxu0 }
 0x747   : > { %v8213_v8 = vpop.eup %8212  ;;  %v6276_v46 = vadd.f32 1.0, %v8211_v54 }
 0x748   : > { %v6396_v47 = vmul.f32 %v8213_v8, %v13108_v2  ;;  %8222 = vpow2.f32 %v6941_v33  ;;  %v13154_v55 = vadd.f32 %v13041_v40, %v6068_v37 }
 0x749   : > { %v5934_v57 = vpop.f32.mrb[84].mxu0  ;;  %8224 = vrcp.f32 %v6276_v46 }
 0x74a   : > { %v8215_v61 = vpop.eup %8214  ;;  %v7169_v5 = vpack.c.bf16 %v6396_v47, %v6395_v7  ;;  %v6942_v16 = vmul.f32 -1.442695, %v13154_v55  ;;  %v6069_v39 = vmul.f32 %v13036_v4, %v5934_v57  ;;  %v7702_v9 = vpop.f32.mrb[85].mxu0 }
 0x74b   : > { %v6277_v20 = vadd.f32 1.0, %v8215_v61  ;;  %v8217_v2 = vpop.eup %8216 }
 0x74c   : > { %7267 = vst [vmem:[%s13089_s30 + $0x28] sm:$0xff] %v7169_v5   ;;  %8226 = vpow2.f32 %v6942_v16  ;;  %v13160_v48 = vadd.f32 %v13041_v40, %v6069_v39  ;;  %v6397_v6 = vmul.f32 %v8217_v2, %v13115_v43 }
 0x74d   : > { %8228 = vrcp.f32 %v6277_v20  ;;  %v5939_v63 = vpop.f32.mrb[86].mxu0 }
 0x74e   : > { %v8219_v32 = vpop.eup %8218  ;;  %v6943_v13 = vmul.f32 -1.442695, %v13160_v48  ;;  %v6070_v50 = vmul.f32 %v13036_v4, %v5939_v63  ;;  %v7705_v21 = vpop.f32.mrb[87].mxu0 }
 0x74f   : > { %v8221_v58 = vpop.eup %8220  ;;  %v6278_v31 = vadd.f32 1.0, %v8219_v32 }
 0x750   : > { %v6398_v0 = vmul.f32 %v8221_v58, %v13121_v25  ;;  %8230 = vpow2.f32 %v6943_v13  ;;  %v13167_v53 = vadd.f32 %v13041_v40, %v6070_v50 }
 0x751   : > { %v5944_v18 = vpop.f32.mrb[88].mxu0  ;;  %8232 = vrcp.f32 %v6278_v31 }
 0x752   : > { %v8223_v34 = vpop.eup %8222  ;;  %v7174_v15 = vpack.c.bf16 %v6398_v0, %v6397_v6  ;;  %v6944_v44 = vmul.f32 -1.442695, %v13167_v53  ;;  %v6071_v36 = vmul.f32 %v13036_v4, %v5944_v18  ;;  %v7708_v38 = vpop.f32.mrb[89].mxu0 }
 0x753   : > { %v6279_v12 = vadd.f32 1.0, %v8223_v34  ;;  %v8225_v25 = vpop.eup %8224 }
 0x754   : > { %7268 = vst [vmem:[%s13089_s30 + $0x30] sm:$0xff] %v7174_v15   ;;  %8234 = vpow2.f32 %v6944_v44  ;;  %v13173_v43 = vadd.f32 %v13041_v40, %v6071_v36  ;;  %v6399_v24 = vmul.f32 %v8225_v25, %v13128_v49 }
 0x755   : > { %8236 = vrcp.f32 %v6279_v12  ;;  %v5949_v45 = vpop.f32.mrb[90].mxu0 }
 0x756   : > { %v8227_v41 = vpop.eup %8226  ;;  %v6945_v17 = vmul.f32 -1.442695, %v13173_v43  ;;  %v6072_v60 = vmul.f32 %v13036_v4, %v5949_v45  ;;  %v7711_v27 = vpop.f32.mrb[91].mxu0 }
 0x757   : > { %v8229_v51 = vpop.eup %8228  ;;  %v6280_v1 = vadd.f32 1.0, %v8227_v41 }
 0x758   : > { %v6400_v14 = vmul.f32 %v8229_v51, %v13134_v11  ;;  %8238 = vpow2.f32 %v6945_v17  ;;  %v13180_v26 = vadd.f32 %v13041_v40, %v6072_v60 }
 0x759   : > { %v5954_v56 = vpop.f32.mrb[92].mxu0  ;;  %8240 = vrcp.f32 %v6280_v1 }
 0x75a   : > { %v8231_v29 = vpop.eup %8230  ;;  %v7179_v52 = vpack.c.bf16 %v6400_v14, %v6399_v24  ;;  %v6946_v10 = vmul.f32 -1.442695, %v13180_v26  ;;  %v6073_v28 = vmul.f32 %v13036_v4, %v5954_v56  ;;  %v7714_v42 = vpop.f32.mrb[93].mxu0 }
 0x75b   : > { %v6281_v59 = vadd.f32 1.0, %v8231_v29  ;;  %v8233_v11 = vpop.eup %8232 }
 0x75c   : > { %7269 = vst [vmem:[%s13089_s30 + $0x38] sm:$0xff] %v7179_v52   ;;  %8242 = vpow2.f32 %v6946_v10  ;;  %v13186_v49 = vadd.f32 %v13041_v40, %v6073_v28  ;;  %v6401_v35 = vmul.f32 %v8233_v11, %v13141_v23 }
 0x75d   : > { %8244 = vrcp.f32 %v6281_v59  ;;  %v5959_v19 = vpop.f32.mrb[94].mxu0 }
 0x75e   : > { %v8235_v62 = vpop.eup %8234  ;;  %v6947_v22 = vmul.f32 -1.442695, %v13186_v49  ;;  %v6074_v3 = vmul.f32 %v13036_v4, %v5959_v19  ;;  %v7717_v54 = vpop.f32.mrb[95].mxu0 }
 0x75f   : > { %v8237_v33 = vpop.eup %8236  ;;  %v6282_v37 = vadd.f32 1.0, %v8235_v62 }
 0x760   : > { %v6402_v8 = vmul.f32 %v8237_v33, %v13147_v30  ;;  %8246 = vpow2.f32 %v6947_v22  ;;  %v13193_v46 = vadd.f32 %v13041_v40, %v6074_v3 }
 0x761   : > { %v5964_v7 = vpop.f32.mrb[96].mxu0  ;;  %8248 = vrcp.f32 %v6282_v37 }
 0x762   : > { %v8239_v47 = vpop.eup %8238  ;;  %v7184_v57 = vpack.c.bf16 %v6402_v8, %v6401_v35  ;;  %v6948_v61 = vmul.f32 -1.442695, %v13193_v46  ;;  %v6075_v5 = vmul.f32 %v13036_v4, %v5964_v7  ;;  %v7720_v16 = vpop.f32.mrb[97].mxu0 }
 0x763   : > { %v6283_v39 = vadd.f32 1.0, %v8239_v47  ;;  %v8241_v30 = vpop.eup %8240 }
 0x764   : > { %7270 = vst [vmem:[%s13089_s30 + $0x40] sm:$0xff] %v7184_v57   ;;  %8250 = vpow2.f32 %v6948_v61  ;;  %v13199_v23 = vadd.f32 %v13041_v40, %v6075_v5  ;;  %v6403_v21 = vmul.f32 %v8241_v30, %v13154_v55 }
 0x765   : > { %8252 = vrcp.f32 %v6283_v39  ;;  %v5969_v9 = vpop.f32.mrb[98].mxu0 }
 0x766   : > { %v8243_v20 = vpop.eup %8242  ;;  %v6949_v2 = vmul.f32 -1.442695, %v13199_v23  ;;  %v6076_v63 = vmul.f32 %v13036_v4, %v5969_v9  ;;  %v7723_v32 = vpop.f32.mrb[99].mxu0 }
 0x767   : > { %v8245_v13 = vpop.eup %8244  ;;  %v6284_v50 = vadd.f32 1.0, %v8243_v20 }
 0x768   : > { %v6404_v58 = vmul.f32 %v8245_v13, %v13160_v48  ;;  %8254 = vpow2.f32 %v6949_v2  ;;  %v13206_v31 = vadd.f32 %v13041_v40, %v6076_v63 }
 0x769   : > { %v5974_v6 = vpop.f32.mrb[100].mxu0  ;;  %8256 = vrcp.f32 %v6284_v50 }
 0x76a   : > { %v8247_v0 = vpop.eup %8246  ;;  %v7189_v18 = vpack.c.bf16 %v6404_v58, %v6403_v21  ;;  %v6950_v34 = vmul.f32 -1.442695, %v13206_v31  ;;  %v6077_v15 = vmul.f32 %v13036_v4, %v5974_v6  ;;  %v7726_v44 = vpop.f32.mrb[101].mxu0 }
 0x76b   : > { %v6285_v36 = vadd.f32 1.0, %v8247_v0  ;;  %v8249_v48 = vpop.eup %8248 }
 0x76c   : > { %7271 = vst [vmem:[%s13089_s30 + $0x48] sm:$0xff] %v7189_v18   ;;  %8258 = vpow2.f32 %v6950_v34  ;;  %v13212_v55 = vadd.f32 %v13041_v40, %v6077_v15  ;;  %v6405_v27 = vmul.f32 %v8249_v48, %v13167_v53 }
 0x76d   : > { %8260 = vrcp.f32 %v6285_v36  ;;  %v5979_v38 = vpop.f32.mrb[102].mxu0 }
 0x76e   : > { %v8251_v12 = vpop.eup %8250  ;;  %v6951_v25 = vmul.f32 -1.442695, %v13212_v55  ;;  %v6078_v45 = vmul.f32 %v13036_v4, %v5979_v38  ;;  %v7729_v41 = vpop.f32.mrb[103].mxu0 }
 0x76f   : > { %v8253_v17 = vpop.eup %8252  ;;  %v6286_v60 = vadd.f32 1.0, %v8251_v12 }
 0x770   : > { %v6406_v51 = vmul.f32 %v8253_v17, %v13173_v43  ;;  %8262 = vpow2.f32 %v6951_v25  ;;  %v13219_v1 = vadd.f32 %v13041_v40, %v6078_v45 }
 0x771   : > { %v5984_v24 = vpop.f32.mrb[104].mxu0  ;;  %8264 = vrcp.f32 %v6286_v60 }
 0x772   : > { %v8255_v14 = vpop.eup %8254  ;;  %v7194_v56 = vpack.c.bf16 %v6406_v51, %v6405_v27  ;;  %v6952_v29 = vmul.f32 -1.442695, %v13219_v1  ;;  %v6079_v52 = vmul.f32 %v13036_v4, %v5984_v24  ;;  %v7732_v10 = vpop.f32.mrb[105].mxu0 }
 0x773   : > { %v6287_v28 = vadd.f32 1.0, %v8255_v14  ;;  %v8257_v43 = vpop.eup %8256 }
 0x774   : > { %7272 = vst [vmem:[%s13089_s30 + $0x50] sm:$0xff] %v7194_v56   ;;  %8266 = vpow2.f32 %v6952_v29  ;;  %v13225_v53 = vadd.f32 %v13041_v40, %v6079_v52  ;;  %v6407_v54 = vmul.f32 %v8257_v43, %v13180_v26 }
 0x775   : > { %8268 = vrcp.f32 %v6287_v28  ;;  %v5989_v42 = vpop.f32.mrb[86].mxu1 }
 0x776   : > { %v8259_v59 = vpop.eup %8258  ;;  %v6953_v11 = vmul.f32 -1.442695, %v13225_v53  ;;  %v6080_v19 = vmul.f32 %v13036_v4, %v5989_v42  ;;  %v7735_v62 = vpop.f32.mrb[87].mxu1 }
 0x777   : > { %v8261_v22 = vpop.eup %8260  ;;  %v6288_v3 = vadd.f32 1.0, %v8259_v59 }
 0x778   : > { %v6408_v33 = vmul.f32 %v8261_v22, %v13186_v49  ;;  %8270 = vpow2.f32 %v6953_v11  ;;  %v13232_v37 = vadd.f32 %v13041_v40, %v6080_v19 }
 0x779   : > { %v5994_v35 = vpop.f32.mrb[88].mxu1  ;;  %8272 = vrcp.f32 %v6288_v3 }
 0x77a   : > { %v8263_v8 = vpop.eup %8262  ;;  %v7199_v7 = vpack.c.bf16 %v6408_v33, %v6407_v54  ;;  %v6954_v47 = vmul.f32 -1.442695, %v13232_v37  ;;  %v6081_v57 = vmul.f32 %v13036_v4, %v5994_v35  ;;  %v7738_v61 = vpop.f32.mrb[89].mxu1 }
 0x77b   : > { %v6289_v5 = vadd.f32 1.0, %v8263_v8  ;;  %v8265_v49 = vpop.eup %8264 }
 0x77c   : > { %7273 = vst [vmem:[%s13089_s30 + $0x58] sm:$0xff] %v7199_v7   ;;  %8274 = vpow2.f32 %v6954_v47  ;;  %v13238_v26 = vadd.f32 %v13041_v40, %v6081_v57  ;;  %v6409_v32 = vmul.f32 %v8265_v49, %v13193_v46 }
 0x77d   : > { %8276 = vrcp.f32 %v6289_v5  ;;  %v5999_v16 = vpop.f32.mrb[90].mxu1 }
 0x77e   : > { %v8267_v39 = vpop.eup %8266  ;;  %v6955_v30 = vmul.f32 -1.442695, %v13238_v26  ;;  %v6082_v9 = vmul.f32 %v13036_v4, %v5999_v16  ;;  %v7741_v20 = vpop.f32.mrb[91].mxu1 }
 0x77f   : > { %v8269_v2 = vpop.eup %8268  ;;  %v6290_v63 = vadd.f32 1.0, %v8267_v39 }
 0x780   : > { %v6410_v13 = vmul.f32 %v8269_v2, %v13199_v23  ;;  %8278 = vpow2.f32 %v6955_v30  ;;  %v13245_v50 = vadd.f32 %v13041_v40, %v6082_v9 }
 0x781   : > { %v6004_v21 = vpop.f32.mrb[92].mxu1  ;;  %8280 = vrcp.f32 %v6290_v63 }
 0x782   : > { %v8271_v58 = vpop.eup %8270  ;;  %v7204_v6 = vpack.c.bf16 %v6410_v13, %v6409_v32  ;;  %v6956_v0 = vmul.f32 -1.442695, %v13245_v50  ;;  %v6083_v18 = vmul.f32 %v13036_v4, %v6004_v21  ;;  %v7744_v34 = vpop.f32.mrb[93].mxu1 }
 0x783   : > { %v6291_v15 = vadd.f32 1.0, %v8271_v58  ;;  %v8273_v23 = vpop.eup %8272 }
 0x784   : > { %7274 = vst [vmem:[%s13089_s30 + $0x60] sm:$0xff] %v7204_v6   ;;  %8282 = vpow2.f32 %v6956_v0  ;;  %v13251_v46 = vadd.f32 %v13041_v40, %v6083_v18  ;;  %v6411_v41 = vmul.f32 %v8273_v23, %v13206_v31 }
 0x785   : > { %8284 = vrcp.f32 %v6291_v15  ;;  %v6009_v44 = vpop.f32.mrb[94].mxu1 }
 0x786   : > { %v8275_v36 = vpop.eup %8274  ;;  %v6957_v48 = vmul.f32 -1.442695, %v13251_v46  ;;  %v6084_v38 = vmul.f32 %v13036_v4, %v6009_v44  ;;  %v7747_v12 = vpop.f32.mrb[95].mxu1 }
 0x787   : > { %v8277_v25 = vpop.eup %8276  ;;  %v6292_v45 = vadd.f32 1.0, %v8275_v36 }
 0x788   : > { %v6412_v17 = vmul.f32 %v8277_v25, %v13212_v55  ;;  %8286 = vpow2.f32 %v6957_v48  ;;  %v13258_v60 = vadd.f32 %v13041_v40, %v6084_v38 }
 0x789   : > { %v6014_v27 = vpop.f32.mrb[96].mxu1  ;;  %8288 = vrcp.f32 %v6292_v45 }
 0x78a   : > { %v8279_v51 = vpop.eup %8278  ;;  %v7209_v24 = vpack.c.bf16 %v6412_v17, %v6411_v41  ;;  %v6958_v14 = vmul.f32 -1.442695, %v13258_v60  ;;  %v6085_v56 = vmul.f32 %v13036_v4, %v6014_v27  ;;  %v7750_v29 = vpop.f32.mrb[97].mxu1 }
 0x78b   : > { %v6293_v52 = vadd.f32 1.0, %v8279_v51  ;;  %v8281_v55 = vpop.eup %8280 }
 0x78c   : > { %7275 = vst [vmem:[%s13089_s30 + $0x68] sm:$0xff] %v7209_v24   ;;  %8290 = vpow2.f32 %v6958_v14  ;;  %v13264_v31 = vadd.f32 %v13041_v40, %v6085_v56  ;;  %v6413_v62 = vmul.f32 %v8281_v55, %v13219_v1 }
 0x78d   : > { %8292 = vrcp.f32 %v6293_v52  ;;  %v6019_v10 = vpop.f32.mrb[98].mxu1 }
 0x78e   : > { %v8283_v28 = vpop.eup %8282  ;;  %v6959_v43 = vmul.f32 -1.442695, %v13264_v31  ;;  %v6086_v42 = vmul.f32 %v13036_v4, %v6019_v10  ;;  %v7753_v59 = vpop.f32.mrb[99].mxu1 }
 0x78f   : > { %v8285_v11 = vpop.eup %8284  ;;  %v6294_v19 = vadd.f32 1.0, %v8283_v28 }
 0x790   : > { %v6414_v22 = vmul.f32 %v8285_v11, %v13225_v53  ;;  %8294 = vpow2.f32 %v6959_v43  ;;  %v13271_v3 = vadd.f32 %v13041_v40, %v6086_v42 }
 0x791   : > { %v6024_v54 = vpop.f32.mrb[100].mxu1  ;;  %8296 = vrcp.f32 %v6294_v19 }
 0x792   : > { %v8287_v33 = vpop.eup %8286  ;;  %v7214_v35 = vpack.c.bf16 %v6414_v22, %v6413_v62  ;;  %v6960_v8 = vmul.f32 -1.442695, %v13271_v3  ;;  %v6087_v7 = vmul.f32 %v13036_v4, %v6024_v54  ;;  %v7756_v47 = vpop.f32.mrb[101].mxu1 }
 0x793   : > { %v6295_v57 = vadd.f32 1.0, %v8287_v33  ;;  %v8289_v53 = vpop.eup %8288 }
 0x794   : > { %7276 = vst [vmem:[%s13089_s30 + $0x70] sm:$0xff] %v7214_v35   ;;  %8298 = vpow2.f32 %v6960_v8  ;;  %v13277_v1 = vadd.f32 %v13041_v40, %v6087_v7  ;;  %v6415_v20 = vmul.f32 %v8289_v53, %v13232_v37 }
 0x795   : > { %8300 = vrcp.f32 %v6295_v57  ;;  %v6029_v61 = vpop.f32.mrb[102].mxu1 }
 0x796   : > { %v8291_v5 = vpop.eup %8290  ;;  %v6961_v49 = vmul.f32 -1.442695, %v13277_v1  ;;  %v6088_v16 = vmul.f32 %v13036_v4, %v6029_v61  ;;  %v7759_v39 = vpop.f32.mrb[103].mxu1 }
 0x797   : > { %v8293_v30 = vpop.eup %8292  ;;  %v6296_v9 = vadd.f32 1.0, %v8291_v5 }
 0x798   : > { %v6416_v2 = vmul.f32 %v8293_v30, %v13238_v26  ;;  %8302 = vpow2.f32 %v6961_v49  ;;  %v6136_v63 = vadd.f32 %v13041_v40, %v6088_v16 }
 0x799   : > { %v6034_v32 = vpop.f32.mrb[104].mxu1  ;;  %8304 = vrcp.f32 %v6296_v9 }
 0x79a   : > { %v8295_v13 = vpop.eup %8294  ;;  %v7219_v21 = vpack.c.bf16 %v6416_v2, %v6415_v20  ;;  %v6962_v58 = vmul.f32 -1.442695, %v6136_v63  ;;  %v6089_v6 = vmul.f32 %v13036_v4, %v6034_v32  ;;  %v7762_v0 = vpop.f32.mrb[105].mxu1 }
 0x79b   : > { %v6297_v18 = vadd.f32 1.0, %v8295_v13  ;;  %v8297_v15 = vpop.eup %8296 }
 0x79c   : > { %7277 = vst [vmem:[%s13089_s30 + $0x78] sm:$0xff] %v7219_v21   ;;  %8306 = vpow2.f32 %v6962_v58  ;;  %v6137_v34 = vadd.f32 %v13041_v40, %v6089_v6  ;;  %v6417_v12 = vmul.f32 %v8297_v15, %v13245_v50 }
 0x79d   : > { %8308 = vrcp.f32 %v6297_v18  ;;  %v6039_v37 = vpop.f32.mrb[106].mxu1 }
 0x79e   : > { %v8299_v26 = vpop.eup %8298  ;;  %v6963_v23 = vmul.f32 -1.442695, %v6137_v34  ;;  %v6090_v44 = vmul.f32 %v13036_v4, %v6039_v37  ;;  %v7765_v36 = vpop.f32.mrb[107].mxu1 }
 0x79f   : > { %v8301_v48 = vpop.eup %8300  ;;  %v6298_v38 = vadd.f32 1.0, %v8299_v26 }
 0x7a0   : > { %v6418_v25 = vmul.f32 %v8301_v48, %v13251_v46  ;;  %8310 = vpow2.f32 %v6963_v23  ;;  %v6138_v45 = vadd.f32 %v13041_v40, %v6090_v44 }
 0x7a1   : > { %8312 = vrcp.f32 %v6298_v38 }
 0x7a2   : > { %v8303_v41 = vpop.eup %8302  ;;  %v7224_v17 = vpack.c.bf16 %v6418_v25, %v6417_v12  ;;  %v6964_v27 = vmul.f32 -1.442695, %v6138_v45 }
 0x7a3   : > { %v6299_v51 = vadd.f32 1.0, %v8303_v41  ;;  %v8305_v24 = vpop.eup %8304 }
 0x7a4   : > { %7278 = vst [vmem:[%s13089_s30 + $0x80] sm:$0xff] %v7224_v17   ;;  %8314 = vpow2.f32 %v6964_v27  ;;  %v6419_v50 = vmul.f32 %v8305_v24, %v13258_v60 }
 0x7a5   : > { %8316 = vrcp.f32 %v6299_v51 }
 0x7a6   : > { %v8307_v4 = vpop.eup %8306 }
 0x7a7   : > { %v8309_v14 = vpop.eup %8308  ;;  %v6300_v56 = vadd.f32 1.0, %v8307_v4 }
 0x7a8   : > { %v6420_v46 = vmul.f32 %v8309_v14, %v13264_v31 }
 0x7a9   : > { %8318 = vrcp.f32 %v6300_v56 }
 0x7aa   : > { %v8311_v29 = vpop.eup %8310  ;;  %v7229_v40 = vpack.c.bf16 %v6420_v46, %v6419_v50 }
 0x7ab   : > { %v6301_v52 = vadd.f32 1.0, %v8311_v29  ;;  %v8313_v55 = vpop.eup %8312 }
 0x7ac   : > { %7279 = vst [vmem:[%s13089_s30 + $0x88] sm:$0xff] %v7229_v40   ;;  %v6421_v42 = vmul.f32 %v8313_v55, %v13271_v3 }
 0x7ad   : > { %8320 = vrcp.f32 %v6301_v52 }
 0x7ae   : > { %v8315_v10 = vpop.eup %8314 }
 0x7af   : > { %v8317_v28 = vpop.eup %8316  ;;  %v6302_v43 = vadd.f32 1.0, %v8315_v10 }
 0x7b0   : > { %v6422_v59 = vmul.f32 %v8317_v28, %v13277_v1 }
 0x7b1   : > { %8322 = vrcp.f32 %v6302_v43 }
 0x7b2   : > { %v7234_v60 = vpack.c.bf16 %v6422_v59, %v6421_v42 }
 0x7b3   : > { %v8319_v31 = vpop.eup %8318 }
 0x7b4   : > { %7280 = vst [vmem:[%s13089_s30 + $0x90] sm:$0xff] %v7234_v60   ;;  %v6423_v19 = vmul.f32 %v8319_v31, %v6136_v63 }
 0x7b7   : > { %v8321_v11 = vpop.eup %8320 }
 0x7b8   : > { %v6424_v62 = vmul.f32 %v8321_v11, %v6137_v34 }
 0x7ba   : > { %v7239_v22 = vpack.c.bf16 %v6424_v62, %v6423_v19 }
 0x7bb   : > { %v8323_v54 = vpop.eup %8322 }
 0x7bc   : > { %7281 = vst [vmem:[%s13089_s30 + $0x98] sm:$0xff] %v7239_v22   ;;  %v6425_v33 = vmul.f32 %v8323_v54, %v6138_v45 }
 0x7be   : > { %v7048_v35 = vpack.c.bf16 %v6425_v33, %v6425_v33 }
 0x7c0   : > { %6631 = vst [vmem:[%s13089_s30 + $0xa0] sm:$0x3] %v7048_v35 }
 0x7c1 PF: > { %s29_s0 = sadd.s32 1, %s8342_s0  }
 0x7c2   : > { %p26_p4 = scmp.ge.s32.totalorder %s29_s0, 4  }
 0x7c4   :  { %28 = sbr.rel (!%p26_p4) target bundleno = 5 (0x5), region = 126 }

</bundles_post_ra>
